<compile_context>
chip_gen: v7x
topology: tpu7x:2x2x1
jax: 0.10.0
libtpu: 0.0.40
codegen_flags: <defaults>
</compile_context>

<pallas_src>
import jax
import jax.numpy as jnp
from jax.experimental import pallas as pl
from jax.experimental.pallas import tpu as pltpu


def _round_up(x, m):
    return ((x + m - 1) // m) * m


# ----------------------------------------------------------------------------
# Fused Pallas kernels
# ----------------------------------------------------------------------------
def _make_conv_kernel(*, apply_bn, apply_act, eps, negative_slope):
    """Kernel: out = patches @ weight [+ bias] [-> BatchNorm(batch stats)]
    [-> LeakyReLU].  All operands resident in VMEM; f32 accumulation on the
    MXU; output stored in the (possibly bf16) output dtype."""
    if apply_bn:
        def kernel(p_ref, w_ref, g_ref, be_ref, o_ref):
            acc = jnp.dot(p_ref[...], w_ref[...],
                          preferred_element_type=jnp.float32)
            # Training-mode batch stats (biased variance), per channel.
            # Conv bias is omitted upstream: it cancels exactly in (x - mean).
            mean = jnp.mean(acc, axis=0, keepdims=True)
            var = jnp.mean(jnp.square(acc - mean), axis=0, keepdims=True)
            y = (acc - mean) * jax.lax.rsqrt(var + eps)
            y = y * g_ref[...] + be_ref[...]
            if apply_act:
                y = jnp.where(y >= 0, y, negative_slope * y)
            o_ref[...] = y.astype(o_ref.dtype)
    else:
        def kernel(p_ref, w_ref, b_ref, o_ref):
            acc = jnp.dot(p_ref[...], w_ref[...],
                          preferred_element_type=jnp.float32)
            y = acc + b_ref[...]
            if apply_act:
                y = jnp.where(y >= 0, y, negative_slope * y)
            o_ref[...] = y.astype(o_ref.dtype)
    return kernel


def _final_conv_kernel(p_ref, w_ref, b_ref, o_ref):
    """OC == 1 conv as a VPU matvec: elementwise multiply + lane reduction.
    Avoids a degenerate (K, 1) MXU matmul and any OC padding of the weight in
    HBM (the masked 8x1 output store is negligible)."""
    prod = p_ref[...].astype(jnp.float32) * w_ref[...].astype(jnp.float32)
    o_ref[...] = jnp.sum(prod, axis=1, keepdims=True) + b_ref[...]


def conv_bn_lrelu_pallas(patches, wmat, vecs, *, apply_bn, apply_act,
                         out_dtype, eps=1e-5, negative_slope=0.2):
    """patches: (M, K) bf16 ; wmat: (K, OC) bf16 ; vecs: per-channel (1, OC)
    f32 vectors (bias, or gamma/beta).  Returns (M, OC) in out_dtype."""
    M, K = patches.shape
    K2, OC = wmat.shape
    assert K == K2
    # Parallel OC axis for big layers: on v7x each TensorCore fetches half the
    # weight; on v5e/v6e it is a cheap 2-step sequential loop.  BN statistics
    # are per-channel, so splitting OC keeps the fused epilogue exact.
    n_oc = 2 if OC >= 256 else 1
    toc = OC // n_oc

    kernel = _make_conv_kernel(apply_bn=apply_bn, apply_act=apply_act,
                               eps=eps, negative_slope=negative_slope)
    vec_specs = [pl.BlockSpec((1, toc), lambda j: (0, j)) for _ in vecs]
    return pl.pallas_call(
        kernel,
        out_shape=jax.ShapeDtypeStruct((M, OC), out_dtype),
        grid_spec=pltpu.PrefetchScalarGridSpec(
            num_scalar_prefetch=0,
            grid=(n_oc,),
            in_specs=[pl.BlockSpec((M, K), lambda j: (0, 0)),
                      pl.BlockSpec((K, toc), lambda j: (0, j))] + vec_specs,
            out_specs=pl.BlockSpec((M, toc), lambda j: (0, j)),
        ),
        compiler_params=pltpu.CompilerParams(
            dimension_semantics=("parallel",)),
    )(patches, wmat, *vecs)


def final_conv_pallas(patches, w_row, bias11):
    """patches: (M, K) bf16 ; w_row: (1, K) bf16 ; bias11: (1, 1) f32."""
    M, _ = patches.shape
    return pl.pallas_call(
        _final_conv_kernel,
        out_shape=jax.ShapeDtypeStruct((M, 1), jnp.float32),
    )(patches, w_row, bias11)


# ----------------------------------------------------------------------------
# im2col glue in NHWC (channels-last).  Flattened K order is (kh, kw, ic);
# packed weights match.  This is cheap XLA slicing that fuses into ~1 op.
# ----------------------------------------------------------------------------
def im2col_nhwc(x, kh, kw, stride, pad, c_extra=0):
    N, H, W, C = x.shape
    xp = jnp.pad(x, ((0, 0), (pad, pad), (pad, pad), (0, c_extra)))
    Cp = C + c_extra
    OH = (H + 2 * pad - kh) // stride + 1
    OW = (W + 2 * pad - kw) // stride + 1
    taps = [xp[:, i:i + stride * OH:stride, j:j + stride * OW:stride, :]
            for i in range(kh) for j in range(kw)]
    cols = jnp.stack(taps, axis=3)                     # (N, OH, OW, KH*KW, Cp)
    return cols.reshape(N * OH * OW, kh * kw * Cp), OH, OW


# ----------------------------------------------------------------------------
# Parameter init (PyTorch Conv2d/BatchNorm2d defaults) and one-time packing.
# ----------------------------------------------------------------------------
def init_params(key, img_channels):
    def conv_init(k, oc, ic, ks):
        fan_in = ic * ks * ks
        bound = 1.0 / jnp.sqrt(jnp.float32(fan_in))
        kw_, kb_ = jax.random.split(k)
        w = jax.random.uniform(kw_, (oc, ic, ks, ks), jnp.float32, -bound, bound)
        b = jax.random.uniform(kb_, (oc,), jnp.float32, -bound, bound)
        return w, b

    ks = jax.random.split(key, 5)
    p = {}
    p["w1"], p["b1"] = conv_init(ks[0], 64, img_channels, 4)
    p["w2"], p["b2"] = conv_init(ks[1], 128, 64, 4)
    p["w3"], p["b3"] = conv_init(ks[2], 256, 128, 4)
    p["w4"], p["b4"] = conv_init(ks[3], 512, 256, 4)
    p["w5"], p["b5"] = conv_init(ks[4], 1, 512, 4)
    for name, c in (("2", 128), ("3", 256), ("4", 512)):
        p["g" + name] = jnp.ones((c,), jnp.float32)    # BatchNorm2d defaults
        p["be" + name] = jnp.zeros((c,), jnp.float32)
    return p


def pack_params(p):
    """One-time packing (outside jit): (OC,IC,KH,KW) f32 -> (KH*KW*ICp, OC)
    bf16 matmul weights; per-channel vectors as (1, OC) f32.  Conv bias is
    dropped for BN layers (exactly cancelled by the BN mean subtraction)."""
    def pack_w(w, ic_pad=None):
        OC, IC, KH, KW = w.shape
        wt = jnp.transpose(w, (2, 3, 1, 0))            # (KH, KW, IC, OC)
        if ic_pad is not None and ic_pad > IC:
            wt = jnp.pad(wt, ((0, 0), (0, 0), (0, ic_pad - IC), (0, 0)))
        return wt.reshape(-1, OC).astype(jnp.bfloat16)

    packed = []
    # Layer 1: conv + LReLU.  Pad IC 3 -> 8 so K = 16*8 = 128 (lane aligned).
    ic1_pad = _round_up(p["w1"].shape[1], 8)
    packed.append({"w": pack_w(p["w1"], ic1_pad),
                   "b": p["b1"].reshape(1, -1).astype(jnp.float32)})
    # Layers 2-4: conv + BN + LReLU (bias omitted, gamma/beta kept).
    for i in ("2", "3", "4"):
        packed.append({"w": pack_w(p["w" + i]),
                       "g": p["g" + i].reshape(1, -1).astype(jnp.float32),
                       "be": p["be" + i].reshape(1, -1).astype(jnp.float32)})
    # Layer 5 (self.fc): OC == 1 -> row-vector weight for the VPU matvec.
    packed.append({"w": pack_w(p["w5"]).reshape(1, -1),
                   "b": p["b5"].reshape(1, 1).astype(jnp.float32)})
    return tuple(packed)


# ----------------------------------------------------------------------------
# Discriminator: Conv(k4 s2 p1)+LReLU -> 3x [Conv+BN+LReLU] -> Conv(512->1)
# ----------------------------------------------------------------------------
_LAYER_CFG = ((4, 2, 1), (4, 2, 1), (4, 2, 1), (4, 1, 1), (4, 1, 1))  # (k,s,p)


def discriminator_forward(packed, x_nchw):
    x = jnp.transpose(x_nchw, (0, 2, 3, 1)).astype(jnp.bfloat16)  # NCHW->NHWC once
    n_layers = len(packed)
    for li, (layer, (ks, stride, padd)) in enumerate(zip(packed, _LAYER_CFG)):
        is_final = li == n_layers - 1
        N, _, _, C = x.shape
        Kdim = layer["w"].shape[1] if is_final else layer["w"].shape[0]
        c_extra = Kdim // (ks * ks) - C                # zero channel pad (layer 1 only)
        patches, OH, OW = im2col_nhwc(x, ks, ks, stride, padd, c_extra)
        if is_final:
            y = final_conv_pallas(patches, layer["w"], layer["b"])
            oc = 1
        else:
            apply_bn = "g" in layer
            vecs = (layer["g"], layer["be"]) if apply_bn else (layer["b"],)
            y = conv_bn_lrelu_pallas(patches, layer["w"], vecs,
                                     apply_bn=apply_bn, apply_act=True,
                                     out_dtype=jnp.bfloat16)
            oc = layer["w"].shape[1]
        x = y.reshape(N, OH, OW, oc)
    return jnp.transpose(x, (0, 3, 1, 2))              # NHWC -> NCHW (f32 logits)


if __name__ == "__main__":
    key = jax.random.PRNGKey(0)
    k_param, k_x = jax.random.split(key)

    img_channels = 3
    batch, spatial = 2, 32
    raw_params = init_params(k_param, img_channels)
    packed = pack_params(raw_params)                   # packed once, outside jit
    x = jax.random.normal(k_x, (batch, img_channels, spatial, spatial),
                          jnp.float32)

    fwd = jax.jit(discriminator_forward)
    out = jax.block_until_ready(fwd(packed, x))

    # 32 -> 16 -> 8 -> 4 -> (s1) 3 -> (s1) 2 ; channels 1
    assert out.shape == (batch, 1, 2, 2), out.shape
    assert jnp.isfinite(out).all()
    print("KERNEL_OK")
</pallas_src>

<mosaic_0001>
module attributes {stable_mosaic.version = 11 : i64} {
  func.func @kernel(%arg0: i32, %arg1: memref<512x128xbf16, #tpu.memory_space<vmem>>, %arg2: memref<128x64xbf16, #tpu.memory_space<vmem>>, %arg3: memref<1x64xf32, #tpu.memory_space<vmem>>, %arg4: memref<512x64xbf16, #tpu.memory_space<vmem>>) attributes {dimension_semantics = [#tpu.dimension_semantics<parallel>], iteration_bounds = array<i64: 1>, scalar_prefetch = 0 : i64, scratch_operands = 0 : i64, tpu.core_type = #tpu.core_type<tc>, window_params = [{pipeline_mode = #tpu.pipeline_mode<synchronous>, transform_indices = @transform_0, window_bounds = array<i64: 512, 128>}, {transform_indices = @transform_1, window_bounds = array<i64: 128, 64>}, {transform_indices = @transform_2, window_bounds = array<i64: 1, 64>}, {transform_indices = @transform_3, window_bounds = array<i64: 512, 64>}]} {
    %c0 = arith.constant 0 : index
    %c0_0 = arith.constant 0 : index
    %0 = vector.load %arg1[%c0, %c0_0] : memref<512x128xbf16, #tpu.memory_space<vmem>>, vector<512x128xbf16>
    %c0_1 = arith.constant 0 : index
    %c0_2 = arith.constant 0 : index
    %1 = vector.load %arg2[%c0_1, %c0_2] : memref<128x64xbf16, #tpu.memory_space<vmem>>, vector<128x64xbf16>
    %cst = arith.constant dense<0.000000e+00> : vector<512x64xf32>
    %2 = tpu.matmul %0, %1, %cst {dimension_numbers = #tpu.dot_dimension_numbers<[1], [0], [0], [1], [0, 0, 1, 1], [], []>} : vector<512x128xbf16>, vector<128x64xbf16>, vector<512x64xf32> -> vector<512x64xf32>
    %c0_3 = arith.constant 0 : index
    %c0_4 = arith.constant 0 : index
    %3 = vector.load %arg3[%c0_3, %c0_4] : memref<1x64xf32, #tpu.memory_space<vmem>>, vector<1x64xf32>
    %4 = vector.broadcast %3 : vector<1x64xf32> to vector<512x64xf32>
    %5 = arith.addf %2, %4 : vector<512x64xf32>
    %cst_5 = arith.constant 0.000000e+00 : f32
    %6 = vector.broadcast %cst_5 : f32 to vector<512x64xf32>
    %7 = arith.cmpf oge, %5, %6 : vector<512x64xf32>
    %cst_6 = arith.constant 2.000000e-01 : f32
    %8 = vector.broadcast %cst_6 : f32 to vector<512x64xf32>
    %9 = arith.mulf %8, %5 : vector<512x64xf32>
    %10 = arith.select %7, %5, %9 : vector<512x64xi1>, vector<512x64xf32>
    %11 = arith.truncf %10 : vector<512x64xf32> to vector<512x64xbf16>
    %c0_7 = arith.constant 0 : index
    %c0_8 = arith.constant 0 : index
    %12 = vector.load %arg4[%c0_7, %c0_8] : memref<512x64xbf16, #tpu.memory_space<vmem>>, vector<512x64xbf16>
    tpu.vector_store %arg4[%c0_7, %c0_8], %11 {strides = array<i32>} : memref<512x64xbf16, #tpu.memory_space<vmem>>, vector<512x64xbf16>,
    return
  }
  func.func @transform_0(%arg0: i32) -> (i32, i32) {
    %c0_i32 = arith.constant 0 : i32
    %c0_i32_0 = arith.constant 0 : i32
    %c0_i32_1 = arith.constant 0 : i32
    return %c0_i32, %c0_i32_0 : i32, i32
  }
  func.func @transform_1(%arg0: i32) -> (i32, i32) {
    %c0_i32 = arith.constant 0 : i32
    %c0_i32_0 = arith.constant 0 : i32
    return %c0_i32, %arg0 : i32, i32
  }
  func.func @transform_2(%arg0: i32) -> (i32, i32) {
    %c0_i32 = arith.constant 0 : i32
    %c0_i32_0 = arith.constant 0 : i32
    return %c0_i32, %arg0 : i32, i32
  }
  func.func @transform_3(%arg0: i32) -> (i32, i32) {
    %c0_i32 = arith.constant 0 : i32
    %c0_i32_0 = arith.constant 0 : i32
    return %c0_i32, %arg0 : i32, i32
  }
}

module attributes {stable_mosaic.version = 11 : i64} {
  func.func @kernel(%arg0: i32, %arg1: memref<128x1024xbf16, #tpu.memory_space<vmem>>, %arg2: memref<1024x128xbf16, #tpu.memory_space<vmem>>, %arg3: memref<1x128xf32, #tpu.memory_space<vmem>>, %arg4: memref<1x128xf32, #tpu.memory_space<vmem>>, %arg5: memref<128x128xbf16, #tpu.memory_space<vmem>>) attributes {dimension_semantics = [#tpu.dimension_semantics<parallel>], iteration_bounds = array<i64: 1>, scalar_prefetch = 0 : i64, scratch_operands = 0 : i64, tpu.core_type = #tpu.core_type<tc>, window_params = [{pipeline_mode = #tpu.pipeline_mode<synchronous>, transform_indices = @transform_0, window_bounds = array<i64: 128, 1024>}, {transform_indices = @transform_1, window_bounds = array<i64: 1024, 128>}, {transform_indices = @transform_2, window_bounds = array<i64: 1, 128>}, {transform_indices = @transform_3, window_bounds = array<i64: 1, 128>}, {transform_indices = @transform_4, window_bounds = array<i64: 128, 128>}]} {
    %c0 = arith.constant 0 : index
    %c0_0 = arith.constant 0 : index
    %0 = vector.load %arg1[%c0, %c0_0] : memref<128x1024xbf16, #tpu.memory_space<vmem>>, vector<128x1024xbf16>
    %c0_1 = arith.constant 0 : index
    %c0_2 = arith.constant 0 : index
    %1 = vector.load %arg2[%c0_1, %c0_2] : memref<1024x128xbf16, #tpu.memory_space<vmem>>, vector<1024x128xbf16>
    %cst = arith.constant dense<0.000000e+00> : vector<128x128xf32>
    %2 = tpu.matmul %0, %1, %cst {dimension_numbers = #tpu.dot_dimension_numbers<[1], [0], [0], [1], [0, 0, 1, 1], [], []>} : vector<128x1024xbf16>, vector<1024x128xbf16>, vector<128x128xf32> -> vector<128x128xf32>
    %cst_3 = arith.constant dense<0.000000e+00> : vector<128xf32>
    %3 = vector.multi_reduction <add>, %2, %cst_3 [0] : vector<128x128xf32> to vector<128xf32>
    %4 = vector.shape_cast %3 : vector<128xf32> to vector<1x128xf32>
    %cst_4 = arith.constant 1.280000e+02 : f32
    %5 = vector.broadcast %cst_4 : f32 to vector<1x128xf32>
    %6 = arith.divf %4, %5 : vector<1x128xf32>
    %7 = vector.broadcast %6 : vector<1x128xf32> to vector<128x128xf32>
    %8 = arith.subf %2, %7 : vector<128x128xf32>
    %9 = arith.mulf %8, %8 : vector<128x128xf32>
    %cst_5 = arith.constant dense<0.000000e+00> : vector<128xf32>
    %10 = vector.multi_reduction <add>, %9, %cst_5 [0] : vector<128x128xf32> to vector<128xf32>
    %11 = vector.shape_cast %10 : vector<128xf32> to vector<1x128xf32>
    %cst_6 = arith.constant 1.280000e+02 : f32
    %12 = vector.broadcast %cst_6 : f32 to vector<1x128xf32>
    %13 = arith.divf %11, %12 : vector<1x128xf32>
    %14 = vector.broadcast %6 : vector<1x128xf32> to vector<128x128xf32>
    %15 = arith.subf %2, %14 : vector<128x128xf32>
    %cst_7 = arith.constant 9.99999974E-6 : f32
    %16 = vector.broadcast %cst_7 : f32 to vector<1x128xf32>
    %17 = arith.addf %13, %16 : vector<1x128xf32>
    %18 = math.rsqrt %17 : vector<1x128xf32>
    %19 = vector.broadcast %18 : vector<1x128xf32> to vector<128x128xf32>
    %20 = arith.mulf %15, %19 : vector<128x128xf32>
    %c0_8 = arith.constant 0 : index
    %c0_9 = arith.constant 0 : index
    %21 = vector.load %arg3[%c0_8, %c0_9] : memref<1x128xf32, #tpu.memory_space<vmem>>, vector<1x128xf32>
    %22 = vector.broadcast %21 : vector<1x128xf32> to vector<128x128xf32>
    %23 = arith.mulf %20, %22 : vector<128x128xf32>
    %c0_10 = arith.constant 0 : index
    %c0_11 = arith.constant 0 : index
    %24 = vector.load %arg4[%c0_10, %c0_11] : memref<1x128xf32, #tpu.memory_space<vmem>>, vector<1x128xf32>
    %25 = vector.broadcast %24 : vector<1x128xf32> to vector<128x128xf32>
    %26 = arith.addf %23, %25 : vector<128x128xf32>
    %cst_12 = arith.constant 0.000000e+00 : f32
    %27 = vector.broadcast %cst_12 : f32 to vector<128x128xf32>
    %28 = arith.cmpf oge, %26, %27 : vector<128x128xf32>
    %cst_13 = arith.constant 2.000000e-01 : f32
    %29 = vector.broadcast %cst_13 : f32 to vector<128x128xf32>
    %30 = arith.mulf %29, %26 : vector<128x128xf32>
    %31 = arith.select %28, %26, %30 : vector<128x128xi1>, vector<128x128xf32>
    %32 = arith.truncf %31 : vector<128x128xf32> to vector<128x128xbf16>
    %c0_14 = arith.constant 0 : index
    %c0_15 = arith.constant 0 : index
    %33 = vector.load %arg5[%c0_14, %c0_15] : memref<128x128xbf16, #tpu.memory_space<vmem>>, vector<128x128xbf16>
    tpu.vector_store %arg5[%c0_14, %c0_15], %32 {strides = array<i32>} : memref<128x128xbf16, #tpu.memory_space<vmem>>, vector<128x128xbf16>,
    return
  }
  func.func @transform_0(%arg0: i32) -> (i32, i32) {
    %c0_i32 = arith.constant 0 : i32
    %c0_i32_0 = arith.constant 0 : i32
    %c0_i32_1 = arith.constant 0 : i32
    return %c0_i32, %c0_i32_0 : i32, i32
  }
  func.func @transform_1(%arg0: i32) -> (i32, i32) {
    %c0_i32 = arith.constant 0 : i32
    %c0_i32_0 = arith.constant 0 : i32
    return %c0_i32, %arg0 : i32, i32
  }
  func.func @transform_2(%arg0: i32) -> (i32, i32) {
    %c0_i32 = arith.constant 0 : i32
    %c0_i32_0 = arith.constant 0 : i32
    return %c0_i32, %arg0 : i32, i32
  }
  func.func @transform_3(%arg0: i32) -> (i32, i32) {
    %c0_i32 = arith.constant 0 : i32
    %c0_i32_0 = arith.constant 0 : i32
    return %c0_i32, %arg0 : i32, i32
  }
  func.func @transform_4(%arg0: i32) -> (i32, i32) {
    %c0_i32 = arith.constant 0 : i32
    %c0_i32_0 = arith.constant 0 : i32
    return %c0_i32, %arg0 : i32, i32
  }
}

module attributes {stable_mosaic.version = 11 : i64} {
  func.func @kernel(%arg0: i32, %arg1: memref<32x2048xbf16, #tpu.memory_space<vmem>>, %arg2: memref<2048x128xbf16, #tpu.memory_space<vmem>>, %arg3: memref<1x128xf32, #tpu.memory_space<vmem>>, %arg4: memref<1x128xf32, #tpu.memory_space<vmem>>, %arg5: memref<32x128xbf16, #tpu.memory_space<vmem>>) attributes {dimension_semantics = [#tpu.dimension_semantics<parallel>], iteration_bounds = array<i64: 2>, scalar_prefetch = 0 : i64, scratch_operands = 0 : i64, tpu.core_type = #tpu.core_type<tc>, window_params = [{pipeline_mode = #tpu.pipeline_mode<synchronous>, transform_indices = @transform_0, window_bounds = array<i64: 32, 2048>}, {transform_indices = @transform_1, window_bounds = array<i64: 2048, 128>}, {transform_indices = @transform_2, window_bounds = array<i64: 1, 128>}, {transform_indices = @transform_3, window_bounds = array<i64: 1, 128>}, {transform_indices = @transform_4, window_bounds = array<i64: 32, 128>}]} {
    %c0 = arith.constant 0 : index
    %c0_0 = arith.constant 0 : index
    %0 = vector.load %arg1[%c0, %c0_0] : memref<32x2048xbf16, #tpu.memory_space<vmem>>, vector<32x2048xbf16>
    %c0_1 = arith.constant 0 : index
    %c0_2 = arith.constant 0 : index
    %1 = vector.load %arg2[%c0_1, %c0_2] : memref<2048x128xbf16, #tpu.memory_space<vmem>>, vector<2048x128xbf16>
    %cst = arith.constant dense<0.000000e+00> : vector<32x128xf32>
    %2 = tpu.matmul %0, %1, %cst {dimension_numbers = #tpu.dot_dimension_numbers<[1], [0], [0], [1], [0, 0, 1, 1], [], []>} : vector<32x2048xbf16>, vector<2048x128xbf16>, vector<32x128xf32> -> vector<32x128xf32>
    %cst_3 = arith.constant dense<0.000000e+00> : vector<128xf32>
    %3 = vector.multi_reduction <add>, %2, %cst_3 [0] : vector<32x128xf32> to vector<128xf32>
    %4 = vector.shape_cast %3 : vector<128xf32> to vector<1x128xf32>
    %cst_4 = arith.constant 3.200000e+01 : f32
    %5 = vector.broadcast %cst_4 : f32 to vector<1x128xf32>
    %6 = arith.divf %4, %5 : vector<1x128xf32>
    %7 = vector.broadcast %6 : vector<1x128xf32> to vector<32x128xf32>
    %8 = arith.subf %2, %7 : vector<32x128xf32>
    %9 = arith.mulf %8, %8 : vector<32x128xf32>
    %cst_5 = arith.constant dense<0.000000e+00> : vector<128xf32>
    %10 = vector.multi_reduction <add>, %9, %cst_5 [0] : vector<32x128xf32> to vector<128xf32>
    %11 = vector.shape_cast %10 : vector<128xf32> to vector<1x128xf32>
    %cst_6 = arith.constant 3.200000e+01 : f32
    %12 = vector.broadcast %cst_6 : f32 to vector<1x128xf32>
    %13 = arith.divf %11, %12 : vector<1x128xf32>
    %14 = vector.broadcast %6 : vector<1x128xf32> to vector<32x128xf32>
    %15 = arith.subf %2, %14 : vector<32x128xf32>
    %cst_7 = arith.constant 9.99999974E-6 : f32
    %16 = vector.broadcast %cst_7 : f32 to vector<1x128xf32>
    %17 = arith.addf %13, %16 : vector<1x128xf32>
    %18 = math.rsqrt %17 : vector<1x128xf32>
    %19 = vector.broadcast %18 : vector<1x128xf32> to vector<32x128xf32>
    %20 = arith.mulf %15, %19 : vector<32x128xf32>
    %c0_8 = arith.constant 0 : index
    %c0_9 = arith.constant 0 : index
    %21 = vector.load %arg3[%c0_8, %c0_9] : memref<1x128xf32, #tpu.memory_space<vmem>>, vector<1x128xf32>
    %22 = vector.broadcast %21 : vector<1x128xf32> to vector<32x128xf32>
    %23 = arith.mulf %20, %22 : vector<32x128xf32>
    %c0_10 = arith.constant 0 : index
    %c0_11 = arith.constant 0 : index
    %24 = vector.load %arg4[%c0_10, %c0_11] : memref<1x128xf32, #tpu.memory_space<vmem>>, vector<1x128xf32>
    %25 = vector.broadcast %24 : vector<1x128xf32> to vector<32x128xf32>
    %26 = arith.addf %23, %25 : vector<32x128xf32>
    %cst_12 = arith.constant 0.000000e+00 : f32
    %27 = vector.broadcast %cst_12 : f32 to vector<32x128xf32>
    %28 = arith.cmpf oge, %26, %27 : vector<32x128xf32>
    %cst_13 = arith.constant 2.000000e-01 : f32
    %29 = vector.broadcast %cst_13 : f32 to vector<32x128xf32>
    %30 = arith.mulf %29, %26 : vector<32x128xf32>
    %31 = arith.select %28, %26, %30 : vector<32x128xi1>, vector<32x128xf32>
    %32 = arith.truncf %31 : vector<32x128xf32> to vector<32x128xbf16>
    %c0_14 = arith.constant 0 : index
    %c0_15 = arith.constant 0 : index
    %33 = vector.load %arg5[%c0_14, %c0_15] : memref<32x128xbf16, #tpu.memory_space<vmem>>, vector<32x128xbf16>
    tpu.vector_store %arg5[%c0_14, %c0_15], %32 {strides = array<i32>} : memref<32x128xbf16, #tpu.memory_space<vmem>>, vector<32x128xbf16>,
    return
  }
  func.func @transform_0(%arg0: i32) -> (i32, i32) {
    %c0_i32 = arith.constant 0 : i32
    %c0_i32_0 = arith.constant 0 : i32
    %c0_i32_1 = arith.constant 0 : i32
    return %c0_i32, %c0_i32_0 : i32, i32
  }
  func.func @transform_1(%arg0: i32) -> (i32, i32) {
    %c0_i32 = arith.constant 0 : i32
    %c0_i32_0 = arith.constant 0 : i32
    return %c0_i32, %arg0 : i32, i32
  }
  func.func @transform_2(%arg0: i32) -> (i32, i32) {
    %c0_i32 = arith.constant 0 : i32
    %c0_i32_0 = arith.constant 0 : i32
    return %c0_i32, %arg0 : i32, i32
  }
  func.func @transform_3(%arg0: i32) -> (i32, i32) {
    %c0_i32 = arith.constant 0 : i32
    %c0_i32_0 = arith.constant 0 : i32
    return %c0_i32, %arg0 : i32, i32
  }
  func.func @transform_4(%arg0: i32) -> (i32, i32) {
    %c0_i32 = arith.constant 0 : i32
    %c0_i32_0 = arith.constant 0 : i32
    return %c0_i32, %arg0 : i32, i32
  }
}

module attributes {stable_mosaic.version = 11 : i64} {
  func.func @kernel(%arg0: i32, %arg1: memref<18x4096xbf16, #tpu.memory_space<vmem>>, %arg2: memref<4096x256xbf16, #tpu.memory_space<vmem>>, %arg3: memref<1x256xf32, #tpu.memory_space<vmem>>, %arg4: memref<1x256xf32, #tpu.memory_space<vmem>>, %arg5: memref<18x256xbf16, #tpu.memory_space<vmem>>) attributes {dimension_semantics = [#tpu.dimension_semantics<parallel>], iteration_bounds = array<i64: 2>, scalar_prefetch = 0 : i64, scratch_operands = 0 : i64, tpu.core_type = #tpu.core_type<tc>, window_params = [{pipeline_mode = #tpu.pipeline_mode<synchronous>, transform_indices = @transform_0, window_bounds = array<i64: 18, 4096>}, {transform_indices = @transform_1, window_bounds = array<i64: 4096, 256>}, {transform_indices = @transform_2, window_bounds = array<i64: 1, 256>}, {transform_indices = @transform_3, window_bounds = array<i64: 1, 256>}, {transform_indices = @transform_4, window_bounds = array<i64: 18, 256>}]} {
    %c0 = arith.constant 0 : index
    %c0_0 = arith.constant 0 : index
    %0 = vector.load %arg1[%c0, %c0_0] : memref<18x4096xbf16, #tpu.memory_space<vmem>>, vector<18x4096xbf16>
    %c0_1 = arith.constant 0 : index
    %c0_2 = arith.constant 0 : index
    %1 = vector.load %arg2[%c0_1, %c0_2] : memref<4096x256xbf16, #tpu.memory_space<vmem>>, vector<4096x256xbf16>
    %cst = arith.constant dense<0.000000e+00> : vector<18x256xf32>
    %2 = tpu.matmul %0, %1, %cst {dimension_numbers = #tpu.dot_dimension_numbers<[1], [0], [0], [1], [0, 0, 1, 1], [], []>} : vector<18x4096xbf16>, vector<4096x256xbf16>, vector<18x256xf32> -> vector<18x256xf32>
    %cst_3 = arith.constant dense<0.000000e+00> : vector<256xf32>
    %3 = vector.multi_reduction <add>, %2, %cst_3 [0] : vector<18x256xf32> to vector<256xf32>
    %4 = vector.shape_cast %3 : vector<256xf32> to vector<1x256xf32>
    %cst_4 = arith.constant 1.800000e+01 : f32
    %5 = vector.broadcast %cst_4 : f32 to vector<1x256xf32>
    %6 = arith.divf %4, %5 : vector<1x256xf32>
    %7 = vector.broadcast %6 : vector<1x256xf32> to vector<18x256xf32>
    %8 = arith.subf %2, %7 : vector<18x256xf32>
    %9 = arith.mulf %8, %8 : vector<18x256xf32>
    %cst_5 = arith.constant dense<0.000000e+00> : vector<256xf32>
    %10 = vector.multi_reduction <add>, %9, %cst_5 [0] : vector<18x256xf32> to vector<256xf32>
    %11 = vector.shape_cast %10 : vector<256xf32> to vector<1x256xf32>
    %cst_6 = arith.constant 1.800000e+01 : f32
    %12 = vector.broadcast %cst_6 : f32 to vector<1x256xf32>
    %13 = arith.divf %11, %12 : vector<1x256xf32>
    %14 = vector.broadcast %6 : vector<1x256xf32> to vector<18x256xf32>
    %15 = arith.subf %2, %14 : vector<18x256xf32>
    %cst_7 = arith.constant 9.99999974E-6 : f32
    %16 = vector.broadcast %cst_7 : f32 to vector<1x256xf32>
    %17 = arith.addf %13, %16 : vector<1x256xf32>
    %18 = math.rsqrt %17 : vector<1x256xf32>
    %19 = vector.broadcast %18 : vector<1x256xf32> to vector<18x256xf32>
    %20 = arith.mulf %15, %19 : vector<18x256xf32>
    %c0_8 = arith.constant 0 : index
    %c0_9 = arith.constant 0 : index
    %21 = vector.load %arg3[%c0_8, %c0_9] : memref<1x256xf32, #tpu.memory_space<vmem>>, vector<1x256xf32>
    %22 = vector.broadcast %21 : vector<1x256xf32> to vector<18x256xf32>
    %23 = arith.mulf %20, %22 : vector<18x256xf32>
    %c0_10 = arith.constant 0 : index
    %c0_11 = arith.constant 0 : index
    %24 = vector.load %arg4[%c0_10, %c0_11] : memref<1x256xf32, #tpu.memory_space<vmem>>, vector<1x256xf32>
    %25 = vector.broadcast %24 : vector<1x256xf32> to vector<18x256xf32>
    %26 = arith.addf %23, %25 : vector<18x256xf32>
    %cst_12 = arith.constant 0.000000e+00 : f32
    %27 = vector.broadcast %cst_12 : f32 to vector<18x256xf32>
    %28 = arith.cmpf oge, %26, %27 : vector<18x256xf32>
    %cst_13 = arith.constant 2.000000e-01 : f32
    %29 = vector.broadcast %cst_13 : f32 to vector<18x256xf32>
    %30 = arith.mulf %29, %26 : vector<18x256xf32>
    %31 = arith.select %28, %26, %30 : vector<18x256xi1>, vector<18x256xf32>
    %32 = arith.truncf %31 : vector<18x256xf32> to vector<18x256xbf16>
    %c0_14 = arith.constant 0 : index
    %c0_15 = arith.constant 0 : index
    %33 = vector.load %arg5[%c0_14, %c0_15] : memref<18x256xbf16, #tpu.memory_space<vmem>>, vector<18x256xbf16>
    tpu.vector_store %arg5[%c0_14, %c0_15], %32 {strides = array<i32>} : memref<18x256xbf16, #tpu.memory_space<vmem>>, vector<18x256xbf16>,
    return
  }
  func.func @transform_0(%arg0: i32) -> (i32, i32) {
    %c0_i32 = arith.constant 0 : i32
    %c0_i32_0 = arith.constant 0 : i32
    %c0_i32_1 = arith.constant 0 : i32
    return %c0_i32, %c0_i32_0 : i32, i32
  }
  func.func @transform_1(%arg0: i32) -> (i32, i32) {
    %c0_i32 = arith.constant 0 : i32
    %c0_i32_0 = arith.constant 0 : i32
    return %c0_i32, %arg0 : i32, i32
  }
  func.func @transform_2(%arg0: i32) -> (i32, i32) {
    %c0_i32 = arith.constant 0 : i32
    %c0_i32_0 = arith.constant 0 : i32
    return %c0_i32, %arg0 : i32, i32
  }
  func.func @transform_3(%arg0: i32) -> (i32, i32) {
    %c0_i32 = arith.constant 0 : i32
    %c0_i32_0 = arith.constant 0 : i32
    return %c0_i32, %arg0 : i32, i32
  }
  func.func @transform_4(%arg0: i32) -> (i32, i32) {
    %c0_i32 = arith.constant 0 : i32
    %c0_i32_0 = arith.constant 0 : i32
    return %c0_i32, %arg0 : i32, i32
  }
}

module attributes {stable_mosaic.version = 11 : i64} {
  func.func @_final_conv_kernel(%arg0: memref<8x8192xbf16, #tpu.memory_space<vmem>>, %arg1: memref<1x8192xbf16, #tpu.memory_space<vmem>>, %arg2: memref<1x1xf32, #tpu.memory_space<vmem>>, %arg3: memref<8x1xf32, #tpu.memory_space<vmem>>) attributes {dimension_semantics = [], scalar_prefetch = 0 : i64, scratch_operands = 0 : i64, tpu.core_type = #tpu.core_type<tc>} {
    %c0 = arith.constant 0 : index
    %c0_0 = arith.constant 0 : index
    %0 = vector.load %arg0[%c0, %c0_0] : memref<8x8192xbf16, #tpu.memory_space<vmem>>, vector<8x8192xbf16>
    %1 = arith.extf %0 : vector<8x8192xbf16> to vector<8x8192xf32>
    %c0_1 = arith.constant 0 : index
    %c0_2 = arith.constant 0 : index
    %2 = vector.load %arg1[%c0_1, %c0_2] : memref<1x8192xbf16, #tpu.memory_space<vmem>>, vector<1x8192xbf16>
    %3 = arith.extf %2 : vector<1x8192xbf16> to vector<1x8192xf32>
    %4 = vector.broadcast %3 : vector<1x8192xf32> to vector<8x8192xf32>
    %5 = arith.mulf %1, %4 : vector<8x8192xf32>
    %cst = arith.constant dense<0.000000e+00> : vector<8xf32>
    %6 = vector.multi_reduction <add>, %5, %cst [1] : vector<8x8192xf32> to vector<8xf32>
    %7 = vector.shape_cast %6 : vector<8xf32> to vector<8x1xf32>
    %c0_3 = arith.constant 0 : index
    %c0_4 = arith.constant 0 : index
    %8 = vector.load %arg2[%c0_3, %c0_4] : memref<1x1xf32, #tpu.memory_space<vmem>>, vector<1x1xf32>
    %9 = vector.broadcast %8 : vector<1x1xf32> to vector<8x1xf32>
    %10 = arith.addf %7, %9 : vector<8x1xf32>
    %c0_5 = arith.constant 0 : index
    %c0_6 = arith.constant 0 : index
    %11 = vector.load %arg3[%c0_5, %c0_6] : memref<8x1xf32, #tpu.memory_space<vmem>>, vector<8x1xf32>
    tpu.vector_store %arg3[%c0_5, %c0_6], %10 {strides = array<i32>} : memref<8x1xf32, #tpu.memory_space<vmem>>, vector<8x1xf32>,
    return
  }
}

</mosaic_0001>

<bundles_post_ra>
// kernel: discriminator_forward.5
= control target key start
LH: loop header
LB: loop body
LE: loop exit
PB: predicated region body
PF: predicated region fallthrough
CT: control target
= control target key end

     0   :  { %vm1079_vm0 = vcmask 519168   ;;  %s2037_s1 = inlined_call_operand.vmem [shape: bf16[128,64], index: 1, kind: input, shape index: {}]   ;;  %s2038_s0 = inlined_call_operand.vmem [shape: bf16[512,128], index: 0, kind: input, shape index: {}]   ;;  %s2039_s2 = inlined_call_operand.vmem [shape: f32[1,64], index: 2, kind: input, shape index: {}]   ;;  %s2040_s3 = inlined_call_operand.vmem [shape: bf16[512,64], index: 3, kind: output, shape index: {}]  }
   0x1   :  { %v1453_v0 = vld [vmem:[%s2037_s1] sm:$0xff]   ;;  %v1454_v1 = vld [vmem:[%s2037_s1 + $0x8] sm:$0xff]   ;;  %v1455_v2 = vld [vmem:[%s2037_s1 + $0x10] sm:$0xff]  }
   0x2   :  { %1357 = vmatprep.subr.bf16.mxu0 %v1453_v0  ;;  %1437 = vmatprep.subr.bf16.mxu1 %v1453_v0  ;;  %v1456_v3 = vld [vmem:[%s2037_s1 + $0x18] sm:$0xff]   ;;  %v1461_v4 = vld [vmem:[%s2038_s0] sm:$0xff]   ;;  %v1458_v7 = vld [vmem:[%s2037_s1 + $0x28] sm:$0xff]  }
   0x3   :  { %1358 = vmatpush3.bf16.msra.mxu0 %v1453_v0  ;;  %1445 = vmatpush3.bf16.msra.mxu1 %v1453_v0  ;;  %v1462_v5 = vld [vmem:[%s2038_s0 + $0x80] sm:$0xff]   ;;  %v1459_v8 = vld [vmem:[%s2037_s1 + $0x30] sm:$0xff]   ;;  %v1460_v9 = vld [vmem:[%s2037_s1 + $0x38] sm:$0xff]  }
   0x4   :  { %1359 = vmatprep.subr.bf16.mxu0 %v1454_v1  ;;  %1438 = vmatprep.subr.bf16.mxu1 %v1454_v1  ;;  %v1457_v6 = vld [vmem:[%s2037_s1 + $0x20] sm:$0xff]   ;;  %v1463_v10 = vld [vmem:[%s2038_s0 + $0x8] sm:$0xff]   ;;  %v1465_v12 = vld [vmem:[%s2038_s0 + $0x10] sm:$0xff]  }
   0x5   :  { %1373 = vmatprep.mubr.bf16.mxu0 %v1461_v4  ;;  %1405 = vmatprep.mubr.bf16.mxu1 %v1462_v5  ;;  %v1464_v11 = vld [vmem:[%s2038_s0 + $0x88] sm:$0xff]   ;;  %v1466_v13 = vld [vmem:[%s2038_s0 + $0x90] sm:$0xff]   ;;  %v1467_v14 = vld [vmem:[%s2038_s0 + $0x18] sm:$0xff]  }
   0x6   :  { %v1468_v15 = vld [vmem:[%s2038_s0 + $0x98] sm:$0xff]   ;;  %v1469_v16 = vld [vmem:[%s2038_s0 + $0x20] sm:$0xff]   ;;  %v1471_v18 = vld [vmem:[%s2038_s0 + $0x28] sm:$0xff]  }
   0x7   :  { %1360 = vmatpush3.bf16.msra.mxu0 %v1454_v1  ;;  %1446 = vmatpush3.bf16.msra.mxu1 %v1454_v1  ;;  %v1470_v17 = vld [vmem:[%s2038_s0 + $0xa0] sm:$0xff]   ;;  %v1472_v19 = vld [vmem:[%s2038_s0 + $0xa8] sm:$0xff]   ;;  %v1473_v20 = vld [vmem:[%s2038_s0 + $0x30] sm:$0xff]  }
   0x8   :  { %1361 = vmatprep.subr.bf16.mxu0 %v1455_v2  ;;  %1439 = vmatprep.subr.bf16.mxu1 %v1455_v2  ;;  %v1474_v21 = vld [vmem:[%s2038_s0 + $0xb0] sm:$0xff]   ;;  %v1475_v22 = vld [vmem:[%s2038_s0 + $0x38] sm:$0xff]   ;;  %v1477_v24 = vld [vmem:[%s2038_s0 + $0x40] sm:$0xff]  }
   0x9   :  { %v1476_v23 = vld [vmem:[%s2038_s0 + $0xb8] sm:$0xff]   ;;  %v1478_v25 = vld [vmem:[%s2038_s0 + $0xc0] sm:$0xff]   ;;  %v1479_v26 = vld [vmem:[%s2038_s0 + $0x48] sm:$0xff]  }
   0xa   :  { %v1480_v27 = vld [vmem:[%s2038_s0 + $0xc8] sm:$0xff]   ;;  %v1481_v28 = vld [vmem:[%s2038_s0 + $0x50] sm:$0xff]   ;;  %v1483_v30 = vld [vmem:[%s2038_s0 + $0x58] sm:$0xff]  }
   0xb   :  { %1362 = vmatpush3.bf16.msra.mxu0 %v1455_v2  ;;  %1447 = vmatpush3.bf16.msra.mxu1 %v1455_v2  ;;  %v1482_v29 = vld [vmem:[%s2038_s0 + $0xd0] sm:$0xff]   ;;  %v1484_v31 = vld [vmem:[%s2038_s0 + $0xd8] sm:$0xff]   ;;  %v1485_v32 = vld [vmem:[%s2038_s0 + $0x60] sm:$0xff]  }
   0xc   :  { %1363 = vmatprep.subr.bf16.mxu0 %v1456_v3  ;;  %1440 = vmatprep.subr.bf16.mxu1 %v1456_v3  ;;  %v1486_v33 = vld [vmem:[%s2038_s0 + $0xe0] sm:$0xff]   ;;  %v1487_v34 = vld [vmem:[%s2038_s0 + $0x68] sm:$0xff]   ;;  %v1489_v36 = vld [vmem:[%s2038_s0 + $0x70] sm:$0xff]  }
   0xd   :  { %v1488_v35 = vld [vmem:[%s2038_s0 + $0xe8] sm:$0xff]   ;;  %v1490_v37 = vld [vmem:[%s2038_s0 + $0xf0] sm:$0xff]   ;;  %v1491_v38 = vld [vmem:[%s2038_s0 + $0x78] sm:$0xff]  }
   0xe   :  { %v1492_v39 = vld [vmem:[%s2038_s0 + $0xf8] sm:$0xff]   ;;  %v1636_v40 = vld [vmem:[%s2039_s2] ss:$0 sm:$0xff] }
   0xf   :  { %1364 = vmatpush3.bf16.msra.mxu0 %v1456_v3  ;;  %1448 = vmatpush3.bf16.msra.mxu1 %v1456_v3 }
  0x10   :  { %1365 = vmatprep.subr.bf16.mxu0 %v1457_v6  ;;  %1441 = vmatprep.subr.bf16.mxu1 %v1457_v6 }
  0x13   :  { %1366 = vmatpush3.bf16.msra.mxu0 %v1457_v6  ;;  %1449 = vmatpush3.bf16.msra.mxu1 %v1457_v6 }
  0x14   :  { %1367 = vmatprep.subr.bf16.mxu0 %v1458_v7  ;;  %1442 = vmatprep.subr.bf16.mxu1 %v1458_v7 }
  0x17   :  { %1368 = vmatpush3.bf16.msra.mxu0 %v1458_v7  ;;  %1450 = vmatpush3.bf16.msra.mxu1 %v1458_v7 }
  0x18   :  { %1369 = vmatprep.subr.bf16.mxu0 %v1459_v8  ;;  %1443 = vmatprep.subr.bf16.mxu1 %v1459_v8 }
  0x1b   :  { %1370 = vmatpush3.bf16.msra.mxu0 %v1459_v8  ;;  %1451 = vmatpush3.bf16.msra.mxu1 %v1459_v8 }
  0x1c   :  { %1371 = vmatprep.subr.bf16.mxu0 %v1460_v9  ;;  %1444 = vmatprep.subr.bf16.mxu1 %v1460_v9 }
  0x1f   :  { %1372 = vmatpush3.bf16.msra.mxu0 %v1460_v9  ;;  %1452 = vmatpush3.bf16.msra.mxu1 %v1460_v9 }
  0x22   :  { %1374 = vmatmul.mubr.bf16.vlgmr.msra.gmra.mrb[0].mxu0 %v1463_v10  ;;  %1406 = vmatmul.mubr.bf16.vlgmr.msra.gmra.mrb[0].mxu1 %v1464_v11 }
  0x23   :  { %1377 = vmatprep.mubr.bf16.mxu0 %v1465_v12  ;;  %1409 = vmatprep.mubr.bf16.mxu1 %v1466_v13 }
  0x2a   :  { %1378 = vmatmul.mubr.bf16.gmra.mrb[4].mxu0 %v1467_v14  ;;  %1410 = vmatmul.mubr.bf16.gmra.mrb[4].mxu1 %v1468_v15 }
  0x2b   :  { %1381 = vmatprep.mubr.bf16.mxu0 %v1469_v16  ;;  %1413 = vmatprep.mubr.bf16.mxu1 %v1470_v17 }
  0x32   :  { %1382 = vmatmul.mubr.bf16.gmra.mrb[8].mxu0 %v1471_v18  ;;  %1414 = vmatmul.mubr.bf16.gmra.mrb[8].mxu1 %v1472_v19 }
  0x33   :  { %1385 = vmatprep.mubr.bf16.mxu0 %v1473_v20  ;;  %1417 = vmatprep.mubr.bf16.mxu1 %v1474_v21 }
  0x3a   :  { %1386 = vmatmul.mubr.bf16.gmra.mrb[12].mxu0 %v1475_v22  ;;  %1418 = vmatmul.mubr.bf16.gmra.mrb[12].mxu1 %v1476_v23 }
  0x3b   :  { %1389 = vmatprep.mubr.bf16.mxu0 %v1477_v24  ;;  %1421 = vmatprep.mubr.bf16.mxu1 %v1478_v25 }
  0x42   :  { %1390 = vmatmul.mubr.bf16.gmra.mrb[16].mxu0 %v1479_v26  ;;  %1422 = vmatmul.mubr.bf16.gmra.mrb[16].mxu1 %v1480_v27 }
  0x43   :  { %1393 = vmatprep.mubr.bf16.mxu0 %v1481_v28  ;;  %1425 = vmatprep.mubr.bf16.mxu1 %v1482_v29 }
  0x4a   :  { %1394 = vmatmul.mubr.bf16.gmra.mrb[20].mxu0 %v1483_v30  ;;  %1426 = vmatmul.mubr.bf16.gmra.mrb[20].mxu1 %v1484_v31 }
  0x4b   :  { %1397 = vmatprep.mubr.bf16.mxu0 %v1485_v32  ;;  %1429 = vmatprep.mubr.bf16.mxu1 %v1486_v33 }
  0x52   :  { %1398 = vmatmul.mubr.bf16.gmra.mrb[24].mxu0 %v1487_v34  ;;  %1430 = vmatmul.mubr.bf16.gmra.mrb[24].mxu1 %v1488_v35 }
  0x53   :  { %1401 = vmatprep.mubr.bf16.mxu0 %v1489_v36  ;;  %1433 = vmatprep.mubr.bf16.mxu1 %v1490_v37 }
  0x5a   :  { %1402 = vmatmul.mubr.bf16.gmra.mrb[28].mxu0 %v1491_v38  ;;  %1434 = vmatmul.mubr.bf16.gmra.mrb[28].mxu1 %v1492_v39 }
  0xf5   :  { %v1375_v41 = vpop.f32.mrb[0].mxu0  ;;  %v1407_v42 = vpop.f32.mrb[0].mxu1 }
  0xf6   :  { %v385_v43 = vadd.f32 %v1375_v41, %v1636_v40  ;;  %v513_v44 = vadd.f32 %v1407_v42, %v1636_v40  ;;  %v376_v45 = vpop.f32.mrb[1].mxu0  ;;  %v504_v46 = vpop.f32.mrb[1].mxu1 }
  0xf7   :  { %v377_v47 = vadd.f32 %v1636_v40, %v376_v45  ;;  %v505_v48 = vadd.f32 %v1636_v40, %v504_v46  ;;  %v1376_v49 = vpop.f32.mrb[2].mxu0  ;;  %v1408_v50 = vpop.f32.mrb[2].mxu1 }
  0xf8   :  { %vm633_vm1 = vcmp.ge.f32.partialorder %v385_v43, 0.0  ;;  %v697_v51 = vmul.f32 0.2, %v385_v43  ;;  %vm665_vm2 = vcmp.ge.f32.partialorder %v513_v44, 0.0  ;;  %v729_v52 = vmul.f32 0.2, %v513_v44 }
  0xf9   :  { %vm631_vm3 = vcmp.ge.f32.partialorder %v377_v47, 0.0  ;;  %v695_v53 = vmul.f32 0.2, %v377_v47  ;;  %vm663_vm4 = vcmp.ge.f32.partialorder %v505_v48, 0.0  ;;  %v727_v54 = vmul.f32 0.2, %v505_v48 }
  0xfa   :  { %v761_v55 = vsel %vm633_vm1, %v385_v43, %v697_v51  ;;  %v793_v56 = vsel %vm665_vm2, %v513_v44, %v729_v52  ;;  %v388_v57 = vadd.f32 %v1376_v49, %v1636_v40  ;;  %v516_v58 = vadd.f32 %v1408_v50, %v1636_v40  ;;  %v379_v59 = vpop.f32.mrb[3].mxu0  ;;  %v507_v60 = vpop.f32.mrb[3].mxu1 }
  0xfb   :  { %v1255_v61 = vpack.c.bf16 %v761_v55, %v761_v55  ;;  %v1287_v62 = vpack.c.bf16 %v793_v56, %v793_v56  ;;  %v759_v63 = vsel %vm631_vm3, %v377_v47, %v695_v53  ;;  %v791_v0 = vsel %vm663_vm4, %v505_v48, %v727_v54 }
  0xfc   :  { %v1253_v1 = vpack.c.bf16 %v759_v63, %v759_v63  ;;  %v1285_v2 = vpack.c.bf16 %v791_v0, %v791_v0  ;;  %vm634_vm5 = vcmp.ge.f32.partialorder %v388_v57, 0.0  ;;  %v698_v3 = vmul.f32 0.2, %v388_v57 }
  0xfd   :  { %1082 = vst.msk [vmem:[%s2040_s3 + $0x8] sm:$0xf] %vm1079_vm0, %v1255_v61  ;;  %1114 = vst.msk [vmem:[%s2040_s3 + $0x88] sm:$0xf] %vm1079_vm0, %v1287_v62  ;;  %vm666_vm6 = vcmp.ge.f32.partialorder %v516_v58, 0.0  ;;  %v380_v5 = vadd.f32 %v1636_v40, %v379_v59  ;;  %v508_v6 = vadd.f32 %v1636_v40, %v507_v60  ;;  %v1379_v7 = vpop.f32.mrb[4].mxu0 }
  0xfe   :  { %v730_v4 = vmul.f32 0.2, %v516_v58  ;;  %v1411_v8 = vpop.f32.mrb[4].mxu1  ;;  %1080 = vst.msk [vmem:[%s2040_s3] sm:$0xf] %vm1079_vm0, %v1253_v1  ;;  %v762_v9 = vsel %vm634_vm5, %v388_v57, %v698_v3  ;;  %v401_v10 = vadd.f32 %v1379_v7, %v1636_v40  ;;  %v392_v12 = vpop.f32.mrb[5].mxu0 }
  0xff   :  { %1112 = vst.msk [vmem:[%s2040_s3 + $0x80] sm:$0xf] %vm1079_vm0, %v1285_v2  ;;  %v529_v11 = vadd.f32 %v1411_v8, %v1636_v40  ;;  %v520_v13 = vpop.f32.mrb[5].mxu1  ;;  %v1256_v14 = vpack.c.bf16 %v762_v9, %v762_v9  ;;  %vm632_vm7 = vcmp.ge.f32.partialorder %v380_v5, 0.0  ;;  %v696_v16 = vmul.f32 0.2, %v380_v5 }
 0x100   :  { %v794_v15 = vsel %vm666_vm6, %v516_v58, %v730_v4  ;;  %v1380_v17 = vpop.f32.mrb[6].mxu0  ;;  %v1412_v18 = vpop.f32.mrb[6].mxu1  ;;  %vm664_vm8 = vcmp.ge.f32.partialorder %v508_v6, 0.0  ;;  %v728_v20 = vmul.f32 0.2, %v508_v6  ;;  %vm637_vm9 = vcmp.ge.f32.partialorder %v401_v10, 0.0 }
 0x101   :  { %v1288_v19 = vpack.c.bf16 %v794_v15, %v794_v15  ;;  %v395_v21 = vpop.f32.mrb[7].mxu0  ;;  %v523_v22 = vpop.f32.mrb[7].mxu1  ;;  %1083 = vst.msk [vmem:[%s2040_s3 + $0xc] sm:$0xf] %vm1079_vm0, %v1256_v14  ;;  %v760_v23 = vsel %vm632_vm7, %v380_v5, %v696_v16  ;;  %v701_v24 = vmul.f32 0.2, %v401_v10  ;;  %v393_v28 = vadd.f32 %v1636_v40, %v392_v12 }
 0x102   :  { %vm669_vm10 = vcmp.ge.f32.partialorder %v529_v11, 0.0  ;;  %v733_v25 = vmul.f32 0.2, %v529_v11  ;;  %v1254_v26 = vpack.c.bf16 %v760_v23, %v760_v23  ;;  %v792_v27 = vsel %vm664_vm8, %v508_v6, %v728_v20 }
 0x103   :  { %1115 = vst.msk [vmem:[%s2040_s3 + $0x8c] sm:$0xf] %vm1079_vm0, %v1288_v19  ;;  %v521_v29 = vadd.f32 %v1636_v40, %v520_v13  ;;  %v1286_v30 = vpack.c.bf16 %v792_v27, %v792_v27  ;;  %v765_v31 = vsel %vm637_vm9, %v401_v10, %v701_v24  ;;  %v404_v33 = vadd.f32 %v1380_v17, %v1636_v40 }
 0x104   :  { %v797_v32 = vsel %vm669_vm10, %v529_v11, %v733_v25  ;;  %1081 = vst.msk [vmem:[%s2040_s3 + $0x4] sm:$0xf] %vm1079_vm0, %v1254_v26  ;;  %v1259_v34 = vpack.c.bf16 %v765_v31, %v765_v31  ;;  %vm635_vm11 = vcmp.ge.f32.partialorder %v393_v28, 0.0  ;;  %v699_v36 = vmul.f32 0.2, %v393_v28 }
 0x105   :  { %v1291_v35 = vpack.c.bf16 %v797_v32, %v797_v32  ;;  %1113 = vst.msk [vmem:[%s2040_s3 + $0x84] sm:$0xf] %vm1079_vm0, %v1286_v30  ;;  %vm667_vm12 = vcmp.ge.f32.partialorder %v521_v29, 0.0  ;;  %v731_v37 = vmul.f32 0.2, %v521_v29  ;;  %vm638_vm13 = vcmp.ge.f32.partialorder %v404_v33, 0.0 }
 0x106   :  { %v702_v38 = vmul.f32 0.2, %v404_v33  ;;  %1086 = vst.msk [vmem:[%s2040_s3 + $0x18] sm:$0xf] %vm1079_vm0, %v1259_v34  ;;  %v763_v39 = vsel %vm635_vm11, %v393_v28, %v699_v36  ;;  %v532_v41 = vadd.f32 %v1412_v18, %v1636_v40  ;;  %v396_v42 = vadd.f32 %v1636_v40, %v395_v21  ;;  %v1383_v44 = vpop.f32.mrb[8].mxu0  ;;  %v1415_v45 = vpop.f32.mrb[8].mxu1 }
 0x107   :  { %1118 = vst.msk [vmem:[%s2040_s3 + $0x98] sm:$0xf] %vm1079_vm0, %v1291_v35  ;;  %v524_v43 = vadd.f32 %v1636_v40, %v523_v22  ;;  %v1257_v46 = vpack.c.bf16 %v763_v39, %v763_v39  ;;  %v795_v47 = vsel %vm667_vm12, %v521_v29, %v731_v37  ;;  %v417_v49 = vadd.f32 %v1383_v44, %v1636_v40  ;;  %v408_v50 = vpop.f32.mrb[9].mxu0  ;;  %v536_v51 = vpop.f32.mrb[9].mxu1 }
 0x108   :  { %v766_v48 = vsel %vm638_vm13, %v404_v33, %v702_v38  ;;  %v1289_v52 = vpack.c.bf16 %v795_v47, %v795_v47  ;;  %vm670_vm14 = vcmp.ge.f32.partialorder %v532_v41, 0.0  ;;  %v734_v54 = vmul.f32 0.2, %v532_v41  ;;  %v1384_v55 = vpop.f32.mrb[10].mxu0  ;;  %v1416_v56 = vpop.f32.mrb[10].mxu1 }
 0x109   :  { %v1260_v53 = vpack.c.bf16 %v766_v48, %v766_v48  ;;  %1084 = vst.msk [vmem:[%s2040_s3 + $0x10] sm:$0xf] %vm1079_vm0, %v1257_v46  ;;  %vm636_vm15 = vcmp.ge.f32.partialorder %v396_v42, 0.0  ;;  %v700_v57 = vmul.f32 0.2, %v396_v42  ;;  %vm668_vm1 = vcmp.ge.f32.partialorder %v524_v43, 0.0 }
 0x10a   :  { %v732_v58 = vmul.f32 0.2, %v524_v43  ;;  %1116 = vst.msk [vmem:[%s2040_s3 + $0x90] sm:$0xf] %vm1079_vm0, %v1289_v52  ;;  %v798_v59 = vsel %vm670_vm14, %v532_v41, %v734_v54  ;;  %vm641_vm2 = vcmp.ge.f32.partialorder %v417_v49, 0.0  ;;  %v545_v61 = vadd.f32 %v1415_v45, %v1636_v40  ;;  %v411_v62 = vpop.f32.mrb[11].mxu0 }
 0x10b   :  { %1087 = vst.msk [vmem:[%s2040_s3 + $0x1c] sm:$0xf] %vm1079_vm0, %v1260_v53  ;;  %v705_v60 = vmul.f32 0.2, %v417_v49  ;;  %v539_v63 = vpop.f32.mrb[11].mxu1  ;;  %v1292_v0 = vpack.c.bf16 %v798_v59, %v798_v59  ;;  %v764_v1 = vsel %vm636_vm15, %v396_v42, %v700_v57  ;;  %v409_v3 = vadd.f32 %v1636_v40, %v408_v50 }
 0x10c   :  { %v796_v2 = vsel %vm668_vm1, %v524_v43, %v732_v58  ;;  %v1258_v4 = vpack.c.bf16 %v764_v1, %v764_v1  ;;  %vm673_vm3 = vcmp.ge.f32.partialorder %v545_v61, 0.0  ;;  %v737_v8 = vmul.f32 0.2, %v545_v61 }
 0x10d   :  { %v1290_v5 = vpack.c.bf16 %v796_v2, %v796_v2  ;;  %v769_v6 = vsel %vm641_vm2, %v417_v49, %v705_v60  ;;  %1119 = vst.msk [vmem:[%s2040_s3 + $0x9c] sm:$0xf] %vm1079_vm0, %v1292_v0  ;;  %vm639_vm4 = vcmp.ge.f32.partialorder %v409_v3, 0.0  ;;  %v703_v9 = vmul.f32 0.2, %v409_v3  ;;  %v1387_v10 = vpop.f32.mrb[12].mxu0 }
 0x10e   :  { %v1263_v7 = vpack.c.bf16 %v769_v6, %v769_v6  ;;  %1085 = vst.msk [vmem:[%s2040_s3 + $0x14] sm:$0xf] %vm1079_vm0, %v1258_v4  ;;  %v537_v11 = vadd.f32 %v1636_v40, %v536_v51  ;;  %v420_v12 = vadd.f32 %v1384_v55, %v1636_v40  ;;  %v548_v13 = vadd.f32 %v1416_v56, %v1636_v40  ;;  %v1419_v15 = vpop.f32.mrb[12].mxu1  ;;  %v424_v16 = vpop.f32.mrb[13].mxu0 }
 0x10f   :  { %1117 = vst.msk [vmem:[%s2040_s3 + $0x94] sm:$0xf] %vm1079_vm0, %v1290_v5  ;;  %v412_v14 = vadd.f32 %v1636_v40, %v411_v62  ;;  %v801_v17 = vsel %vm673_vm3, %v545_v61, %v737_v8  ;;  %v767_v18 = vsel %vm639_vm4, %v409_v3, %v703_v9  ;;  %v540_v19 = vadd.f32 %v1636_v40, %v539_v63  ;;  %v552_v21 = vpop.f32.mrb[13].mxu1  ;;  %v1388_v22 = vpop.f32.mrb[14].mxu0 }
 0x110   :  { %1090 = vst.msk [vmem:[%s2040_s3 + $0x28] sm:$0xf] %vm1079_vm0, %v1263_v7  ;;  %v433_v20 = vadd.f32 %v1387_v10, %v1636_v40  ;;  %v1295_v23 = vpack.c.bf16 %v801_v17, %v801_v17  ;;  %v1261_v24 = vpack.c.bf16 %v767_v18, %v767_v18  ;;  %vm671_vm5 = vcmp.ge.f32.partialorder %v537_v11, 0.0  ;;  %v1420_v26 = vpop.f32.mrb[14].mxu1  ;;  %v427_v27 = vpop.f32.mrb[15].mxu0 }
 0x111   :  { %v735_v25 = vmul.f32 0.2, %v537_v11  ;;  %vm642_vm6 = vcmp.ge.f32.partialorder %v420_v12, 0.0  ;;  %v706_v28 = vmul.f32 0.2, %v420_v12  ;;  %vm674_vm7 = vcmp.ge.f32.partialorder %v548_v13, 0.0 }
 0x112   :  { %v738_v29 = vmul.f32 0.2, %v548_v13  ;;  %1122 = vst.msk [vmem:[%s2040_s3 + $0xa8] sm:$0xf] %vm1079_vm0, %v1295_v23  ;;  %1088 = vst.msk [vmem:[%s2040_s3 + $0x20] sm:$0xf] %vm1079_vm0, %v1261_v24  ;;  %v561_v44 = vadd.f32 %v1419_v15, %v1636_v40  ;;  %v425_v48 = vadd.f32 %v1636_v40, %v424_v16  ;;  %v553_v49 = vadd.f32 %v1636_v40, %v552_v21 }
 0x113   :  { %v799_v30 = vsel %vm671_vm5, %v537_v11, %v735_v25  ;;  %vm640_vm8 = vcmp.ge.f32.partialorder %v412_v14, 0.0  ;;  %v704_v31 = vmul.f32 0.2, %v412_v14  ;;  %vm672_vm9 = vcmp.ge.f32.partialorder %v540_v19, 0.0  ;;  %v555_v32 = vpop.f32.mrb[15].mxu1 }
 0x114   :  { %v1293_v33 = vpack.c.bf16 %v799_v30, %v799_v30  ;;  %v770_v34 = vsel %vm642_vm6, %v420_v12, %v706_v28  ;;  %v802_v35 = vsel %vm674_vm7, %v548_v13, %v738_v29  ;;  %v736_v36 = vmul.f32 0.2, %v540_v19 }
 0x115   :  { %v1264_v37 = vpack.c.bf16 %v770_v34, %v770_v34  ;;  %v1296_v38 = vpack.c.bf16 %v802_v35, %v802_v35  ;;  %v768_v39 = vsel %vm640_vm8, %v412_v14, %v704_v31  ;;  %vm645_vm10 = vcmp.ge.f32.partialorder %v433_v20, 0.0  ;;  %v1391_v45 = vpop.f32.mrb[16].mxu0  ;;  %v1423_v46 = vpop.f32.mrb[16].mxu1 }
 0x116   :  { %1120 = vst.msk [vmem:[%s2040_s3 + $0xa0] sm:$0xf] %vm1079_vm0, %v1293_v33  ;;  %v1262_v41 = vpack.c.bf16 %v768_v39, %v768_v39  ;;  %v800_v42 = vsel %vm672_vm9, %v540_v19, %v736_v36  ;;  %v709_v43 = vmul.f32 0.2, %v433_v20  ;;  %v436_v50 = vadd.f32 %v1388_v22, %v1636_v40  ;;  %v440_v51 = vpop.f32.mrb[17].mxu0  ;;  %v568_v52 = vpop.f32.mrb[17].mxu1 }
 0x117   :  { %1091 = vst.msk [vmem:[%s2040_s3 + $0x2c] sm:$0xf] %vm1079_vm0, %v1264_v37  ;;  %1123 = vst.msk [vmem:[%s2040_s3 + $0xac] sm:$0xf] %vm1079_vm0, %v1296_v38  ;;  %v1294_v47 = vpack.c.bf16 %v800_v42, %v800_v42  ;;  %vm677_vm11 = vcmp.ge.f32.partialorder %v561_v44, 0.0  ;;  %v564_v55 = vadd.f32 %v1420_v26, %v1636_v40  ;;  %v1762_v56 = vpop.f32.mrb[18].mxu0  ;;  %v428_v7 = vadd.f32 %v1636_v40, %v427_v27 }
 0x118   :  { %1089 = vst.msk [vmem:[%s2040_s3 + $0x24] sm:$0xf] %vm1079_vm0, %v1262_v41  ;;  %v773_v53 = vsel %vm645_vm10, %v433_v20, %v709_v43  ;;  %v741_v54 = vmul.f32 0.2, %v561_v44  ;;  %v1764_v57 = vpop.f32.mrb[18].mxu1  ;;  %vm643_vm12 = vcmp.ge.f32.partialorder %v425_v48, 0.0  ;;  %v556_v11 = vadd.f32 %v1636_v40, %v555_v32 }
 0x119   :  { %1121 = vst.msk [vmem:[%s2040_s3 + $0xa4] sm:$0xf] %vm1079_vm0, %v1294_v47  ;;  %v1267_v58 = vpack.c.bf16 %v773_v53, %v773_v53  ;;  %v707_v59 = vmul.f32 0.2, %v425_v48  ;;  %vm675_vm13 = vcmp.ge.f32.partialorder %v553_v49, 0.0  ;;  %v1770_v60 = vpop.f32.mrb[19].mxu0  ;;  %v449_v14 = vadd.f32 %v1391_v45, %v1636_v40 }
 0x11a   :  { %v1772_v61 = vpop.f32.mrb[19].mxu1  ;;  %v805_v62 = vsel %vm677_vm11, %v561_v44, %v741_v54  ;;  %v739_v63 = vmul.f32 0.2, %v553_v49  ;;  %vm646_vm14 = vcmp.ge.f32.partialorder %v436_v50, 0.0  ;;  %v710_v0 = vmul.f32 0.2, %v436_v50 }
 0x11b   :  { %1094 = vst.msk [vmem:[%s2040_s3 + $0x38] sm:$0xf] %vm1079_vm0, %v1267_v58  ;;  %v1299_v1 = vpack.c.bf16 %v805_v62, %v805_v62  ;;  %v771_v2 = vsel %vm643_vm12, %v425_v48, %v707_v59  ;;  %vm678_vm15 = vcmp.ge.f32.partialorder %v564_v55, 0.0  ;;  %v742_v3 = vmul.f32 0.2, %v564_v55 }
 0x11c   :  { %v1265_v4 = vpack.c.bf16 %v771_v2, %v771_v2  ;;  %v803_v5 = vsel %vm675_vm13, %v553_v49, %v739_v63  ;;  %v774_v6 = vsel %vm646_vm14, %v436_v50, %v710_v0  ;;  %vm644_vm1 = vcmp.ge.f32.partialorder %v428_v7, 0.0 }
 0x11d   :  { %1126 = vst.msk [vmem:[%s2040_s3 + $0xb8] sm:$0xf] %vm1079_vm0, %v1299_v1  ;;  %v1297_v8 = vpack.c.bf16 %v803_v5, %v803_v5  ;;  %v1268_v9 = vpack.c.bf16 %v774_v6, %v774_v6  ;;  %v806_v10 = vsel %vm678_vm15, %v564_v55, %v742_v3  ;;  %v708_v13 = vmul.f32 0.2, %v428_v7  ;;  %v1395_v15 = vpop.f32.mrb[20].mxu0  ;;  %v1427_v16 = vpop.f32.mrb[20].mxu1 }
 0x11e   :  { %1092 = vst.msk [vmem:[%s2040_s3 + $0x30] sm:$0xf] %vm1079_vm0, %v1265_v4  ;;  %v1300_v12 = vpack.c.bf16 %v806_v10, %v806_v10  ;;  %vm676_vm2 = vcmp.ge.f32.partialorder %v556_v11, 0.0  ;;  %v740_v17 = vmul.f32 0.2, %v556_v11  ;;  %v577_v18 = vadd.f32 %v1423_v46, %v1636_v40  ;;  %v456_v20 = vpop.f32.mrb[21].mxu0 }
 0x11f   :  { %1124 = vst.msk [vmem:[%s2040_s3 + $0xb0] sm:$0xf] %vm1079_vm0, %v1297_v8  ;;  %1095 = vst.msk [vmem:[%s2040_s3 + $0x3c] sm:$0xf] %vm1079_vm0, %v1268_v9  ;;  %v441_v19 = vadd.f32 %v1636_v40, %v440_v51  ;;  %v1799_v21 = vpop.f32.mrb[21].mxu1  ;;  %v772_v22 = vsel %vm644_vm1, %v428_v7, %v708_v13  ;;  %vm649_vm3 = vcmp.ge.f32.partialorder %v449_v14, 0.0  ;;  %v569_v24 = vadd.f32 %v1636_v40, %v568_v52 }
 0x120   :  { %1127 = vst.msk [vmem:[%s2040_s3 + $0xbc] sm:$0xf] %vm1079_vm0, %v1300_v12  ;;  %v713_v23 = vmul.f32 0.2, %v449_v14  ;;  %v1806_v25 = vpop.f32.mrb[22].mxu0  ;;  %v1808_v26 = vpop.f32.mrb[22].mxu1  ;;  %v1266_v27 = vpack.c.bf16 %v772_v22, %v772_v22  ;;  %v804_v28 = vsel %vm676_vm2, %v556_v11, %v740_v17  ;;  %v452_v41 = vadd.f32 %v1762_v56, %v1636_v40 }
 0x121   :  { %vm681_vm4 = vcmp.ge.f32.partialorder %v577_v18, 0.0  ;;  %v745_v29 = vmul.f32 0.2, %v577_v18  ;;  %v1810_v30 = vpop.f32.mrb[23].mxu0  ;;  %v1812_v31 = vpop.f32.mrb[23].mxu1  ;;  %v1298_v32 = vpack.c.bf16 %v804_v28, %v804_v28  ;;  %vm647_vm5 = vcmp.ge.f32.partialorder %v441_v19, 0.0 }
 0x122   :  { %v777_v33 = vsel %vm649_vm3, %v449_v14, %v713_v23  ;;  %v711_v34 = vmul.f32 0.2, %v441_v19  ;;  %1093 = vst.msk [vmem:[%s2040_s3 + $0x34] sm:$0xf] %vm1079_vm0, %v1266_v27  ;;  %vm679_vm6 = vcmp.ge.f32.partialorder %v569_v24, 0.0  ;;  %v580_v42 = vadd.f32 %v1764_v57, %v1636_v40 }
 0x123   :  { %v1271_v35 = vpack.c.bf16 %v777_v33, %v777_v33  ;;  %v809_v36 = vsel %vm681_vm4, %v577_v18, %v745_v29  ;;  %v743_v37 = vmul.f32 0.2, %v569_v24  ;;  %1125 = vst.msk [vmem:[%s2040_s3 + $0xb4] sm:$0xf] %vm1079_vm0, %v1298_v32  ;;  %v444_v45 = vadd.f32 %v1636_v40, %v1770_v60 }
 0x124   :  { %v1303_v38 = vpack.c.bf16 %v809_v36, %v809_v36  ;;  %v775_v39 = vsel %vm647_vm5, %v441_v19, %v711_v34  ;;  %v572_v46 = vadd.f32 %v1636_v40, %v1772_v61  ;;  %vm650_vm7 = vcmp.ge.f32.partialorder %v452_v41, 0.0 }
 0x125   :  { %1098 = vst.msk [vmem:[%s2040_s3 + $0x48] sm:$0xf] %vm1079_vm0, %v1271_v35  ;;  %v1269_v43 = vpack.c.bf16 %v775_v39, %v775_v39  ;;  %v807_v44 = vsel %vm679_vm6, %v569_v24, %v743_v37  ;;  %v714_v48 = vmul.f32 0.2, %v452_v41  ;;  %vm682_vm8 = vcmp.ge.f32.partialorder %v580_v42, 0.0  ;;  %v1838_v49 = vpop.f32.mrb[24].mxu0 }
 0x126   :  { %1130 = vst.msk [vmem:[%s2040_s3 + $0xc8] sm:$0xf] %vm1079_vm0, %v1303_v38  ;;  %v1301_v47 = vpack.c.bf16 %v807_v44, %v807_v44  ;;  %v1840_v50 = vpop.f32.mrb[24].mxu1  ;;  %v746_v51 = vmul.f32 0.2, %v580_v42  ;;  %vm648_vm9 = vcmp.ge.f32.partialorder %v444_v45, 0.0  ;;  %v465_v55 = vadd.f32 %v1395_v15, %v1636_v40 }
 0x127   :  { %1096 = vst.msk [vmem:[%s2040_s3 + $0x40] sm:$0xf] %vm1079_vm0, %v1269_v43  ;;  %v712_v52 = vmul.f32 0.2, %v444_v45  ;;  %vm680_vm10 = vcmp.ge.f32.partialorder %v572_v46, 0.0  ;;  %v778_v53 = vsel %vm650_vm7, %v452_v41, %v714_v48  ;;  %v593_v56 = vadd.f32 %v1427_v16, %v1636_v40  ;;  %v1852_v57 = vpop.f32.mrb[25].mxu0 }
 0x128   :  { %1128 = vst.msk [vmem:[%s2040_s3 + $0xc0] sm:$0xf] %vm1079_vm0, %v1301_v47  ;;  %v744_v54 = vmul.f32 0.2, %v572_v46  ;;  %v1854_v58 = vpop.f32.mrb[25].mxu1  ;;  %v1272_v59 = vpack.c.bf16 %v778_v53, %v778_v53  ;;  %v810_v60 = vsel %vm682_vm8, %v580_v42, %v746_v51  ;;  %v457_v62 = vadd.f32 %v1636_v40, %v456_v20  ;;  %v1858_v63 = vpop.f32.mrb[26].mxu0 }
 0x129   :  { %v776_v61 = vsel %vm648_vm9, %v444_v45, %v712_v52  ;;  %v1860_v0 = vpop.f32.mrb[26].mxu1  ;;  %v1304_v1 = vpack.c.bf16 %v810_v60, %v810_v60  ;;  %vm653_vm11 = vcmp.ge.f32.partialorder %v465_v55, 0.0  ;;  %v1863_v4 = vpop.f32.mrb[27].mxu0  ;;  %v717_v7 = vmul.f32 0.2, %v465_v55 }
 0x12a   :  { %v1270_v2 = vpack.c.bf16 %v776_v61, %v776_v61  ;;  %v808_v3 = vsel %vm680_vm10, %v572_v46, %v744_v54  ;;  %v1865_v5 = vpop.f32.mrb[27].mxu1  ;;  %1099 = vst.msk [vmem:[%s2040_s3 + $0x4c] sm:$0xf] %vm1079_vm0, %v1272_v59  ;;  %vm685_vm12 = vcmp.ge.f32.partialorder %v593_v56, 0.0  ;;  %v749_v8 = vmul.f32 0.2, %v593_v56 }
 0x12b   :  { %v1302_v6 = vpack.c.bf16 %v808_v3, %v808_v3  ;;  %1131 = vst.msk [vmem:[%s2040_s3 + $0xcc] sm:$0xf] %vm1079_vm0, %v1304_v1  ;;  %vm651_vm13 = vcmp.ge.f32.partialorder %v457_v62, 0.0  ;;  %v715_v9 = vmul.f32 0.2, %v457_v62  ;;  %v585_v10 = vadd.f32 %v1636_v40, %v1799_v21 }
 0x12c   :  { %1097 = vst.msk [vmem:[%s2040_s3 + $0x44] sm:$0xf] %vm1079_vm0, %v1270_v2  ;;  %v468_v11 = vadd.f32 %v1806_v25, %v1636_v40  ;;  %v781_v12 = vsel %vm653_vm11, %v465_v55, %v717_v7  ;;  %v813_v13 = vsel %vm685_vm12, %v593_v56, %v749_v8  ;;  %v596_v14 = vadd.f32 %v1808_v26, %v1636_v40 }
 0x12d   :  { %1129 = vst.msk [vmem:[%s2040_s3 + $0xc4] sm:$0xf] %vm1079_vm0, %v1302_v6  ;;  %v460_v15 = vadd.f32 %v1636_v40, %v1810_v30  ;;  %v1275_v16 = vpack.c.bf16 %v781_v12, %v781_v12  ;;  %v1307_v17 = vpack.c.bf16 %v813_v13, %v813_v13  ;;  %v779_v18 = vsel %vm651_vm13, %v457_v62, %v715_v9  ;;  %v1891_v19 = vpop.f32.mrb[28].mxu0  ;;  %v1893_v20 = vpop.f32.mrb[28].mxu1 }
 0x12e   :  { %vm683_vm14 = vcmp.ge.f32.partialorder %v585_v10, 0.0  ;;  %v1273_v21 = vpack.c.bf16 %v779_v18, %v779_v18  ;;  %v747_v22 = vmul.f32 0.2, %v585_v10  ;;  %vm654_vm15 = vcmp.ge.f32.partialorder %v468_v11, 0.0  ;;  %v1895_v24 = vpop.f32.mrb[29].mxu0  ;;  %v1913_v32 = vpop.f32.mrb[29].mxu1 }
 0x12f   :  { %v718_v23 = vmul.f32 0.2, %v468_v11  ;;  %1102 = vst.msk [vmem:[%s2040_s3 + $0x58] sm:$0xf] %vm1079_vm0, %v1275_v16  ;;  %1134 = vst.msk [vmem:[%s2040_s3 + $0xd8] sm:$0xf] %vm1079_vm0, %v1307_v17  ;;  %v588_v29 = vadd.f32 %v1636_v40, %v1812_v31  ;;  %v481_v30 = vadd.f32 %v1838_v49, %v1636_v40  ;;  %v609_v45 = vadd.f32 %v1840_v50, %v1636_v40 }
 0x130   :  { %vm686_vm1 = vcmp.ge.f32.partialorder %v596_v14, 0.0  ;;  %v750_v25 = vmul.f32 0.2, %v596_v14  ;;  %vm652_vm2 = vcmp.ge.f32.partialorder %v460_v15, 0.0  ;;  %v716_v26 = vmul.f32 0.2, %v460_v15 }
 0x131   :  { %1100 = vst.msk [vmem:[%s2040_s3 + $0x50] sm:$0xf] %vm1079_vm0, %v1273_v21  ;;  %v811_v27 = vsel %vm683_vm14, %v585_v10, %v747_v22  ;;  %v782_v28 = vsel %vm654_vm15, %v468_v11, %v718_v23  ;;  %v1915_v33 = vpop.f32.mrb[30].mxu0  ;;  %v1917_v38 = vpop.f32.mrb[30].mxu1  ;;  %vm684_vm3 = vcmp.ge.f32.partialorder %v588_v29, 0.0  ;;  %vm657_vm4 = vcmp.ge.f32.partialorder %v481_v30, 0.0 }
 0x132   :  { %v1305_v34 = vpack.c.bf16 %v811_v27, %v811_v27  ;;  %v1276_v35 = vpack.c.bf16 %v782_v28, %v782_v28  ;;  %v814_v36 = vsel %vm686_vm1, %v596_v14, %v750_v25  ;;  %v780_v37 = vsel %vm652_vm2, %v460_v15, %v716_v26  ;;  %v1919_v39 = vpop.f32.mrb[31].mxu0  ;;  %v1921_v31 = vpop.f32.mrb[31].mxu1 }
 0x133   :  { %v1308_v41 = vpack.c.bf16 %v814_v36, %v814_v36  ;;  %v1274_v42 = vpack.c.bf16 %v780_v37, %v780_v37  ;;  %v748_v43 = vmul.f32 0.2, %v588_v29  ;;  %v721_v44 = vmul.f32 0.2, %v481_v30 }
 0x134   :  { %1132 = vst.msk [vmem:[%s2040_s3 + $0xd0] sm:$0xf] %vm1079_vm0, %v1305_v34  ;;  %1103 = vst.msk [vmem:[%s2040_s3 + $0x5c] sm:$0xf] %vm1079_vm0, %v1276_v35  ;;  %v473_v46 = vadd.f32 %v1636_v40, %v1852_v57  ;;  %v601_v48 = vadd.f32 %v1636_v40, %v1854_v58  ;;  %v484_v49 = vadd.f32 %v1858_v63, %v1636_v40  ;;  %vm689_vm5 = vcmp.ge.f32.partialorder %v609_v45, 0.0 }
 0x135   :  { %1135 = vst.msk [vmem:[%s2040_s3 + $0xdc] sm:$0xf] %vm1079_vm0, %v1308_v41  ;;  %1101 = vst.msk [vmem:[%s2040_s3 + $0x54] sm:$0xf] %vm1079_vm0, %v1274_v42  ;;  %v812_v47 = vsel %vm684_vm3, %v588_v29, %v748_v43  ;;  %v612_v50 = vadd.f32 %v1860_v0, %v1636_v40  ;;  %v785_v52 = vsel %vm657_vm4, %v481_v30, %v721_v44  ;;  %v753_v53 = vmul.f32 0.2, %v609_v45 }
 0x136   :  { %v1306_v51 = vpack.c.bf16 %v812_v47, %v812_v47  ;;  %v1279_v54 = vpack.c.bf16 %v785_v52, %v785_v52  ;;  %vm655_vm6 = vcmp.ge.f32.partialorder %v473_v46, 0.0  ;;  %v719_v55 = vmul.f32 0.2, %v473_v46 }
 0x137   :  { %vm687_vm7 = vcmp.ge.f32.partialorder %v601_v48, 0.0  ;;  %v817_v56 = vsel %vm689_vm5, %v609_v45, %v753_v53  ;;  %v751_v57 = vmul.f32 0.2, %v601_v48  ;;  %vm658_vm8 = vcmp.ge.f32.partialorder %v484_v49, 0.0 }
 0x138   :  { %1133 = vst.msk [vmem:[%s2040_s3 + $0xd4] sm:$0xf] %vm1079_vm0, %v1306_v51  ;;  %v722_v58 = vmul.f32 0.2, %v484_v49  ;;  %1106 = vst.msk [vmem:[%s2040_s3 + $0x68] sm:$0xf] %vm1079_vm0, %v1279_v54  ;;  %v1311_v59 = vpack.c.bf16 %v817_v56, %v817_v56  ;;  %v783_v60 = vsel %vm655_vm6, %v473_v46, %v719_v55  ;;  %v476_v1 = vadd.f32 %v1636_v40, %v1863_v4 }
 0x139   :  { %vm690_vm9 = vcmp.ge.f32.partialorder %v612_v50, 0.0  ;;  %v754_v61 = vmul.f32 0.2, %v612_v50  ;;  %v1277_v62 = vpack.c.bf16 %v783_v60, %v783_v60  ;;  %v815_v63 = vsel %vm687_vm7, %v601_v48, %v751_v57 }
 0x13a   :  { %v786_v0 = vsel %vm658_vm8, %v484_v49, %v722_v58  ;;  %1138 = vst.msk [vmem:[%s2040_s3 + $0xe8] sm:$0xf] %vm1079_vm0, %v1311_v59  ;;  %v1309_v2 = vpack.c.bf16 %v815_v63, %v815_v63  ;;  %v604_v7 = vadd.f32 %v1636_v40, %v1865_v5  ;;  %vm656_vm10 = vcmp.ge.f32.partialorder %v476_v1, 0.0 }
 0x13b   :  { %v1280_v3 = vpack.c.bf16 %v786_v0, %v786_v0  ;;  %v818_v6 = vsel %vm690_vm9, %v612_v50, %v754_v61  ;;  %1104 = vst.msk [vmem:[%s2040_s3 + $0x60] sm:$0xf] %vm1079_vm0, %v1277_v62  ;;  %v720_v9 = vmul.f32 0.2, %v476_v1  ;;  %v497_v4 = vadd.f32 %v1891_v19, %v1636_v40 }
 0x13c   :  { %v1312_v8 = vpack.c.bf16 %v818_v6, %v818_v6  ;;  %1136 = vst.msk [vmem:[%s2040_s3 + $0xe0] sm:$0xf] %vm1079_vm0, %v1309_v2  ;;  %vm688_vm11 = vcmp.ge.f32.partialorder %v604_v7, 0.0  ;;  %v752_v5 = vmul.f32 0.2, %v604_v7  ;;  %v625_v10 = vadd.f32 %v1893_v20, %v1636_v40 }
 0x13d   :  { %1107 = vst.msk [vmem:[%s2040_s3 + $0x6c] sm:$0xf] %vm1079_vm0, %v1280_v3  ;;  %v489_v11 = vadd.f32 %v1636_v40, %v1895_v24  ;;  %v784_v12 = vsel %vm656_vm10, %v476_v1, %v720_v9  ;;  %vm661_vm12 = vcmp.ge.f32.partialorder %v497_v4, 0.0  ;;  %v725_v13 = vmul.f32 0.2, %v497_v4 }
 0x13e   :  { %1139 = vst.msk [vmem:[%s2040_s3 + $0xec] sm:$0xf] %vm1079_vm0, %v1312_v8  ;;  %v617_v14 = vadd.f32 %v1636_v40, %v1913_v32  ;;  %v1278_v15 = vpack.c.bf16 %v784_v12, %v784_v12  ;;  %v816_v16 = vsel %vm688_vm11, %v604_v7, %v752_v5  ;;  %vm693_vm13 = vcmp.ge.f32.partialorder %v625_v10, 0.0 }
 0x13f   :  { %v757_v17 = vmul.f32 0.2, %v625_v10  ;;  %v1310_v18 = vpack.c.bf16 %v816_v16, %v816_v16  ;;  %v789_v19 = vsel %vm661_vm12, %v497_v4, %v725_v13  ;;  %vm659_vm14 = vcmp.ge.f32.partialorder %v489_v11, 0.0 }
 0x140   :  { %v723_v20 = vmul.f32 0.2, %v489_v11  ;;  %1105 = vst.msk [vmem:[%s2040_s3 + $0x64] sm:$0xf] %vm1079_vm0, %v1278_v15  ;;  %v1283_v21 = vpack.c.bf16 %v789_v19, %v789_v19  ;;  %vm691_vm15 = vcmp.ge.f32.partialorder %v617_v14, 0.0  ;;  %v500_v26 = vadd.f32 %v1915_v33, %v1636_v40 }
 0x141   :  { %v821_v22 = vsel %vm693_vm13, %v625_v10, %v757_v17  ;;  %v755_v23 = vmul.f32 0.2, %v617_v14  ;;  %1137 = vst.msk [vmem:[%s2040_s3 + $0xe4] sm:$0xf] %vm1079_vm0, %v1310_v18  ;;  %v628_v27 = vadd.f32 %v1917_v38, %v1636_v40  ;;  %v492_v30 = vadd.f32 %v1636_v40, %v1919_v39 }
 0x142   :  { %v1315_v24 = vpack.c.bf16 %v821_v22, %v821_v22  ;;  %v787_v25 = vsel %vm659_vm14, %v489_v11, %v723_v20  ;;  %1110 = vst.msk [vmem:[%s2040_s3 + $0x78] sm:$0xf] %vm1079_vm0, %v1283_v21  ;;  %v620_v32 = vadd.f32 %v1636_v40, %v1921_v31  ;;  %vm662_vm1 = vcmp.ge.f32.partialorder %v500_v26, 0.0 }
 0x143   :  { %v1281_v28 = vpack.c.bf16 %v787_v25, %v787_v25  ;;  %v819_v29 = vsel %vm691_vm15, %v617_v14, %v755_v23  ;;  %v726_v34 = vmul.f32 0.2, %v500_v26  ;;  %vm694_vm2 = vcmp.ge.f32.partialorder %v628_v27, 0.0 }
 0x144   :  { %1142 = vst.msk [vmem:[%s2040_s3 + $0xf8] sm:$0xf] %vm1079_vm0, %v1315_v24  ;;  %v1313_v33 = vpack.c.bf16 %v819_v29, %v819_v29  ;;  %v758_v35 = vmul.f32 0.2, %v628_v27  ;;  %vm660_vm3 = vcmp.ge.f32.partialorder %v492_v30, 0.0  ;;  %vm692_vm4 = vcmp.ge.f32.partialorder %v620_v32, 0.0 }
 0x145   :  { %1108 = vst.msk [vmem:[%s2040_s3 + $0x70] sm:$0xf] %vm1079_vm0, %v1281_v28  ;;  %v724_v36 = vmul.f32 0.2, %v492_v30  ;;  %v790_v40 = vsel %vm662_vm1, %v500_v26, %v726_v34  ;;  %v756_v37 = vmul.f32 0.2, %v620_v32 }
 0x146   :  { %1140 = vst.msk [vmem:[%s2040_s3 + $0xf0] sm:$0xf] %vm1079_vm0, %v1313_v33  ;;  %v1284_v38 = vpack.c.bf16 %v790_v40, %v790_v40  ;;  %v822_v39 = vsel %vm694_vm2, %v628_v27, %v758_v35 }
 0x147   :  { %v788_v41 = vsel %vm660_vm3, %v492_v30, %v724_v36  ;;  %v1316_v42 = vpack.c.bf16 %v822_v39, %v822_v39  ;;  %v820_v31 = vsel %vm692_vm4, %v620_v32, %v756_v37 }
 0x148   :  { %v1282_v43 = vpack.c.bf16 %v788_v41, %v788_v41  ;;  %1111 = vst.msk [vmem:[%s2040_s3 + $0x7c] sm:$0xf] %vm1079_vm0, %v1284_v38  ;;  %v1314_v44 = vpack.c.bf16 %v820_v31, %v820_v31 }
 0x149   :  { %1143 = vst.msk [vmem:[%s2040_s3 + $0xfc] sm:$0xf] %vm1079_vm0, %v1316_v42 }
 0x14a   :  { %1109 = vst.msk [vmem:[%s2040_s3 + $0x74] sm:$0xf] %vm1079_vm0, %v1282_v43  ;;  %1141 = vst.msk [vmem:[%s2040_s3 + $0xf4] sm:$0xf] %vm1079_vm0, %v1314_v44 }

// kernel: discriminator_forward.6
= control target key start
LH: loop header
LB: loop body
LE: loop exit
PB: predicated region body
PF: predicated region fallthrough
CT: control target
= control target key end

     0   :  { %s2649_s1 = inlined_call_operand.vmem [shape: bf16[1024,128], index: 1, kind: input, shape index: {}]   ;;  %s2650_s0 = inlined_call_operand.vmem [shape: bf16[128,1024], index: 0, kind: input, shape index: {}]   ;;  %s2651_s2 = inlined_call_operand.vmem [shape: f32[1,128], index: 2, kind: input, shape index: {}]   ;;  %s2652_s3 = inlined_call_operand.vmem [shape: f32[1,128], index: 3, kind: input, shape index: {}]   ;;  %s2653_s4 = inlined_call_operand.vmem [shape: bf16[128,128], index: 4, kind: output, shape index: {}]  }
   0x1   :  { %v2040_v0 = vld [vmem:[%s2649_s1 + $0x40] sm:$0xff]   ;;  %v2044_v4 = vld [vmem:[%s2649_s1 + $0x48] sm:$0xff]   ;;  %v2048_v8 = vld [vmem:[%s2649_s1 + $0x50] sm:$0xff]  }
   0x2   :  { %v2041_v1 = vld [vmem:[%s2649_s1 + $0xc0] sm:$0xff]   ;;  %1784 = vmatprep.subr.bf16.mxu0 %v2040_v0  ;;  %v2045_v5 = vld [vmem:[%s2649_s1 + $0xc8] sm:$0xff]   ;;  %v2049_v9 = vld [vmem:[%s2649_s1 + $0xd0] sm:$0xff]  }
   0x3   :  { %v2042_v2 = vld [vmem:[%s2649_s1] sm:$0xff]   ;;  %1848 = vmatprep.subr.bf16.mxu1 %v2041_v1  ;;  %v2046_v6 = vld [vmem:[%s2649_s1 + $0x8] sm:$0xff]   ;;  %v2050_v10 = vld [vmem:[%s2649_s1 + $0x10] sm:$0xff]  }
   0x4   :  { %v2043_v3 = vld [vmem:[%s2649_s1 + $0x80] sm:$0xff]   ;;  %1785 = vmatpush3.bf16.msra.mxu0 %v2042_v2  ;;  %v2047_v7 = vld [vmem:[%s2649_s1 + $0x88] sm:$0xff]   ;;  %v2051_v11 = vld [vmem:[%s2649_s1 + $0x90] sm:$0xff]  }
   0x5   :  { %1849 = vmatpush3.bf16.msra.mxu1 %v2043_v3  ;;  %1786 = vmatprep.subr.bf16.mxu0 %v2044_v4  ;;  %v2052_v12 = vld [vmem:[%s2649_s1 + $0x58] sm:$0xff]   ;;  %v2056_v16 = vld [vmem:[%s2649_s1 + $0x60] sm:$0xff]   ;;  %v2060_v20 = vld [vmem:[%s2649_s1 + $0x68] sm:$0xff]  }
   0x6   :  { %1850 = vmatprep.subr.bf16.mxu1 %v2045_v5  ;;  %v2053_v13 = vld [vmem:[%s2649_s1 + $0xd8] sm:$0xff]   ;;  %v2057_v17 = vld [vmem:[%s2649_s1 + $0xe0] sm:$0xff]   ;;  %v2061_v21 = vld [vmem:[%s2649_s1 + $0xe8] sm:$0xff]  }
   0x7   :  { %v2054_v14 = vld [vmem:[%s2649_s1 + $0x18] sm:$0xff]   ;;  %v2058_v18 = vld [vmem:[%s2649_s1 + $0x20] sm:$0xff]   ;;  %v2062_v22 = vld [vmem:[%s2649_s1 + $0x28] sm:$0xff]  }
   0x8   :  { %1787 = vmatpush3.bf16.msra.mxu0 %v2046_v6  ;;  %v2055_v15 = vld [vmem:[%s2649_s1 + $0x98] sm:$0xff]   ;;  %v2059_v19 = vld [vmem:[%s2649_s1 + $0xa0] sm:$0xff]   ;;  %v2063_v23 = vld [vmem:[%s2649_s1 + $0xa8] sm:$0xff]  }
   0x9   :  { %1851 = vmatpush3.bf16.msra.mxu1 %v2047_v7  ;;  %1788 = vmatprep.subr.bf16.mxu0 %v2048_v8  ;;  %v2064_v24 = vld [vmem:[%s2649_s1 + $0x70] sm:$0xff]   ;;  %v2068_v28 = vld [vmem:[%s2649_s1 + $0x78] sm:$0xff]   ;;  %v18_v32 = vld [vmem:[%s2650_s0] sm:$0xff] }
   0xa   :  { %1852 = vmatprep.subr.bf16.mxu1 %v2049_v9  ;;  %v2065_v25 = vld [vmem:[%s2649_s1 + $0xf0] sm:$0xff]   ;;  %v2069_v29 = vld [vmem:[%s2649_s1 + $0xf8] sm:$0xff]   ;;  %v22_v33 = vld [vmem:[%s2650_s0 + $0x20] sm:$0xff] }
   0xb   :  { %v2066_v26 = vld [vmem:[%s2649_s1 + $0x30] sm:$0xff]   ;;  %v2070_v30 = vld [vmem:[%s2649_s1 + $0x38] sm:$0xff]   ;;  %v19_v34 = vld [vmem:[%s2650_s0 + $0x8] sm:$0xff]  ;;  %v1575_v35 = vcombine.low %v18_v32, %v22_v33  ;;  %v1576_v36 = vcombine.high %v18_v32, %v22_v33 }
   0xc   :  { %1789 = vmatpush3.bf16.msra.mxu0 %v2050_v10  ;;  %v2067_v27 = vld [vmem:[%s2649_s1 + $0xb0] sm:$0xff]   ;;  %v2071_v31 = vld [vmem:[%s2649_s1 + $0xb8] sm:$0xff]   ;;  %v23_v37 = vld [vmem:[%s2650_s0 + $0x28] sm:$0xff] }
   0xd   :  { %1853 = vmatpush3.bf16.msra.mxu1 %v2051_v11  ;;  %1790 = vmatprep.subr.bf16.mxu0 %v2052_v12  ;;  %v1577_v38 = vcombine.low %v19_v34, %v23_v37  ;;  %v1578_v39 = vcombine.high %v19_v34, %v23_v37  ;;  %v2072_v40 = vld [vmem:[%s2649_s1 + $0x140] sm:$0xff]   ;;  %v27_v47 = vld [vmem:[%s2650_s0 + $0x48] sm:$0xff]  ;;  %v2080_v62 = vld [vmem:[%s2649_s1 + $0x150] sm:$0xff]  }
   0xe   :  { %1854 = vmatprep.subr.bf16.mxu1 %v2053_v13  ;;  %946 = vmatprep.mubr.bf16.mxu0 %v1576_v36  ;;  %v2073_v41 = vld [vmem:[%s2649_s1 + $0x100] sm:$0xff]   ;;  %v31_v48 = vld [vmem:[%s2650_s0 + $0x68] sm:$0xff]  ;;  %v2081_v63 = vld [vmem:[%s2649_s1 + $0x110] sm:$0xff]  }
   0xf   :  { %1043 = vmatprep.mubr.bf16.mxu1 %v1578_v39  ;;  %v2074_v42 = vld [vmem:[%s2649_s1 + $0x1c0] sm:$0xff]   ;;  %v1586_v49 = vcombine.high %v27_v47, %v31_v48  ;;  %v2076_v50 = vld [vmem:[%s2649_s1 + $0x148] sm:$0xff]   ;;  %v1585_v53 = vcombine.low %v27_v47, %v31_v48  ;;  %v2082_v0 = vld [vmem:[%s2649_s1 + $0x1d0] sm:$0xff]  }
  0x10   :  { %1791 = vmatpush3.bf16.msra.mxu0 %v2054_v14  ;;  %v2075_v43 = vld [vmem:[%s2649_s1 + $0x180] sm:$0xff]   ;;  %v2077_v52 = vld [vmem:[%s2649_s1 + $0x108] sm:$0xff]   ;;  %v2083_v1 = vld [vmem:[%s2649_s1 + $0x190] sm:$0xff]  }
  0x11   :  { %1855 = vmatpush3.bf16.msra.mxu1 %v2055_v15  ;;  %1792 = vmatprep.subr.bf16.mxu0 %v2056_v16  ;;  %v26_v44 = vld [vmem:[%s2650_s0 + $0x40] sm:$0xff]  ;;  %v2078_v54 = vld [vmem:[%s2649_s1 + $0x1c8] sm:$0xff]   ;;  %v2084_v10 = vld [vmem:[%s2649_s1 + $0x158] sm:$0xff]  }
  0x12   :  { %1856 = vmatprep.subr.bf16.mxu1 %v2057_v17  ;;  %v30_v45 = vld [vmem:[%s2650_s0 + $0x60] sm:$0xff]  ;;  %v2079_v55 = vld [vmem:[%s2649_s1 + $0x188] sm:$0xff]   ;;  %v2085_v11 = vld [vmem:[%s2649_s1 + $0x118] sm:$0xff]  }
  0x13   :  { %v1584_v46 = vcombine.high %v26_v44, %v30_v45  ;;  %v1583_v51 = vcombine.low %v26_v44, %v30_v45  ;;  %v34_v56 = vld [vmem:[%s2650_s0 + $0x80] sm:$0xff]  ;;  %v35_v58 = vld [vmem:[%s2650_s0 + $0x88] sm:$0xff]  ;;  %v2086_v12 = vld [vmem:[%s2649_s1 + $0x1d8] sm:$0xff]  }
  0x14   :  { %1793 = vmatpush3.bf16.msra.mxu0 %v2058_v18  ;;  %v38_v57 = vld [vmem:[%s2650_s0 + $0xa0] sm:$0xff]  ;;  %v39_v59 = vld [vmem:[%s2650_s0 + $0xa8] sm:$0xff]  ;;  %v2087_v13 = vld [vmem:[%s2649_s1 + $0x198] sm:$0xff]  }
  0x15   :  { %1857 = vmatpush3.bf16.msra.mxu1 %v2059_v19  ;;  %1794 = vmatprep.subr.bf16.mxu0 %v2060_v20  ;;  %v1592_v60 = vcombine.high %v34_v56, %v38_v57  ;;  %v1594_v61 = vcombine.high %v35_v58, %v39_v59  ;;  %v1591_v2 = vcombine.low %v34_v56, %v38_v57  ;;  %v42_v3 = vld [vmem:[%s2650_s0 + $0xc0] sm:$0xff]  ;;  %v43_v5 = vld [vmem:[%s2650_s0 + $0xc8] sm:$0xff]  ;;  %v2097_v39 = vld [vmem:[%s2649_s1 + $0x130] sm:$0xff]  }
  0x16   :  { %1858 = vmatprep.subr.bf16.mxu1 %v2061_v21  ;;  %v46_v4 = vld [vmem:[%s2650_s0 + $0xe0] sm:$0xff]  ;;  %v1593_v6 = vcombine.low %v35_v58, %v39_v59  ;;  %v47_v8 = vld [vmem:[%s2650_s0 + $0xe8] sm:$0xff]  ;;  %v2101_v48 = vld [vmem:[%s2649_s1 + $0x138] sm:$0xff]  }
  0x17   :  { %v1600_v7 = vcombine.high %v42_v3, %v46_v4  ;;  %v1602_v9 = vcombine.high %v43_v5, %v47_v8  ;;  %v50_v14 = vld [vmem:[%s2650_s0 + $0x100] sm:$0xff]  ;;  %v51_v16 = vld [vmem:[%s2650_s0 + $0x108] sm:$0xff]  ;;  %v1599_v19 = vcombine.low %v42_v3, %v46_v4  ;;  %v1601_v21 = vcombine.low %v43_v5, %v47_v8  ;;  %v29_v8 = vld [vmem:[%s2650_s0 + $0x58] sm:$0xff] }
  0x18   :  { %1795 = vmatpush3.bf16.msra.mxu0 %v2062_v22  ;;  %v54_v15 = vld [vmem:[%s2650_s0 + $0x120] sm:$0xff]  ;;  %v55_v17 = vld [vmem:[%s2650_s0 + $0x128] sm:$0xff] }
  0x19   :  { %1859 = vmatpush3.bf16.msra.mxu1 %v2063_v23  ;;  %1796 = vmatprep.subr.bf16.mxu0 %v2064_v24  ;;  %v2088_v18 = vld [vmem:[%s2649_s1 + $0x160] sm:$0xff]   ;;  %v1608_v22 = vcombine.high %v50_v14, %v54_v15  ;;  %v1610_v24 = vcombine.high %v51_v16, %v55_v17  ;;  %v2094_v32 = vld [vmem:[%s2649_s1 + $0x1e8] sm:$0xff]   ;;  %v1607_v34 = vcombine.low %v50_v14, %v54_v15  ;;  %v36_v14 = vld [vmem:[%s2650_s0 + $0x90] sm:$0xff] }
  0x1a   :  { %1860 = vmatprep.subr.bf16.mxu1 %v2065_v25  ;;  %v2089_v20 = vld [vmem:[%s2649_s1 + $0x120] sm:$0xff]   ;;  %v2095_v33 = vld [vmem:[%s2649_s1 + $0x1a8] sm:$0xff]   ;;  %v40_v15 = vld [vmem:[%s2650_s0 + $0xb0] sm:$0xff] }
  0x1b   :  { %v2090_v23 = vld [vmem:[%s2649_s1 + $0x1e0] sm:$0xff]   ;;  %v67_v44 = vld [vmem:[%s2650_s0 + $0x188] sm:$0xff] }
  0x1c   :  { %1797 = vmatpush3.bf16.msra.mxu0 %v2066_v26  ;;  %v2091_v25 = vld [vmem:[%s2649_s1 + $0x1a0] sm:$0xff]   ;;  %v71_v45 = vld [vmem:[%s2650_s0 + $0x1a8] sm:$0xff] }
  0x1d   :  { %1861 = vmatpush3.bf16.msra.mxu1 %v2067_v27  ;;  %1798 = vmatprep.subr.bf16.mxu0 %v2068_v28  ;;  %v58_v26 = vld [vmem:[%s2650_s0 + $0x140] sm:$0xff]  ;;  %v2092_v28 = vld [vmem:[%s2649_s1 + $0x168] sm:$0xff]   ;;  %v1625_v59 = vcombine.low %v67_v44, %v71_v45 }
  0x1e   :  { %1862 = vmatprep.subr.bf16.mxu1 %v2069_v29  ;;  %v62_v27 = vld [vmem:[%s2650_s0 + $0x160] sm:$0xff]  ;;  %v59_v29 = vld [vmem:[%s2650_s0 + $0x148] sm:$0xff] }
  0x1f   :  { %v1616_v36 = vcombine.high %v58_v26, %v62_v27  ;;  %v1615_v47 = vcombine.low %v58_v26, %v62_v27  ;;  %v75_v56 = vld [vmem:[%s2650_s0 + $0x1c8] sm:$0xff]  ;;  %v1595_v26 = vcombine.low %v36_v14, %v40_v15 }
  0x20   :  { %1799 = vmatpush3.bf16.msra.mxu0 %v2070_v30  ;;  %v63_v30 = vld [vmem:[%s2650_s0 + $0x168] sm:$0xff] }
  0x21   :  { %1863 = vmatpush3.bf16.msra.mxu1 %v2071_v31  ;;  %1912 = vmatprep.subr.bf16.mxu0 %v2072_v40  ;;  %v2093_v31 = vld [vmem:[%s2649_s1 + $0x128] sm:$0xff]   ;;  %v1618_v37 = vcombine.high %v59_v29, %v63_v30  ;;  %v2098_v40 = vld [vmem:[%s2649_s1 + $0x1f0] sm:$0xff]  }
  0x22   :  { %1976 = vmatprep.subr.bf16.mxu1 %v2074_v42  ;;  %v70_v42 = vld [vmem:[%s2650_s0 + $0x1a0] sm:$0xff]  ;;  %v79_v57 = vld [vmem:[%s2650_s0 + $0x1e8] sm:$0xff] }
  0x23   :  { %947 = vmatmul.mubr.bf16.vlgmr.msra.gmra.mrb[0].mxu0 %v1575_v35  ;;  %v1609_v35 = vcombine.low %v51_v16, %v55_v17  ;;  %v1633_v3 = vcombine.low %v75_v56, %v79_v57  ;;  %v37_v16 = vld [vmem:[%s2650_s0 + $0x98] sm:$0xff] }
  0x24   :  { %1044 = vmatmul.mubr.bf16.vlgmr.msra.gmra.mrb[0].mxu1 %v1577_v38  ;;  %1913 = vmatpush3.bf16.msra.mxu0 %v2073_v41  ;;  %v2096_v38 = vld [vmem:[%s2649_s1 + $0x170] sm:$0xff]   ;;  %v66_v41 = vld [vmem:[%s2650_s0 + $0x180] sm:$0xff]  ;;  %v41_v17 = vld [vmem:[%s2650_s0 + $0xb8] sm:$0xff] }
  0x25   :  { %1977 = vmatpush3.bf16.msra.mxu1 %v2075_v43  ;;  %954 = vmatprep.mubr.bf16.mxu0 %v1584_v46  ;;  %v2099_v43 = vld [vmem:[%s2649_s1 + $0x1b0] sm:$0xff]   ;;  %v2100_v46 = vld [vmem:[%s2649_s1 + $0x178] sm:$0xff]   ;;  %v1623_v58 = vcombine.low %v66_v41, %v70_v42  ;;  %v1597_v27 = vcombine.low %v37_v16, %v41_v17 }
  0x26   :  { %1051 = vmatprep.mubr.bf16.mxu1 %v1586_v49  ;;  %1914 = vmatprep.subr.bf16.mxu0 %v2076_v50  ;;  %v1617_v49 = vcombine.low %v59_v29, %v63_v30  ;;  %v1624_v50 = vcombine.high %v66_v41, %v70_v42  ;;  %v52_v30 = vld [vmem:[%s2650_s0 + $0x110] sm:$0xff]  ;;  %v65_v41 = vld [vmem:[%s2650_s0 + $0x178] sm:$0xff] }
  0x27   :  { %1978 = vmatprep.subr.bf16.mxu1 %v2078_v54  ;;  %v74_v54 = vld [vmem:[%s2650_s0 + $0x1c0] sm:$0xff] }
  0x28   :  { %1915 = vmatpush3.bf16.msra.mxu0 %v2077_v52  ;;  %v1626_v52 = vcombine.high %v67_v44, %v71_v45 }
  0x29   :  { %1979 = vmatpush3.bf16.msra.mxu1 %v2079_v55  ;;  %1916 = vmatprep.subr.bf16.mxu0 %v2080_v62  ;;  %v78_v55 = vld [vmem:[%s2650_s0 + $0x1e0] sm:$0xff]  ;;  %v20_v62 = vld [vmem:[%s2650_s0 + $0x10] sm:$0xff] }
  0x2a   :  { %1980 = vmatprep.subr.bf16.mxu1 %v2082_v0  ;;  %v21_v0 = vld [vmem:[%s2650_s0 + $0x18] sm:$0xff] }
  0x2b   :  { %955 = vmatmul.mubr.bf16.gmra.mrb[4].mxu0 %v1583_v51  ;;  %v2102_v51 = vld [vmem:[%s2649_s1 + $0x1f8] sm:$0xff]  }
  0x2c   :  { %1052 = vmatmul.mubr.bf16.gmra.mrb[4].mxu1 %v1585_v53  ;;  %962 = vmatprep.mubr.bf16.mxu0 %v1592_v60  ;;  %v2103_v53 = vld [vmem:[%s2649_s1 + $0x1b8] sm:$0xff]   ;;  %v1632_v60 = vcombine.high %v74_v54, %v78_v55 }
  0x2d   :  { %1059 = vmatprep.mubr.bf16.mxu1 %v1594_v61  ;;  %1917 = vmatpush3.bf16.msra.mxu0 %v2081_v63  ;;  %v1634_v61 = vcombine.high %v75_v56, %v79_v57  ;;  %v24_v63 = vld [vmem:[%s2650_s0 + $0x30] sm:$0xff]  ;;  %v77_v56 = vld [vmem:[%s2650_s0 + $0x1d8] sm:$0xff] }
  0x2e   :  { %1981 = vmatpush3.bf16.msra.mxu1 %v2083_v1  ;;  %1918 = vmatprep.subr.bf16.mxu0 %v2084_v10  ;;  %v25_v1 = vld [vmem:[%s2650_s0 + $0x38] sm:$0xff]  ;;  %v1580_v4 = vcombine.high %v20_v62, %v24_v63  ;;  %v1579_v10 = vcombine.low %v20_v62, %v24_v63 }
  0x2f   :  { %1982 = vmatprep.subr.bf16.mxu1 %v2086_v12  ;;  %v1582_v5 = vcombine.high %v21_v0, %v25_v1  ;;  %v81_v57 = vld [vmem:[%s2650_s0 + $0x1f8] sm:$0xff] }
  0x30   :  { %v1637_v63 = vcombine.low %v77_v56, %v81_v57 }
  0x31   :  { %1919 = vmatpush3.bf16.msra.mxu0 %v2085_v11  ;;  %v1581_v11 = vcombine.low %v21_v0, %v25_v1 }
  0x32   :  { %1983 = vmatpush3.bf16.msra.mxu1 %v2087_v13  ;;  %1920 = vmatprep.subr.bf16.mxu0 %v2088_v18 }
  0x33   :  { %963 = vmatmul.mubr.bf16.gmra.mrb[8].mxu0 %v1591_v2  ;;  %1984 = vmatprep.subr.bf16.mxu1 %v2090_v23  ;;  %v1631_v2 = vcombine.low %v74_v54, %v78_v55  ;;  %v48_v23 = vld [vmem:[%s2650_s0 + $0xf0] sm:$0xff] }
  0x34   :  { %1060 = vmatmul.mubr.bf16.gmra.mrb[8].mxu1 %v1593_v6  ;;  %970 = vmatprep.mubr.bf16.mxu0 %v1600_v7  ;;  %v28_v6 = vld [vmem:[%s2650_s0 + $0x50] sm:$0xff] }
  0x35   :  { %1067 = vmatprep.mubr.bf16.mxu1 %v1602_v9  ;;  %1921 = vmatpush3.bf16.msra.mxu0 %v2089_v20  ;;  %v32_v7 = vld [vmem:[%s2650_s0 + $0x70] sm:$0xff]  ;;  %v33_v9 = vld [vmem:[%s2650_s0 + $0x78] sm:$0xff]  ;;  %v1596_v20 = vcombine.high %v36_v14, %v40_v15 }
  0x36   :  { %1985 = vmatpush3.bf16.msra.mxu1 %v2091_v25  ;;  %1922 = vmatprep.subr.bf16.mxu0 %v2092_v28  ;;  %v1588_v12 = vcombine.high %v28_v6, %v32_v7  ;;  %v1590_v13 = vcombine.high %v29_v8, %v33_v9  ;;  %v1587_v18 = vcombine.low %v28_v6, %v32_v7  ;;  %v49_v25 = vld [vmem:[%s2650_s0 + $0xf8] sm:$0xff]  ;;  %v76_v54 = vld [vmem:[%s2650_s0 + $0x1d0] sm:$0xff] }
  0x37   :  { %1986 = vmatprep.subr.bf16.mxu1 %v2094_v32  ;;  %v53_v32 = vld [vmem:[%s2650_s0 + $0x118] sm:$0xff]  ;;  %v80_v55 = vld [vmem:[%s2650_s0 + $0x1f0] sm:$0xff] }
  0x38   :  { %v1635_v62 = vcombine.low %v76_v54, %v80_v55 }
  0x39   :  { %1923 = vmatpush3.bf16.msra.mxu0 %v2093_v31  ;;  %v56_v31 = vld [vmem:[%s2650_s0 + $0x130] sm:$0xff] }
  0x3a   :  { %1987 = vmatpush3.bf16.msra.mxu1 %v2095_v33  ;;  %1924 = vmatprep.subr.bf16.mxu0 %v2096_v38  ;;  %v57_v33 = vld [vmem:[%s2650_s0 + $0x138] sm:$0xff]  ;;  %v60_v38 = vld [vmem:[%s2650_s0 + $0x150] sm:$0xff]  ;;  %v1611_v42 = vcombine.low %v52_v30, %v56_v31 }
  0x3b   :  { %971 = vmatmul.mubr.bf16.gmra.mrb[12].mxu0 %v1599_v19  ;;  %1988 = vmatprep.subr.bf16.mxu1 %v2098_v40  ;;  %v1589_v19 = vcombine.low %v29_v8, %v33_v9  ;;  %v61_v40 = vld [vmem:[%s2650_s0 + $0x158] sm:$0xff] }
  0x3c   :  { %1068 = vmatmul.mubr.bf16.gmra.mrb[12].mxu1 %v1601_v21  ;;  %978 = vmatprep.mubr.bf16.mxu0 %v1608_v22  ;;  %v1598_v21 = vcombine.high %v37_v16, %v41_v17  ;;  %v44_v22 = vld [vmem:[%s2650_s0 + $0xd0] sm:$0xff]  ;;  %v1622_v45 = vcombine.high %v61_v40, %v65_v41 }
  0x3d   :  { %1075 = vmatprep.mubr.bf16.mxu1 %v1610_v24  ;;  %1925 = vmatpush3.bf16.msra.mxu0 %v2097_v39  ;;  %v45_v24 = vld [vmem:[%s2650_s0 + $0xd8] sm:$0xff]  ;;  %v1604_v28 = vcombine.high %v44_v22, %v48_v23  ;;  %v64_v39 = vld [vmem:[%s2650_s0 + $0x170] sm:$0xff] }
  0x3e   :  { %1989 = vmatpush3.bf16.msra.mxu1 %v2099_v43  ;;  %1926 = vmatprep.subr.bf16.mxu0 %v2100_v46  ;;  %v1606_v29 = vcombine.high %v45_v24, %v49_v25  ;;  %v1613_v43 = vcombine.low %v53_v32, %v57_v33  ;;  %v1620_v44 = vcombine.high %v60_v38, %v64_v39  ;;  %v68_v46 = vld [vmem:[%s2650_s0 + $0x190] sm:$0xff] }
  0x3f   :  { %1990 = vmatprep.subr.bf16.mxu1 %v2102_v51  ;;  %v1621_v51 = vcombine.low %v61_v40, %v65_v41 }
  0x41   :  { %1927 = vmatpush3.bf16.msra.mxu0 %v2101_v48  ;;  %v69_v48 = vld [vmem:[%s2650_s0 + $0x198] sm:$0xff] }
  0x42   :  { %1991 = vmatpush3.bf16.msra.mxu1 %v2103_v53 }
  0x43   :  { %979 = vmatmul.mubr.bf16.gmra.mrb[16].mxu0 %v1607_v34  ;;  %v1603_v34 = vcombine.low %v44_v22, %v48_v23 }
  0x44   :  { %1076 = vmatmul.mubr.bf16.gmra.mrb[16].mxu1 %v1609_v35  ;;  %986 = vmatprep.mubr.bf16.mxu0 %v1616_v36  ;;  %v1605_v35 = vcombine.low %v45_v24, %v49_v25  ;;  %v1612_v36 = vcombine.high %v52_v30, %v56_v31 }
  0x45   :  { %1083 = vmatprep.mubr.bf16.mxu1 %v1618_v37  ;;  %v1614_v37 = vcombine.high %v53_v32, %v57_v33 }
  0x4b   :  { %987 = vmatmul.mubr.bf16.gmra.mrb[20].mxu0 %v1615_v47  ;;  %v72_v47 = vld [vmem:[%s2650_s0 + $0x1b0] sm:$0xff] }
  0x4c   :  { %1084 = vmatmul.mubr.bf16.gmra.mrb[20].mxu1 %v1617_v49  ;;  %994 = vmatprep.mubr.bf16.mxu0 %v1624_v50  ;;  %v73_v49 = vld [vmem:[%s2650_s0 + $0x1b8] sm:$0xff]  ;;  %v1619_v50 = vcombine.low %v60_v38, %v64_v39 }
  0x4d   :  { %1091 = vmatprep.mubr.bf16.mxu1 %v1626_v52  ;;  %v1628_v52 = vcombine.high %v68_v46, %v72_v47  ;;  %v1630_v53 = vcombine.high %v69_v48, %v73_v49 }
  0x53   :  { %995 = vmatmul.mubr.bf16.gmra.mrb[24].mxu0 %v1623_v58  ;;  %v1627_v58 = vcombine.low %v68_v46, %v72_v47 }
  0x54   :  { %1092 = vmatmul.mubr.bf16.gmra.mrb[24].mxu1 %v1625_v59  ;;  %1002 = vmatprep.mubr.bf16.mxu0 %v1632_v60  ;;  %v1629_v59 = vcombine.low %v69_v48, %v73_v49  ;;  %v1636_v60 = vcombine.high %v76_v54, %v80_v55 }
  0x55   :  { %1099 = vmatprep.mubr.bf16.mxu1 %v1634_v61  ;;  %v1638_v61 = vcombine.high %v77_v56, %v81_v57 }
  0x5b   :  { %1003 = vmatmul.mubr.bf16.gmra.mrb[28].mxu0 %v1631_v2 }
  0x5c   :  { %1100 = vmatmul.mubr.bf16.gmra.mrb[28].mxu1 %v1633_v3  ;;  %1140 = vmatprep.mubr.bf16.mxu0 %v1580_v4 }
  0x5d   :  { %1237 = vmatprep.mubr.bf16.mxu1 %v1582_v5 }
  0x63   :  { %1141 = vmatmul.mubr.bf16.vlgmr.msra.gmra.mrb[32].mxu0 %v1579_v10 }
  0x64   :  { %1238 = vmatmul.mubr.bf16.vlgmr.msra.gmra.mrb[32].mxu1 %v1581_v11  ;;  %1148 = vmatprep.mubr.bf16.mxu0 %v1588_v12 }
  0x65   :  { %1245 = vmatprep.mubr.bf16.mxu1 %v1590_v13 }
  0x6b   :  { %1149 = vmatmul.mubr.bf16.gmra.mrb[36].mxu0 %v1587_v18 }
  0x6c   :  { %1246 = vmatmul.mubr.bf16.gmra.mrb[36].mxu1 %v1589_v19  ;;  %1156 = vmatprep.mubr.bf16.mxu0 %v1596_v20 }
  0x6d   :  { %1253 = vmatprep.mubr.bf16.mxu1 %v1598_v21 }
  0x73   :  { %1157 = vmatmul.mubr.bf16.gmra.mrb[40].mxu0 %v1595_v26 }
  0x74   :  { %1254 = vmatmul.mubr.bf16.gmra.mrb[40].mxu1 %v1597_v27  ;;  %1164 = vmatprep.mubr.bf16.mxu0 %v1604_v28 }
  0x75   :  { %1261 = vmatprep.mubr.bf16.mxu1 %v1606_v29 }
  0x7b   :  { %1165 = vmatmul.mubr.bf16.gmra.mrb[44].mxu0 %v1603_v34 }
  0x7c   :  { %1262 = vmatmul.mubr.bf16.gmra.mrb[44].mxu1 %v1605_v35  ;;  %1172 = vmatprep.mubr.bf16.mxu0 %v1612_v36 }
  0x7d   :  { %1269 = vmatprep.mubr.bf16.mxu1 %v1614_v37 }
  0x83   :  { %1173 = vmatmul.mubr.bf16.gmra.mrb[48].mxu0 %v1611_v42 }
  0x84   :  { %1270 = vmatmul.mubr.bf16.gmra.mrb[48].mxu1 %v1613_v43  ;;  %1180 = vmatprep.mubr.bf16.mxu0 %v1620_v44 }
  0x85   :  { %1277 = vmatprep.mubr.bf16.mxu1 %v1622_v45 }
  0x8b   :  { %1181 = vmatmul.mubr.bf16.gmra.mrb[52].mxu0 %v1619_v50 }
  0x8c   :  { %1278 = vmatmul.mubr.bf16.gmra.mrb[52].mxu1 %v1621_v51  ;;  %1188 = vmatprep.mubr.bf16.mxu0 %v1628_v52 }
  0x8d   :  { %1285 = vmatprep.mubr.bf16.mxu1 %v1630_v53 }
  0x93   :  { %1189 = vmatmul.mubr.bf16.gmra.mrb[56].mxu0 %v1627_v58 }
  0x94   :  { %1286 = vmatmul.mubr.bf16.gmra.mrb[56].mxu1 %v1629_v59  ;;  %1196 = vmatprep.mubr.bf16.mxu0 %v1636_v60 }
  0x95   :  { %1293 = vmatprep.mubr.bf16.mxu1 %v1638_v61 }
  0x9b   :  { %1197 = vmatmul.mubr.bf16.gmra.mrb[60].mxu0 %v1635_v62 }
  0x9c   :  { %1294 = vmatmul.mubr.bf16.gmra.mrb[60].mxu1 %v1637_v63 }
  0xf6   :  { %v1800_v0 = vpop.f32.mrb[0].mxu0 }
  0xf7   :  { %v1864_v1 = vpop.f32.mrb[0].mxu1  ;;  %v1801_v2 = vpop.f32.mrb[1].mxu0 }
  0xf8   :  { %v1802_v3 = vadd.f32 %v1801_v2, %v1800_v0  ;;  %v1865_v4 = vpop.f32.mrb[1].mxu1  ;;  %v1803_v5 = vpop.f32.mrb[2].mxu0 }
  0xf9   :  { %v1866_v6 = vadd.f32 %v1865_v4, %v1864_v1  ;;  %v1867_v7 = vpop.f32.mrb[2].mxu1  ;;  %v1804_v8 = vpop.f32.mrb[3].mxu0 }
  0xfa   :  { %v1805_v9 = vadd.f32 %v1804_v8, %v1803_v5  ;;  %v1868_v10 = vpop.f32.mrb[3].mxu1 }
  0xfb   :  { %v2515_v11 = vadd.f32 %v1866_v6, %v1802_v3  ;;  %v1869_v12 = vadd.f32 %v1868_v10, %v1867_v7 }
  0xfd   :  { %v2517_v13 = vadd.f32 %v1869_v12, %v1805_v9 }
  0xfe   :  { %v1806_v14 = vpop.f32.mrb[4].mxu0 }
  0xff   :  { %v1870_v15 = vpop.f32.mrb[4].mxu1  ;;  %v1807_v16 = vpop.f32.mrb[5].mxu0 }
 0x100   :  { %v1808_v17 = vadd.f32 %v1807_v16, %v1806_v14  ;;  %v1871_v18 = vpop.f32.mrb[5].mxu1  ;;  %v1809_v19 = vpop.f32.mrb[6].mxu0 }
 0x101   :  { %v1872_v20 = vadd.f32 %v1871_v18, %v1870_v15  ;;  %v1873_v21 = vpop.f32.mrb[6].mxu1  ;;  %v1810_v22 = vpop.f32.mrb[7].mxu0 }
 0x102   :  { %v1811_v23 = vadd.f32 %v1810_v22, %v1809_v19  ;;  %v1874_v24 = vpop.f32.mrb[7].mxu1 }
 0x103   :  { %v2519_v25 = vadd.f32 %v1872_v20, %v1808_v17  ;;  %v1875_v26 = vadd.f32 %v1874_v24, %v1873_v21 }
 0x105   :  { %v2521_v27 = vadd.f32 %v1875_v26, %v1811_v23 }
 0x106   :  { %v1812_v28 = vpop.f32.mrb[8].mxu0 }
 0x107   :  { %v1876_v29 = vpop.f32.mrb[8].mxu1  ;;  %v1813_v30 = vpop.f32.mrb[9].mxu0 }
 0x108   :  { %v1814_v31 = vadd.f32 %v1813_v30, %v1812_v28  ;;  %v1877_v32 = vpop.f32.mrb[9].mxu1  ;;  %v1815_v33 = vpop.f32.mrb[10].mxu0 }
 0x109   :  { %v1878_v34 = vadd.f32 %v1877_v32, %v1876_v29  ;;  %v1879_v35 = vpop.f32.mrb[10].mxu1  ;;  %v1816_v36 = vpop.f32.mrb[11].mxu0 }
 0x10a   :  { %v1817_v37 = vadd.f32 %v1816_v36, %v1815_v33  ;;  %v1880_v38 = vpop.f32.mrb[11].mxu1 }
 0x10b   :  { %v2523_v39 = vadd.f32 %v1878_v34, %v1814_v31  ;;  %v1881_v40 = vadd.f32 %v1880_v38, %v1879_v35 }
 0x10d   :  { %v2525_v41 = vadd.f32 %v1881_v40, %v1817_v37 }
 0x10e   :  { %v1818_v42 = vpop.f32.mrb[12].mxu0 }
 0x10f   :  { %v1882_v43 = vpop.f32.mrb[12].mxu1  ;;  %v1819_v44 = vpop.f32.mrb[13].mxu0 }
 0x110   :  { %v1820_v45 = vadd.f32 %v1819_v44, %v1818_v42  ;;  %v1883_v46 = vpop.f32.mrb[13].mxu1  ;;  %v1821_v47 = vpop.f32.mrb[14].mxu0 }
 0x111   :  { %v1884_v48 = vadd.f32 %v1883_v46, %v1882_v43  ;;  %v1885_v49 = vpop.f32.mrb[14].mxu1  ;;  %v1822_v50 = vpop.f32.mrb[15].mxu0 }
 0x112   :  { %v1823_v51 = vadd.f32 %v1822_v50, %v1821_v47  ;;  %v1886_v52 = vpop.f32.mrb[15].mxu1 }
 0x113   :  { %v2527_v53 = vadd.f32 %v1884_v48, %v1820_v45  ;;  %v1887_v54 = vadd.f32 %v1886_v52, %v1885_v49 }
 0x115   :  { %v2529_v55 = vadd.f32 %v1887_v54, %v1823_v51 }
 0x116   :  { %v1824_v56 = vpop.f32.mrb[16].mxu0 }
 0x117   :  { %v1888_v57 = vpop.f32.mrb[16].mxu1  ;;  %v1825_v58 = vpop.f32.mrb[17].mxu0 }
 0x118   :  { %v1826_v59 = vadd.f32 %v1825_v58, %v1824_v56  ;;  %v1889_v60 = vpop.f32.mrb[17].mxu1  ;;  %v1827_v61 = vpop.f32.mrb[18].mxu0 }
 0x119   :  { %v1890_v62 = vadd.f32 %v1889_v60, %v1888_v57  ;;  %v1891_v63 = vpop.f32.mrb[18].mxu1  ;;  %v1828_v0 = vpop.f32.mrb[19].mxu0 }
 0x11a   :  { %v1829_v1 = vadd.f32 %v1828_v0, %v1827_v61  ;;  %v1892_v2 = vpop.f32.mrb[19].mxu1 }
 0x11b   :  { %v2531_v3 = vadd.f32 %v1890_v62, %v1826_v59  ;;  %v1893_v4 = vadd.f32 %v1892_v2, %v1891_v63 }
 0x11d   :  { %v2533_v5 = vadd.f32 %v1893_v4, %v1829_v1 }
 0x11e   :  { %v1830_v6 = vpop.f32.mrb[20].mxu0 }
 0x11f   :  { %v1894_v7 = vpop.f32.mrb[20].mxu1  ;;  %v1831_v8 = vpop.f32.mrb[21].mxu0 }
 0x120   :  { %v1832_v9 = vadd.f32 %v1831_v8, %v1830_v6  ;;  %v1895_v10 = vpop.f32.mrb[21].mxu1  ;;  %v1833_v12 = vpop.f32.mrb[22].mxu0 }
 0x121   :  { %v1896_v14 = vadd.f32 %v1895_v10, %v1894_v7  ;;  %v1897_v15 = vpop.f32.mrb[22].mxu1  ;;  %v1834_v16 = vpop.f32.mrb[23].mxu0 }
 0x122   :  { %v1835_v17 = vadd.f32 %v1834_v16, %v1833_v12  ;;  %v1898_v18 = vpop.f32.mrb[23].mxu1 }
 0x123   :  { %v2535_v19 = vadd.f32 %v1896_v14, %v1832_v9  ;;  %v1899_v20 = vadd.f32 %v1898_v18, %v1897_v15 }
 0x125   :  { %v2537_v21 = vadd.f32 %v1899_v20, %v1835_v17 }
 0x126   :  { %v1836_v22 = vpop.f32.mrb[24].mxu0 }
 0x127   :  { %v1900_v23 = vpop.f32.mrb[24].mxu1  ;;  %v1837_v24 = vpop.f32.mrb[25].mxu0 }
 0x128   :  { %v1838_v26 = vadd.f32 %v1837_v24, %v1836_v22  ;;  %v1901_v28 = vpop.f32.mrb[25].mxu1  ;;  %v1839_v29 = vpop.f32.mrb[26].mxu0 }
 0x129   :  { %v1902_v30 = vadd.f32 %v1901_v28, %v1900_v23  ;;  %v1903_v31 = vpop.f32.mrb[26].mxu1  ;;  %v1840_v32 = vpop.f32.mrb[27].mxu0 }
 0x12a   :  { %v1841_v33 = vadd.f32 %v1840_v32, %v1839_v29  ;;  %v1904_v34 = vpop.f32.mrb[27].mxu1 }
 0x12b   :  { %v2539_v35 = vadd.f32 %v1902_v30, %v1838_v26  ;;  %v1905_v36 = vadd.f32 %v1904_v34, %v1903_v31 }
 0x12d   :  { %v2541_v37 = vadd.f32 %v1905_v36, %v1841_v33 }
 0x12e   :  { %v1842_v38 = vpop.f32.mrb[28].mxu0 }
 0x12f   :  { %v1906_v40 = vpop.f32.mrb[28].mxu1  ;;  %v1843_v42 = vpop.f32.mrb[29].mxu0 }
 0x130   :  { %v1844_v43 = vadd.f32 %v1843_v42, %v1842_v38  ;;  %v1907_v44 = vpop.f32.mrb[29].mxu1  ;;  %v1845_v45 = vpop.f32.mrb[30].mxu0 }
 0x131   :  { %v1908_v46 = vadd.f32 %v1907_v44, %v1906_v40  ;;  %v1909_v47 = vpop.f32.mrb[30].mxu1  ;;  %v1846_v48 = vpop.f32.mrb[31].mxu0 }
 0x132   :  { %v1847_v49 = vadd.f32 %v1846_v48, %v1845_v45  ;;  %v1910_v50 = vpop.f32.mrb[31].mxu1 }
 0x133   :  { %v2543_v51 = vadd.f32 %v1908_v46, %v1844_v43  ;;  %v1911_v52 = vadd.f32 %v1910_v50, %v1909_v47 }
 0x135   :  { %v2545_v54 = vadd.f32 %v1911_v52, %v1847_v49 }
 0x136   :  { %v1928_v56 = vpop.f32.mrb[32].mxu0 }
 0x137   :  { %v1992_v57 = vpop.f32.mrb[32].mxu1  ;;  %v1929_v58 = vpop.f32.mrb[33].mxu0 }
 0x138   :  { %v1930_v59 = vadd.f32 %v1929_v58, %v1928_v56  ;;  %v1993_v60 = vpop.f32.mrb[33].mxu1  ;;  %v1931_v61 = vpop.f32.mrb[34].mxu0 }
 0x139   :  { %v1994_v62 = vadd.f32 %v1993_v60, %v1992_v57  ;;  %v1995_v63 = vpop.f32.mrb[34].mxu1  ;;  %v1932_v0 = vpop.f32.mrb[35].mxu0 }
 0x13a   :  { %v1143_v1 = vadd.f32 %v1930_v59, %v2515_v11  ;;  %v1933_v2 = vadd.f32 %v1932_v0, %v1931_v61  ;;  %v1996_v4 = vpop.f32.mrb[35].mxu1 }
 0x13b   :  { %v1997_v6 = vadd.f32 %v1996_v4, %v1995_v63 }
 0x13c   :  { %v2548_v7 = vadd.f32 %v1994_v62, %v1143_v1  ;;  %v1146_v8 = vadd.f32 %v1933_v2, %v2517_v13 }
 0x13e   :  { %v2551_v9 = vadd.f32 %v1997_v6, %v1146_v8  ;;  %v1934_v10 = vpop.f32.mrb[36].mxu0 }
 0x13f   :  { %v1998_v12 = vpop.f32.mrb[36].mxu1  ;;  %v1935_v14 = vpop.f32.mrb[37].mxu0 }
 0x140   :  { %v1302_v15 = vadd.f32 %v2551_v9, %v2548_v7  ;;  %v1936_v16 = vadd.f32 %v1935_v14, %v1934_v10  ;;  %v1999_v17 = vpop.f32.mrb[37].mxu1  ;;  %v1937_v18 = vpop.f32.mrb[38].mxu0 }
 0x141   :  { %v2000_v20 = vadd.f32 %v1999_v17, %v1998_v12  ;;  %v2001_v11 = vpop.f32.mrb[38].mxu1  ;;  %v1938_v22 = vpop.f32.mrb[39].mxu0 }
 0x142   :  { %v1151_v23 = vadd.f32 %v1936_v16, %v2519_v25  ;;  %v1939_v24 = vadd.f32 %v1938_v22, %v1937_v18  ;;  %v2002_v26 = vpop.f32.mrb[39].mxu1 }
 0x143   :  { %v2003_v28 = vadd.f32 %v2002_v26, %v2001_v11 }
 0x144   :  { %v2556_v13 = vadd.f32 %v2000_v20, %v1151_v23  ;;  %v1154_v29 = vadd.f32 %v1939_v24, %v2521_v27 }
 0x146   :  { %v1303_v30 = vadd.f32 %v1302_v15, %v2556_v13  ;;  %v2560_v31 = vadd.f32 %v2003_v28, %v1154_v29  ;;  %v1940_v32 = vpop.f32.mrb[40].mxu0 }
 0x147   :  { %v2004_v33 = vpop.f32.mrb[40].mxu1  ;;  %v1941_v34 = vpop.f32.mrb[41].mxu0 }
 0x148   :  { %v1304_v36 = vadd.f32 %v1303_v30, %v2560_v31  ;;  %v1942_v38 = vadd.f32 %v1941_v34, %v1940_v32  ;;  %v2005_v40 = vpop.f32.mrb[41].mxu1  ;;  %v1943_v42 = vpop.f32.mrb[42].mxu0 }
 0x149   :  { %v2006_v25 = vadd.f32 %v2005_v40, %v2004_v33  ;;  %v2007_v43 = vpop.f32.mrb[42].mxu1  ;;  %v1944_v44 = vpop.f32.mrb[43].mxu0 }
 0x14a   :  { %v1159_v45 = vadd.f32 %v1942_v38, %v2523_v39  ;;  %v1945_v46 = vadd.f32 %v1944_v44, %v1943_v42  ;;  %v2008_v47 = vpop.f32.mrb[43].mxu1 }
 0x14b   :  { %v2009_v27 = vadd.f32 %v2008_v47, %v2007_v43 }
 0x14c   :  { %v2564_v48 = vadd.f32 %v2006_v25, %v1159_v45  ;;  %v1162_v49 = vadd.f32 %v1945_v46, %v2525_v41 }
 0x14e   :  { %v1305_v50 = vadd.f32 %v1304_v36, %v2564_v48  ;;  %v2568_v52 = vadd.f32 %v2009_v27, %v1162_v49  ;;  %v1946_v56 = vpop.f32.mrb[44].mxu0 }
 0x14f   :  { %v2010_v57 = vpop.f32.mrb[44].mxu1  ;;  %v1947_v58 = vpop.f32.mrb[45].mxu0 }
 0x150   :  { %v1306_v59 = vadd.f32 %v1305_v50, %v2568_v52  ;;  %v1948_v60 = vadd.f32 %v1947_v58, %v1946_v56  ;;  %v2011_v61 = vpop.f32.mrb[45].mxu1  ;;  %v1949_v62 = vpop.f32.mrb[46].mxu0 }
 0x151   :  { %v2012_v39 = vadd.f32 %v2011_v61, %v2010_v57  ;;  %v2013_v63 = vpop.f32.mrb[46].mxu1  ;;  %v1950_v0 = vpop.f32.mrb[47].mxu0 }
 0x152   :  { %v1167_v1 = vadd.f32 %v1948_v60, %v2527_v53  ;;  %v1951_v2 = vadd.f32 %v1950_v0, %v1949_v62  ;;  %v2014_v4 = vpop.f32.mrb[47].mxu1 }
 0x153   :  { %v2015_v41 = vadd.f32 %v2014_v4, %v2013_v63 }
 0x154   :  { %v2572_v6 = vadd.f32 %v2012_v39, %v1167_v1  ;;  %v1170_v8 = vadd.f32 %v1951_v2, %v2529_v55 }
 0x156   :  { %v1307_v10 = vadd.f32 %v1306_v59, %v2572_v6  ;;  %v2576_v12 = vadd.f32 %v2015_v41, %v1170_v8  ;;  %v1952_v14 = vpop.f32.mrb[48].mxu0 }
 0x157   :  { %v2016_v15 = vpop.f32.mrb[48].mxu1  ;;  %v1953_v16 = vpop.f32.mrb[49].mxu0 }
 0x158   :  { %v1308_v17 = vadd.f32 %v1307_v10, %v2576_v12  ;;  %v1954_v18 = vadd.f32 %v1953_v16, %v1952_v14  ;;  %v2017_v20 = vpop.f32.mrb[49].mxu1  ;;  %v1955_v11 = vpop.f32.mrb[50].mxu0 }
 0x159   :  { %v2018_v53 = vadd.f32 %v2017_v20, %v2016_v15  ;;  %v2019_v22 = vpop.f32.mrb[50].mxu1  ;;  %v1956_v23 = vpop.f32.mrb[51].mxu0 }
 0x15a   :  { %v1175_v24 = vadd.f32 %v1954_v18, %v2531_v3  ;;  %v1957_v26 = vadd.f32 %v1956_v23, %v1955_v11  ;;  %v2020_v28 = vpop.f32.mrb[51].mxu1 }
 0x15b   :  { %v2021_v55 = vadd.f32 %v2020_v28, %v2019_v22 }
 0x15c   :  { %v2580_v29 = vadd.f32 %v2018_v53, %v1175_v24  ;;  %v1178_v30 = vadd.f32 %v1957_v26, %v2533_v5 }
 0x15e   :  { %v1309_v32 = vadd.f32 %v1308_v17, %v2580_v29  ;;  %v2584_v33 = vadd.f32 %v2021_v55, %v1178_v30  ;;  %v1958_v34 = vpop.f32.mrb[52].mxu0 }
 0x15f   :  { %v2022_v36 = vpop.f32.mrb[52].mxu1  ;;  %v1959_v38 = vpop.f32.mrb[53].mxu0 }
 0x160   :  { %v1310_v40 = vadd.f32 %v1309_v32, %v2584_v33  ;;  %v1960_v42 = vadd.f32 %v1959_v38, %v1958_v34  ;;  %v2023_v25 = vpop.f32.mrb[53].mxu1  ;;  %v1961_v43 = vpop.f32.mrb[54].mxu0 }
 0x161   :  { %v2024_v3 = vadd.f32 %v2023_v25, %v2022_v36  ;;  %v2025_v44 = vpop.f32.mrb[54].mxu1  ;;  %v1962_v45 = vpop.f32.mrb[55].mxu0 }
 0x162   :  { %v1183_v46 = vadd.f32 %v1960_v42, %v2535_v19  ;;  %v1963_v47 = vadd.f32 %v1962_v45, %v1961_v43  ;;  %v2026_v27 = vpop.f32.mrb[55].mxu1 }
 0x163   :  { %v2027_v5 = vadd.f32 %v2026_v27, %v2025_v44 }
 0x164   :  { %v1280_v49 = vadd.f32 %v2024_v3, %v1183_v46  ;;  %v1186_v50 = vadd.f32 %v1963_v47, %v2537_v21 }
 0x166   :  { %v1311_v56 = vadd.f32 %v1310_v40, %v1280_v49  ;;  %v1283_v57 = vadd.f32 %v2027_v5, %v1186_v50  ;;  %v1964_v58 = vpop.f32.mrb[56].mxu0 }
 0x167   :  { %v2028_v59 = vpop.f32.mrb[56].mxu1  ;;  %v1965_v60 = vpop.f32.mrb[57].mxu0 }
 0x168   :  { %v1312_v61 = vadd.f32 %v1311_v56, %v1283_v57  ;;  %v1966_v62 = vadd.f32 %v1965_v60, %v1964_v58  ;;  %v2029_v39 = vpop.f32.mrb[57].mxu1  ;;  %v1967_v63 = vpop.f32.mrb[58].mxu0 }
 0x169   :  { %v2030_v0 = vadd.f32 %v2029_v39, %v2028_v59  ;;  %v2031_v1 = vpop.f32.mrb[58].mxu1  ;;  %v1968_v2 = vpop.f32.mrb[59].mxu0 }
 0x16a   :  { %v1191_v19 = vadd.f32 %v1966_v62, %v2539_v35  ;;  %v1969_v4 = vadd.f32 %v1968_v2, %v1967_v63  ;;  %v2032_v41 = vpop.f32.mrb[59].mxu1 }
 0x16b   :  { %v2033_v8 = vadd.f32 %v2032_v41, %v2031_v1 }
 0x16c   :  { %v1288_v10 = vadd.f32 %v2030_v0, %v1191_v19  ;;  %v1194_v21 = vadd.f32 %v1969_v4, %v2541_v37 }
 0x16e   :  { %v1313_v14 = vadd.f32 %v1312_v61, %v1288_v10  ;;  %v1291_v15 = vadd.f32 %v2033_v8, %v1194_v21  ;;  %v1970_v16 = vpop.f32.mrb[60].mxu0 }
 0x16f   :  { %v2034_v17 = vpop.f32.mrb[60].mxu1  ;;  %v1971_v18 = vpop.f32.mrb[61].mxu0 }
 0x170   :  { %v1314_v20 = vadd.f32 %v1313_v14, %v1291_v15  ;;  %v1972_v11 = vadd.f32 %v1971_v18, %v1970_v16  ;;  %v2035_v53 = vpop.f32.mrb[61].mxu1  ;;  %v1973_v22 = vpop.f32.mrb[62].mxu0 }
 0x171   :  { %v2036_v23 = vadd.f32 %v2035_v53, %v2034_v17  ;;  %v2037_v24 = vpop.f32.mrb[62].mxu1  ;;  %v1974_v26 = vpop.f32.mrb[63].mxu0 }
 0x172   :  { %v1199_v35 = vadd.f32 %v1972_v11, %v2543_v51  ;;  %v1975_v28 = vadd.f32 %v1974_v26, %v1973_v22  ;;  %v2038_v55 = vpop.f32.mrb[63].mxu1 }
 0x173   :  { %v2039_v30 = vadd.f32 %v2038_v55, %v2037_v24 }
 0x174   :  { %v1296_v32 = vadd.f32 %v2036_v23, %v1199_v35  ;;  %v1202_v37 = vadd.f32 %v1975_v28, %v2545_v54 }
 0x176   :  { %v1315_v34 = vadd.f32 %v1314_v20, %v1296_v32  ;;  %v1299_v36 = vadd.f32 %v2039_v30, %v1202_v37 }
 0x178   :  { %v1316_v38 = vadd.f32 %v1315_v34, %v1299_v36 }
 0x17a   :  { %v1317_v40 = vrot.slane %v1316_v38, 4 }
 0x17c   :  { %v1318_v42 = vadd.f32 %v1317_v40, %v1316_v38 }
 0x17e   :  { %v1319_v25 = vrot.slane %v1318_v42, 2 }
 0x180   :  { %v1320_v43 = vadd.f32 %v1319_v25, %v1318_v42 }
 0x182   :  { %v1321_v3 = vrot.slane %v1320_v43, 1 }
 0x184   :  { %v1322_v44 = vadd.f32 %v1321_v3, %v1320_v43 }
 0x186   :  { %v1324_v45 = vmul.f32 0.0078125, %v1322_v44 }
 0x188   :  { %v1325_v46 = vsub.f32 %v2548_v7, %v1324_v45  ;;  %v1326_v51 = vsub.f32 %v2551_v9, %v1324_v45  ;;  %v1327_v47 = vsub.f32 %v2556_v13, %v1324_v45  ;;  %v1328_v27 = vsub.f32 %v2560_v31, %v1324_v45 }
 0x189   :  { %v1329_v54 = vsub.f32 %v2564_v48, %v1324_v45  ;;  %v1330_v5 = vsub.f32 %v2568_v52, %v1324_v45  ;;  %v1331_v50 = vsub.f32 %v2572_v6, %v1324_v45  ;;  %v1332_v56 = vsub.f32 %v2576_v12, %v1324_v45 }
 0x18a   :  { %v1333_v58 = vsub.f32 %v2580_v29, %v1324_v45  ;;  %v1334_v59 = vsub.f32 %v2584_v33, %v1324_v45  ;;  %v1335_v60 = vsub.f32 %v1280_v49, %v1324_v45  ;;  %v1336_v7 = vsub.f32 %v1283_v57, %v1324_v45 }
 0x18b   :  { %v1337_v61 = vsub.f32 %v1288_v10, %v1324_v45  ;;  %v1338_v9 = vsub.f32 %v1291_v15, %v1324_v45  ;;  %v1339_v62 = vsub.f32 %v1296_v32, %v1324_v45  ;;  %v1340_v13 = vsub.f32 %v1299_v36, %v1324_v45 }
 0x18c   :  { %v1341_v39 = vmul.f32 %v1325_v46, %v1325_v46  ;;  %v1342_v31 = vmul.f32 %v1326_v51, %v1326_v51  ;;  %v1343_v63 = vmul.f32 %v1327_v47, %v1327_v47  ;;  %v1344_v0 = vmul.f32 %v1328_v27, %v1328_v27 }
 0x18d   :  { %v1345_v1 = vmul.f32 %v1329_v54, %v1329_v54  ;;  %v1346_v2 = vmul.f32 %v1330_v5, %v1330_v5  ;;  %v1347_v19 = vmul.f32 %v1331_v50, %v1331_v50  ;;  %v1348_v4 = vmul.f32 %v1332_v56, %v1332_v56 }
 0x18e   :  { %v1357_v48 = vadd.f32 %v1342_v31, %v1341_v39  ;;  %v1349_v49 = vmul.f32 %v1333_v58, %v1333_v58  ;;  %v1350_v41 = vmul.f32 %v1334_v59, %v1334_v59  ;;  %v1351_v10 = vmul.f32 %v1335_v60, %v1335_v60  ;;  %v1703_v39 = vld [vmem:[%s2651_s2] ss:$0 sm:$0xff] }
 0x18f   :  { %v1352_v14 = vmul.f32 %v1336_v7, %v1336_v7  ;;  %v1353_v16 = vmul.f32 %v1337_v61, %v1337_v61  ;;  %v1354_v18 = vmul.f32 %v1338_v9, %v1338_v9  ;;  %v1355_v11 = vmul.f32 %v1339_v62, %v1339_v62 }
 0x190   :  { %v1358_v52 = vadd.f32 %v1357_v48, %v1343_v63  ;;  %v1356_v22 = vmul.f32 %v1340_v13, %v1340_v13 }
 0x192   :  { %v1359_v6 = vadd.f32 %v1358_v52, %v1344_v0 }
 0x194   :  { %v1360_v12 = vadd.f32 %v1359_v6, %v1345_v1 }
 0x196   :  { %v1361_v29 = vadd.f32 %v1360_v12, %v1346_v2  ;;  %v1704_v12 = vld [vmem:[%s2652_s3] ss:$0 sm:$0xff] }
 0x198   :  { %v1362_v33 = vadd.f32 %v1361_v29, %v1347_v19 }
 0x19a   :  { %v1363_v57 = vadd.f32 %v1362_v33, %v1348_v4 }
 0x19c   :  { %v1364_v8 = vadd.f32 %v1363_v57, %v1349_v49 }
 0x19e   :  { %v1365_v21 = vadd.f32 %v1364_v8, %v1350_v41 }
 0x1a0   :  { %v1366_v15 = vadd.f32 %v1365_v21, %v1351_v10 }
 0x1a2   :  { %v1367_v17 = vadd.f32 %v1366_v15, %v1352_v14 }
 0x1a4   :  { %v1368_v20 = vadd.f32 %v1367_v17, %v1353_v16 }
 0x1a6   :  { %v1369_v53 = vadd.f32 %v1368_v20, %v1354_v18 }
 0x1a8   :  { %v1370_v23 = vadd.f32 %v1369_v53, %v1355_v11 }
 0x1aa   :  { %v1371_v24 = vadd.f32 %v1370_v23, %v1356_v22 }
 0x1ac   :  { %v1372_v26 = vrot.slane %v1371_v24, 4 }
 0x1ae   :  { %v1373_v35 = vadd.f32 %v1372_v26, %v1371_v24 }
 0x1b0   :  { %v1374_v28 = vrot.slane %v1373_v35, 2 }
 0x1b2   :  { %v1375_v55 = vadd.f32 %v1374_v28, %v1373_v35 }
 0x1b4   :  { %v1376_v30 = vrot.slane %v1375_v55, 1 }
 0x1b6   :  { %v1377_v32 = vadd.f32 %v1376_v30, %v1375_v55 }
 0x1b8   :  { %v1378_v37 = vmul.f32 0.0078125, %v1377_v32 }
 0x1ba   :  { %v1379_v34 = vadd.f32 1e-05, %v1378_v37 }
 0x1bc   :  { %2104 = vrsqrt.f32 %v1379_v34 }
 0x1c6   :  { %v2105_v36 = vpop.eup %2104 }
 0x1c7   :  { %v1381_v38 = vmul.f32 %v2105_v36, %v1325_v46  ;;  %v1382_v40 = vmul.f32 %v2105_v36, %v1326_v51  ;;  %v1383_v42 = vmul.f32 %v2105_v36, %v1327_v47  ;;  %v1384_v25 = vmul.f32 %v2105_v36, %v1328_v27 }
 0x1c8   :  { %v1385_v43 = vmul.f32 %v2105_v36, %v1329_v54  ;;  %v1386_v3 = vmul.f32 %v2105_v36, %v1330_v5  ;;  %v1387_v44 = vmul.f32 %v2105_v36, %v1331_v50  ;;  %v1388_v45 = vmul.f32 %v2105_v36, %v1332_v56 }
 0x1c9   :  { %v1389_v31 = vmul.f32 %v2105_v36, %v1333_v58  ;;  %v1390_v63 = vmul.f32 %v2105_v36, %v1334_v59  ;;  %v1391_v48 = vmul.f32 %v2105_v36, %v1335_v60  ;;  %v1392_v0 = vmul.f32 %v2105_v36, %v1336_v7 }
 0x1ca   :  { %v1393_v52 = vmul.f32 %v2105_v36, %v1337_v61  ;;  %v1394_v1 = vmul.f32 %v2105_v36, %v1338_v9  ;;  %v1395_v6 = vmul.f32 %v2105_v36, %v1339_v62  ;;  %v1396_v2 = vmul.f32 %v2105_v36, %v1340_v13 }
 0x1cb   :  { %v1404_v46 = vmul.f32 %v1703_v39, %v1381_v38  ;;  %v1405_v51 = vmul.f32 %v1703_v39, %v1382_v40  ;;  %v1406_v47 = vmul.f32 %v1703_v39, %v1383_v42  ;;  %v1407_v27 = vmul.f32 %v1703_v39, %v1384_v25 }
 0x1cc   :  { %v1408_v54 = vmul.f32 %v1703_v39, %v1385_v43  ;;  %v1409_v5 = vmul.f32 %v1703_v39, %v1386_v3  ;;  %v1410_v50 = vmul.f32 %v1703_v39, %v1387_v44  ;;  %v1411_v56 = vmul.f32 %v1703_v39, %v1388_v45 }
 0x1cd   :  { %v1412_v58 = vmul.f32 %v1703_v39, %v1389_v31  ;;  %v1413_v59 = vmul.f32 %v1703_v39, %v1390_v63  ;;  %v1414_v60 = vmul.f32 %v1703_v39, %v1391_v48  ;;  %v1415_v7 = vmul.f32 %v1703_v39, %v1392_v0 }
 0x1ce   :  { %v1416_v61 = vmul.f32 %v1703_v39, %v1393_v52  ;;  %v1417_v9 = vmul.f32 %v1703_v39, %v1394_v1  ;;  %v1418_v62 = vmul.f32 %v1703_v39, %v1395_v6  ;;  %v1419_v13 = vmul.f32 %v1703_v39, %v1396_v2 }
 0x1cf   :  { %v1427_v19 = vadd.f32 %v1704_v12, %v1404_v46  ;;  %v1428_v29 = vadd.f32 %v1704_v12, %v1405_v51  ;;  %v1429_v4 = vadd.f32 %v1704_v12, %v1406_v47  ;;  %v1430_v33 = vadd.f32 %v1704_v12, %v1407_v27 }
 0x1d0   :  { %v1431_v49 = vadd.f32 %v1704_v12, %v1408_v54  ;;  %v1432_v57 = vadd.f32 %v1704_v12, %v1409_v5  ;;  %v1433_v41 = vadd.f32 %v1704_v12, %v1410_v50  ;;  %v1434_v8 = vadd.f32 %v1704_v12, %v1411_v56 }
 0x1d1   :  { %v1435_v10 = vadd.f32 %v1704_v12, %v1412_v58  ;;  %v1436_v21 = vadd.f32 %v1704_v12, %v1413_v59  ;;  %v1437_v14 = vadd.f32 %v1704_v12, %v1414_v60  ;;  %v1438_v15 = vadd.f32 %v1704_v12, %v1415_v7 }
 0x1d2   :  { %v1439_v16 = vadd.f32 %v1704_v12, %v1416_v61  ;;  %v1440_v17 = vadd.f32 %v1704_v12, %v1417_v9  ;;  %v1441_v18 = vadd.f32 %v1704_v12, %v1418_v62  ;;  %v1442_v20 = vadd.f32 %v1704_v12, %v1419_v13 }
 0x1d3   :  { %vm1443_vm0 = vcmp.ge.f32.partialorder %v1427_v19, 0.0  ;;  %vm1444_vm1 = vcmp.ge.f32.partialorder %v1428_v29, 0.0  ;;  %vm1445_vm2 = vcmp.ge.f32.partialorder %v1429_v4, 0.0  ;;  %vm1446_vm3 = vcmp.ge.f32.partialorder %v1430_v33, 0.0 }
 0x1d4   :  { %vm1447_vm4 = vcmp.ge.f32.partialorder %v1431_v49, 0.0  ;;  %vm1448_vm5 = vcmp.ge.f32.partialorder %v1432_v57, 0.0  ;;  %vm1449_vm6 = vcmp.ge.f32.partialorder %v1433_v41, 0.0  ;;  %vm1450_vm7 = vcmp.ge.f32.partialorder %v1434_v8, 0.0 }
 0x1d5   :  { %vm1451_vm8 = vcmp.ge.f32.partialorder %v1435_v10, 0.0  ;;  %vm1452_vm9 = vcmp.ge.f32.partialorder %v1436_v21, 0.0  ;;  %vm1453_vm10 = vcmp.ge.f32.partialorder %v1437_v14, 0.0  ;;  %vm1454_vm11 = vcmp.ge.f32.partialorder %v1438_v15, 0.0 }
 0x1d6   :  { %vm1455_vm12 = vcmp.ge.f32.partialorder %v1439_v16, 0.0  ;;  %vm1456_vm13 = vcmp.ge.f32.partialorder %v1440_v17, 0.0  ;;  %vm1457_vm14 = vcmp.ge.f32.partialorder %v1441_v18, 0.0  ;;  %vm1458_vm15 = vcmp.ge.f32.partialorder %v1442_v20, 0.0 }
 0x1d7   :  { %v1459_v11 = vmul.f32 0.2, %v1427_v19  ;;  %v1460_v53 = vmul.f32 0.2, %v1428_v29  ;;  %v1461_v22 = vmul.f32 0.2, %v1429_v4 }
 0x1d8   :  { %v1462_v23 = vmul.f32 0.2, %v1430_v33  ;;  %v1463_v24 = vmul.f32 0.2, %v1431_v49  ;;  %v1464_v26 = vmul.f32 0.2, %v1432_v57 }
 0x1d9   :  { %v1465_v35 = vmul.f32 0.2, %v1433_v41  ;;  %v1466_v28 = vmul.f32 0.2, %v1434_v8  ;;  %v1467_v55 = vmul.f32 0.2, %v1435_v10  ;;  %v1475_v30 = vsel %vm1443_vm0, %v1427_v19, %v1459_v11 }
 0x1da   :  { %v1468_v32 = vmul.f32 0.2, %v1436_v21  ;;  %v1469_v37 = vmul.f32 0.2, %v1437_v14  ;;  %v1470_v34 = vmul.f32 0.2, %v1438_v15  ;;  %v1476_v36 = vsel %vm1444_vm1, %v1428_v29, %v1460_v53 }
 0x1db   :  { %v1471_v38 = vmul.f32 0.2, %v1439_v16  ;;  %v1472_v40 = vmul.f32 0.2, %v1440_v17  ;;  %v1473_v42 = vmul.f32 0.2, %v1441_v18  ;;  %v1477_v25 = vsel %vm1445_vm2, %v1429_v4, %v1461_v22 }
 0x1dc   :  { %v1474_v43 = vmul.f32 0.2, %v1442_v20  ;;  %v1478_v3 = vsel %vm1446_vm3, %v1430_v33, %v1462_v23  ;;  %v1479_v44 = vsel %vm1447_vm4, %v1431_v49, %v1463_v24  ;;  %v1480_v45 = vsel %vm1448_vm5, %v1432_v57, %v1464_v26 }
 0x1dd   :  { %v1481_v39 = vsel %vm1449_vm6, %v1433_v41, %v1465_v35  ;;  %v1482_v31 = vsel %vm1450_vm7, %v1434_v8, %v1466_v28  ;;  %v1483_v63 = vsel %vm1451_vm8, %v1435_v10, %v1467_v55  ;;  %v1484_v48 = vsel %vm1452_vm9, %v1436_v21, %v1468_v32 }
 0x1de   :  { %v1485_v0 = vsel %vm1453_vm10, %v1437_v14, %v1469_v37  ;;  %v1486_v52 = vsel %vm1454_vm11, %v1438_v15, %v1470_v34  ;;  %v1487_v1 = vsel %vm1455_vm12, %v1439_v16, %v1471_v38  ;;  %v1488_v6 = vsel %vm1456_vm13, %v1440_v17, %v1472_v40 }
 0x1df   :  { %v1489_v2 = vsel %vm1457_vm14, %v1441_v18, %v1473_v42  ;;  %v1490_v46 = vsel %vm1458_vm15, %v1442_v20, %v1474_v43  ;;  %v1740_v51 = vpack.c.bf16 %v1476_v36, %v1475_v30  ;;  %v1745_v47 = vpack.c.bf16 %v1478_v3, %v1477_v25 }
 0x1e0   :  { %v1750_v27 = vpack.c.bf16 %v1480_v45, %v1479_v44  ;;  %v1755_v54 = vpack.c.bf16 %v1482_v31, %v1481_v39  ;;  %v1760_v5 = vpack.c.bf16 %v1484_v48, %v1483_v63  ;;  %v1765_v50 = vpack.c.bf16 %v1486_v52, %v1485_v0 }
 0x1e1   :  { %1741 = vst [vmem:[%s2653_s4] sm:$0xff] %v1740_v51   ;;  %1777 = vst [vmem:[%s2653_s4 + $0x8] sm:$0xff] %v1745_v47   ;;  %v1770_v56 = vpack.c.bf16 %v1488_v6, %v1487_v1  ;;  %v1775_v12 = vpack.c.bf16 %v1490_v46, %v1489_v2 }
 0x1e2   :  { %1778 = vst [vmem:[%s2653_s4 + $0x10] sm:$0xff] %v1750_v27   ;;  %1779 = vst [vmem:[%s2653_s4 + $0x18] sm:$0xff] %v1755_v54  }
 0x1e3   :  { %1780 = vst [vmem:[%s2653_s4 + $0x20] sm:$0xff] %v1760_v5   ;;  %1781 = vst [vmem:[%s2653_s4 + $0x28] sm:$0xff] %v1765_v50  }
 0x1e4   :  { %1782 = vst [vmem:[%s2653_s4 + $0x30] sm:$0xff] %v1770_v56   ;;  %1783 = vst [vmem:[%s2653_s4 + $0x38] sm:$0xff] %v1775_v12  }

// kernel: discriminator_forward.7
= control target key start
LH: loop header
LB: loop body
LE: loop exit
PB: predicated region body
PF: predicated region fallthrough
CT: control target
= control target key end

     0   :  { %s3734_s15 = smov 0   ;;  %s3736_s16 = smov 0   ;;  %s4564_s0 = inlined_call_operand.vmem [shape: bf16[32,2048], index: 0, kind: input, shape index: {}]   ;;  %s4565_s1 = inlined_call_operand.vmem [shape: bf16[2048,256], index: 1, kind: input, shape index: {}]   ;;  %s4566_s2 = inlined_call_operand.vmem [shape: f32[1,256], index: 2, kind: input, shape index: {}]   ;;  %s4567_s3 = inlined_call_operand.vmem [shape: f32[1,256], index: 3, kind: input, shape index: {}]   ;;  %s4568_s4 = inlined_call_operand.vmem [shape: bf16[32,256], index: 4, kind: output, shape index: {}]  }
   0x1   :  { %s3738_s17 = smov 0  }
   0x2 LB: > { %s3750_s18 = sadd.s32 4294967295, %s3707_s17   ;;  %s3753_s19 = sadd.s32 1, %s3707_s17   ;;  %s3707_s17 = sphi %s3738_s17, %s4572_s17   ;;  %s3703_s16 = sphi %s3736_s16, %s4571_s16   ;;  %s3699_s15 = sphi %s3734_s15, %s4570_s15  }
   0x3   : > { %s39_s20 = ssub.s32 %s3707_s17, %s3753_s19  ;;  %s42_s21 = sadd.s32 1, %s3703_s16 }
   0x4   : > { %p40_p0 = scmp.eq.s32.totalorder %s39_s20, 0  ;;  %p49_p1 = scmp.ne.s32.totalorder %s3703_s16, %s3699_s15 }
   0x5   : > { %p50_p2 = scmp.eq.s32.totalorder %s3707_s17, 0  ;;  %p131_p3 = scmp.eq.s32.totalorder %s3750_s18, 1 }
   0x6   : > { %s3763_s22 = scalar_select %p40_p0, %s3703_s16, %s42_s21  }
   0x7   : > { %p51_p4 = por %p50_p2, %p49_p1  ;;  %p3765_p5 = por %p131_p3, %p49_p1 }
   0x8   : > { %p3116_p6 = scmp.ge.s32.totalorder %s3707_s17, 2 }
   0xa   : > { %156 = sbr.rel (%p3116_p6) target bundleno = 191 (0xbf), region = 20 }
  0x11   : > { %159 = sbr.rel (!%p51_p4) target bundleno = 191 (0xbf), region = 24  ;;  %s161_s24 = sand.u32 (%p51_p4), 1, %s3703_s16  }
  0x12   : > { %s3118_s25 = sshll.u32 (%p51_p4), %s3707_s17, 2  ;;  %s3117_s26 = sshll.u32 (%p51_p4), %s161_s24, 10 }
  0x13   : > { %s3775_s29 = scalar_lea.vmem (%p51_p4), %s4565_s1, %s3118_s25  ;;  %s3779_s30 = scalar_lea.vmem (%p51_p4), [#allocation2], %s3117_s26 }
  0x14   : > { %v181_v0 = vld [vmem:[%s3775_s29] sm:$0xf] (%p51_p4)  ;;  %v183_v1 = vld [vmem:[%s3775_s29 + $0x8] sm:$0xf] (%p51_p4)  ;;  %v185_v2 = vld [vmem:[%s3775_s29 + $0x10] sm:$0xf] (%p51_p4) }
  0x15   : > { %182 = vst [vmem:[%s3779_s30] sm:$0xf] (%p51_p4), %v181_v0  ;;  %184 = vst [vmem:[%s3779_s30 + $0x4] sm:$0xf] (%p51_p4), %v183_v1  ;;  %v187_v3 = vld [vmem:[%s3775_s29 + $0x18] sm:$0xf] (%p51_p4) }
  0x16   : > { %v189_v4 = vld [vmem:[%s3775_s29 + $0x20] sm:$0xf] (%p51_p4)  ;;  %186 = vst [vmem:[%s3779_s30 + $0x8] sm:$0xf] (%p51_p4), %v185_v2  ;;  %188 = vst [vmem:[%s3779_s30 + $0xc] sm:$0xf] (%p51_p4), %v187_v3 }
  0x17   : > { %190 = vst [vmem:[%s3779_s30 + $0x10] sm:$0xf] (%p51_p4), %v189_v4  ;;  %v191_v5 = vld [vmem:[%s3775_s29 + $0x28] sm:$0xf] (%p51_p4)  ;;  %v193_v6 = vld [vmem:[%s3775_s29 + $0x30] sm:$0xf] (%p51_p4) }
  0x18   : > { %v195_v7 = vld [vmem:[%s3775_s29 + $0x38] sm:$0xf]  ;;  %192 = vst [vmem:[%s3779_s30 + $0x14] sm:$0xf] %v191_v5  ;;  %194 = vst [vmem:[%s3779_s30 + $0x18] sm:$0xf] %v193_v6 }
  0x19   : > { %196 = vst [vmem:[%s3779_s30 + $0x1c] sm:$0xf] %v195_v7  ;;  %v197_v8 = vld [vmem:[%s3775_s29 + $0x40] sm:$0xf]  ;;  %v199_v9 = vld [vmem:[%s3775_s29 + $0x48] sm:$0xf] }
  0x1a   : > { %v201_v10 = vld [vmem:[%s3775_s29 + $0x50] sm:$0xf]  ;;  %198 = vst [vmem:[%s3779_s30 + $0x20] sm:$0xf] %v197_v8  ;;  %200 = vst [vmem:[%s3779_s30 + $0x24] sm:$0xf] %v199_v9 }
  0x1b   : > { %202 = vst [vmem:[%s3779_s30 + $0x28] sm:$0xf] %v201_v10  ;;  %v203_v11 = vld [vmem:[%s3775_s29 + $0x58] sm:$0xf]  ;;  %v205_v12 = vld [vmem:[%s3775_s29 + $0x60] sm:$0xf] }
  0x1c   : > { %v207_v13 = vld [vmem:[%s3775_s29 + $0x68] sm:$0xf]  ;;  %204 = vst [vmem:[%s3779_s30 + $0x2c] sm:$0xf] %v203_v11  ;;  %206 = vst [vmem:[%s3779_s30 + $0x30] sm:$0xf] %v205_v12 }
  0x1d   : > { %208 = vst [vmem:[%s3779_s30 + $0x34] sm:$0xf] %v207_v13  ;;  %v209_v14 = vld [vmem:[%s3775_s29 + $0x70] sm:$0xf]  ;;  %v211_v15 = vld [vmem:[%s3775_s29 + $0x78] sm:$0xf] }
  0x1e   : > { %v213_v16 = vld [vmem:[%s3775_s29 + $0x80] sm:$0xf]  ;;  %210 = vst [vmem:[%s3779_s30 + $0x38] sm:$0xf] %v209_v14  ;;  %212 = vst [vmem:[%s3779_s30 + $0x3c] sm:$0xf] %v211_v15 }
  0x1f   : > { %214 = vst [vmem:[%s3779_s30 + $0x40] sm:$0xf] %v213_v16  ;;  %v215_v17 = vld [vmem:[%s3775_s29 + $0x88] sm:$0xf]  ;;  %v217_v18 = vld [vmem:[%s3775_s29 + $0x90] sm:$0xf] }
  0x20   : > { %v219_v19 = vld [vmem:[%s3775_s29 + $0x98] sm:$0xf]  ;;  %216 = vst [vmem:[%s3779_s30 + $0x44] sm:$0xf] %v215_v17  ;;  %218 = vst [vmem:[%s3779_s30 + $0x48] sm:$0xf] %v217_v18 }
  0x21   : > { %220 = vst [vmem:[%s3779_s30 + $0x4c] sm:$0xf] %v219_v19  ;;  %v221_v20 = vld [vmem:[%s3775_s29 + $0xa0] sm:$0xf]  ;;  %v223_v21 = vld [vmem:[%s3775_s29 + $0xa8] sm:$0xf] }
  0x22   : > { %v225_v22 = vld [vmem:[%s3775_s29 + $0xb0] sm:$0xf]  ;;  %222 = vst [vmem:[%s3779_s30 + $0x50] sm:$0xf] %v221_v20  ;;  %224 = vst [vmem:[%s3779_s30 + $0x54] sm:$0xf] %v223_v21 }
  0x23   : > { %226 = vst [vmem:[%s3779_s30 + $0x58] sm:$0xf] %v225_v22  ;;  %v227_v23 = vld [vmem:[%s3775_s29 + $0xb8] sm:$0xf]  ;;  %v229_v24 = vld [vmem:[%s3775_s29 + $0xc0] sm:$0xf] }
  0x24   : > { %v231_v25 = vld [vmem:[%s3775_s29 + $0xc8] sm:$0xf]  ;;  %228 = vst [vmem:[%s3779_s30 + $0x5c] sm:$0xf] %v227_v23  ;;  %230 = vst [vmem:[%s3779_s30 + $0x60] sm:$0xf] %v229_v24 }
  0x25   : > { %232 = vst [vmem:[%s3779_s30 + $0x64] sm:$0xf] %v231_v25  ;;  %v233_v26 = vld [vmem:[%s3775_s29 + $0xd0] sm:$0xf]  ;;  %v235_v27 = vld [vmem:[%s3775_s29 + $0xd8] sm:$0xf] }
  0x26   : > { %v237_v28 = vld [vmem:[%s3775_s29 + $0xe0] sm:$0xf]  ;;  %234 = vst [vmem:[%s3779_s30 + $0x68] sm:$0xf] %v233_v26  ;;  %236 = vst [vmem:[%s3779_s30 + $0x6c] sm:$0xf] %v235_v27 }
  0x27   : > { %238 = vst [vmem:[%s3779_s30 + $0x70] sm:$0xf] %v237_v28  ;;  %v239_v29 = vld [vmem:[%s3775_s29 + $0xe8] sm:$0xf]  ;;  %v241_v30 = vld [vmem:[%s3775_s29 + $0xf0] sm:$0xf] }
  0x28   : > { %v243_v31 = vld [vmem:[%s3775_s29 + $0xf8] sm:$0xf]  ;;  %240 = vst [vmem:[%s3779_s30 + $0x74] sm:$0xf] %v239_v29  ;;  %242 = vst [vmem:[%s3779_s30 + $0x78] sm:$0xf] %v241_v30 }
  0x29   : > { %244 = vst [vmem:[%s3779_s30 + $0x7c] sm:$0xf] %v243_v31  ;;  %v245_v32 = vld [vmem:[%s3775_s29 + $0x100] sm:$0xf]  ;;  %v247_v33 = vld [vmem:[%s3775_s29 + $0x108] sm:$0xf] }
  0x2a   : > { %v249_v34 = vld [vmem:[%s3775_s29 + $0x110] sm:$0xf]  ;;  %246 = vst [vmem:[%s3779_s30 + $0x80] sm:$0xf] %v245_v32  ;;  %248 = vst [vmem:[%s3779_s30 + $0x84] sm:$0xf] %v247_v33 }
  0x2b   : > { %250 = vst [vmem:[%s3779_s30 + $0x88] sm:$0xf] %v249_v34  ;;  %v251_v35 = vld [vmem:[%s3775_s29 + $0x118] sm:$0xf]  ;;  %v253_v36 = vld [vmem:[%s3775_s29 + $0x120] sm:$0xf] }
  0x2c   : > { %v255_v37 = vld [vmem:[%s3775_s29 + $0x128] sm:$0xf]  ;;  %252 = vst [vmem:[%s3779_s30 + $0x8c] sm:$0xf] %v251_v35  ;;  %254 = vst [vmem:[%s3779_s30 + $0x90] sm:$0xf] %v253_v36 }
  0x2d   : > { %256 = vst [vmem:[%s3779_s30 + $0x94] sm:$0xf] %v255_v37  ;;  %v257_v38 = vld [vmem:[%s3775_s29 + $0x130] sm:$0xf]  ;;  %v259_v39 = vld [vmem:[%s3775_s29 + $0x138] sm:$0xf] }
  0x2e   : > { %v261_v40 = vld [vmem:[%s3775_s29 + $0x140] sm:$0xf]  ;;  %258 = vst [vmem:[%s3779_s30 + $0x98] sm:$0xf] %v257_v38  ;;  %260 = vst [vmem:[%s3779_s30 + $0x9c] sm:$0xf] %v259_v39 }
  0x2f   : > { %262 = vst [vmem:[%s3779_s30 + $0xa0] sm:$0xf] %v261_v40  ;;  %v263_v41 = vld [vmem:[%s3775_s29 + $0x148] sm:$0xf]  ;;  %v265_v42 = vld [vmem:[%s3775_s29 + $0x150] sm:$0xf] }
  0x30   : > { %v267_v43 = vld [vmem:[%s3775_s29 + $0x158] sm:$0xf]  ;;  %264 = vst [vmem:[%s3779_s30 + $0xa4] sm:$0xf] %v263_v41  ;;  %266 = vst [vmem:[%s3779_s30 + $0xa8] sm:$0xf] %v265_v42 }
  0x31   : > { %268 = vst [vmem:[%s3779_s30 + $0xac] sm:$0xf] %v267_v43  ;;  %v269_v44 = vld [vmem:[%s3775_s29 + $0x160] sm:$0xf]  ;;  %v271_v45 = vld [vmem:[%s3775_s29 + $0x168] sm:$0xf] }
  0x32   : > { %v273_v46 = vld [vmem:[%s3775_s29 + $0x170] sm:$0xf]  ;;  %270 = vst [vmem:[%s3779_s30 + $0xb0] sm:$0xf] %v269_v44  ;;  %272 = vst [vmem:[%s3779_s30 + $0xb4] sm:$0xf] %v271_v45 }
  0x33   : > { %274 = vst [vmem:[%s3779_s30 + $0xb8] sm:$0xf] %v273_v46  ;;  %v275_v47 = vld [vmem:[%s3775_s29 + $0x178] sm:$0xf]  ;;  %v277_v48 = vld [vmem:[%s3775_s29 + $0x180] sm:$0xf] }
  0x34   : > { %v279_v49 = vld [vmem:[%s3775_s29 + $0x188] sm:$0xf]  ;;  %276 = vst [vmem:[%s3779_s30 + $0xbc] sm:$0xf] %v275_v47  ;;  %278 = vst [vmem:[%s3779_s30 + $0xc0] sm:$0xf] %v277_v48 }
  0x35   : > { %280 = vst [vmem:[%s3779_s30 + $0xc4] sm:$0xf] %v279_v49  ;;  %v281_v50 = vld [vmem:[%s3775_s29 + $0x190] sm:$0xf]  ;;  %v283_v51 = vld [vmem:[%s3775_s29 + $0x198] sm:$0xf] }
  0x36   : > { %v285_v52 = vld [vmem:[%s3775_s29 + $0x1a0] sm:$0xf]  ;;  %282 = vst [vmem:[%s3779_s30 + $0xc8] sm:$0xf] %v281_v50  ;;  %284 = vst [vmem:[%s3779_s30 + $0xcc] sm:$0xf] %v283_v51 }
  0x37   : > { %286 = vst [vmem:[%s3779_s30 + $0xd0] sm:$0xf] %v285_v52  ;;  %v287_v53 = vld [vmem:[%s3775_s29 + $0x1a8] sm:$0xf]  ;;  %v289_v54 = vld [vmem:[%s3775_s29 + $0x1b0] sm:$0xf] }
  0x38   : > { %v291_v55 = vld [vmem:[%s3775_s29 + $0x1b8] sm:$0xf]  ;;  %288 = vst [vmem:[%s3779_s30 + $0xd4] sm:$0xf] %v287_v53  ;;  %290 = vst [vmem:[%s3779_s30 + $0xd8] sm:$0xf] %v289_v54 }
  0x39   : > { %292 = vst [vmem:[%s3779_s30 + $0xdc] sm:$0xf] %v291_v55  ;;  %v293_v56 = vld [vmem:[%s3775_s29 + $0x1c0] sm:$0xf]  ;;  %v295_v57 = vld [vmem:[%s3775_s29 + $0x1c8] sm:$0xf] }
  0x3a   : > { %v297_v58 = vld [vmem:[%s3775_s29 + $0x1d0] sm:$0xf]  ;;  %294 = vst [vmem:[%s3779_s30 + $0xe0] sm:$0xf] %v293_v56  ;;  %296 = vst [vmem:[%s3779_s30 + $0xe4] sm:$0xf] %v295_v57 }
  0x3b   : > { %298 = vst [vmem:[%s3779_s30 + $0xe8] sm:$0xf] %v297_v58  ;;  %v299_v59 = vld [vmem:[%s3775_s29 + $0x1d8] sm:$0xf]  ;;  %v301_v60 = vld [vmem:[%s3775_s29 + $0x1e0] sm:$0xf] }
  0x3c   : > { %v303_v61 = vld [vmem:[%s3775_s29 + $0x1e8] sm:$0xf]  ;;  %300 = vst [vmem:[%s3779_s30 + $0xec] sm:$0xf] %v299_v59  ;;  %302 = vst [vmem:[%s3779_s30 + $0xf0] sm:$0xf] %v301_v60 }
  0x3d   : > { %304 = vst [vmem:[%s3779_s30 + $0xf4] sm:$0xf] %v303_v61  ;;  %v305_v62 = vld [vmem:[%s3775_s29 + $0x1f0] sm:$0xf]  ;;  %v307_v63 = vld [vmem:[%s3775_s29 + $0x1f8] sm:$0xf] }
  0x3e   : > { %v309_v0 = vld [vmem:[%s3775_s29 + $0x200] sm:$0xf]  ;;  %306 = vst [vmem:[%s3779_s30 + $0xf8] sm:$0xf] %v305_v62  ;;  %308 = vst [vmem:[%s3779_s30 + $0xfc] sm:$0xf] %v307_v63 }
  0x3f   : > { %310 = vst [vmem:[%s3779_s30 + $0x100] sm:$0xf] %v309_v0  ;;  %v311_v1 = vld [vmem:[%s3775_s29 + $0x208] sm:$0xf]  ;;  %v313_v2 = vld [vmem:[%s3775_s29 + $0x210] sm:$0xf] }
  0x40   : > { %v315_v3 = vld [vmem:[%s3775_s29 + $0x218] sm:$0xf]  ;;  %312 = vst [vmem:[%s3779_s30 + $0x104] sm:$0xf] %v311_v1  ;;  %314 = vst [vmem:[%s3779_s30 + $0x108] sm:$0xf] %v313_v2 }
  0x41   : > { %316 = vst [vmem:[%s3779_s30 + $0x10c] sm:$0xf] %v315_v3  ;;  %v317_v4 = vld [vmem:[%s3775_s29 + $0x220] sm:$0xf]  ;;  %v319_v5 = vld [vmem:[%s3775_s29 + $0x228] sm:$0xf] }
  0x42   : > { %v321_v6 = vld [vmem:[%s3775_s29 + $0x230] sm:$0xf]  ;;  %318 = vst [vmem:[%s3779_s30 + $0x110] sm:$0xf] %v317_v4  ;;  %320 = vst [vmem:[%s3779_s30 + $0x114] sm:$0xf] %v319_v5 }
  0x43   : > { %322 = vst [vmem:[%s3779_s30 + $0x118] sm:$0xf] %v321_v6  ;;  %v323_v7 = vld [vmem:[%s3775_s29 + $0x238] sm:$0xf]  ;;  %v325_v8 = vld [vmem:[%s3775_s29 + $0x240] sm:$0xf] }
  0x44   : > { %v327_v9 = vld [vmem:[%s3775_s29 + $0x248] sm:$0xf]  ;;  %324 = vst [vmem:[%s3779_s30 + $0x11c] sm:$0xf] %v323_v7  ;;  %326 = vst [vmem:[%s3779_s30 + $0x120] sm:$0xf] %v325_v8 }
  0x45   : > { %328 = vst [vmem:[%s3779_s30 + $0x124] sm:$0xf] %v327_v9  ;;  %v329_v10 = vld [vmem:[%s3775_s29 + $0x250] sm:$0xf]  ;;  %v331_v11 = vld [vmem:[%s3775_s29 + $0x258] sm:$0xf] }
  0x46   : > { %v333_v12 = vld [vmem:[%s3775_s29 + $0x260] sm:$0xf]  ;;  %330 = vst [vmem:[%s3779_s30 + $0x128] sm:$0xf] %v329_v10  ;;  %332 = vst [vmem:[%s3779_s30 + $0x12c] sm:$0xf] %v331_v11 }
  0x47   : > { %334 = vst [vmem:[%s3779_s30 + $0x130] sm:$0xf] %v333_v12  ;;  %v335_v13 = vld [vmem:[%s3775_s29 + $0x268] sm:$0xf]  ;;  %v337_v14 = vld [vmem:[%s3775_s29 + $0x270] sm:$0xf] }
  0x48   : > { %v339_v15 = vld [vmem:[%s3775_s29 + $0x278] sm:$0xf]  ;;  %336 = vst [vmem:[%s3779_s30 + $0x134] sm:$0xf] %v335_v13  ;;  %338 = vst [vmem:[%s3779_s30 + $0x138] sm:$0xf] %v337_v14 }
  0x49   : > { %340 = vst [vmem:[%s3779_s30 + $0x13c] sm:$0xf] %v339_v15  ;;  %v341_v16 = vld [vmem:[%s3775_s29 + $0x280] sm:$0xf]  ;;  %v343_v17 = vld [vmem:[%s3775_s29 + $0x288] sm:$0xf] }
  0x4a   : > { %v345_v18 = vld [vmem:[%s3775_s29 + $0x290] sm:$0xf]  ;;  %342 = vst [vmem:[%s3779_s30 + $0x140] sm:$0xf] %v341_v16  ;;  %344 = vst [vmem:[%s3779_s30 + $0x144] sm:$0xf] %v343_v17 }
  0x4b   : > { %346 = vst [vmem:[%s3779_s30 + $0x148] sm:$0xf] %v345_v18  ;;  %v347_v19 = vld [vmem:[%s3775_s29 + $0x298] sm:$0xf]  ;;  %v349_v20 = vld [vmem:[%s3775_s29 + $0x2a0] sm:$0xf] }
  0x4c   : > { %v351_v21 = vld [vmem:[%s3775_s29 + $0x2a8] sm:$0xf]  ;;  %348 = vst [vmem:[%s3779_s30 + $0x14c] sm:$0xf] %v347_v19  ;;  %350 = vst [vmem:[%s3779_s30 + $0x150] sm:$0xf] %v349_v20 }
  0x4d   : > { %352 = vst [vmem:[%s3779_s30 + $0x154] sm:$0xf] %v351_v21  ;;  %v353_v22 = vld [vmem:[%s3775_s29 + $0x2b0] sm:$0xf]  ;;  %v355_v23 = vld [vmem:[%s3775_s29 + $0x2b8] sm:$0xf] }
  0x4e   : > { %v357_v24 = vld [vmem:[%s3775_s29 + $0x2c0] sm:$0xf]  ;;  %354 = vst [vmem:[%s3779_s30 + $0x158] sm:$0xf] %v353_v22  ;;  %356 = vst [vmem:[%s3779_s30 + $0x15c] sm:$0xf] %v355_v23 }
  0x4f   : > { %358 = vst [vmem:[%s3779_s30 + $0x160] sm:$0xf] %v357_v24  ;;  %v359_v25 = vld [vmem:[%s3775_s29 + $0x2c8] sm:$0xf]  ;;  %v361_v26 = vld [vmem:[%s3775_s29 + $0x2d0] sm:$0xf] }
  0x50   : > { %v363_v27 = vld [vmem:[%s3775_s29 + $0x2d8] sm:$0xf]  ;;  %360 = vst [vmem:[%s3779_s30 + $0x164] sm:$0xf] %v359_v25  ;;  %362 = vst [vmem:[%s3779_s30 + $0x168] sm:$0xf] %v361_v26 }
  0x51   : > { %364 = vst [vmem:[%s3779_s30 + $0x16c] sm:$0xf] %v363_v27  ;;  %v365_v28 = vld [vmem:[%s3775_s29 + $0x2e0] sm:$0xf]  ;;  %v367_v29 = vld [vmem:[%s3775_s29 + $0x2e8] sm:$0xf] }
  0x52   : > { %v369_v30 = vld [vmem:[%s3775_s29 + $0x2f0] sm:$0xf]  ;;  %366 = vst [vmem:[%s3779_s30 + $0x170] sm:$0xf] %v365_v28  ;;  %368 = vst [vmem:[%s3779_s30 + $0x174] sm:$0xf] %v367_v29 }
  0x53   : > { %370 = vst [vmem:[%s3779_s30 + $0x178] sm:$0xf] %v369_v30  ;;  %v371_v31 = vld [vmem:[%s3775_s29 + $0x2f8] sm:$0xf]  ;;  %v373_v32 = vld [vmem:[%s3775_s29 + $0x300] sm:$0xf] }
  0x54   : > { %v375_v33 = vld [vmem:[%s3775_s29 + $0x308] sm:$0xf]  ;;  %372 = vst [vmem:[%s3779_s30 + $0x17c] sm:$0xf] %v371_v31  ;;  %374 = vst [vmem:[%s3779_s30 + $0x180] sm:$0xf] %v373_v32 }
  0x55   : > { %376 = vst [vmem:[%s3779_s30 + $0x184] sm:$0xf] %v375_v33  ;;  %v377_v34 = vld [vmem:[%s3775_s29 + $0x310] sm:$0xf]  ;;  %v379_v35 = vld [vmem:[%s3775_s29 + $0x318] sm:$0xf] }
  0x56   : > { %v381_v36 = vld [vmem:[%s3775_s29 + $0x320] sm:$0xf]  ;;  %378 = vst [vmem:[%s3779_s30 + $0x188] sm:$0xf] %v377_v34  ;;  %380 = vst [vmem:[%s3779_s30 + $0x18c] sm:$0xf] %v379_v35 }
  0x57   : > { %382 = vst [vmem:[%s3779_s30 + $0x190] sm:$0xf] %v381_v36  ;;  %v383_v37 = vld [vmem:[%s3775_s29 + $0x328] sm:$0xf]  ;;  %v385_v38 = vld [vmem:[%s3775_s29 + $0x330] sm:$0xf] }
  0x58   : > { %v387_v39 = vld [vmem:[%s3775_s29 + $0x338] sm:$0xf]  ;;  %384 = vst [vmem:[%s3779_s30 + $0x194] sm:$0xf] %v383_v37  ;;  %386 = vst [vmem:[%s3779_s30 + $0x198] sm:$0xf] %v385_v38 }
  0x59   : > { %388 = vst [vmem:[%s3779_s30 + $0x19c] sm:$0xf] %v387_v39  ;;  %v389_v40 = vld [vmem:[%s3775_s29 + $0x340] sm:$0xf]  ;;  %v391_v41 = vld [vmem:[%s3775_s29 + $0x348] sm:$0xf] }
  0x5a   : > { %v393_v42 = vld [vmem:[%s3775_s29 + $0x350] sm:$0xf]  ;;  %390 = vst [vmem:[%s3779_s30 + $0x1a0] sm:$0xf] %v389_v40  ;;  %392 = vst [vmem:[%s3779_s30 + $0x1a4] sm:$0xf] %v391_v41 }
  0x5b   : > { %394 = vst [vmem:[%s3779_s30 + $0x1a8] sm:$0xf] %v393_v42  ;;  %v395_v43 = vld [vmem:[%s3775_s29 + $0x358] sm:$0xf]  ;;  %v397_v44 = vld [vmem:[%s3775_s29 + $0x360] sm:$0xf] }
  0x5c   : > { %v399_v45 = vld [vmem:[%s3775_s29 + $0x368] sm:$0xf]  ;;  %396 = vst [vmem:[%s3779_s30 + $0x1ac] sm:$0xf] %v395_v43  ;;  %398 = vst [vmem:[%s3779_s30 + $0x1b0] sm:$0xf] %v397_v44 }
  0x5d   : > { %400 = vst [vmem:[%s3779_s30 + $0x1b4] sm:$0xf] %v399_v45  ;;  %v401_v46 = vld [vmem:[%s3775_s29 + $0x370] sm:$0xf]  ;;  %v403_v47 = vld [vmem:[%s3775_s29 + $0x378] sm:$0xf] }
  0x5e   : > { %v405_v48 = vld [vmem:[%s3775_s29 + $0x380] sm:$0xf]  ;;  %402 = vst [vmem:[%s3779_s30 + $0x1b8] sm:$0xf] %v401_v46  ;;  %404 = vst [vmem:[%s3779_s30 + $0x1bc] sm:$0xf] %v403_v47 }
  0x5f   : > { %406 = vst [vmem:[%s3779_s30 + $0x1c0] sm:$0xf] %v405_v48  ;;  %v407_v49 = vld [vmem:[%s3775_s29 + $0x388] sm:$0xf]  ;;  %v409_v50 = vld [vmem:[%s3775_s29 + $0x390] sm:$0xf] }
  0x60   : > { %v411_v51 = vld [vmem:[%s3775_s29 + $0x398] sm:$0xf]  ;;  %408 = vst [vmem:[%s3779_s30 + $0x1c4] sm:$0xf] %v407_v49  ;;  %410 = vst [vmem:[%s3779_s30 + $0x1c8] sm:$0xf] %v409_v50 }
  0x61   : > { %412 = vst [vmem:[%s3779_s30 + $0x1cc] sm:$0xf] %v411_v51  ;;  %v413_v52 = vld [vmem:[%s3775_s29 + $0x3a0] sm:$0xf]  ;;  %v415_v53 = vld [vmem:[%s3775_s29 + $0x3a8] sm:$0xf] }
  0x62   : > { %v417_v54 = vld [vmem:[%s3775_s29 + $0x3b0] sm:$0xf]  ;;  %414 = vst [vmem:[%s3779_s30 + $0x1d0] sm:$0xf] %v413_v52  ;;  %416 = vst [vmem:[%s3779_s30 + $0x1d4] sm:$0xf] %v415_v53 }
  0x63   : > { %418 = vst [vmem:[%s3779_s30 + $0x1d8] sm:$0xf] %v417_v54  ;;  %v419_v55 = vld [vmem:[%s3775_s29 + $0x3b8] sm:$0xf]  ;;  %v421_v56 = vld [vmem:[%s3775_s29 + $0x3c0] sm:$0xf] }
  0x64   : > { %v423_v57 = vld [vmem:[%s3775_s29 + $0x3c8] sm:$0xf]  ;;  %420 = vst [vmem:[%s3779_s30 + $0x1dc] sm:$0xf] %v419_v55  ;;  %422 = vst [vmem:[%s3779_s30 + $0x1e0] sm:$0xf] %v421_v56 }
  0x65   : > { %424 = vst [vmem:[%s3779_s30 + $0x1e4] sm:$0xf] %v423_v57  ;;  %v425_v58 = vld [vmem:[%s3775_s29 + $0x3d0] sm:$0xf]  ;;  %v427_v59 = vld [vmem:[%s3775_s29 + $0x3d8] sm:$0xf] }
  0x66   : > { %v429_v60 = vld [vmem:[%s3775_s29 + $0x3e0] sm:$0xf]  ;;  %426 = vst [vmem:[%s3779_s30 + $0x1e8] sm:$0xf] %v425_v58  ;;  %428 = vst [vmem:[%s3779_s30 + $0x1ec] sm:$0xf] %v427_v59 }
  0x67   : > { %430 = vst [vmem:[%s3779_s30 + $0x1f0] sm:$0xf] %v429_v60  ;;  %v431_v61 = vld [vmem:[%s3775_s29 + $0x3e8] sm:$0xf]  ;;  %v433_v62 = vld [vmem:[%s3775_s29 + $0x3f0] sm:$0xf] }
  0x68   : > { %v435_v63 = vld [vmem:[%s3775_s29 + $0x3f8] sm:$0xf]  ;;  %432 = vst [vmem:[%s3779_s30 + $0x1f4] sm:$0xf] %v431_v61  ;;  %434 = vst [vmem:[%s3779_s30 + $0x1f8] sm:$0xf] %v433_v62 }
  0x69   : > { %436 = vst [vmem:[%s3779_s30 + $0x1fc] sm:$0xf] %v435_v63  ;;  %v437_v0 = vld [vmem:[%s3775_s29 + $0x400] sm:$0xf]  ;;  %v439_v1 = vld [vmem:[%s3775_s29 + $0x408] sm:$0xf] }
  0x6a   : > { %v441_v2 = vld [vmem:[%s3775_s29 + $0x410] sm:$0xf]  ;;  %438 = vst [vmem:[%s3779_s30 + $0x200] sm:$0xf] %v437_v0  ;;  %440 = vst [vmem:[%s3779_s30 + $0x204] sm:$0xf] %v439_v1 }
  0x6b   : > { %442 = vst [vmem:[%s3779_s30 + $0x208] sm:$0xf] %v441_v2  ;;  %v443_v3 = vld [vmem:[%s3775_s29 + $0x418] sm:$0xf]  ;;  %v445_v4 = vld [vmem:[%s3775_s29 + $0x420] sm:$0xf] }
  0x6c   : > { %v447_v5 = vld [vmem:[%s3775_s29 + $0x428] sm:$0xf]  ;;  %444 = vst [vmem:[%s3779_s30 + $0x20c] sm:$0xf] %v443_v3  ;;  %446 = vst [vmem:[%s3779_s30 + $0x210] sm:$0xf] %v445_v4 }
  0x6d   : > { %448 = vst [vmem:[%s3779_s30 + $0x214] sm:$0xf] %v447_v5  ;;  %v449_v6 = vld [vmem:[%s3775_s29 + $0x430] sm:$0xf]  ;;  %v451_v7 = vld [vmem:[%s3775_s29 + $0x438] sm:$0xf] }
  0x6e   : > { %v453_v8 = vld [vmem:[%s3775_s29 + $0x440] sm:$0xf]  ;;  %450 = vst [vmem:[%s3779_s30 + $0x218] sm:$0xf] %v449_v6  ;;  %452 = vst [vmem:[%s3779_s30 + $0x21c] sm:$0xf] %v451_v7 }
  0x6f   : > { %454 = vst [vmem:[%s3779_s30 + $0x220] sm:$0xf] %v453_v8  ;;  %v455_v9 = vld [vmem:[%s3775_s29 + $0x448] sm:$0xf]  ;;  %v457_v10 = vld [vmem:[%s3775_s29 + $0x450] sm:$0xf] }
  0x70   : > { %v459_v11 = vld [vmem:[%s3775_s29 + $0x458] sm:$0xf]  ;;  %456 = vst [vmem:[%s3779_s30 + $0x224] sm:$0xf] %v455_v9  ;;  %458 = vst [vmem:[%s3779_s30 + $0x228] sm:$0xf] %v457_v10 }
  0x71   : > { %460 = vst [vmem:[%s3779_s30 + $0x22c] sm:$0xf] %v459_v11  ;;  %v461_v12 = vld [vmem:[%s3775_s29 + $0x460] sm:$0xf]  ;;  %v463_v13 = vld [vmem:[%s3775_s29 + $0x468] sm:$0xf] }
  0x72   : > { %v465_v14 = vld [vmem:[%s3775_s29 + $0x470] sm:$0xf]  ;;  %462 = vst [vmem:[%s3779_s30 + $0x230] sm:$0xf] %v461_v12  ;;  %464 = vst [vmem:[%s3779_s30 + $0x234] sm:$0xf] %v463_v13 }
  0x73   : > { %466 = vst [vmem:[%s3779_s30 + $0x238] sm:$0xf] %v465_v14  ;;  %v467_v15 = vld [vmem:[%s3775_s29 + $0x478] sm:$0xf]  ;;  %v469_v16 = vld [vmem:[%s3775_s29 + $0x480] sm:$0xf] }
  0x74   : > { %v471_v17 = vld [vmem:[%s3775_s29 + $0x488] sm:$0xf]  ;;  %468 = vst [vmem:[%s3779_s30 + $0x23c] sm:$0xf] %v467_v15  ;;  %470 = vst [vmem:[%s3779_s30 + $0x240] sm:$0xf] %v469_v16 }
  0x75   : > { %472 = vst [vmem:[%s3779_s30 + $0x244] sm:$0xf] %v471_v17  ;;  %v473_v18 = vld [vmem:[%s3775_s29 + $0x490] sm:$0xf]  ;;  %v475_v19 = vld [vmem:[%s3775_s29 + $0x498] sm:$0xf] }
  0x76   : > { %v477_v20 = vld [vmem:[%s3775_s29 + $0x4a0] sm:$0xf]  ;;  %474 = vst [vmem:[%s3779_s30 + $0x248] sm:$0xf] %v473_v18  ;;  %476 = vst [vmem:[%s3779_s30 + $0x24c] sm:$0xf] %v475_v19 }
  0x77   : > { %478 = vst [vmem:[%s3779_s30 + $0x250] sm:$0xf] %v477_v20  ;;  %v479_v21 = vld [vmem:[%s3775_s29 + $0x4a8] sm:$0xf]  ;;  %v481_v22 = vld [vmem:[%s3775_s29 + $0x4b0] sm:$0xf] }
  0x78   : > { %v483_v23 = vld [vmem:[%s3775_s29 + $0x4b8] sm:$0xf]  ;;  %480 = vst [vmem:[%s3779_s30 + $0x254] sm:$0xf] %v479_v21  ;;  %482 = vst [vmem:[%s3779_s30 + $0x258] sm:$0xf] %v481_v22 }
  0x79   : > { %484 = vst [vmem:[%s3779_s30 + $0x25c] sm:$0xf] %v483_v23  ;;  %v485_v24 = vld [vmem:[%s3775_s29 + $0x4c0] sm:$0xf]  ;;  %v487_v25 = vld [vmem:[%s3775_s29 + $0x4c8] sm:$0xf] }
  0x7a   : > { %v489_v26 = vld [vmem:[%s3775_s29 + $0x4d0] sm:$0xf]  ;;  %486 = vst [vmem:[%s3779_s30 + $0x260] sm:$0xf] %v485_v24  ;;  %488 = vst [vmem:[%s3779_s30 + $0x264] sm:$0xf] %v487_v25 }
  0x7b   : > { %490 = vst [vmem:[%s3779_s30 + $0x268] sm:$0xf] %v489_v26  ;;  %v491_v27 = vld [vmem:[%s3775_s29 + $0x4d8] sm:$0xf]  ;;  %v493_v28 = vld [vmem:[%s3775_s29 + $0x4e0] sm:$0xf] }
  0x7c   : > { %v495_v29 = vld [vmem:[%s3775_s29 + $0x4e8] sm:$0xf]  ;;  %492 = vst [vmem:[%s3779_s30 + $0x26c] sm:$0xf] %v491_v27  ;;  %494 = vst [vmem:[%s3779_s30 + $0x270] sm:$0xf] %v493_v28 }
  0x7d   : > { %496 = vst [vmem:[%s3779_s30 + $0x274] sm:$0xf] %v495_v29  ;;  %v497_v30 = vld [vmem:[%s3775_s29 + $0x4f0] sm:$0xf]  ;;  %v499_v31 = vld [vmem:[%s3775_s29 + $0x4f8] sm:$0xf] }
  0x7e   : > { %v501_v32 = vld [vmem:[%s3775_s29 + $0x500] sm:$0xf]  ;;  %498 = vst [vmem:[%s3779_s30 + $0x278] sm:$0xf] %v497_v30  ;;  %500 = vst [vmem:[%s3779_s30 + $0x27c] sm:$0xf] %v499_v31 }
  0x7f   : > { %502 = vst [vmem:[%s3779_s30 + $0x280] sm:$0xf] %v501_v32  ;;  %v503_v33 = vld [vmem:[%s3775_s29 + $0x508] sm:$0xf]  ;;  %v505_v34 = vld [vmem:[%s3775_s29 + $0x510] sm:$0xf] }
  0x80   : > { %v507_v35 = vld [vmem:[%s3775_s29 + $0x518] sm:$0xf]  ;;  %504 = vst [vmem:[%s3779_s30 + $0x284] sm:$0xf] %v503_v33  ;;  %506 = vst [vmem:[%s3779_s30 + $0x288] sm:$0xf] %v505_v34 }
  0x81   : > { %508 = vst [vmem:[%s3779_s30 + $0x28c] sm:$0xf] %v507_v35  ;;  %v509_v36 = vld [vmem:[%s3775_s29 + $0x520] sm:$0xf]  ;;  %v511_v37 = vld [vmem:[%s3775_s29 + $0x528] sm:$0xf] }
  0x82   : > { %v513_v38 = vld [vmem:[%s3775_s29 + $0x530] sm:$0xf]  ;;  %510 = vst [vmem:[%s3779_s30 + $0x290] sm:$0xf] %v509_v36  ;;  %512 = vst [vmem:[%s3779_s30 + $0x294] sm:$0xf] %v511_v37 }
  0x83   : > { %514 = vst [vmem:[%s3779_s30 + $0x298] sm:$0xf] %v513_v38  ;;  %v515_v39 = vld [vmem:[%s3775_s29 + $0x538] sm:$0xf]  ;;  %v517_v40 = vld [vmem:[%s3775_s29 + $0x540] sm:$0xf] }
  0x84   : > { %v519_v41 = vld [vmem:[%s3775_s29 + $0x548] sm:$0xf]  ;;  %516 = vst [vmem:[%s3779_s30 + $0x29c] sm:$0xf] %v515_v39  ;;  %518 = vst [vmem:[%s3779_s30 + $0x2a0] sm:$0xf] %v517_v40 }
  0x85   : > { %520 = vst [vmem:[%s3779_s30 + $0x2a4] sm:$0xf] %v519_v41  ;;  %v521_v42 = vld [vmem:[%s3775_s29 + $0x550] sm:$0xf]  ;;  %v523_v43 = vld [vmem:[%s3775_s29 + $0x558] sm:$0xf] }
  0x86   : > { %v525_v44 = vld [vmem:[%s3775_s29 + $0x560] sm:$0xf]  ;;  %522 = vst [vmem:[%s3779_s30 + $0x2a8] sm:$0xf] %v521_v42  ;;  %524 = vst [vmem:[%s3779_s30 + $0x2ac] sm:$0xf] %v523_v43 }
  0x87   : > { %526 = vst [vmem:[%s3779_s30 + $0x2b0] sm:$0xf] %v525_v44  ;;  %v527_v45 = vld [vmem:[%s3775_s29 + $0x568] sm:$0xf]  ;;  %v529_v46 = vld [vmem:[%s3775_s29 + $0x570] sm:$0xf] }
  0x88   : > { %v531_v47 = vld [vmem:[%s3775_s29 + $0x578] sm:$0xf]  ;;  %528 = vst [vmem:[%s3779_s30 + $0x2b4] sm:$0xf] %v527_v45  ;;  %530 = vst [vmem:[%s3779_s30 + $0x2b8] sm:$0xf] %v529_v46 }
  0x89   : > { %532 = vst [vmem:[%s3779_s30 + $0x2bc] sm:$0xf] %v531_v47  ;;  %v533_v48 = vld [vmem:[%s3775_s29 + $0x580] sm:$0xf]  ;;  %v535_v49 = vld [vmem:[%s3775_s29 + $0x588] sm:$0xf] }
  0x8a   : > { %v537_v50 = vld [vmem:[%s3775_s29 + $0x590] sm:$0xf]  ;;  %534 = vst [vmem:[%s3779_s30 + $0x2c0] sm:$0xf] %v533_v48  ;;  %536 = vst [vmem:[%s3779_s30 + $0x2c4] sm:$0xf] %v535_v49 }
  0x8b   : > { %538 = vst [vmem:[%s3779_s30 + $0x2c8] sm:$0xf] %v537_v50  ;;  %v539_v51 = vld [vmem:[%s3775_s29 + $0x598] sm:$0xf]  ;;  %v541_v52 = vld [vmem:[%s3775_s29 + $0x5a0] sm:$0xf] }
  0x8c   : > { %v543_v53 = vld [vmem:[%s3775_s29 + $0x5a8] sm:$0xf]  ;;  %540 = vst [vmem:[%s3779_s30 + $0x2cc] sm:$0xf] %v539_v51  ;;  %542 = vst [vmem:[%s3779_s30 + $0x2d0] sm:$0xf] %v541_v52 }
  0x8d   : > { %544 = vst [vmem:[%s3779_s30 + $0x2d4] sm:$0xf] %v543_v53  ;;  %v545_v54 = vld [vmem:[%s3775_s29 + $0x5b0] sm:$0xf]  ;;  %v547_v55 = vld [vmem:[%s3775_s29 + $0x5b8] sm:$0xf] }
  0x8e   : > { %v549_v56 = vld [vmem:[%s3775_s29 + $0x5c0] sm:$0xf]  ;;  %546 = vst [vmem:[%s3779_s30 + $0x2d8] sm:$0xf] %v545_v54  ;;  %548 = vst [vmem:[%s3779_s30 + $0x2dc] sm:$0xf] %v547_v55 }
  0x8f   : > { %550 = vst [vmem:[%s3779_s30 + $0x2e0] sm:$0xf] %v549_v56  ;;  %v551_v57 = vld [vmem:[%s3775_s29 + $0x5c8] sm:$0xf]  ;;  %v553_v58 = vld [vmem:[%s3775_s29 + $0x5d0] sm:$0xf] }
  0x90   : > { %v555_v59 = vld [vmem:[%s3775_s29 + $0x5d8] sm:$0xf]  ;;  %552 = vst [vmem:[%s3779_s30 + $0x2e4] sm:$0xf] %v551_v57  ;;  %554 = vst [vmem:[%s3779_s30 + $0x2e8] sm:$0xf] %v553_v58 }
  0x91   : > { %556 = vst [vmem:[%s3779_s30 + $0x2ec] sm:$0xf] %v555_v59  ;;  %v557_v60 = vld [vmem:[%s3775_s29 + $0x5e0] sm:$0xf]  ;;  %v559_v61 = vld [vmem:[%s3775_s29 + $0x5e8] sm:$0xf] }
  0x92   : > { %v561_v62 = vld [vmem:[%s3775_s29 + $0x5f0] sm:$0xf]  ;;  %558 = vst [vmem:[%s3779_s30 + $0x2f0] sm:$0xf] %v557_v60  ;;  %560 = vst [vmem:[%s3779_s30 + $0x2f4] sm:$0xf] %v559_v61 }
  0x93   : > { %562 = vst [vmem:[%s3779_s30 + $0x2f8] sm:$0xf] %v561_v62  ;;  %v563_v63 = vld [vmem:[%s3775_s29 + $0x5f8] sm:$0xf]  ;;  %v565_v0 = vld [vmem:[%s3775_s29 + $0x600] sm:$0xf] }
  0x94   : > { %v567_v1 = vld [vmem:[%s3775_s29 + $0x608] sm:$0xf]  ;;  %564 = vst [vmem:[%s3779_s30 + $0x2fc] sm:$0xf] %v563_v63  ;;  %566 = vst [vmem:[%s3779_s30 + $0x300] sm:$0xf] %v565_v0 }
  0x95   : > { %568 = vst [vmem:[%s3779_s30 + $0x304] sm:$0xf] %v567_v1  ;;  %v569_v2 = vld [vmem:[%s3775_s29 + $0x610] sm:$0xf]  ;;  %v571_v3 = vld [vmem:[%s3775_s29 + $0x618] sm:$0xf] }
  0x96   : > { %v573_v4 = vld [vmem:[%s3775_s29 + $0x620] sm:$0xf]  ;;  %570 = vst [vmem:[%s3779_s30 + $0x308] sm:$0xf] %v569_v2  ;;  %572 = vst [vmem:[%s3779_s30 + $0x30c] sm:$0xf] %v571_v3 }
  0x97   : > { %574 = vst [vmem:[%s3779_s30 + $0x310] sm:$0xf] %v573_v4  ;;  %v575_v5 = vld [vmem:[%s3775_s29 + $0x628] sm:$0xf]  ;;  %v577_v6 = vld [vmem:[%s3775_s29 + $0x630] sm:$0xf] }
  0x98   : > { %v579_v7 = vld [vmem:[%s3775_s29 + $0x638] sm:$0xf]  ;;  %576 = vst [vmem:[%s3779_s30 + $0x314] sm:$0xf] %v575_v5  ;;  %578 = vst [vmem:[%s3779_s30 + $0x318] sm:$0xf] %v577_v6 }
  0x99   : > { %580 = vst [vmem:[%s3779_s30 + $0x31c] sm:$0xf] %v579_v7  ;;  %v581_v8 = vld [vmem:[%s3775_s29 + $0x640] sm:$0xf]  ;;  %v583_v9 = vld [vmem:[%s3775_s29 + $0x648] sm:$0xf] }
  0x9a   : > { %v585_v10 = vld [vmem:[%s3775_s29 + $0x650] sm:$0xf]  ;;  %582 = vst [vmem:[%s3779_s30 + $0x320] sm:$0xf] %v581_v8  ;;  %584 = vst [vmem:[%s3779_s30 + $0x324] sm:$0xf] %v583_v9 }
  0x9b   : > { %586 = vst [vmem:[%s3779_s30 + $0x328] sm:$0xf] %v585_v10  ;;  %v587_v11 = vld [vmem:[%s3775_s29 + $0x658] sm:$0xf]  ;;  %v589_v12 = vld [vmem:[%s3775_s29 + $0x660] sm:$0xf] }
  0x9c   : > { %v591_v13 = vld [vmem:[%s3775_s29 + $0x668] sm:$0xf]  ;;  %588 = vst [vmem:[%s3779_s30 + $0x32c] sm:$0xf] %v587_v11  ;;  %590 = vst [vmem:[%s3779_s30 + $0x330] sm:$0xf] %v589_v12 }
  0x9d   : > { %592 = vst [vmem:[%s3779_s30 + $0x334] sm:$0xf] %v591_v13  ;;  %v593_v14 = vld [vmem:[%s3775_s29 + $0x670] sm:$0xf]  ;;  %v595_v15 = vld [vmem:[%s3775_s29 + $0x678] sm:$0xf] }
  0x9e   : > { %v597_v16 = vld [vmem:[%s3775_s29 + $0x680] sm:$0xf]  ;;  %594 = vst [vmem:[%s3779_s30 + $0x338] sm:$0xf] %v593_v14  ;;  %596 = vst [vmem:[%s3779_s30 + $0x33c] sm:$0xf] %v595_v15 }
  0x9f   : > { %598 = vst [vmem:[%s3779_s30 + $0x340] sm:$0xf] %v597_v16  ;;  %v599_v17 = vld [vmem:[%s3775_s29 + $0x688] sm:$0xf]  ;;  %v601_v18 = vld [vmem:[%s3775_s29 + $0x690] sm:$0xf] }
  0xa0   : > { %v603_v19 = vld [vmem:[%s3775_s29 + $0x698] sm:$0xf]  ;;  %600 = vst [vmem:[%s3779_s30 + $0x344] sm:$0xf] %v599_v17  ;;  %602 = vst [vmem:[%s3779_s30 + $0x348] sm:$0xf] %v601_v18 }
  0xa1   : > { %604 = vst [vmem:[%s3779_s30 + $0x34c] sm:$0xf] %v603_v19  ;;  %v605_v20 = vld [vmem:[%s3775_s29 + $0x6a0] sm:$0xf]  ;;  %v607_v21 = vld [vmem:[%s3775_s29 + $0x6a8] sm:$0xf] }
  0xa2   : > { %v609_v22 = vld [vmem:[%s3775_s29 + $0x6b0] sm:$0xf]  ;;  %606 = vst [vmem:[%s3779_s30 + $0x350] sm:$0xf] %v605_v20  ;;  %608 = vst [vmem:[%s3779_s30 + $0x354] sm:$0xf] %v607_v21 }
  0xa3   : > { %610 = vst [vmem:[%s3779_s30 + $0x358] sm:$0xf] %v609_v22  ;;  %v611_v23 = vld [vmem:[%s3775_s29 + $0x6b8] sm:$0xf]  ;;  %v613_v24 = vld [vmem:[%s3775_s29 + $0x6c0] sm:$0xf] }
  0xa4   : > { %v615_v25 = vld [vmem:[%s3775_s29 + $0x6c8] sm:$0xf]  ;;  %612 = vst [vmem:[%s3779_s30 + $0x35c] sm:$0xf] %v611_v23  ;;  %614 = vst [vmem:[%s3779_s30 + $0x360] sm:$0xf] %v613_v24 }
  0xa5   : > { %616 = vst [vmem:[%s3779_s30 + $0x364] sm:$0xf] %v615_v25  ;;  %v617_v26 = vld [vmem:[%s3775_s29 + $0x6d0] sm:$0xf]  ;;  %v619_v27 = vld [vmem:[%s3775_s29 + $0x6d8] sm:$0xf] }
  0xa6   : > { %v621_v28 = vld [vmem:[%s3775_s29 + $0x6e0] sm:$0xf]  ;;  %618 = vst [vmem:[%s3779_s30 + $0x368] sm:$0xf] %v617_v26  ;;  %620 = vst [vmem:[%s3779_s30 + $0x36c] sm:$0xf] %v619_v27 }
  0xa7   : > { %622 = vst [vmem:[%s3779_s30 + $0x370] sm:$0xf] %v621_v28  ;;  %v623_v29 = vld [vmem:[%s3775_s29 + $0x6e8] sm:$0xf]  ;;  %v625_v30 = vld [vmem:[%s3775_s29 + $0x6f0] sm:$0xf] }
  0xa8   : > { %v627_v31 = vld [vmem:[%s3775_s29 + $0x6f8] sm:$0xf]  ;;  %624 = vst [vmem:[%s3779_s30 + $0x374] sm:$0xf] %v623_v29  ;;  %626 = vst [vmem:[%s3779_s30 + $0x378] sm:$0xf] %v625_v30 }
  0xa9   : > { %628 = vst [vmem:[%s3779_s30 + $0x37c] sm:$0xf] %v627_v31  ;;  %v629_v32 = vld [vmem:[%s3775_s29 + $0x700] sm:$0xf]  ;;  %v631_v33 = vld [vmem:[%s3775_s29 + $0x708] sm:$0xf] }
  0xaa   : > { %v633_v34 = vld [vmem:[%s3775_s29 + $0x710] sm:$0xf]  ;;  %630 = vst [vmem:[%s3779_s30 + $0x380] sm:$0xf] %v629_v32  ;;  %632 = vst [vmem:[%s3779_s30 + $0x384] sm:$0xf] %v631_v33 }
  0xab   : > { %634 = vst [vmem:[%s3779_s30 + $0x388] sm:$0xf] %v633_v34  ;;  %v635_v35 = vld [vmem:[%s3775_s29 + $0x718] sm:$0xf]  ;;  %v637_v36 = vld [vmem:[%s3775_s29 + $0x720] sm:$0xf] }
  0xac   : > { %v639_v37 = vld [vmem:[%s3775_s29 + $0x728] sm:$0xf]  ;;  %636 = vst [vmem:[%s3779_s30 + $0x38c] sm:$0xf] %v635_v35  ;;  %638 = vst [vmem:[%s3779_s30 + $0x390] sm:$0xf] %v637_v36 }
  0xad   : > { %640 = vst [vmem:[%s3779_s30 + $0x394] sm:$0xf] %v639_v37  ;;  %v641_v38 = vld [vmem:[%s3775_s29 + $0x730] sm:$0xf]  ;;  %v643_v39 = vld [vmem:[%s3775_s29 + $0x738] sm:$0xf] }
  0xae   : > { %v645_v40 = vld [vmem:[%s3775_s29 + $0x740] sm:$0xf]  ;;  %642 = vst [vmem:[%s3779_s30 + $0x398] sm:$0xf] %v641_v38  ;;  %644 = vst [vmem:[%s3779_s30 + $0x39c] sm:$0xf] %v643_v39 }
  0xaf   : > { %646 = vst [vmem:[%s3779_s30 + $0x3a0] sm:$0xf] %v645_v40  ;;  %v647_v41 = vld [vmem:[%s3775_s29 + $0x748] sm:$0xf]  ;;  %v649_v42 = vld [vmem:[%s3775_s29 + $0x750] sm:$0xf] }
  0xb0   : > { %v651_v43 = vld [vmem:[%s3775_s29 + $0x758] sm:$0xf]  ;;  %648 = vst [vmem:[%s3779_s30 + $0x3a4] sm:$0xf] %v647_v41  ;;  %650 = vst [vmem:[%s3779_s30 + $0x3a8] sm:$0xf] %v649_v42 }
  0xb1   : > { %652 = vst [vmem:[%s3779_s30 + $0x3ac] sm:$0xf] %v651_v43  ;;  %v653_v44 = vld [vmem:[%s3775_s29 + $0x760] sm:$0xf]  ;;  %v655_v45 = vld [vmem:[%s3775_s29 + $0x768] sm:$0xf] }
  0xb2   : > { %v657_v46 = vld [vmem:[%s3775_s29 + $0x770] sm:$0xf]  ;;  %654 = vst [vmem:[%s3779_s30 + $0x3b0] sm:$0xf] %v653_v44  ;;  %656 = vst [vmem:[%s3779_s30 + $0x3b4] sm:$0xf] %v655_v45 }
  0xb3   : > { %658 = vst [vmem:[%s3779_s30 + $0x3b8] sm:$0xf] %v657_v46  ;;  %v659_v47 = vld [vmem:[%s3775_s29 + $0x778] sm:$0xf]  ;;  %v661_v48 = vld [vmem:[%s3775_s29 + $0x780] sm:$0xf] }
  0xb4   : > { %v663_v49 = vld [vmem:[%s3775_s29 + $0x788] sm:$0xf]  ;;  %660 = vst [vmem:[%s3779_s30 + $0x3bc] sm:$0xf] %v659_v47  ;;  %662 = vst [vmem:[%s3779_s30 + $0x3c0] sm:$0xf] %v661_v48 }
  0xb5   : > { %664 = vst [vmem:[%s3779_s30 + $0x3c4] sm:$0xf] %v663_v49  ;;  %v665_v50 = vld [vmem:[%s3775_s29 + $0x790] sm:$0xf]  ;;  %v667_v51 = vld [vmem:[%s3775_s29 + $0x798] sm:$0xf] }
  0xb6   : > { %v669_v52 = vld [vmem:[%s3775_s29 + $0x7a0] sm:$0xf]  ;;  %666 = vst [vmem:[%s3779_s30 + $0x3c8] sm:$0xf] %v665_v50  ;;  %668 = vst [vmem:[%s3779_s30 + $0x3cc] sm:$0xf] %v667_v51 }
  0xb7   : > { %670 = vst [vmem:[%s3779_s30 + $0x3d0] sm:$0xf] %v669_v52  ;;  %v671_v53 = vld [vmem:[%s3775_s29 + $0x7a8] sm:$0xf]  ;;  %v673_v54 = vld [vmem:[%s3775_s29 + $0x7b0] sm:$0xf] }
  0xb8   : > { %v675_v55 = vld [vmem:[%s3775_s29 + $0x7b8] sm:$0xf]  ;;  %672 = vst [vmem:[%s3779_s30 + $0x3d4] sm:$0xf] %v671_v53  ;;  %674 = vst [vmem:[%s3779_s30 + $0x3d8] sm:$0xf] %v673_v54 }
  0xb9   : > { %676 = vst [vmem:[%s3779_s30 + $0x3dc] sm:$0xf] %v675_v55  ;;  %v677_v56 = vld [vmem:[%s3775_s29 + $0x7c0] sm:$0xf]  ;;  %v679_v57 = vld [vmem:[%s3775_s29 + $0x7c8] sm:$0xf] }
  0xba   : > { %v681_v58 = vld [vmem:[%s3775_s29 + $0x7d0] sm:$0xf]  ;;  %678 = vst [vmem:[%s3779_s30 + $0x3e0] sm:$0xf] %v677_v56  ;;  %680 = vst [vmem:[%s3779_s30 + $0x3e4] sm:$0xf] %v679_v57 }
  0xbb   : > { %682 = vst [vmem:[%s3779_s30 + $0x3e8] sm:$0xf] %v681_v58  ;;  %v683_v59 = vld [vmem:[%s3775_s29 + $0x7d8] sm:$0xf]  ;;  %v685_v60 = vld [vmem:[%s3775_s29 + $0x7e0] sm:$0xf] }
  0xbc   : > { %v687_v61 = vld [vmem:[%s3775_s29 + $0x7e8] sm:$0xf]  ;;  %684 = vst [vmem:[%s3779_s30 + $0x3ec] sm:$0xf] %v683_v59  ;;  %686 = vst [vmem:[%s3779_s30 + $0x3f0] sm:$0xf] %v685_v60 }
  0xbd   : > { %688 = vst [vmem:[%s3779_s30 + $0x3f4] sm:$0xf] %v687_v61  ;;  %v689_v62 = vld [vmem:[%s3775_s29 + $0x7f0] sm:$0xf]  ;;  %v691_v63 = vld [vmem:[%s3775_s29 + $0x7f8] sm:$0xf] }
  0xbe   : > { %690 = vst [vmem:[%s3779_s30 + $0x3f8] sm:$0xf] %v689_v62  ;;  %692 = vst [vmem:[%s3779_s30 + $0x3fc] sm:$0xf] %v691_v63 }
  0xbf PF: > { %p3119_p7 = scmp.ge.s32.totalorder %s3707_s17, 1  ;;  %p1238_p8 = scmp.lt.s32.totalorder %s3707_s17, 3 }
  0xc1   : > { %p1239_p9 = pnand %p3119_p7, %p1238_p8 }
  0xc2   : > { %s1245_s5 = sand.u32 (!%p1239_p9), 1, %s3699_s15   ;;  %v4297_v0 = vld [vmem:[%s4564_s0] sm:$0xff] (!%p1239_p9)  ;;  %v4307_v2 = vld [vmem:[%s4564_s0 + $0x8] sm:$0xff] (!%p1239_p9)  ;;  %p1275_p10 = scmp.lt.s32.totalorder (!%p1239_p9), %s3750_s18, 1 }
  0xc3   : > { %1242 = sbr.rel (%p1239_p9) target bundleno = 632 (0x278), region = 73  ;;  %v4302_v1 = vld [vmem:[%s4564_s0 + $0x40] sm:$0xff] (!%p1239_p9)  ;;  %s3120_s12 = sshll.u32 (!%p1239_p9), %s1245_s5, 10  ;;  %v4316_v4 = vld [vmem:[%s4564_s0 + $0x48] sm:$0xff] (!%p1239_p9) }
  0xc4   : > { %v3123_v3 = vcombine.high (!%p1239_p9), %v4297_v0, %v4302_v1  ;;  %v3125_v5 = vcombine.high (!%p1239_p9), %v4307_v2, %v4316_v4  ;;  %s4320_s17 = scalar_lea.vmem (!%p1239_p9), [#allocation2], %s3120_s12  ;;  %v1298_v35 = vld [vmem:[%s4564_s0 + $0x80] sm:$0xff] (!%p1239_p9)  ;;  %v1299_v38 = vld [vmem:[%s4564_s0 + $0x88] sm:$0xff] (!%p1239_p9)  ;;  %v3122_v42 = vcombine.low (!%p1239_p9), %v4297_v0, %v4302_v1  ;;  %v3124_v43 = vcombine.low (!%p1239_p9), %v4307_v2, %v4316_v4  ;;  %s3121_s30 = sshll.u32 (!%p1239_p9), %s1245_s5, 4 }
  0xc5   : > { %v3555_v6 = vld [vmem:[%s4320_s17 + $0x40] sm:$0xff] (!%p1239_p9)   ;;  %v3559_v10 = vld [vmem:[%s4320_s17 + $0x48] sm:$0xff] (!%p1239_p9)   ;;  %v3563_v14 = vld [vmem:[%s4320_s17 + $0x50] sm:$0xff] (!%p1239_p9)   ;;  %s1274_s6 = scalar_lea.vmem (!%p1239_p9), [#allocation3], %s3121_s30 }
  0xc6   : > { %2530 = vmatprep.mubr.bf16.mxu0 (!%p1239_p9), %v3123_v3  ;;  %v3556_v7 = vld [vmem:[%s4320_s17 + $0xc0] sm:$0xff] (!%p1239_p9)   ;;  %2579 = vmatprep.mubr.bf16.mxu1 (!%p1239_p9), %v3125_v5  ;;  %v3560_v11 = vld [vmem:[%s4320_s17 + $0xc8] sm:$0xff] (!%p1239_p9)   ;;  %v3564_v15 = vld [vmem:[%s4320_s17 + $0xd0] sm:$0xff] (!%p1239_p9)  }
  0xc7   : > { %3307 = vmatprep.subr.bf16.mxu0 (!%p1239_p9), %v3555_v6  ;;  %v3557_v8 = vld [vmem:[%s4320_s17] sm:$0xff] (!%p1239_p9)   ;;  %3335 = vmatprep.subr.bf16.mxu1 (!%p1239_p9), %v3556_v7  ;;  %v3561_v12 = vld [vmem:[%s4320_s17 + $0x8] sm:$0xff] (!%p1239_p9)   ;;  %v3565_v16 = vld [vmem:[%s4320_s17 + $0x10] sm:$0xff] (!%p1239_p9)  }
  0xc8   : > { %v3558_v9 = vld [vmem:[%s4320_s17 + $0x80] sm:$0xff] (!%p1239_p9)   ;;  %3308 = vmatpush3.bf16.msra.mxu0 (!%p1239_p9), %v3557_v8  ;;  %v3562_v13 = vld [vmem:[%s4320_s17 + $0x88] sm:$0xff] (!%p1239_p9)   ;;  %v3566_v17 = vld [vmem:[%s4320_s17 + $0x90] sm:$0xff] (!%p1239_p9)  }
  0xc9   : > { %3336 = vmatpush3.bf16.msra.mxu1 (!%p1239_p9), %v3558_v9  ;;  %3309 = vmatprep.subr.bf16.mxu0 (!%p1239_p9), %v3559_v10  ;;  %v3567_v18 = vld [vmem:[%s4320_s17 + $0x58] sm:$0xff] (!%p1239_p9)   ;;  %v3571_v22 = vld [vmem:[%s4320_s17 + $0x60] sm:$0xff] (!%p1239_p9)   ;;  %v3575_v26 = vld [vmem:[%s4320_s17 + $0x68] sm:$0xff] (!%p1239_p9)  }
  0xca   : > { %3337 = vmatprep.subr.bf16.mxu1 %v3560_v11  ;;  %v3568_v19 = vld [vmem:[%s4320_s17 + $0xd8] sm:$0xff]   ;;  %v3572_v23 = vld [vmem:[%s4320_s17 + $0xe0] sm:$0xff]   ;;  %v3576_v27 = vld [vmem:[%s4320_s17 + $0xe8] sm:$0xff]   ;;  %s1276_s21 = scalar_select %p1275_p10, %s3750_s18, 1 }
  0xcb   : > { %v3569_v20 = vld [vmem:[%s4320_s17 + $0x18] sm:$0xff]   ;;  %v3573_v24 = vld [vmem:[%s4320_s17 + $0x20] sm:$0xff]   ;;  %v3577_v28 = vld [vmem:[%s4320_s17 + $0x28] sm:$0xff]   ;;  %s3289_s15 = sshll.u32 (%p3765_p5), %s3750_s18, 2 }
  0xcc   : > { %3310 = vmatpush3.bf16.msra.mxu0 %v3561_v12  ;;  %v3570_v21 = vld [vmem:[%s4320_s17 + $0x98] sm:$0xff]   ;;  %v3574_v25 = vld [vmem:[%s4320_s17 + $0xa0] sm:$0xff]   ;;  %v3578_v29 = vld [vmem:[%s4320_s17 + $0xa8] sm:$0xff]   ;;  %s1277_s26 = scalar_lea.vmem %s4566_s2, %s1276_s21  ;;  %s1280_s29 = scalar_lea.vmem %s4567_s3, %s1276_s21 }
  0xcd   : > { %3338 = vmatpush3.bf16.msra.mxu1 %v3562_v13  ;;  %3311 = vmatprep.subr.bf16.mxu0 %v3563_v14  ;;  %v3579_v30 = vld [vmem:[%s4320_s17 + $0x70] sm:$0xff]   ;;  %v3583_v34 = vld [vmem:[%s4320_s17 + $0x78] sm:$0xff]   ;;  %v1306_v36 = vld [vmem:[%s4564_s0 + $0xc0] sm:$0xff]  ;;  %s2987_s8 = scalar_lea.vmem (%p3765_p5), %s4568_s4, %s3289_s15 }
  0xce   : > { %3339 = vmatprep.subr.bf16.mxu1 %v3564_v15  ;;  %v3580_v31 = vld [vmem:[%s4320_s17 + $0xf0] sm:$0xff]   ;;  %v3584_v37 = vld [vmem:[%s4320_s17 + $0xf8] sm:$0xff]   ;;  %v1307_v39 = vld [vmem:[%s4564_s0 + $0xc8] sm:$0xff]  ;;  %v3139_v46 = vcombine.high %v1298_v35, %v1306_v36  ;;  %v3138_v54 = vcombine.low %v1298_v35, %v1306_v36 }
  0xcf   : > { %v3581_v32 = vld [vmem:[%s4320_s17 + $0x30] sm:$0xff]   ;;  %v3585_v40 = vld [vmem:[%s4320_s17 + $0x38] sm:$0xff]   ;;  %v3587_v44 = vld [vmem:[%s4320_s17 + $0x140] sm:$0xff]   ;;  %v3141_v48 = vcombine.high %v1299_v38, %v1307_v39  ;;  %v3140_v56 = vcombine.low %v1299_v38, %v1307_v39 }
  0xd0   : > { %3312 = vmatpush3.bf16.msra.mxu0 %v3565_v16  ;;  %v3582_v33 = vld [vmem:[%s4320_s17 + $0xb0] sm:$0xff]   ;;  %v3586_v41 = vld [vmem:[%s4320_s17 + $0xb8] sm:$0xff]   ;;  %v3588_v45 = vld [vmem:[%s4320_s17 + $0x1c0] sm:$0xff]  }
  0xd1   : > { %3340 = vmatpush3.bf16.msra.mxu1 %v3566_v17  ;;  %3313 = vmatprep.subr.bf16.mxu0 %v3567_v18  ;;  %v3589_v47 = vld [vmem:[%s4320_s17 + $0x100] sm:$0xff]   ;;  %v3591_v50 = vld [vmem:[%s4320_s17 + $0x148] sm:$0xff]   ;;  %v3595_v55 = vld [vmem:[%s4320_s17 + $0x150] sm:$0xff]  }
  0xd2   : > { %3341 = vmatprep.subr.bf16.mxu1 %v3568_v19  ;;  %v3590_v49 = vld [vmem:[%s4320_s17 + $0x180] sm:$0xff]   ;;  %v3592_v51 = vld [vmem:[%s4320_s17 + $0x1c8] sm:$0xff]   ;;  %v3596_v57 = vld [vmem:[%s4320_s17 + $0x1d0] sm:$0xff]  }
  0xd3   : > { %v3593_v52 = vld [vmem:[%s4320_s17 + $0x108] sm:$0xff]   ;;  %v3597_v58 = vld [vmem:[%s4320_s17 + $0x110] sm:$0xff]   ;;  %v3599_v60 = vld [vmem:[%s4320_s17 + $0x158] sm:$0xff]  }
  0xd4   : > { %3314 = vmatpush3.bf16.msra.mxu0 %v3569_v20  ;;  %v3594_v53 = vld [vmem:[%s4320_s17 + $0x188] sm:$0xff]   ;;  %v3598_v59 = vld [vmem:[%s4320_s17 + $0x190] sm:$0xff]   ;;  %v3600_v61 = vld [vmem:[%s4320_s17 + $0x1d8] sm:$0xff]  }
  0xd5   : > { %3342 = vmatpush3.bf16.msra.mxu1 %v3570_v21  ;;  %3315 = vmatprep.subr.bf16.mxu0 %v3571_v22  ;;  %v3601_v62 = vld [vmem:[%s4320_s17 + $0x118] sm:$0xff]   ;;  %v3603_v0 = vld [vmem:[%s4320_s17 + $0x160] sm:$0xff]   ;;  %v3607_v4 = vld [vmem:[%s4320_s17 + $0x168] sm:$0xff]  }
  0xd6   : > { %3343 = vmatprep.subr.bf16.mxu1 %v3572_v23  ;;  %v3602_v63 = vld [vmem:[%s4320_s17 + $0x198] sm:$0xff]   ;;  %v3604_v1 = vld [vmem:[%s4320_s17 + $0x1e0] sm:$0xff]   ;;  %v3608_v5 = vld [vmem:[%s4320_s17 + $0x1e8] sm:$0xff]  }
  0xd7   : > { %v3605_v2 = vld [vmem:[%s4320_s17 + $0x120] sm:$0xff]   ;;  %v3609_v6 = vld [vmem:[%s4320_s17 + $0x128] sm:$0xff]   ;;  %v3611_v8 = vld [vmem:[%s4320_s17 + $0x170] sm:$0xff]  }
  0xd8   : > { %3316 = vmatpush3.bf16.msra.mxu0 %v3573_v24  ;;  %v3606_v3 = vld [vmem:[%s4320_s17 + $0x1a0] sm:$0xff]   ;;  %v3610_v7 = vld [vmem:[%s4320_s17 + $0x1a8] sm:$0xff]   ;;  %v3612_v9 = vld [vmem:[%s4320_s17 + $0x1f0] sm:$0xff]  }
  0xd9   : > { %3344 = vmatpush3.bf16.msra.mxu1 %v3574_v25  ;;  %3317 = vmatprep.subr.bf16.mxu0 %v3575_v26  ;;  %v3613_v10 = vld [vmem:[%s4320_s17 + $0x130] sm:$0xff]   ;;  %v3615_v12 = vld [vmem:[%s4320_s17 + $0x178] sm:$0xff]   ;;  %v3619_v24 = vld [vmem:[%s4320_s17 + $0x240] sm:$0xff]  }
  0xda   : > { %3345 = vmatprep.subr.bf16.mxu1 %v3576_v27  ;;  %v3614_v11 = vld [vmem:[%s4320_s17 + $0x1b0] sm:$0xff]   ;;  %v3616_v14 = vld [vmem:[%s4320_s17 + $0x1f8] sm:$0xff]   ;;  %v3620_v25 = vld [vmem:[%s4320_s17 + $0x2c0] sm:$0xff]  }
  0xdb   : > { %v1284_v13 = vld [vmem:[%s4564_s0 + $0x10] sm:$0xff]  ;;  %v3617_v15 = vld [vmem:[%s4320_s17 + $0x138] sm:$0xff]   ;;  %v3621_v26 = vld [vmem:[%s4320_s17 + $0x200] sm:$0xff]  }
  0xdc   : > { %3318 = vmatpush3.bf16.msra.mxu0 %v3577_v28  ;;  %v3618_v16 = vld [vmem:[%s4320_s17 + $0x1b8] sm:$0xff]   ;;  %v1292_v17 = vld [vmem:[%s4564_s0 + $0x50] sm:$0xff]  ;;  %v3622_v27 = vld [vmem:[%s4320_s17 + $0x280] sm:$0xff]  }
  0xdd   : > { %3346 = vmatpush3.bf16.msra.mxu1 %v3578_v29  ;;  %3319 = vmatprep.subr.bf16.mxu0 %v3579_v30  ;;  %v1285_v18 = vld [vmem:[%s4564_s0 + $0x18] sm:$0xff]  ;;  %v3126_v20 = vcombine.low %v1284_v13, %v1292_v17  ;;  %v3127_v21 = vcombine.high %v1284_v13, %v1292_v17  ;;  %v3623_v28 = vld [vmem:[%s4320_s17 + $0x248] sm:$0xff]   ;;  %v3627_v36 = vld [vmem:[%s4320_s17 + $0x250] sm:$0xff]  }
  0xde   : > { %3347 = vmatprep.subr.bf16.mxu1 %v3580_v31  ;;  %v1293_v19 = vld [vmem:[%s4564_s0 + $0x58] sm:$0xff]  ;;  %v3624_v29 = vld [vmem:[%s4320_s17 + $0x2c8] sm:$0xff]   ;;  %v1310_v17 = vld [vmem:[%s4564_s0 + $0xe0] sm:$0xff] }
  0xdf   : > { %v3128_v22 = vcombine.low %v1285_v18, %v1293_v19  ;;  %v3129_v23 = vcombine.high %v1285_v18, %v1293_v19  ;;  %v3625_v30 = vld [vmem:[%s4320_s17 + $0x208] sm:$0xff]   ;;  %v1301_v38 = vld [vmem:[%s4564_s0 + $0x98] sm:$0xff] }
  0xe0   : > { %3320 = vmatpush3.bf16.msra.mxu0 %v3581_v32  ;;  %v3626_v31 = vld [vmem:[%s4320_s17 + $0x288] sm:$0xff]   ;;  %v1300_v32 = vld [vmem:[%s4564_s0 + $0x90] sm:$0xff]  ;;  %v1309_v39 = vld [vmem:[%s4564_s0 + $0xd8] sm:$0xff] }
  0xe1   : > { %3348 = vmatpush3.bf16.msra.mxu1 %v3582_v33  ;;  %3321 = vmatprep.subr.bf16.mxu0 %v3583_v34  ;;  %v1308_v33 = vld [vmem:[%s4564_s0 + $0xd0] sm:$0xff]  ;;  %v3656_v13 = vld [vmem:[%s4320_s17 + $0x3c8] sm:$0xff]  }
  0xe2   : > { %3349 = vmatprep.subr.bf16.mxu1 %v3584_v37  ;;  %v3143_v34 = vcombine.high %v1300_v32, %v1308_v33  ;;  %v3142_v35 = vcombine.low %v1300_v32, %v1308_v33  ;;  %v3628_v37 = vld [vmem:[%s4320_s17 + $0x2d0] sm:$0xff]   ;;  %v3667_v32 = vld [vmem:[%s4320_s17 + $0x360] sm:$0xff]  }
  0xe3   : > { %v3668_v33 = vld [vmem:[%s4320_s17 + $0x3e0] sm:$0xff]  }
  0xe4   : > { %3322 = vmatpush3.bf16.msra.mxu0 %v3585_v40  ;;  %v3145_v40 = vcombine.high %v1301_v38, %v1309_v39 }
  0xe5   : > { %3350 = vmatpush3.bf16.msra.mxu1 %v3586_v41  ;;  %3363 = vmatprep.subr.bf16.mxu0 %v3587_v44  ;;  %v3629_v41 = vld [vmem:[%s4320_s17 + $0x210] sm:$0xff]   ;;  %v3631_v44 = vld [vmem:[%s4320_s17 + $0x258] sm:$0xff]  }
  0xe6   : > { %3391 = vmatprep.subr.bf16.mxu1 %v3588_v45  ;;  %v3632_v45 = vld [vmem:[%s4320_s17 + $0x2d8] sm:$0xff]  }
  0xe7   : > { %2531 = vmatmul.mubr.bf16.vlgmr.msra.gmra.mrb[0].mxu0 %v3122_v42  ;;  %v3144_v42 = vcombine.low %v1301_v38, %v1309_v39  ;;  %v3673_v38 = vld [vmem:[%s4320_s17 + $0x328] sm:$0xff]  }
  0xe8   : > { %2580 = vmatmul.mubr.bf16.vlgmr.msra.gmra.mrb[0].mxu1 %v3124_v43  ;;  %3364 = vmatpush3.bf16.msra.mxu0 %v3589_v47  ;;  %v3630_v43 = vld [vmem:[%s4320_s17 + $0x290] sm:$0xff]   ;;  %v3634_v47 = vld [vmem:[%s4320_s17 + $0x298] sm:$0xff]   ;;  %v3674_v39 = vld [vmem:[%s4320_s17 + $0x3a8] sm:$0xff]  }
  0xe9   : > { %3392 = vmatpush3.bf16.msra.mxu1 %v3590_v49  ;;  %2538 = vmatprep.mubr.bf16.mxu0 %v3139_v46  ;;  %v3633_v46 = vld [vmem:[%s4320_s17 + $0x218] sm:$0xff]   ;;  %v3636_v49 = vld [vmem:[%s4320_s17 + $0x2e0] sm:$0xff]  }
  0xea   : > { %3365 = vmatprep.subr.bf16.mxu0 %v3591_v50  ;;  %2587 = vmatprep.mubr.bf16.mxu1 %v3141_v48  ;;  %v3635_v48 = vld [vmem:[%s4320_s17 + $0x260] sm:$0xff]  }
  0xeb   : > { %3393 = vmatprep.subr.bf16.mxu1 %v3592_v51  ;;  %v3637_v50 = vld [vmem:[%s4320_s17 + $0x220] sm:$0xff]  }
  0xec   : > { %3366 = vmatpush3.bf16.msra.mxu0 %v3593_v52  ;;  %v3638_v51 = vld [vmem:[%s4320_s17 + $0x2a0] sm:$0xff]   ;;  %v3639_v52 = vld [vmem:[%s4320_s17 + $0x268] sm:$0xff]  }
  0xed   : > { %3394 = vmatpush3.bf16.msra.mxu1 %v3594_v53  ;;  %3367 = vmatprep.subr.bf16.mxu0 %v3595_v55  ;;  %v3640_v53 = vld [vmem:[%s4320_s17 + $0x2e8] sm:$0xff]  }
  0xee   : > { %3395 = vmatprep.subr.bf16.mxu1 %v3596_v57  ;;  %v3642_v55 = vld [vmem:[%s4320_s17 + $0x2a8] sm:$0xff]   ;;  %v3644_v57 = vld [vmem:[%s4320_s17 + $0x2f0] sm:$0xff]  }
  0xef   : > { %2539 = vmatmul.mubr.bf16.gmra.mrb[4].mxu0 %v3138_v54  ;;  %v3641_v54 = vld [vmem:[%s4320_s17 + $0x228] sm:$0xff]  }
  0xf0   : > { %3368 = vmatpush3.bf16.msra.mxu0 %v3597_v58  ;;  %2588 = vmatmul.mubr.bf16.gmra.mrb[4].mxu1 %v3140_v56  ;;  %v3643_v56 = vld [vmem:[%s4320_s17 + $0x270] sm:$0xff]  }
  0xf1   : > { %3396 = vmatpush3.bf16.msra.mxu1 %v3598_v59  ;;  %3369 = vmatprep.subr.bf16.mxu0 %v3599_v60  ;;  %v3645_v58 = vld [vmem:[%s4320_s17 + $0x230] sm:$0xff]   ;;  %v3647_v60 = vld [vmem:[%s4320_s17 + $0x278] sm:$0xff]  }
  0xf2   : > { %3397 = vmatprep.subr.bf16.mxu1 %v3600_v61  ;;  %2628 = vmatprep.mubr.bf16.mxu0 %v3127_v21  ;;  %v3646_v59 = vld [vmem:[%s4320_s17 + $0x2b0] sm:$0xff]   ;;  %v3648_v61 = vld [vmem:[%s4320_s17 + $0x2f8] sm:$0xff]  }
  0xf3   : > { %2677 = vmatprep.mubr.bf16.mxu1 %v3129_v23  ;;  %v3660_v21 = vld [vmem:[%s4320_s17 + $0x3d0] sm:$0xff]   ;;  %v1311_v23 = vld [vmem:[%s4564_s0 + $0xe8] sm:$0xff] }
  0xf4   : > { %3370 = vmatpush3.bf16.msra.mxu0 %v3601_v62  ;;  %v3649_v62 = vld [vmem:[%s4320_s17 + $0x238] sm:$0xff]  }
  0xf5   : > { %3398 = vmatpush3.bf16.msra.mxu1 %v3602_v63  ;;  %3371 = vmatprep.subr.bf16.mxu0 %v3603_v0  ;;  %v3650_v63 = vld [vmem:[%s4320_s17 + $0x2b8] sm:$0xff]   ;;  %v1286_v0 = vld [vmem:[%s4564_s0 + $0x20] sm:$0xff] }
  0xf6   : > { %3399 = vmatprep.subr.bf16.mxu1 %v3604_v1  ;;  %v1294_v1 = vld [vmem:[%s4564_s0 + $0x60] sm:$0xff] }
  0xf8   : > { %3372 = vmatpush3.bf16.msra.mxu0 %v3605_v2  ;;  %v3130_v2 = vcombine.low %v1286_v0, %v1294_v1 }
  0xf9   : > { %3400 = vmatpush3.bf16.msra.mxu1 %v3606_v3  ;;  %3373 = vmatprep.subr.bf16.mxu0 %v3607_v4  ;;  %v3131_v3 = vcombine.high %v1286_v0, %v1294_v1  ;;  %v1287_v4 = vld [vmem:[%s4564_s0 + $0x28] sm:$0xff] }
  0xfa   : > { %3401 = vmatprep.subr.bf16.mxu1 %v3608_v5  ;;  %v1295_v5 = vld [vmem:[%s4564_s0 + $0x68] sm:$0xff] }
  0xfc   : > { %3374 = vmatpush3.bf16.msra.mxu0 %v3609_v6  ;;  %v3132_v6 = vcombine.low %v1287_v4, %v1295_v5 }
  0xfd   : > { %3402 = vmatpush3.bf16.msra.mxu1 %v3610_v7  ;;  %3375 = vmatprep.subr.bf16.mxu0 %v3611_v8  ;;  %v3133_v7 = vcombine.high %v1287_v4, %v1295_v5  ;;  %v3651_v8 = vld [vmem:[%s4320_s17 + $0x340] sm:$0xff]  }
  0xfe   : > { %3403 = vmatprep.subr.bf16.mxu1 %v3612_v9  ;;  %v3652_v9 = vld [vmem:[%s4320_s17 + $0x3c0] sm:$0xff]  }
 0x100   : > { %3376 = vmatpush3.bf16.msra.mxu0 %v3613_v10  ;;  %v3653_v10 = vld [vmem:[%s4320_s17 + $0x300] sm:$0xff]  }
 0x101   : > { %3404 = vmatpush3.bf16.msra.mxu1 %v3614_v11  ;;  %3377 = vmatprep.subr.bf16.mxu0 %v3615_v12  ;;  %v3654_v11 = vld [vmem:[%s4320_s17 + $0x380] sm:$0xff]   ;;  %v3655_v12 = vld [vmem:[%s4320_s17 + $0x348] sm:$0xff]  }
 0x102   : > { %3405 = vmatprep.subr.bf16.mxu1 %v3616_v14  ;;  %v3657_v14 = vld [vmem:[%s4320_s17 + $0x308] sm:$0xff]  }
 0x104   : > { %3378 = vmatpush3.bf16.msra.mxu0 %v3617_v15  ;;  %v3658_v15 = vld [vmem:[%s4320_s17 + $0x388] sm:$0xff]  }
 0x105   : > { %3406 = vmatpush3.bf16.msra.mxu1 %v3618_v16  ;;  %3419 = vmatprep.subr.bf16.mxu0 %v3619_v24  ;;  %v1302_v16 = vld [vmem:[%s4564_s0 + $0xa0] sm:$0xff] }
 0x106   : > { %3447 = vmatprep.subr.bf16.mxu1 %v3620_v25  ;;  %v3147_v18 = vcombine.high %v1302_v16, %v1310_v17  ;;  %v3146_v19 = vcombine.low %v1302_v16, %v1310_v17  ;;  %v3661_v25 = vld [vmem:[%s4320_s17 + $0x310] sm:$0xff]  }
 0x107   : > { %2629 = vmatmul.mubr.bf16.vlgmr.msra.gmra.mrb[8].mxu0 %v3126_v20  ;;  %v3659_v20 = vld [vmem:[%s4320_s17 + $0x350] sm:$0xff]  }
 0x108   : > { %2678 = vmatmul.mubr.bf16.vlgmr.msra.gmra.mrb[8].mxu1 %v3128_v22  ;;  %3420 = vmatpush3.bf16.msra.mxu0 %v3621_v26  ;;  %v1303_v22 = vld [vmem:[%s4564_s0 + $0xa8] sm:$0xff] }
 0x109   : > { %3448 = vmatpush3.bf16.msra.mxu1 %v3622_v27  ;;  %3421 = vmatprep.subr.bf16.mxu0 %v3623_v28  ;;  %v3149_v24 = vcombine.high %v1303_v22, %v1311_v23  ;;  %v3148_v26 = vcombine.low %v1303_v22, %v1311_v23  ;;  %v3662_v27 = vld [vmem:[%s4320_s17 + $0x390] sm:$0xff]   ;;  %v3663_v28 = vld [vmem:[%s4320_s17 + $0x358] sm:$0xff]  }
 0x10a   : > { %3449 = vmatprep.subr.bf16.mxu1 %v3624_v29  ;;  %2636 = vmatprep.mubr.bf16.mxu0 %v3143_v34  ;;  %v3664_v29 = vld [vmem:[%s4320_s17 + $0x3d8] sm:$0xff]   ;;  %v3669_v34 = vld [vmem:[%s4320_s17 + $0x320] sm:$0xff]  }
 0x10b   : > { %2685 = vmatprep.mubr.bf16.mxu1 %v3145_v40  ;;  %v3675_v40 = vld [vmem:[%s4320_s17 + $0x370] sm:$0xff]  }
 0x10c   : > { %3422 = vmatpush3.bf16.msra.mxu0 %v3625_v30  ;;  %v3665_v30 = vld [vmem:[%s4320_s17 + $0x318] sm:$0xff]  }
 0x10d   : > { %3450 = vmatpush3.bf16.msra.mxu1 %v3626_v31  ;;  %3423 = vmatprep.subr.bf16.mxu0 %v3627_v36  ;;  %v3666_v31 = vld [vmem:[%s4320_s17 + $0x398] sm:$0xff]   ;;  %v3671_v36 = vld [vmem:[%s4320_s17 + $0x368] sm:$0xff]  }
 0x10e   : > { %3451 = vmatprep.subr.bf16.mxu1 %v3628_v37  ;;  %v3672_v37 = vld [vmem:[%s4320_s17 + $0x3e8] sm:$0xff]  }
 0x10f   : > { %2637 = vmatmul.mubr.bf16.gmra.mrb[12].mxu0 %v3142_v35  ;;  %v3670_v35 = vld [vmem:[%s4320_s17 + $0x3a0] sm:$0xff]  }
 0x110   : > { %3424 = vmatpush3.bf16.msra.mxu0 %v3629_v41  ;;  %2686 = vmatmul.mubr.bf16.gmra.mrb[12].mxu1 %v3144_v42  ;;  %v3676_v41 = vld [vmem:[%s4320_s17 + $0x3f0] sm:$0xff]  }
 0x111   : > { %3452 = vmatpush3.bf16.msra.mxu1 %v3630_v43  ;;  %3425 = vmatprep.subr.bf16.mxu0 %v3631_v44  ;;  %v3677_v42 = vld [vmem:[%s4320_s17 + $0x330] sm:$0xff]   ;;  %v3679_v44 = vld [vmem:[%s4320_s17 + $0x378] sm:$0xff]  }
 0x112   : > { %3453 = vmatprep.subr.bf16.mxu1 %v3632_v45  ;;  %2726 = vmatprep.mubr.bf16.mxu0 %v3131_v3  ;;  %v3678_v43 = vld [vmem:[%s4320_s17 + $0x3b0] sm:$0xff]   ;;  %v3680_v45 = vld [vmem:[%s4320_s17 + $0x3f8] sm:$0xff]  }
 0x113   : > { %2775 = vmatprep.mubr.bf16.mxu1 %v3133_v7 }
 0x114   : > { %3426 = vmatpush3.bf16.msra.mxu0 %v3633_v46  ;;  %v3681_v46 = vld [vmem:[%s4320_s17 + $0x338] sm:$0xff]  }
 0x115   : > { %3454 = vmatpush3.bf16.msra.mxu1 %v3634_v47  ;;  %3427 = vmatprep.subr.bf16.mxu0 %v3635_v48  ;;  %v3682_v47 = vld [vmem:[%s4320_s17 + $0x3b8] sm:$0xff]   ;;  %v1288_v48 = vld [vmem:[%s4564_s0 + $0x30] sm:$0xff] }
 0x116   : > { %3455 = vmatprep.subr.bf16.mxu1 %v3636_v49  ;;  %v1296_v49 = vld [vmem:[%s4564_s0 + $0x70] sm:$0xff] }
 0x118   : > { %3428 = vmatpush3.bf16.msra.mxu0 %v3637_v50  ;;  %v1289_v50 = vld [vmem:[%s4564_s0 + $0x38] sm:$0xff] }
 0x119   : > { %3456 = vmatpush3.bf16.msra.mxu1 %v3638_v51  ;;  %3429 = vmatprep.subr.bf16.mxu0 %v3639_v52  ;;  %v3134_v51 = vcombine.low %v1288_v48, %v1296_v49  ;;  %v3135_v52 = vcombine.high %v1288_v48, %v1296_v49 }
 0x11a   : > { %3457 = vmatprep.subr.bf16.mxu1 %v3640_v53  ;;  %v1297_v53 = vld [vmem:[%s4564_s0 + $0x78] sm:$0xff] }
 0x11c   : > { %3430 = vmatpush3.bf16.msra.mxu0 %v3641_v54  ;;  %v1304_v54 = vld [vmem:[%s4564_s0 + $0xb0] sm:$0xff] }
 0x11d   : > { %3458 = vmatpush3.bf16.msra.mxu1 %v3642_v55  ;;  %3431 = vmatprep.subr.bf16.mxu0 %v3643_v56  ;;  %v1312_v55 = vld [vmem:[%s4564_s0 + $0xf0] sm:$0xff]  ;;  %v3136_v56 = vcombine.low %v1289_v50, %v1297_v53 }
 0x11e   : > { %3459 = vmatprep.subr.bf16.mxu1 %v3644_v57  ;;  %v3137_v57 = vcombine.high %v1289_v50, %v1297_v53 }
 0x120   : > { %3432 = vmatpush3.bf16.msra.mxu0 %v3645_v58  ;;  %v3151_v58 = vcombine.high %v1304_v54, %v1312_v55 }
 0x121   : > { %3460 = vmatpush3.bf16.msra.mxu1 %v3646_v59  ;;  %3433 = vmatprep.subr.bf16.mxu0 %v3647_v60  ;;  %v1305_v59 = vld [vmem:[%s4564_s0 + $0xb8] sm:$0xff] }
 0x122   : > { %3461 = vmatprep.subr.bf16.mxu1 %v3648_v61  ;;  %v1313_v60 = vld [vmem:[%s4564_s0 + $0xf8] sm:$0xff] }
 0x123   : > { %v3153_v61 = vcombine.high %v1305_v59, %v1313_v60 }
 0x124   : > { %3434 = vmatpush3.bf16.msra.mxu0 %v3649_v62  ;;  %v3150_v62 = vcombine.low %v1304_v54, %v1312_v55 }
 0x125   : > { %3462 = vmatpush3.bf16.msra.mxu1 %v3650_v63  ;;  %3475 = vmatprep.subr.bf16.mxu0 %v3651_v8  ;;  %v3152_v63 = vcombine.low %v1305_v59, %v1313_v60 }
 0x126   : > { %3503 = vmatprep.subr.bf16.mxu1 %v3652_v9 }
 0x127   : > { %2727 = vmatmul.mubr.bf16.vlgmr.msra.gmra.mrb[16].mxu0 %v3130_v2 }
 0x128   : > { %2776 = vmatmul.mubr.bf16.vlgmr.msra.gmra.mrb[16].mxu1 %v3132_v6  ;;  %3476 = vmatpush3.bf16.msra.mxu0 %v3653_v10 }
 0x129   : > { %3504 = vmatpush3.bf16.msra.mxu1 %v3654_v11  ;;  %3477 = vmatprep.subr.bf16.mxu0 %v3655_v12 }
 0x12a   : > { %3505 = vmatprep.subr.bf16.mxu1 %v3656_v13  ;;  %2734 = vmatprep.mubr.bf16.mxu0 %v3147_v18 }
 0x12b   : > { %2783 = vmatprep.mubr.bf16.mxu1 %v3149_v24 }
 0x12c   : > { %3478 = vmatpush3.bf16.msra.mxu0 %v3657_v14 }
 0x12d   : > { %3506 = vmatpush3.bf16.msra.mxu1 %v3658_v15  ;;  %3479 = vmatprep.subr.bf16.mxu0 %v3659_v20 }
 0x12e   : > { %3507 = vmatprep.subr.bf16.mxu1 %v3660_v21 }
 0x12f   : > { %2735 = vmatmul.mubr.bf16.gmra.mrb[20].mxu0 %v3146_v19 }
 0x130   : > { %3480 = vmatpush3.bf16.msra.mxu0 %v3661_v25  ;;  %2784 = vmatmul.mubr.bf16.gmra.mrb[20].mxu1 %v3148_v26 }
 0x131   : > { %3508 = vmatpush3.bf16.msra.mxu1 %v3662_v27  ;;  %3481 = vmatprep.subr.bf16.mxu0 %v3663_v28 }
 0x132   : > { %3509 = vmatprep.subr.bf16.mxu1 %v3664_v29  ;;  %2824 = vmatprep.mubr.bf16.mxu0 %v3135_v52 }
 0x133   : > { %2873 = vmatprep.mubr.bf16.mxu1 %v3137_v57 }
 0x134   : > { %3482 = vmatpush3.bf16.msra.mxu0 %v3665_v30 }
 0x135   : > { %3510 = vmatpush3.bf16.msra.mxu1 %v3666_v31  ;;  %3483 = vmatprep.subr.bf16.mxu0 %v3667_v32 }
 0x136   : > { %3511 = vmatprep.subr.bf16.mxu1 %v3668_v33 }
 0x138   : > { %3484 = vmatpush3.bf16.msra.mxu0 %v3669_v34 }
 0x139   : > { %3512 = vmatpush3.bf16.msra.mxu1 %v3670_v35  ;;  %3485 = vmatprep.subr.bf16.mxu0 %v3671_v36 }
 0x13a   : > { %3513 = vmatprep.subr.bf16.mxu1 %v3672_v37 }
 0x13c   : > { %3486 = vmatpush3.bf16.msra.mxu0 %v3673_v38 }
 0x13d   : > { %3514 = vmatpush3.bf16.msra.mxu1 %v3674_v39  ;;  %3487 = vmatprep.subr.bf16.mxu0 %v3675_v40 }
 0x13e   : > { %3515 = vmatprep.subr.bf16.mxu1 %v3676_v41 }
 0x140   : > { %3488 = vmatpush3.bf16.msra.mxu0 %v3677_v42 }
 0x141   : > { %3516 = vmatpush3.bf16.msra.mxu1 %v3678_v43  ;;  %3489 = vmatprep.subr.bf16.mxu0 %v3679_v44 }
 0x142   : > { %3517 = vmatprep.subr.bf16.mxu1 %v3680_v45 }
 0x144   : > { %3490 = vmatpush3.bf16.msra.mxu0 %v3681_v46 }
 0x145   : > { %3518 = vmatpush3.bf16.msra.mxu1 %v3682_v47 }
 0x147   : > { %2825 = vmatmul.mubr.bf16.vlgmr.msra.gmra.mrb[24].mxu0 %v3134_v51 }
 0x148   : > { %2874 = vmatmul.mubr.bf16.vlgmr.msra.gmra.mrb[24].mxu1 %v3136_v56  ;;  %2832 = vmatprep.mubr.bf16.mxu0 %v3151_v58 }
 0x149   : > { %2881 = vmatprep.mubr.bf16.mxu1 %v3153_v61 }
 0x14f   : > { %2833 = vmatmul.mubr.bf16.gmra.mrb[28].mxu0 %v3150_v62 }
 0x150   : > { %2882 = vmatmul.mubr.bf16.gmra.mrb[28].mxu1 %v3152_v63 }
 0x1ba   : > { %v3323_v0 = vpop.f32.mrb[0].mxu0 }
 0x1bb   : > { %v3351_v1 = vpop.f32.mrb[0].mxu1  ;;  %v3324_v2 = vpop.f32.mrb[1].mxu0 }
 0x1bc   : > { %v3325_v3 = vadd.f32 %v3324_v2, %v3323_v0  ;;  %v3352_v4 = vpop.f32.mrb[1].mxu1  ;;  %v3326_v5 = vpop.f32.mrb[2].mxu0 }
 0x1bd   : > { %v3353_v6 = vadd.f32 %v3352_v4, %v3351_v1  ;;  %v3354_v7 = vpop.f32.mrb[2].mxu1  ;;  %v3327_v8 = vpop.f32.mrb[3].mxu0 }
 0x1be   : > { %v3328_v9 = vadd.f32 %v3327_v8, %v3326_v5  ;;  %v3355_v10 = vpop.f32.mrb[3].mxu1 }
 0x1bf   : > { %v2582_v11 = vadd.f32 %v3353_v6, %v3325_v3  ;;  %v3356_v12 = vadd.f32 %v3355_v10, %v3354_v7 }
 0x1c1   : > { %v2585_v13 = vadd.f32 %v3356_v12, %v3328_v9 }
 0x1c2   : > { %v3329_v14 = vpop.f32.mrb[4].mxu0 }
 0x1c3   : > { %v3357_v15 = vpop.f32.mrb[4].mxu1  ;;  %v3330_v16 = vpop.f32.mrb[5].mxu0 }
 0x1c4   : > { %v3331_v17 = vadd.f32 %v3330_v16, %v3329_v14  ;;  %v3358_v18 = vpop.f32.mrb[5].mxu1  ;;  %v3332_v19 = vpop.f32.mrb[6].mxu0 }
 0x1c5   : > { %v3359_v20 = vadd.f32 %v3358_v18, %v3357_v15  ;;  %v3360_v21 = vpop.f32.mrb[6].mxu1  ;;  %v3333_v22 = vpop.f32.mrb[7].mxu0 }
 0x1c6   : > { %v3334_v23 = vadd.f32 %v3333_v22, %v3332_v19  ;;  %v3361_v24 = vpop.f32.mrb[7].mxu1 }
 0x1c7   : > { %v2590_v25 = vadd.f32 %v3359_v20, %v3331_v17  ;;  %v3362_v26 = vadd.f32 %v3361_v24, %v3360_v21 }
 0x1c9   : > { %v2593_v27 = vadd.f32 %v3362_v26, %v3334_v23 }
 0x1da   : > { %v3379_v28 = vpop.f32.mrb[8].mxu0 }
 0x1db   : > { %v3407_v29 = vpop.f32.mrb[8].mxu1  ;;  %v3380_v30 = vpop.f32.mrb[9].mxu0 }
 0x1dc   : > { %v3408_v31 = vpop.f32.mrb[9].mxu1  ;;  %v3381_v32 = vadd.f32 %v3380_v30, %v3379_v28  ;;  %v3382_v34 = vpop.f32.mrb[10].mxu0 }
 0x1dd   : > { %v3409_v33 = vadd.f32 %v3408_v31, %v3407_v29  ;;  %v3410_v35 = vpop.f32.mrb[10].mxu1  ;;  %v3383_v36 = vpop.f32.mrb[11].mxu0 }
 0x1de   : > { %v3411_v37 = vpop.f32.mrb[11].mxu1  ;;  %v2631_v38 = vadd.f32 %v3381_v32, %v2582_v11  ;;  %v3384_v39 = vadd.f32 %v3383_v36, %v3382_v34 }
 0x1df   : > { %v3412_v40 = vadd.f32 %v3411_v37, %v3410_v35 }
 0x1e0   : > { %v2680_v41 = vadd.f32 %v3409_v33, %v2631_v38  ;;  %v2634_v42 = vadd.f32 %v3384_v39, %v2585_v13 }
 0x1e2   : > { %v2683_v43 = vadd.f32 %v3412_v40, %v2634_v42  ;;  %v3385_v44 = vpop.f32.mrb[12].mxu0 }
 0x1e3   : > { %v3386_v45 = vpop.f32.mrb[13].mxu0  ;;  %v3413_v50 = vpop.f32.mrb[12].mxu1 }
 0x1e4   : > { %v3387_v46 = vadd.f32 %v3386_v45, %v3385_v44  ;;  %v3388_v47 = vpop.f32.mrb[14].mxu0  ;;  %v3414_v52 = vpop.f32.mrb[13].mxu1 }
 0x1e5   : > { %v3389_v48 = vpop.f32.mrb[15].mxu0  ;;  %v3415_v54 = vadd.f32 %v3414_v52, %v3413_v50  ;;  %v3416_v55 = vpop.f32.mrb[14].mxu1 }
 0x1e6   : > { %v2639_v49 = vadd.f32 %v3387_v46, %v2590_v25  ;;  %v3390_v51 = vadd.f32 %v3389_v48, %v3388_v47  ;;  %v3417_v56 = vpop.f32.mrb[15].mxu1 }
 0x1e7   : > { %v3418_v58 = vadd.f32 %v3417_v56, %v3416_v55 }
 0x1e8   : > { %v2642_v53 = vadd.f32 %v3390_v51, %v2593_v27  ;;  %v2688_v57 = vadd.f32 %v3415_v54, %v2639_v49 }
 0x1ea   : > { %v2691_v59 = vadd.f32 %v3418_v58, %v2642_v53 }
 0x1fa   : > { %v3435_v60 = vpop.f32.mrb[16].mxu0 }
 0x1fb   : > { %v3463_v61 = vpop.f32.mrb[16].mxu1  ;;  %v3436_v62 = vpop.f32.mrb[17].mxu0 }
 0x1fc   : > { %v3437_v63 = vadd.f32 %v3436_v62, %v3435_v60  ;;  %v3464_v0 = vpop.f32.mrb[17].mxu1  ;;  %v3438_v1 = vpop.f32.mrb[18].mxu0 }
 0x1fd   : > { %v3465_v2 = vadd.f32 %v3464_v0, %v3463_v61  ;;  %v3466_v3 = vpop.f32.mrb[18].mxu1  ;;  %v3439_v4 = vpop.f32.mrb[19].mxu0 }
 0x1fe   : > { %v2729_v5 = vadd.f32 %v3437_v63, %v2680_v41  ;;  %v3440_v6 = vadd.f32 %v3439_v4, %v3438_v1  ;;  %v3467_v7 = vpop.f32.mrb[19].mxu1 }
 0x1ff   : > { %v3468_v8 = vadd.f32 %v3467_v7, %v3466_v3 }
 0x200   : > { %v2778_v9 = vadd.f32 %v3465_v2, %v2729_v5  ;;  %v2732_v10 = vadd.f32 %v3440_v6, %v2683_v43 }
 0x202   : > { %v2781_v11 = vadd.f32 %v3468_v8, %v2732_v10  ;;  %v3441_v12 = vpop.f32.mrb[20].mxu0 }
 0x203   : > { %v3442_v13 = vpop.f32.mrb[21].mxu0  ;;  %v3469_v16 = vpop.f32.mrb[20].mxu1 }
 0x204   : > { %v3443_v14 = vadd.f32 %v3442_v13, %v3441_v12  ;;  %v3444_v15 = vpop.f32.mrb[22].mxu0  ;;  %v3470_v20 = vpop.f32.mrb[21].mxu1 }
 0x205   : > { %v3445_v17 = vpop.f32.mrb[23].mxu0  ;;  %v3471_v21 = vadd.f32 %v3470_v20, %v3469_v16  ;;  %v3472_v22 = vpop.f32.mrb[22].mxu1 }
 0x206   : > { %v2737_v18 = vadd.f32 %v3443_v14, %v2688_v57  ;;  %v3446_v19 = vadd.f32 %v3445_v17, %v3444_v15  ;;  %v3473_v24 = vpop.f32.mrb[23].mxu1 }
 0x207   : > { %v3474_v26 = vadd.f32 %v3473_v24, %v3472_v22 }
 0x208   : > { %v2740_v23 = vadd.f32 %v3446_v19, %v2691_v59  ;;  %v2786_v25 = vadd.f32 %v3471_v21, %v2737_v18 }
 0x20a   : > { %v2789_v27 = vadd.f32 %v3474_v26, %v2740_v23  ;;  %v3282_v26 = vld [vmem:[%s1277_s26] ss:$0 sm:$0xff] }
 0x21a   : > { %v3491_v28 = vpop.f32.mrb[24].mxu0 }
 0x21b   : > { %v3519_v29 = vpop.f32.mrb[24].mxu1  ;;  %v3492_v30 = vpop.f32.mrb[25].mxu0 }
 0x21c   : > { %v3493_v31 = vadd.f32 %v3492_v30, %v3491_v28  ;;  %v3520_v32 = vpop.f32.mrb[25].mxu1  ;;  %v3494_v33 = vpop.f32.mrb[26].mxu0 }
 0x21d   : > { %v3521_v34 = vadd.f32 %v3520_v32, %v3519_v29  ;;  %v3522_v35 = vpop.f32.mrb[26].mxu1  ;;  %v3495_v36 = vpop.f32.mrb[27].mxu0 }
 0x21e   : > { %v2827_v37 = vadd.f32 %v3493_v31, %v2778_v9  ;;  %v3496_v38 = vadd.f32 %v3495_v36, %v3494_v33  ;;  %v3523_v39 = vpop.f32.mrb[27].mxu1  ;;  %v3283_v31 = vld [vmem:[%s1280_s29] ss:$0 sm:$0xff] }
 0x21f   : > { %v3524_v40 = vadd.f32 %v3523_v39, %v3522_v35 }
 0x220   : > { %v2876_v41 = vadd.f32 %v3521_v34, %v2827_v37  ;;  %v2830_v42 = vadd.f32 %v3496_v38, %v2781_v11 }
 0x222   : > { %v2879_v43 = vadd.f32 %v3524_v40, %v2830_v42  ;;  %v3497_v44 = vpop.f32.mrb[28].mxu0 }
 0x223   : > { %v3525_v45 = vpop.f32.mrb[28].mxu1  ;;  %v3498_v46 = vpop.f32.mrb[29].mxu0 }
 0x224   : > { %v2890_v47 = vadd.f32 %v2879_v43, %v2876_v41  ;;  %v3499_v48 = vadd.f32 %v3498_v46, %v3497_v44  ;;  %v3526_v49 = vpop.f32.mrb[29].mxu1  ;;  %v3500_v50 = vpop.f32.mrb[30].mxu0 }
 0x225   : > { %v3527_v51 = vadd.f32 %v3526_v49, %v3525_v45  ;;  %v3528_v52 = vpop.f32.mrb[30].mxu1  ;;  %v3501_v53 = vpop.f32.mrb[31].mxu0 }
 0x226   : > { %v2835_v54 = vadd.f32 %v3499_v48, %v2786_v25  ;;  %v3502_v55 = vadd.f32 %v3501_v53, %v3500_v50  ;;  %v3529_v56 = vpop.f32.mrb[31].mxu1 }
 0x227   : > { %v3530_v57 = vadd.f32 %v3529_v56, %v3528_v52 }
 0x228   : > { %v2884_v58 = vadd.f32 %v3527_v51, %v2835_v54  ;;  %v2838_v59 = vadd.f32 %v3502_v55, %v2789_v27 }
 0x22a   : > { %v2891_v60 = vadd.f32 %v2890_v47, %v2884_v58  ;;  %v2887_v61 = vadd.f32 %v3530_v57, %v2838_v59 }
 0x22c   : > { %v2892_v62 = vadd.f32 %v2891_v60, %v2887_v61 }
 0x22e   : > { %v2893_v63 = vrot.slane %v2892_v62, 4 }
 0x230   : > { %v2894_v0 = vadd.f32 %v2893_v63, %v2892_v62 }
 0x232   : > { %v2895_v1 = vrot.slane %v2894_v0, 2 }
 0x234   : > { %v2896_v2 = vadd.f32 %v2895_v1, %v2894_v0 }
 0x236   : > { %v2897_v3 = vrot.slane %v2896_v2, 1 }
 0x238   : > { %v2898_v4 = vadd.f32 %v2897_v3, %v2896_v2 }
 0x23a   : > { %v2900_v5 = vmul.f32 0.03125, %v2898_v4 }
 0x23c   : > { %v2901_v6 = vsub.f32 %v2876_v41, %v2900_v5  ;;  %v2902_v7 = vsub.f32 %v2879_v43, %v2900_v5  ;;  %v2903_v8 = vsub.f32 %v2884_v58, %v2900_v5  ;;  %v2904_v9 = vsub.f32 %v2887_v61, %v2900_v5 }
 0x23e   : > { %v2905_v10 = vmul.f32 %v2901_v6, %v2901_v6  ;;  %v2906_v11 = vmul.f32 %v2902_v7, %v2902_v7  ;;  %v2907_v12 = vmul.f32 %v2903_v8, %v2903_v8  ;;  %v2908_v14 = vmul.f32 %v2904_v9, %v2904_v9 }
 0x240   : > { %v2909_v13 = vadd.f32 %v2906_v11, %v2905_v10 }
 0x242   : > { %v2910_v15 = vadd.f32 %v2909_v13, %v2907_v12 }
 0x244   : > { %v2911_v16 = vadd.f32 %v2910_v15, %v2908_v14 }
 0x246   : > { %v2912_v17 = vrot.slane %v2911_v16, 4 }
 0x248   : > { %v2913_v18 = vadd.f32 %v2912_v17, %v2911_v16 }
 0x24a   : > { %v2914_v19 = vrot.slane %v2913_v18, 2 }
 0x24c   : > { %v2915_v20 = vadd.f32 %v2914_v19, %v2913_v18 }
 0x24e   : > { %v2916_v21 = vrot.slane %v2915_v20, 1 }
 0x250   : > { %v2917_v22 = vadd.f32 %v2916_v21, %v2915_v20 }
 0x252   : > { %v2918_v23 = vmul.f32 0.03125, %v2917_v22 }
 0x254   : > { %v2919_v24 = vadd.f32 1e-05, %v2918_v23 }
 0x256   : > { %3683 = vrsqrt.f32 %v2919_v24 }
 0x260   : > { %v3684_v25 = vpop.eup %3683 }
 0x261   : > { %v2921_v27 = vmul.f32 %v3684_v25, %v2901_v6  ;;  %v2922_v28 = vmul.f32 %v3684_v25, %v2902_v7  ;;  %v2923_v29 = vmul.f32 %v3684_v25, %v2903_v8  ;;  %v2924_v30 = vmul.f32 %v3684_v25, %v2904_v9 }
 0x263   : > { %v2932_v32 = vmul.f32 %v3282_v26, %v2921_v27  ;;  %v2933_v33 = vmul.f32 %v3282_v26, %v2922_v28  ;;  %v2934_v34 = vmul.f32 %v3282_v26, %v2923_v29  ;;  %v2935_v35 = vmul.f32 %v3282_v26, %v2924_v30 }
 0x265   : > { %v2943_v36 = vadd.f32 %v3283_v31, %v2932_v32  ;;  %v2944_v37 = vadd.f32 %v3283_v31, %v2933_v33  ;;  %v2945_v38 = vadd.f32 %v3283_v31, %v2934_v34  ;;  %v2946_v39 = vadd.f32 %v3283_v31, %v2935_v35 }
 0x267   : > { %vm2947_vm0 = vcmp.ge.f32.partialorder %v2943_v36, 0.0  ;;  %vm2948_vm1 = vcmp.ge.f32.partialorder %v2944_v37, 0.0  ;;  %vm2949_vm2 = vcmp.ge.f32.partialorder %v2945_v38, 0.0  ;;  %vm2950_vm3 = vcmp.ge.f32.partialorder %v2946_v39, 0.0 }
 0x268   : > { %v2951_v40 = vmul.f32 0.2, %v2943_v36  ;;  %v2952_v41 = vmul.f32 0.2, %v2944_v37  ;;  %v2953_v42 = vmul.f32 0.2, %v2945_v38 }
 0x269   : > { %v2954_v43 = vmul.f32 0.2, %v2946_v39  ;;  %2985 = sbr.rel (!%p3765_p5) target bundleno = 632 (0x278), region = 81 }
 0x26a   : > { %v2955_v44 = vsel %vm2947_vm0, %v2943_v36, %v2951_v40  ;;  %v2956_v45 = vsel %vm2948_vm1, %v2944_v37, %v2952_v41  ;;  %v2957_v46 = vsel %vm2949_vm2, %v2945_v38, %v2953_v42 }
 0x26b   : > { %v2958_v47 = vsel %vm2950_vm3, %v2946_v39, %v2954_v43  ;;  %v3299_v48 = vpack.c.bf16 %v2956_v45, %v2955_v44 }
 0x26c   : > { %v3304_v49 = vpack.c.bf16 %v2958_v47, %v2957_v46 }
 0x26d   : > { %3300 = vst [vmem:[%s1274_s6] sm:$0xff] %v3299_v48  }
 0x26e   : > { %3306 = vst [vmem:[%s1274_s6 + $0x8] sm:$0xff] %v3304_v49  }
 0x274   : > { %v3003_v50 = vld [vmem:[%s1274_s6] sm:$0xf]  ;;  %v3005_v51 = vld [vmem:[%s1274_s6 + $0x4] sm:$0xf] }
 0x275   : > { %v3007_v52 = vld [vmem:[%s1274_s6 + $0x8] sm:$0xf]  ;;  %v3009_v53 = vld [vmem:[%s1274_s6 + $0xc] sm:$0xf]  ;;  %3004 = vst [vmem:[%s2987_s8] sm:$0xf] %v3003_v50 }
 0x276   : > { %3006 = vst [vmem:[%s2987_s8 + $0x8] sm:$0xf] %v3005_v51  ;;  %3008 = vst [vmem:[%s2987_s8 + $0x10] sm:$0xf] %v3007_v52 }
 0x277   : > { %3010 = vst [vmem:[%s2987_s8 + $0x18] sm:$0xf] %v3009_v53 }
 0x278 PF: > { %p11_p11 = scmp.ge.s32.totalorder %s3753_s19, 4   ;;  %s4570_s15 = smov %s3703_s16 }
 0x279   : > { %s4571_s16 = smov %s3763_s22  ;;  %s4572_s17 = smov %s3753_s19 }
 0x27a   :  { %13 = sbr.rel (!%p11_p11) target bundleno = 2 (0x2), region = 159 }

// kernel: discriminator_forward.9
= control target key start
LH: loop header
LB: loop body
LE: loop exit
PB: predicated region body
PF: predicated region fallthrough
CT: control target
= control target key end

     0   :  { %v152_v1 = vlaneseq  ;;  %vm865_vm0 = vcmask 7168   ;;  %s1574_s2 = inlined_call_operand.<no memory space> [shape: f32[1,1], index: 2, kind: input, shape index: {}]   ;;  %s1575_s1 = inlined_call_operand.vmem [shape: bf16[1,8192], index: 1, kind: input, shape index: {}]   ;;  %s1576_s0 = inlined_call_operand.vmem [shape: bf16[8,8192], index: 0, kind: input, shape index: {}]   ;;  %s1577_s3 = inlined_call_operand.vmem [shape: f32[8,1], index: 3, kind: output, shape index: {}]  }
   0x1   :  { %v8_v0 = vstv %s1574_s2  ;;  %v117_v2 = vld [vmem:[%s1575_s1 + $0x28] sm:$0xff]  ;;  %v118_v3 = vld [vmem:[%s1575_s1 + $0x30] sm:$0xff]  ;;  %v119_v5 = vld [vmem:[%s1575_s1 + $0x38] sm:$0xff] }
   0x2   :  { %9 = vst [vmem:[#allocation2] sm:$0x1] %v8_v0  ;;  %v153_v4 = vshrl.u32 %v152_v1, 7  ;;  %v904_v6 = vunpack.c.l.bf16 %v117_v2  ;;  %v906_v7 = vunpack.c.h.bf16 %v117_v2  ;;  %v908_v8 = vunpack.c.l.bf16 %v118_v3  ;;  %v959_v32 = vld [vmem:[%s1576_s0] sm:$0xff]  ;;  %v964_v33 = vld [vmem:[%s1576_s0 + $0x8] sm:$0xff]  ;;  %v977_v38 = vld [vmem:[%s1576_s0 + $0x10] sm:$0xff] }
   0x3   :  { %v918_v13 = vunpack.c.h.bf16 %v118_v3  ;;  %v920_v14 = vunpack.c.l.bf16 %v119_v5  ;;  %v922_v15 = vunpack.c.h.bf16 %v119_v5  ;;  %1595 = vst [vmem:[#allocation7_spill] sm:$0xff] %v977_v38  ;;  %v982_v39 = vld [vmem:[%s1576_s0 + $0x88] sm:$0xff]  ;;  %v116_v40 = vld [vmem:[%s1575_s1 + $0x20] sm:$0xff]  ;;  %v998_v45 = vld [vmem:[%s1576_s0 + $0x90] sm:$0xff] }
   0x4   :  { %v910_v9 = vsub.s32 0, %v153_v4  ;;  %v912_v10 = vsub.s32 2, %v153_v4  ;;  %v914_v11 = vsub.s32 4, %v153_v4  ;;  %v916_v12 = vsub.s32 6, %v153_v4  ;;  %v1003_v46 = vld [vmem:[%s1576_s0 + $0x98] sm:$0xff]  ;;  %v112_v54 = vld [vmem:[%s1575_s1] sm:$0xff] }
   0x5   :  { %v1015_v55 = vunpack.c.l.bf16 %v116_v40  ;;  %v1020_v56 = vld [vmem:[%s1576_s0 + $0xa0] sm:$0xff]  ;;  %v1025_v57 = vld [vmem:[%s1576_s0 + $0xa8] sm:$0xff]  ;;  %v1030_v61 = vunpack.c.h.bf16 %v116_v40  ;;  %v1035_v62 = vld [vmem:[%s1576_s0 + $0xb0] sm:$0xff]  ;;  %v1049_v4 = vunpack.c.l.bf16 %v112_v54  ;;  %v1065_v48 = vunpack.c.h.bf16 %v112_v54 }
   0x6   :  { %1591 = vst [vmem:[#allocation3_spill] sm:$0xff] %v910_v9  ;;  %1592 = vst [vmem:[#allocation4_spill] sm:$0xff] %v912_v10  ;;  %v315_v16 = vrot.slane %v904_v6, %v910_v9  ;;  %v319_v17 = vrot.slane %v904_v6, %v912_v10  ;;  %v323_v18 = vrot.slane %v904_v6, %v914_v11  ;;  %v1040_v63 = vld [vmem:[%s1576_s0 + $0xb8] sm:$0xff]  ;;  %v46_v50 = vld [vmem:[%s1576_s0 + $0xf0] sm:$0xff] }
   0x7   :  { %1593 = vst [vmem:[#allocation5_spill] sm:$0xff] %v914_v11  ;;  %1594 = vst [vmem:[#allocation6_spill] sm:$0xff] %v916_v12  ;;  %v327_v19 = vrot.slane %v904_v6, %v916_v12  ;;  %v331_v20 = vrot.slane %v906_v7, %v910_v9  ;;  %v335_v21 = vrot.slane %v906_v7, %v912_v10 }
   0x8   :  { %v339_v22 = vrot.slane %v906_v7, %v914_v11  ;;  %v343_v23 = vrot.slane %v906_v7, %v916_v12  ;;  %v347_v24 = vrot.slane %v908_v8, %v910_v9  ;;  %v351_v25 = vrot.slane %v908_v8, %v912_v10  ;;  %1596 = vst [vmem:[#allocation8_spill] sm:$0xff] %v1015_v55 }
   0x9   :  { %v355_v26 = vrot.slane %v908_v8, %v914_v11  ;;  %v359_v27 = vrot.slane %v908_v8, %v916_v12  ;;  %v363_v28 = vrot.slane %v918_v13, %v910_v9  ;;  %v367_v29 = vrot.slane %v918_v13, %v912_v10 }
   0xa   :  { %v371_v30 = vrot.slane %v918_v13, %v914_v11  ;;  %v375_v31 = vrot.slane %v918_v13, %v916_v12  ;;  %v379_v34 = vrot.slane %v920_v14, %v910_v9  ;;  %v383_v35 = vrot.slane %v920_v14, %v912_v10 }
   0xb   :  { %v387_v36 = vrot.slane %v920_v14, %v914_v11  ;;  %v391_v37 = vrot.slane %v920_v14, %v916_v12  ;;  %v395_v41 = vrot.slane %v922_v15, %v910_v9  ;;  %v399_v42 = vrot.slane %v922_v15, %v912_v10 }
   0xc   :  { %v403_v43 = vrot.slane %v922_v15, %v914_v11  ;;  %v407_v44 = vrot.slane %v922_v15, %v916_v12  ;;  %v287_v1 = vrot.slane %v1015_v55, %v912_v10  ;;  %v291_v2 = vrot.slane %v1015_v55, %v914_v11  ;;  %v45_v15 = vld [vmem:[%s1576_s0 + $0xe8] sm:$0xff] }
   0xd   :  { %v295_v3 = vrot.slane %v1015_v55, %v916_v12  ;;  %v303_v5 = vrot.slane %v1030_v61, %v912_v10  ;;  %v307_v40 = vrot.slane %v1030_v61, %v914_v11  ;;  %v311_v52 = vrot.slane %v1030_v61, %v916_v12 }
   0xe   :  { %v1068_v47 = vrot.slane %v287_v1, %v910_v9  ;;  %v1071_v51 = vrot.slane %v291_v2, %v910_v9  ;;  %v155_v59 = vrot.slane %v1049_v4, %v910_v9  ;;  %v1091_v1 = vrot.slane %v315_v16, %v910_v9 }
   0xf   :  { %v1074_v0 = vrot.slane %v295_v3, %v910_v9  ;;  %v1079_v58 = vrot.slane %v303_v5, %v910_v9  ;;  %v1082_v53 = vrot.slane %v307_v40, %v910_v9  ;;  %v1085_v54 = vrot.slane %v311_v52, %v910_v9 }
  0x10   :  { %1597 = vst [vmem:[#allocation9_spill] sm:$0xff] %v1068_v47  ;;  %v1097_v2 = vrot.slane %v319_v17, %v910_v9  ;;  %v1103_v3 = vrot.slane %v323_v18, %v910_v9  ;;  %v1109_v52 = vrot.slane %v327_v19, %v910_v9  ;;  %v1115_v16 = vrot.slane %v331_v20, %v910_v9 }
  0x11   :  { %v1121_v17 = vrot.slane %v335_v21, %v910_v9  ;;  %v1127_v18 = vrot.slane %v339_v22, %v910_v9  ;;  %v1133_v6 = vrot.slane %v343_v23, %v910_v9  ;;  %v1139_v19 = vrot.slane %v347_v24, %v910_v9  ;;  %v1162_v22 = vld [vmem:[%s1576_s0 + $0xc0] sm:$0xff] }
  0x12   :  { %v1145_v20 = vrot.slane %v351_v25, %v910_v9  ;;  %v1151_v21 = vrot.slane %v355_v26, %v910_v9  ;;  %v1157_v7 = vrot.slane %v359_v27, %v910_v9  ;;  %v1168_v23 = vrot.slane %v363_v28, %v910_v9  ;;  %v1191_v26 = vld [vmem:[%s1576_s0 + $0xc8] sm:$0xff] }
  0x13   :  { %v1174_v24 = vrot.slane %v367_v29, %v910_v9  ;;  %v1180_v8 = vrot.slane %v371_v30, %v910_v9  ;;  %v1186_v25 = vrot.slane %v375_v31, %v910_v9  ;;  %v1197_v27 = vrot.slane %v379_v34, %v910_v9  ;;  %v1220_v30 = vld [vmem:[%s1576_s0 + $0xd0] sm:$0xff]  ;;  %v1225_v31 = vld [vmem:[%s1576_s0 + $0xd8] sm:$0xff] }
  0x14   :  { %1598 = vst [vmem:[#allocation10_spill] sm:$0xff] %v1168_v23  ;;  %v1203_v28 = vrot.slane %v383_v35, %v910_v9  ;;  %v1209_v13 = vrot.slane %v387_v36, %v910_v9  ;;  %v1215_v29 = vrot.slane %v391_v37, %v910_v9  ;;  %v1231_v34 = vrot.slane %v395_v41, %v910_v9  ;;  %v1254_v37 = vld [vmem:[%s1576_s0 + $0xe0] sm:$0xff] }
  0x15   :  { %1599 = vst [vmem:[#allocation11_spill] sm:$0xff] %v1174_v24  ;;  %1600 = vst [vmem:[#allocation12_spill] sm:$0xff] %v1180_v8  ;;  %v1237_v14 = vrot.slane %v399_v42, %v910_v9  ;;  %v1243_v35 = vrot.slane %v403_v43, %v910_v9  ;;  %v1249_v36 = vrot.slane %v407_v44, %v910_v9  ;;  %v95_v41 = vunpack.c.h.bf16 %v1040_v63 }
  0x16   :  { %1601 = vst [vmem:[#allocation13_spill] sm:$0xff] %v1186_v25  ;;  %1602 = vst [vmem:[#allocation14_spill] sm:$0xff] %v1197_v27  ;;  %v96_v42 = vunpack.c.l.bf16 %v1162_v22  ;;  %v159_v5 = vrot.slane %v1049_v4, %v912_v10  ;;  %v163_v43 = vrot.slane %v1049_v4, %v914_v11  ;;  %v97_v44 = vunpack.c.h.bf16 %v1162_v22  ;;  %v47_v22 = vld [vmem:[%s1576_s0 + $0xf8] sm:$0xff] }
  0x17   :  { %1603 = vst [vmem:[#allocation15_spill] sm:$0xff] %v1203_v28  ;;  %1604 = vst [vmem:[#allocation16_spill] sm:$0xff] %v1209_v13  ;;  %v98_v40 = vunpack.c.l.bf16 %v1191_v26  ;;  %v99_v49 = vunpack.c.h.bf16 %v1191_v26  ;;  %v299_v60 = vrot.slane %v1030_v61, %v910_v9  ;;  %v100_v47 = vunpack.c.l.bf16 %v1220_v30  ;;  %v1284_v61 = vld [vmem:[%s1575_s1 + $0x8] sm:$0xff] }
  0x18   :  { %1605 = vst [vmem:[#allocation17_spill] sm:$0xff] %v1215_v29  ;;  %1606 = vst [vmem:[#allocation18_spill] sm:$0xff] %v1231_v34  ;;  %v101_v55 = vunpack.c.h.bf16 %v1220_v30  ;;  %v102_v38 = vunpack.c.l.bf16 %v1225_v31  ;;  %v104_v26 = vunpack.c.l.bf16 %v1254_v37  ;;  %v171_v30 = vrot.slane %v1065_v48, %v910_v9 }
  0x19   :  { %1607 = vst [vmem:[#allocation19_spill] sm:$0xff] %v1237_v14  ;;  %1608 = vst [vmem:[#allocation20_spill] sm:$0xff] %v1243_v35  ;;  %v167_v35 = vrot.slane %v1049_v4, %v916_v12  ;;  %v475_v14 = vrot.slane %v155_v59, %v910_v9  ;;  %v106_v34 = vunpack.c.l.bf16 %v45_v15  ;;  %v479_v29 = vrot.slane %v159_v5, %v910_v9 }
  0x1a   :  { %1609 = vst [vmem:[#allocation21_spill] sm:$0xff] %v1249_v36  ;;  %v103_v36 = vunpack.c.h.bf16 %v1225_v31  ;;  %1610 = vst [vmem:[#allocation22_spill] sm:$0xff] %v1284_v61  ;;  %v105_v31 = vunpack.c.h.bf16 %v1254_v37  ;;  %v483_v13 = vrot.slane %v163_v43, %v910_v9  ;;  %v107_v28 = vunpack.c.h.bf16 %v45_v15 }
  0x1b   :  { %v108_v27 = vunpack.c.l.bf16 %v46_v50  ;;  %v109_v25 = vunpack.c.h.bf16 %v46_v50  ;;  %v619_v8 = vrot.slane %v299_v60, %v910_v9  ;;  %v110_v24 = vunpack.c.l.bf16 %v47_v22 }
  0x1c   :  { %v111_v23 = vunpack.c.h.bf16 %v47_v22  ;;  %v1296_v4 = vunpack.c.l.bf16 %v1284_v61  ;;  %v175_v59 = vrot.slane %v1065_v48, %v912_v10  ;;  %v179_v37 = vrot.slane %v1065_v48, %v914_v11 }
  0x1d   :  { %v487_v5 = vrot.slane %v167_v35, %v910_v9  ;;  %v491_v43 = vrot.slane %v171_v30, %v910_v9  ;;  %v1612_v15 = vunpack.c.l.bf16 %v959_v32  ;;  %v1613_v60 = vunpack.c.h.bf16 %v959_v32 }
  0x1e   :  { %1611 = vst [vmem:[#allocation23_spill] sm:$0xff] %v1296_v4  ;;  %v1614_v22 = vunpack.c.l.bf16 %v964_v33  ;;  %v1615_v4 = vunpack.c.l.bf16 %v982_v39  ;;  %v1616_v11 = vunpack.c.h.bf16 %v982_v39  ;;  %v1617_v30 = vunpack.c.l.bf16 %v998_v45 }
  0x1f   :  { %v728_v50 = vmul.f32 %v475_v14, %v1612_v15  ;;  %v729_v12 = vmul.f32 %v479_v29, %v1613_v60  ;;  %v1618_v32 = vunpack.c.h.bf16 %v998_v45  ;;  %v1622_v45 = vunpack.c.h.bf16 %v1020_v56 }
  0x20   :  { %v730_v61 = vmul.f32 %v483_v13, %v1614_v22  ;;  %v1313_v10 = vmul.f32 %v1071_v51, %v1615_v4  ;;  %v1318_v35 = vmul.f32 %v1074_v0, %v1616_v11  ;;  %v1322_v9 = vmul.f32 %v619_v8, %v1617_v30 }
  0x21   :  { %v1327_v29 = vmul.f32 %v1079_v58, %v1618_v32  ;;  %v1619_v13 = vunpack.c.l.bf16 %v1003_v46  ;;  %v1620_v51 = vunpack.c.h.bf16 %v1003_v46  ;;  %v1621_v11 = vunpack.c.l.bf16 %v1020_v56 }
  0x22   :  { %v1347_v58 = vmul.f32 %v1097_v2, %v1622_v45  ;;  %v1623_v8 = vunpack.c.l.bf16 %v1025_v57  ;;  %v1624_v46 = vunpack.c.h.bf16 %v1025_v57  ;;  %v1625_v4 = vunpack.c.l.bf16 %v1035_v62 }
  0x23   :  { %v1332_v14 = vmul.f32 %v1082_v53, %v1619_v13  ;;  %v1337_v39 = vmul.f32 %v1085_v54, %v1620_v51  ;;  %v1342_v0 = vmul.f32 %v1091_v1, %v1621_v11  ;;  %v1626_v56 = vunpack.c.h.bf16 %v1035_v62  ;;  %v1638_v51 = vld [vmem:[#allocation20_spill] sm:$0xff] }
  0x24   :  { %v1352_v53 = vmul.f32 %v1103_v3, %v1623_v8  ;;  %v1357_v54 = vmul.f32 %v1109_v52, %v1624_v46  ;;  %v1362_v1 = vmul.f32 %v1115_v16, %v1625_v4  ;;  %v1627_v15 = vunpack.c.l.bf16 %v1040_v63 }
  0x25   :  { %v1367_v2 = vmul.f32 %v1121_v17, %v1626_v56  ;;  %v1375_v57 = vmul.f32 %v1133_v6, %v95_v41  ;;  %v1378_v52 = vmul.f32 %v1139_v19, %v96_v42  ;;  %v1381_v60 = vmul.f32 %v1145_v20, %v97_v44  ;;  %v1628_v17 = vld [vmem:[#allocation10_spill] sm:$0xff]  ;;  %v1630_v6 = vld [vmem:[#allocation12_spill] sm:$0xff]  ;;  %v1631_v19 = vld [vmem:[#allocation13_spill] sm:$0xff] }
  0x26   :  { %v1372_v3 = vmul.f32 %v1127_v18, %v1627_v15  ;;  %v1384_v16 = vmul.f32 %v1151_v21, %v98_v40  ;;  %v1387_v62 = vmul.f32 %v1157_v7, %v99_v49  ;;  %v1390_v63 = vmul.f32 %v1628_v17, %v100_v47  ;;  %v1629_v18 = vld [vmem:[#allocation11_spill] sm:$0xff]  ;;  %v19_v20 = vld [vmem:[%s1576_s0 + $0x18] sm:$0xff]  ;;  %v1634_v47 = vld [vmem:[#allocation16_spill] sm:$0xff] }
  0x27   :  { %v1393_v22 = vmul.f32 %v1629_v18, %v101_v55  ;;  %v1396_v41 = vmul.f32 %v1630_v6, %v102_v38  ;;  %v1399_v42 = vmul.f32 %v1631_v19, %v103_v36  ;;  %v1632_v21 = vld [vmem:[#allocation14_spill] sm:$0xff]  ;;  %v1633_v49 = vld [vmem:[#allocation15_spill] sm:$0xff]  ;;  %v1411_v40 = vmul.f32 %v1634_v47, %v106_v34  ;;  %v1635_v55 = vld [vmem:[#allocation17_spill] sm:$0xff] }
  0x28   :  { %v1405_v44 = vmul.f32 %v1632_v21, %v104_v26  ;;  %v1408_v7 = vmul.f32 %v1633_v49, %v105_v31  ;;  %v1414_v30 = vmul.f32 %v1635_v55, %v107_v28  ;;  %v1636_v38 = vld [vmem:[#allocation18_spill] sm:$0xff]  ;;  %v1637_v36 = vld [vmem:[#allocation19_spill] sm:$0xff]  ;;  %v1423_v11 = vmul.f32 %v1638_v51, %v110_v24  ;;  %v1639_v26 = vld [vmem:[#allocation21_spill] sm:$0xff] }
  0x29   :  { %v1417_v32 = vmul.f32 %v1636_v38, %v108_v27  ;;  %v1420_v13 = vmul.f32 %v1637_v36, %v109_v25  ;;  %v1426_v45 = vmul.f32 %v1639_v26, %v111_v23  ;;  %v1640_v31 = vld [vmem:[#allocation6_spill] sm:$0xff]  ;;  %v1641_v34 = vld [vmem:[#allocation3_spill] sm:$0xff]  ;;  %v1642_v28 = vunpack.c.h.bf16 %v964_v33  ;;  %v1649_v38 = vld [vmem:[#allocation5_spill] sm:$0xff] }
  0x2a   :  { %v183_v8 = vrot.slane %v1065_v48, %v1640_v31  ;;  %v495_v46 = vrot.slane %v175_v59, %v1641_v34  ;;  %v792_v56 = vadd.f32 %v729_v12, %v728_v50  ;;  %v54_v27 = vunpack.c.l.bf16 %v19_v20  ;;  %v20_v25 = vld [vmem:[%s1576_s0 + $0x20] sm:$0xff]  ;;  %v1646_v59 = vld [vmem:[#allocation4_spill] sm:$0xff] }
  0x2b   :  { %v731_v4 = vmul.f32 %v487_v5, %v1642_v28  ;;  %v1643_v24 = vld [vmem:[#allocation23_spill] sm:$0xff]  ;;  %v499_v23 = vrot.slane %v179_v37, %v1641_v34  ;;  %v55_v19 = vunpack.c.h.bf16 %v19_v20  ;;  %v56_v49 = vunpack.c.l.bf16 %v20_v25  ;;  %v1648_v47 = vld [vmem:[#allocation22_spill] sm:$0xff] }
  0x2c   :  { %v187_v15 = vrot.slane %v1643_v24, %v1641_v34  ;;  %v1644_v17 = vld [vmem:[#allocation7_spill] sm:$0xff]  ;;  %v793_v48 = vadd.f32 %v792_v56, %v730_v61  ;;  %v191_v33 = vrot.slane %v1643_v24, %v1646_v59  ;;  %v503_v12 = vrot.slane %v183_v8, %v1641_v34  ;;  %v22_v56 = vld [vmem:[%s1576_s0 + $0x30] sm:$0xff] }
  0x2d   :  { %v1645_v18 = vunpack.c.l.bf16 %v1644_v17  ;;  %v1647_v5 = vunpack.c.h.bf16 %v1644_v17  ;;  %v123_v55 = vunpack.c.h.bf16 %v1648_v47  ;;  %v21_v37 = vld [vmem:[%s1576_s0 + $0x28] sm:$0xff]  ;;  %v195_v61 = vrot.slane %v1643_v24, %v1649_v38  ;;  %v114_v17 = vld [vmem:[%s1575_s1 + $0x10] sm:$0xff] }
  0x2e   :  { %v794_v21 = vadd.f32 %v793_v48, %v731_v4  ;;  %v734_v20 = vmul.f32 %v499_v23, %v54_v27  ;;  %v57_v51 = vunpack.c.h.bf16 %v20_v25  ;;  %v199_v26 = vrot.slane %v1643_v24, %v1640_v31 }
  0x2f   :  { %v732_v6 = vmul.f32 %v491_v43, %v1645_v18  ;;  %v733_v50 = vmul.f32 %v495_v46, %v1647_v5  ;;  %v507_v43 = vrot.slane %v187_v15, %v1641_v34  ;;  %v511_v8 = vrot.slane %v191_v33, %v1641_v34  ;;  %v23_v5 = vld [vmem:[%s1576_s0 + $0x38] sm:$0xff] }
  0x30   :  { %v735_v46 = vmul.f32 %v503_v12, %v55_v19  ;;  %v58_v4 = vunpack.c.l.bf16 %v21_v37  ;;  %v203_v27 = vrot.slane %v123_v55, %v1641_v34  ;;  %v515_v25 = vrot.slane %v195_v61, %v1641_v34 }
  0x31   :  { %v795_v36 = vadd.f32 %v794_v21, %v732_v6  ;;  %v736_v15 = vmul.f32 %v507_v43, %v56_v49  ;;  %v59_v24 = vunpack.c.h.bf16 %v21_v37  ;;  %v207_v18 = vrot.slane %v123_v55, %v1646_v59 }
  0x32   :  { %v519_v6 = vrot.slane %v199_v26, %v1641_v34  ;;  %v737_v48 = vmul.f32 %v511_v8, %v57_v51  ;;  %v60_v33 = vunpack.c.l.bf16 %v22_v56  ;;  %v124_v12 = vunpack.c.l.bf16 %v114_v17  ;;  %v24_v26 = vld [vmem:[%s1576_s0 + $0x40] sm:$0xff] }
  0x33   :  { %v796_v28 = vadd.f32 %v795_v36, %v733_v50  ;;  %v211_v50 = vrot.slane %v123_v55, %v1649_v38  ;;  %v523_v21 = vrot.slane %v203_v27, %v1641_v34  ;;  %v738_v47 = vmul.f32 %v515_v25, %v58_v4 }
  0x34   :  { %v61_v61 = vunpack.c.h.bf16 %v22_v56  ;;  %v215_v37 = vrot.slane %v123_v55, %v1640_v31  ;;  %v527_v43 = vrot.slane %v207_v18, %v1641_v34  ;;  %v62_v51 = vunpack.c.l.bf16 %v23_v5  ;;  %v25_v18 = vld [vmem:[%s1576_s0 + $0x48] sm:$0xff] }
  0x35   :  { %v797_v23 = vadd.f32 %v796_v28, %v734_v20  ;;  %v739_v20 = vmul.f32 %v519_v6, %v59_v24  ;;  %v219_v8 = vrot.slane %v124_v12, %v1641_v34  ;;  %v740_v28 = vmul.f32 %v523_v21, %v60_v33 }
  0x36   :  { %v63_v4 = vunpack.c.h.bf16 %v23_v5  ;;  %v223_v56 = vrot.slane %v124_v12, %v1646_v59  ;;  %v535_v55 = vrot.slane %v215_v37, %v1641_v34  ;;  %v741_v25 = vmul.f32 %v527_v43, %v61_v61  ;;  %v115_v37 = vld [vmem:[%s1575_s1 + $0x18] sm:$0xff] }
  0x37   :  { %v798_v19 = vadd.f32 %v797_v23, %v735_v46  ;;  %v531_v46 = vrot.slane %v211_v50, %v1641_v34  ;;  %v64_v23 = vunpack.c.l.bf16 %v24_v26  ;;  %v125_v24 = vunpack.c.h.bf16 %v114_v17  ;;  %v26_v17 = vld [vmem:[%s1576_s0 + $0x50] sm:$0xff] }
  0x38   :  { %v227_v6 = vrot.slane %v124_v12, %v1649_v38  ;;  %v65_v50 = vunpack.c.h.bf16 %v24_v26  ;;  %v231_v5 = vrot.slane %v124_v12, %v1640_v31  ;;  %v543_v21 = vrot.slane %v223_v56, %v1641_v34  ;;  %v27_v56 = vld [vmem:[%s1576_s0 + $0x58] sm:$0xff] }
  0x39   :  { %v799_v49 = vadd.f32 %v798_v19, %v736_v15  ;;  %v742_v19 = vmul.f32 %v531_v46, %v62_v51  ;;  %v66_v61 = vunpack.c.l.bf16 %v25_v18  ;;  %v235_v43 = vrot.slane %v125_v24, %v1641_v34 }
  0x3a   :  { %v67_v12 = vunpack.c.h.bf16 %v25_v18  ;;  %v239_v26 = vrot.slane %v125_v24, %v1646_v59  ;;  %v745_v46 = vmul.f32 %v543_v21, %v65_v50  ;;  %v247_v18 = vrot.slane %v125_v24, %v1640_v31 }
  0x3b   :  { %v800_v36 = vadd.f32 %v799_v49, %v737_v48  ;;  %v539_v48 = vrot.slane %v219_v8, %v1641_v34  ;;  %v551_v8 = vrot.slane %v231_v5, %v1641_v34  ;;  %v70_v50 = vunpack.c.l.bf16 %v27_v56  ;;  %v28_v5 = vld [vmem:[%s1576_s0 + $0x60] sm:$0xff] }
  0x3d   :  { %v801_v27 = vadd.f32 %v800_v36, %v738_v47  ;;  %v743_v47 = vmul.f32 %v535_v55, %v63_v4  ;;  %v744_v36 = vmul.f32 %v539_v48, %v64_v23  ;;  %v126_v4 = vunpack.c.l.bf16 %v115_v37 }
  0x3e   :  { %v243_v55 = vrot.slane %v125_v24, %v1649_v38  ;;  %v559_v48 = vrot.slane %v239_v26, %v1641_v34  ;;  %v567_v24 = vrot.slane %v247_v18, %v1641_v34  ;;  %v29_v26 = vld [vmem:[%s1576_s0 + $0x68] sm:$0xff] }
  0x3f   :  { %v802_v15 = vadd.f32 %v801_v27, %v739_v20  ;;  %v547_v20 = vrot.slane %v227_v6, %v1641_v34  ;;  %v68_v27 = vunpack.c.l.bf16 %v26_v17  ;;  %v69_v6 = vunpack.c.h.bf16 %v26_v17 }
  0x40   :  { %v251_v21 = vrot.slane %v126_v4, %v1641_v34  ;;  %v255_v17 = vrot.slane %v126_v4, %v1646_v59 }
  0x41   :  { %v803_v33 = vadd.f32 %v802_v15, %v740_v28  ;;  %v746_v15 = vmul.f32 %v547_v20, %v66_v61  ;;  %v71_v61 = vunpack.c.h.bf16 %v27_v56  ;;  %v749_v20 = vmul.f32 %v559_v48, %v69_v6 }
  0x42   :  { %v263_v56 = vrot.slane %v126_v4, %v1640_v31  ;;  %v74_v6 = vunpack.c.l.bf16 %v29_v26 }
  0x43   :  { %v804_v49 = vadd.f32 %v803_v33, %v741_v25  ;;  %v555_v25 = vrot.slane %v235_v43, %v1641_v34 }
  0x45   :  { %v805_v51 = vadd.f32 %v804_v49, %v742_v19  ;;  %v747_v19 = vmul.f32 %v551_v8, %v67_v12  ;;  %v748_v49 = vmul.f32 %v555_v25, %v68_v27  ;;  %v127_v12 = vunpack.c.h.bf16 %v115_v37  ;;  %v30_v37 = vld [vmem:[%s1576_s0 + $0x70] sm:$0xff] }
  0x46   :  { %v259_v8 = vrot.slane %v126_v4, %v1649_v38  ;;  %v575_v25 = vrot.slane %v255_v17, %v1641_v34  ;;  %v583_v4 = vrot.slane %v263_v56, %v1641_v34 }
  0x47   :  { %v806_v28 = vadd.f32 %v805_v51, %v743_v47  ;;  %v563_v47 = vrot.slane %v243_v55, %v1641_v34  ;;  %v72_v51 = vunpack.c.l.bf16 %v28_v5  ;;  %v73_v55 = vunpack.c.h.bf16 %v28_v5 }
  0x48   :  { %v267_v18 = vrot.slane %v127_v12, %v1641_v34  ;;  %v579_v48 = vrot.slane %v259_v8, %v1641_v34  ;;  %v271_v5 = vrot.slane %v127_v12, %v1646_v59 }
  0x49   :  { %v807_v23 = vadd.f32 %v806_v28, %v744_v36  ;;  %v750_v28 = vmul.f32 %v563_v47, %v70_v50  ;;  %v75_v50 = vunpack.c.h.bf16 %v29_v26 }
  0x4a   :  { %v587_v17 = vrot.slane %v267_v18, %v1641_v34  ;;  %v591_v59 = vrot.slane %v271_v5, %v1641_v34 }
  0x4b   :  { %v808_v33 = vadd.f32 %v807_v23, %v745_v46  ;;  %v571_v46 = vrot.slane %v251_v21, %v1641_v34  ;;  %v753_v21 = vmul.f32 %v575_v25, %v73_v55  ;;  %v755_v26 = vmul.f32 %v583_v4, %v75_v50 }
  0x4d   :  { %v809_v43 = vadd.f32 %v808_v33, %v746_v15  ;;  %v751_v15 = vmul.f32 %v567_v24, %v71_v61  ;;  %v275_v61 = vrot.slane %v127_v12, %v1649_v38  ;;  %v754_v24 = vmul.f32 %v579_v48, %v74_v6  ;;  %v32_v38 = vld [vmem:[%s1576_s0 + $0x80] sm:$0xff] }
  0x4e   :  { %v80_v6 = vunpack.c.l.bf16 %v32_v38 }
  0x4f   :  { %v810_v36 = vadd.f32 %v809_v43, %v747_v19  ;;  %v752_v19 = vmul.f32 %v571_v46, %v72_v51  ;;  %v31_v43 = vld [vmem:[%s1576_s0 + $0x78] sm:$0xff]  ;;  %v279_v51 = vrot.slane %v127_v12, %v1640_v31  ;;  %v595_v55 = vrot.slane %v275_v61, %v1641_v34 }
  0x50   :  { %v78_v46 = vunpack.c.l.bf16 %v31_v43 }
  0x51   :  { %v811_v27 = vadd.f32 %v810_v36, %v748_v49  ;;  %v76_v49 = vunpack.c.l.bf16 %v30_v37  ;;  %v77_v36 = vunpack.c.h.bf16 %v30_v37 }
  0x52   :  { %v758_v18 = vmul.f32 %v595_v55, %v78_v46 }
  0x53   :  { %v812_v23 = vadd.f32 %v811_v27, %v749_v20  ;;  %v756_v56 = vmul.f32 %v587_v17, %v76_v49  ;;  %v757_v31 = vmul.f32 %v591_v59, %v77_v36 }
  0x55   :  { %v813_v33 = vadd.f32 %v812_v23, %v750_v28  ;;  %v1650_v28 = vld [vmem:[#allocation8_spill] sm:$0xff]  ;;  %v599_v23 = vrot.slane %v279_v51, %v1641_v34 }
  0x56   :  { %v283_v27 = vrot.slane %v1650_v28, %v1641_v34 }
  0x57   :  { %v814_v47 = vadd.f32 %v813_v33, %v751_v15  ;;  %v79_v15 = vunpack.c.h.bf16 %v31_v43 }
  0x58   :  { %v603_v37 = vrot.slane %v283_v27, %v1641_v34 }
  0x59   :  { %v815_v20 = vadd.f32 %v814_v47, %v752_v19  ;;  %v81_v19 = vunpack.c.h.bf16 %v32_v38  ;;  %v759_v33 = vmul.f32 %v599_v23, %v79_v15 }
  0x5a   :  { %v760_v5 = vmul.f32 %v603_v37, %v80_v6 }
  0x5b   :  { %v816_v8 = vadd.f32 %v815_v20, %v753_v21  ;;  %v1651_v21 = vld [vmem:[#allocation9_spill] sm:$0xff] }
  0x5c   :  { %v761_v47 = vmul.f32 %v1651_v21, %v81_v19 }
  0x5d   :  { %v817_v25 = vadd.f32 %v816_v8, %v754_v24 }
  0x5f   :  { %v818_v12 = vadd.f32 %v817_v25, %v755_v26 }
  0x61   :  { %v819_v48 = vadd.f32 %v818_v12, %v756_v56 }
  0x63   :  { %v820_v50 = vadd.f32 %v819_v48, %v757_v31 }
  0x65   :  { %v821_v4 = vadd.f32 %v820_v50, %v758_v18 }
  0x67   :  { %v822_v49 = vadd.f32 %v821_v4, %v759_v33 }
  0x69   :  { %v823_v61 = vadd.f32 %v822_v49, %v760_v5 }
  0x6b   :  { %v824_v17 = vadd.f32 %v823_v61, %v761_v47 }
  0x6d   :  { %v825_v43 = vadd.f32 %v824_v17, %v1313_v10 }
  0x6f   :  { %v826_v24 = vadd.f32 %v825_v43, %v1318_v35 }
  0x71   :  { %v827_v20 = vadd.f32 %v826_v24, %v1322_v9 }
  0x73   :  { %v828_v34 = vadd.f32 %v827_v20, %v1327_v29 }
  0x75   :  { %v829_v36 = vadd.f32 %v828_v34, %v1332_v14 }
  0x77   :  { %v830_v51 = vadd.f32 %v829_v36, %v1337_v39 }
  0x79   :  { %v831_v59 = vadd.f32 %v830_v51, %v1342_v0 }
  0x7b   :  { %v832_v26 = vadd.f32 %v831_v59, %v1347_v58 }
  0x7d   :  { %v833_v8 = vadd.f32 %v832_v26, %v1352_v53 }
  0x7f   :  { %v834_v46 = vadd.f32 %v833_v8, %v1357_v54 }
  0x81   :  { %v835_v10 = vadd.f32 %v834_v46, %v1362_v1 }
  0x83   :  { %v836_v35 = vadd.f32 %v835_v10, %v1367_v2 }
  0x85   :  { %v837_v9 = vadd.f32 %v836_v35, %v1372_v3 }
  0x87   :  { %v838_v29 = vadd.f32 %v837_v9, %v1375_v57 }
  0x89   :  { %v839_v14 = vadd.f32 %v838_v29, %v1378_v52 }
  0x8b   :  { %v840_v39 = vadd.f32 %v839_v14, %v1381_v60 }
  0x8d   :  { %v841_v0 = vadd.f32 %v840_v39, %v1384_v16 }
  0x8f   :  { %v842_v58 = vadd.f32 %v841_v0, %v1387_v62 }
  0x91   :  { %v843_v53 = vadd.f32 %v842_v58, %v1390_v63 }
  0x93   :  { %v844_v54 = vadd.f32 %v843_v53, %v1393_v22 }
  0x95   :  { %v845_v1 = vadd.f32 %v844_v54, %v1396_v41  ;;  %v871_v41 = vld [vmem:[#allocation2] ss:$0 sm:$0xff] }
  0x97   :  { %v846_v2 = vadd.f32 %v845_v1, %v1399_v42 }
  0x99   :  { %v847_v3 = vadd.f32 %v846_v2, %v1405_v44 }
  0x9b   :  { %v848_v57 = vadd.f32 %v847_v3, %v1408_v7 }
  0x9d   :  { %v849_v52 = vadd.f32 %v848_v57, %v1411_v40 }
  0x9f   :  { %v850_v60 = vadd.f32 %v849_v52, %v1414_v30 }
  0xa1   :  { %v851_v16 = vadd.f32 %v850_v60, %v1417_v32 }
  0xa3   :  { %v852_v62 = vadd.f32 %v851_v16, %v1420_v13 }
  0xa5   :  { %v853_v63 = vadd.f32 %v852_v62, %v1423_v11 }
  0xa7   :  { %v854_v22 = vadd.f32 %v853_v63, %v1426_v45 }
  0xa9   :  { %855 = vadd.xlane.f32.xlu0 %v854_v22 }
 0x136   :  { %v856_v28 = vpop.xlane.xlu0 %855 }
 0x137   :  { %v864_v42 = vadd.f32 %v871_v41, %v856_v28 }
 0x139   :  { %866 = vst.msk [vmem:[%s1577_s3] sm:$0xff] %vm865_vm0, %v864_v42 }

// kernel: discriminator_forward.8
= control target key start
LH: loop header
LB: loop body
LE: loop exit
PB: predicated region body
PF: predicated region fallthrough
CT: control target
= control target key end

     0   :  { %s10475_s15 = smov 0   ;;  %s10477_s16 = smov 0   ;;  %s12370_s0 = inlined_call_operand.vmem [shape: bf16[18,4096], index: 0, kind: input, shape index: {}]   ;;  %s12371_s1 = inlined_call_operand.vmem [shape: bf16[4096,512], index: 1, kind: input, shape index: {}]   ;;  %s12372_s2 = inlined_call_operand.vmem [shape: f32[1,512], index: 2, kind: input, shape index: {}]   ;;  %s12373_s3 = inlined_call_operand.vmem [shape: f32[1,512], index: 3, kind: input, shape index: {}]   ;;  %s12374_s4 = inlined_call_operand.vmem [shape: bf16[18,512], index: 4, kind: output, shape index: {}]  }
   0x1   :  { %s10479_s17 = smov 0  }
   0x2 LB: > { %s10491_s18 = sadd.s32 4294967295, %s10448_s17   ;;  %s10494_s19 = sadd.s32 1, %s10448_s17   ;;  %s10448_s17 = sphi %s10479_s17, %s12378_s17   ;;  %s10444_s16 = sphi %s10477_s16, %s12377_s16   ;;  %s10440_s15 = sphi %s10475_s15, %s12376_s15  }
   0x3   : > { %s39_s20 = ssub.s32 %s10448_s17, %s10494_s19  ;;  %s42_s21 = sadd.s32 1, %s10444_s16 }
   0x4   : > { %p40_p0 = scmp.eq.s32.totalorder %s39_s20, 0  ;;  %p49_p1 = scmp.ne.s32.totalorder %s10444_s16, %s10440_s15 }
   0x5   : > { %p50_p2 = scmp.eq.s32.totalorder %s10448_s17, 0  ;;  %p131_p3 = scmp.eq.s32.totalorder %s10491_s18, 1 }
   0x6   : > { %s10504_s22 = scalar_select %p40_p0, %s10444_s16, %s42_s21  }
   0x7   : > { %p51_p4 = por %p50_p2, %p49_p1  ;;  %p10506_p5 = por %p131_p3, %p49_p1 }
   0x8   : > { %p8883_p6 = scmp.ge.s32.totalorder %s10448_s17, 2 }
   0xa   : > { %156 = sbr.rel (%p8883_p6) target bundleno = 277 (0x115), region = 20 }
  0x11   : > { %159 = sbr.rel (!%p51_p4) target bundleno = 277 (0x115), region = 24  ;;  %s161_s24 = sand.u32 (%p51_p4), 1, %s10444_s16  }
  0x12   : > { %s9474_s25 = sshll.u32 (%p51_p4), %s10448_s17, 3  ;;  %s8884_s26 = sshll.u32 (%p51_p4), %s161_s24, 12 }
  0x13   : > { %s10516_s29 = scalar_lea.vmem (%p51_p4), %s12371_s1, %s9474_s25  ;;  %s10521_s30 = scalar_lea.vmem (%p51_p4), [#allocation2], %s8884_s26 }
  0x14   : > { %v1219_v0 = vld [vmem:[%s10516_s29] sm:$0xff] (%p51_p4)  ;;  %v1221_v1 = vld [vmem:[%s10516_s29 + $0x10] sm:$0xff] (%p51_p4) }
  0x15   : > { %v1223_v2 = vld [vmem:[%s10516_s29 + $0x20] sm:$0xff] (%p51_p4)  ;;  %1220 = vst [vmem:[%s10521_s30] sm:$0xff] (%p51_p4), %v1219_v0  ;;  %1222 = vst [vmem:[%s10521_s30 + $0x8] sm:$0xff] (%p51_p4), %v1221_v1  ;;  %v1225_v3 = vld [vmem:[%s10516_s29 + $0x30] sm:$0xff] (%p51_p4) }
  0x16   : > { %1224 = vst [vmem:[%s10521_s30 + $0x10] sm:$0xff] (%p51_p4), %v1223_v2  ;;  %v1227_v4 = vld [vmem:[%s10516_s29 + $0x40] sm:$0xff] (%p51_p4)  ;;  %v1229_v5 = vld [vmem:[%s10516_s29 + $0x50] sm:$0xff] (%p51_p4)  ;;  %1226 = vst [vmem:[%s10521_s30 + $0x18] sm:$0xff] (%p51_p4), %v1225_v3 }
  0x17   : > { %1228 = vst [vmem:[%s10521_s30 + $0x20] sm:$0xff] (%p51_p4), %v1227_v4  ;;  %1230 = vst [vmem:[%s10521_s30 + $0x28] sm:$0xff] (%p51_p4), %v1229_v5  ;;  %v1231_v6 = vld [vmem:[%s10516_s29 + $0x60] sm:$0xff] (%p51_p4)  ;;  %v1233_v7 = vld [vmem:[%s10516_s29 + $0x70] sm:$0xff] (%p51_p4) }
  0x18   : > { %v1235_v8 = vld [vmem:[%s10516_s29 + $0x80] sm:$0xff]  ;;  %1232 = vst [vmem:[%s10521_s30 + $0x30] sm:$0xff] %v1231_v6  ;;  %1234 = vst [vmem:[%s10521_s30 + $0x38] sm:$0xff] %v1233_v7  ;;  %v1237_v9 = vld [vmem:[%s10516_s29 + $0x90] sm:$0xff] }
  0x19   : > { %1236 = vst [vmem:[%s10521_s30 + $0x40] sm:$0xff] %v1235_v8  ;;  %v1239_v10 = vld [vmem:[%s10516_s29 + $0xa0] sm:$0xff]  ;;  %v1241_v11 = vld [vmem:[%s10516_s29 + $0xb0] sm:$0xff]  ;;  %1238 = vst [vmem:[%s10521_s30 + $0x48] sm:$0xff] %v1237_v9 }
  0x1a   : > { %1240 = vst [vmem:[%s10521_s30 + $0x50] sm:$0xff] %v1239_v10  ;;  %1242 = vst [vmem:[%s10521_s30 + $0x58] sm:$0xff] %v1241_v11  ;;  %v1243_v12 = vld [vmem:[%s10516_s29 + $0xc0] sm:$0xff]  ;;  %v1245_v13 = vld [vmem:[%s10516_s29 + $0xd0] sm:$0xff] }
  0x1b   : > { %v1247_v14 = vld [vmem:[%s10516_s29 + $0xe0] sm:$0xff]  ;;  %1244 = vst [vmem:[%s10521_s30 + $0x60] sm:$0xff] %v1243_v12  ;;  %1246 = vst [vmem:[%s10521_s30 + $0x68] sm:$0xff] %v1245_v13  ;;  %v1249_v15 = vld [vmem:[%s10516_s29 + $0xf0] sm:$0xff] }
  0x1c   : > { %1248 = vst [vmem:[%s10521_s30 + $0x70] sm:$0xff] %v1247_v14  ;;  %v1251_v16 = vld [vmem:[%s10516_s29 + $0x100] sm:$0xff]  ;;  %v1253_v17 = vld [vmem:[%s10516_s29 + $0x110] sm:$0xff]  ;;  %1250 = vst [vmem:[%s10521_s30 + $0x78] sm:$0xff] %v1249_v15 }
  0x1d   : > { %1252 = vst [vmem:[%s10521_s30 + $0x80] sm:$0xff] %v1251_v16  ;;  %1254 = vst [vmem:[%s10521_s30 + $0x88] sm:$0xff] %v1253_v17  ;;  %v1255_v18 = vld [vmem:[%s10516_s29 + $0x120] sm:$0xff]  ;;  %v1257_v19 = vld [vmem:[%s10516_s29 + $0x130] sm:$0xff] }
  0x1e   : > { %v1259_v20 = vld [vmem:[%s10516_s29 + $0x140] sm:$0xff]  ;;  %1256 = vst [vmem:[%s10521_s30 + $0x90] sm:$0xff] %v1255_v18  ;;  %1258 = vst [vmem:[%s10521_s30 + $0x98] sm:$0xff] %v1257_v19  ;;  %v1261_v21 = vld [vmem:[%s10516_s29 + $0x150] sm:$0xff] }
  0x1f   : > { %1260 = vst [vmem:[%s10521_s30 + $0xa0] sm:$0xff] %v1259_v20  ;;  %v1263_v22 = vld [vmem:[%s10516_s29 + $0x160] sm:$0xff]  ;;  %v1265_v23 = vld [vmem:[%s10516_s29 + $0x170] sm:$0xff]  ;;  %1262 = vst [vmem:[%s10521_s30 + $0xa8] sm:$0xff] %v1261_v21 }
  0x20   : > { %1264 = vst [vmem:[%s10521_s30 + $0xb0] sm:$0xff] %v1263_v22  ;;  %1266 = vst [vmem:[%s10521_s30 + $0xb8] sm:$0xff] %v1265_v23  ;;  %v1267_v24 = vld [vmem:[%s10516_s29 + $0x180] sm:$0xff]  ;;  %v1269_v25 = vld [vmem:[%s10516_s29 + $0x190] sm:$0xff] }
  0x21   : > { %v1271_v26 = vld [vmem:[%s10516_s29 + $0x1a0] sm:$0xff]  ;;  %1268 = vst [vmem:[%s10521_s30 + $0xc0] sm:$0xff] %v1267_v24  ;;  %1270 = vst [vmem:[%s10521_s30 + $0xc8] sm:$0xff] %v1269_v25  ;;  %v1273_v27 = vld [vmem:[%s10516_s29 + $0x1b0] sm:$0xff] }
  0x22   : > { %1272 = vst [vmem:[%s10521_s30 + $0xd0] sm:$0xff] %v1271_v26  ;;  %v1275_v28 = vld [vmem:[%s10516_s29 + $0x1c0] sm:$0xff]  ;;  %v1277_v29 = vld [vmem:[%s10516_s29 + $0x1d0] sm:$0xff]  ;;  %1274 = vst [vmem:[%s10521_s30 + $0xd8] sm:$0xff] %v1273_v27 }
  0x23   : > { %1276 = vst [vmem:[%s10521_s30 + $0xe0] sm:$0xff] %v1275_v28  ;;  %1278 = vst [vmem:[%s10521_s30 + $0xe8] sm:$0xff] %v1277_v29  ;;  %v1279_v30 = vld [vmem:[%s10516_s29 + $0x1e0] sm:$0xff]  ;;  %v1281_v31 = vld [vmem:[%s10516_s29 + $0x1f0] sm:$0xff] }
  0x24   : > { %v1283_v32 = vld [vmem:[%s10516_s29 + $0x200] sm:$0xff]  ;;  %1280 = vst [vmem:[%s10521_s30 + $0xf0] sm:$0xff] %v1279_v30  ;;  %1282 = vst [vmem:[%s10521_s30 + $0xf8] sm:$0xff] %v1281_v31  ;;  %v1285_v33 = vld [vmem:[%s10516_s29 + $0x210] sm:$0xff] }
  0x25   : > { %1284 = vst [vmem:[%s10521_s30 + $0x100] sm:$0xff] %v1283_v32  ;;  %v1287_v34 = vld [vmem:[%s10516_s29 + $0x220] sm:$0xff]  ;;  %v1289_v35 = vld [vmem:[%s10516_s29 + $0x230] sm:$0xff]  ;;  %1286 = vst [vmem:[%s10521_s30 + $0x108] sm:$0xff] %v1285_v33 }
  0x26   : > { %1288 = vst [vmem:[%s10521_s30 + $0x110] sm:$0xff] %v1287_v34  ;;  %1290 = vst [vmem:[%s10521_s30 + $0x118] sm:$0xff] %v1289_v35  ;;  %v1291_v36 = vld [vmem:[%s10516_s29 + $0x240] sm:$0xff]  ;;  %v1293_v37 = vld [vmem:[%s10516_s29 + $0x250] sm:$0xff] }
  0x27   : > { %v1295_v38 = vld [vmem:[%s10516_s29 + $0x260] sm:$0xff]  ;;  %1292 = vst [vmem:[%s10521_s30 + $0x120] sm:$0xff] %v1291_v36  ;;  %1294 = vst [vmem:[%s10521_s30 + $0x128] sm:$0xff] %v1293_v37  ;;  %v1297_v39 = vld [vmem:[%s10516_s29 + $0x270] sm:$0xff] }
  0x28   : > { %1296 = vst [vmem:[%s10521_s30 + $0x130] sm:$0xff] %v1295_v38  ;;  %v1299_v40 = vld [vmem:[%s10516_s29 + $0x280] sm:$0xff]  ;;  %v1301_v41 = vld [vmem:[%s10516_s29 + $0x290] sm:$0xff]  ;;  %1298 = vst [vmem:[%s10521_s30 + $0x138] sm:$0xff] %v1297_v39 }
  0x29   : > { %1300 = vst [vmem:[%s10521_s30 + $0x140] sm:$0xff] %v1299_v40  ;;  %1302 = vst [vmem:[%s10521_s30 + $0x148] sm:$0xff] %v1301_v41  ;;  %v1303_v42 = vld [vmem:[%s10516_s29 + $0x2a0] sm:$0xff]  ;;  %v1305_v43 = vld [vmem:[%s10516_s29 + $0x2b0] sm:$0xff] }
  0x2a   : > { %v1307_v44 = vld [vmem:[%s10516_s29 + $0x2c0] sm:$0xff]  ;;  %1304 = vst [vmem:[%s10521_s30 + $0x150] sm:$0xff] %v1303_v42  ;;  %1306 = vst [vmem:[%s10521_s30 + $0x158] sm:$0xff] %v1305_v43  ;;  %v1309_v45 = vld [vmem:[%s10516_s29 + $0x2d0] sm:$0xff] }
  0x2b   : > { %1308 = vst [vmem:[%s10521_s30 + $0x160] sm:$0xff] %v1307_v44  ;;  %v1311_v46 = vld [vmem:[%s10516_s29 + $0x2e0] sm:$0xff]  ;;  %v1313_v47 = vld [vmem:[%s10516_s29 + $0x2f0] sm:$0xff]  ;;  %1310 = vst [vmem:[%s10521_s30 + $0x168] sm:$0xff] %v1309_v45 }
  0x2c   : > { %1312 = vst [vmem:[%s10521_s30 + $0x170] sm:$0xff] %v1311_v46  ;;  %1314 = vst [vmem:[%s10521_s30 + $0x178] sm:$0xff] %v1313_v47  ;;  %v1315_v48 = vld [vmem:[%s10516_s29 + $0x300] sm:$0xff]  ;;  %v1317_v49 = vld [vmem:[%s10516_s29 + $0x310] sm:$0xff] }
  0x2d   : > { %v1319_v50 = vld [vmem:[%s10516_s29 + $0x320] sm:$0xff]  ;;  %1316 = vst [vmem:[%s10521_s30 + $0x180] sm:$0xff] %v1315_v48  ;;  %1318 = vst [vmem:[%s10521_s30 + $0x188] sm:$0xff] %v1317_v49  ;;  %v1321_v51 = vld [vmem:[%s10516_s29 + $0x330] sm:$0xff] }
  0x2e   : > { %1320 = vst [vmem:[%s10521_s30 + $0x190] sm:$0xff] %v1319_v50  ;;  %v1323_v52 = vld [vmem:[%s10516_s29 + $0x340] sm:$0xff]  ;;  %v1325_v53 = vld [vmem:[%s10516_s29 + $0x350] sm:$0xff]  ;;  %1322 = vst [vmem:[%s10521_s30 + $0x198] sm:$0xff] %v1321_v51 }
  0x2f   : > { %1324 = vst [vmem:[%s10521_s30 + $0x1a0] sm:$0xff] %v1323_v52  ;;  %1326 = vst [vmem:[%s10521_s30 + $0x1a8] sm:$0xff] %v1325_v53  ;;  %v1327_v54 = vld [vmem:[%s10516_s29 + $0x360] sm:$0xff]  ;;  %v1329_v55 = vld [vmem:[%s10516_s29 + $0x370] sm:$0xff] }
  0x30   : > { %v1331_v56 = vld [vmem:[%s10516_s29 + $0x380] sm:$0xff]  ;;  %1328 = vst [vmem:[%s10521_s30 + $0x1b0] sm:$0xff] %v1327_v54  ;;  %1330 = vst [vmem:[%s10521_s30 + $0x1b8] sm:$0xff] %v1329_v55  ;;  %v1333_v57 = vld [vmem:[%s10516_s29 + $0x390] sm:$0xff] }
  0x31   : > { %1332 = vst [vmem:[%s10521_s30 + $0x1c0] sm:$0xff] %v1331_v56  ;;  %v1335_v58 = vld [vmem:[%s10516_s29 + $0x3a0] sm:$0xff]  ;;  %v1337_v59 = vld [vmem:[%s10516_s29 + $0x3b0] sm:$0xff]  ;;  %1334 = vst [vmem:[%s10521_s30 + $0x1c8] sm:$0xff] %v1333_v57 }
  0x32   : > { %1336 = vst [vmem:[%s10521_s30 + $0x1d0] sm:$0xff] %v1335_v58  ;;  %1338 = vst [vmem:[%s10521_s30 + $0x1d8] sm:$0xff] %v1337_v59  ;;  %v1339_v60 = vld [vmem:[%s10516_s29 + $0x3c0] sm:$0xff]  ;;  %v1341_v61 = vld [vmem:[%s10516_s29 + $0x3d0] sm:$0xff] }
  0x33   : > { %v1343_v62 = vld [vmem:[%s10516_s29 + $0x3e0] sm:$0xff]  ;;  %1340 = vst [vmem:[%s10521_s30 + $0x1e0] sm:$0xff] %v1339_v60  ;;  %1342 = vst [vmem:[%s10521_s30 + $0x1e8] sm:$0xff] %v1341_v61  ;;  %v1345_v63 = vld [vmem:[%s10516_s29 + $0x3f0] sm:$0xff] }
  0x34   : > { %1344 = vst [vmem:[%s10521_s30 + $0x1f0] sm:$0xff] %v1343_v62  ;;  %v1347_v0 = vld [vmem:[%s10516_s29 + $0x400] sm:$0xff]  ;;  %v1349_v1 = vld [vmem:[%s10516_s29 + $0x410] sm:$0xff]  ;;  %1346 = vst [vmem:[%s10521_s30 + $0x1f8] sm:$0xff] %v1345_v63 }
  0x35   : > { %1348 = vst [vmem:[%s10521_s30 + $0x200] sm:$0xff] %v1347_v0  ;;  %1350 = vst [vmem:[%s10521_s30 + $0x208] sm:$0xff] %v1349_v1  ;;  %v1351_v2 = vld [vmem:[%s10516_s29 + $0x420] sm:$0xff]  ;;  %v1353_v3 = vld [vmem:[%s10516_s29 + $0x430] sm:$0xff] }
  0x36   : > { %v1355_v4 = vld [vmem:[%s10516_s29 + $0x440] sm:$0xff]  ;;  %1352 = vst [vmem:[%s10521_s30 + $0x210] sm:$0xff] %v1351_v2  ;;  %1354 = vst [vmem:[%s10521_s30 + $0x218] sm:$0xff] %v1353_v3  ;;  %v1357_v5 = vld [vmem:[%s10516_s29 + $0x450] sm:$0xff] }
  0x37   : > { %1356 = vst [vmem:[%s10521_s30 + $0x220] sm:$0xff] %v1355_v4  ;;  %v1359_v6 = vld [vmem:[%s10516_s29 + $0x460] sm:$0xff]  ;;  %v1361_v7 = vld [vmem:[%s10516_s29 + $0x470] sm:$0xff]  ;;  %1358 = vst [vmem:[%s10521_s30 + $0x228] sm:$0xff] %v1357_v5 }
  0x38   : > { %1360 = vst [vmem:[%s10521_s30 + $0x230] sm:$0xff] %v1359_v6  ;;  %1362 = vst [vmem:[%s10521_s30 + $0x238] sm:$0xff] %v1361_v7  ;;  %v1363_v8 = vld [vmem:[%s10516_s29 + $0x480] sm:$0xff]  ;;  %v1365_v9 = vld [vmem:[%s10516_s29 + $0x490] sm:$0xff] }
  0x39   : > { %v1367_v10 = vld [vmem:[%s10516_s29 + $0x4a0] sm:$0xff]  ;;  %1364 = vst [vmem:[%s10521_s30 + $0x240] sm:$0xff] %v1363_v8  ;;  %1366 = vst [vmem:[%s10521_s30 + $0x248] sm:$0xff] %v1365_v9  ;;  %v1369_v11 = vld [vmem:[%s10516_s29 + $0x4b0] sm:$0xff] }
  0x3a   : > { %1368 = vst [vmem:[%s10521_s30 + $0x250] sm:$0xff] %v1367_v10  ;;  %v1371_v12 = vld [vmem:[%s10516_s29 + $0x4c0] sm:$0xff]  ;;  %v1373_v13 = vld [vmem:[%s10516_s29 + $0x4d0] sm:$0xff]  ;;  %1370 = vst [vmem:[%s10521_s30 + $0x258] sm:$0xff] %v1369_v11 }
  0x3b   : > { %1372 = vst [vmem:[%s10521_s30 + $0x260] sm:$0xff] %v1371_v12  ;;  %1374 = vst [vmem:[%s10521_s30 + $0x268] sm:$0xff] %v1373_v13  ;;  %v1375_v14 = vld [vmem:[%s10516_s29 + $0x4e0] sm:$0xff]  ;;  %v1377_v15 = vld [vmem:[%s10516_s29 + $0x4f0] sm:$0xff] }
  0x3c   : > { %v1379_v16 = vld [vmem:[%s10516_s29 + $0x500] sm:$0xff]  ;;  %1376 = vst [vmem:[%s10521_s30 + $0x270] sm:$0xff] %v1375_v14  ;;  %1378 = vst [vmem:[%s10521_s30 + $0x278] sm:$0xff] %v1377_v15  ;;  %v1381_v17 = vld [vmem:[%s10516_s29 + $0x510] sm:$0xff] }
  0x3d   : > { %1380 = vst [vmem:[%s10521_s30 + $0x280] sm:$0xff] %v1379_v16  ;;  %v1383_v18 = vld [vmem:[%s10516_s29 + $0x520] sm:$0xff]  ;;  %v1385_v19 = vld [vmem:[%s10516_s29 + $0x530] sm:$0xff]  ;;  %1382 = vst [vmem:[%s10521_s30 + $0x288] sm:$0xff] %v1381_v17 }
  0x3e   : > { %1384 = vst [vmem:[%s10521_s30 + $0x290] sm:$0xff] %v1383_v18  ;;  %1386 = vst [vmem:[%s10521_s30 + $0x298] sm:$0xff] %v1385_v19  ;;  %v1387_v20 = vld [vmem:[%s10516_s29 + $0x540] sm:$0xff]  ;;  %v1389_v21 = vld [vmem:[%s10516_s29 + $0x550] sm:$0xff] }
  0x3f   : > { %v1391_v22 = vld [vmem:[%s10516_s29 + $0x560] sm:$0xff]  ;;  %1388 = vst [vmem:[%s10521_s30 + $0x2a0] sm:$0xff] %v1387_v20  ;;  %1390 = vst [vmem:[%s10521_s30 + $0x2a8] sm:$0xff] %v1389_v21  ;;  %v1393_v23 = vld [vmem:[%s10516_s29 + $0x570] sm:$0xff] }
  0x40   : > { %1392 = vst [vmem:[%s10521_s30 + $0x2b0] sm:$0xff] %v1391_v22  ;;  %v1395_v24 = vld [vmem:[%s10516_s29 + $0x580] sm:$0xff]  ;;  %v1397_v25 = vld [vmem:[%s10516_s29 + $0x590] sm:$0xff]  ;;  %1394 = vst [vmem:[%s10521_s30 + $0x2b8] sm:$0xff] %v1393_v23 }
  0x41   : > { %1396 = vst [vmem:[%s10521_s30 + $0x2c0] sm:$0xff] %v1395_v24  ;;  %1398 = vst [vmem:[%s10521_s30 + $0x2c8] sm:$0xff] %v1397_v25  ;;  %v1399_v26 = vld [vmem:[%s10516_s29 + $0x5a0] sm:$0xff]  ;;  %v1401_v27 = vld [vmem:[%s10516_s29 + $0x5b0] sm:$0xff] }
  0x42   : > { %v1403_v28 = vld [vmem:[%s10516_s29 + $0x5c0] sm:$0xff]  ;;  %1400 = vst [vmem:[%s10521_s30 + $0x2d0] sm:$0xff] %v1399_v26  ;;  %1402 = vst [vmem:[%s10521_s30 + $0x2d8] sm:$0xff] %v1401_v27  ;;  %v1405_v29 = vld [vmem:[%s10516_s29 + $0x5d0] sm:$0xff] }
  0x43   : > { %1404 = vst [vmem:[%s10521_s30 + $0x2e0] sm:$0xff] %v1403_v28  ;;  %v1407_v30 = vld [vmem:[%s10516_s29 + $0x5e0] sm:$0xff]  ;;  %v1409_v31 = vld [vmem:[%s10516_s29 + $0x5f0] sm:$0xff]  ;;  %1406 = vst [vmem:[%s10521_s30 + $0x2e8] sm:$0xff] %v1405_v29 }
  0x44   : > { %1408 = vst [vmem:[%s10521_s30 + $0x2f0] sm:$0xff] %v1407_v30  ;;  %1410 = vst [vmem:[%s10521_s30 + $0x2f8] sm:$0xff] %v1409_v31  ;;  %v1411_v32 = vld [vmem:[%s10516_s29 + $0x600] sm:$0xff]  ;;  %v1413_v33 = vld [vmem:[%s10516_s29 + $0x610] sm:$0xff] }
  0x45   : > { %v1415_v34 = vld [vmem:[%s10516_s29 + $0x620] sm:$0xff]  ;;  %1412 = vst [vmem:[%s10521_s30 + $0x300] sm:$0xff] %v1411_v32  ;;  %1414 = vst [vmem:[%s10521_s30 + $0x308] sm:$0xff] %v1413_v33  ;;  %v1417_v35 = vld [vmem:[%s10516_s29 + $0x630] sm:$0xff] }
  0x46   : > { %1416 = vst [vmem:[%s10521_s30 + $0x310] sm:$0xff] %v1415_v34  ;;  %v1419_v36 = vld [vmem:[%s10516_s29 + $0x640] sm:$0xff]  ;;  %v1421_v37 = vld [vmem:[%s10516_s29 + $0x650] sm:$0xff]  ;;  %1418 = vst [vmem:[%s10521_s30 + $0x318] sm:$0xff] %v1417_v35 }
  0x47   : > { %1420 = vst [vmem:[%s10521_s30 + $0x320] sm:$0xff] %v1419_v36  ;;  %1422 = vst [vmem:[%s10521_s30 + $0x328] sm:$0xff] %v1421_v37  ;;  %v1423_v38 = vld [vmem:[%s10516_s29 + $0x660] sm:$0xff]  ;;  %v1425_v39 = vld [vmem:[%s10516_s29 + $0x670] sm:$0xff] }
  0x48   : > { %v1427_v40 = vld [vmem:[%s10516_s29 + $0x680] sm:$0xff]  ;;  %1424 = vst [vmem:[%s10521_s30 + $0x330] sm:$0xff] %v1423_v38  ;;  %1426 = vst [vmem:[%s10521_s30 + $0x338] sm:$0xff] %v1425_v39  ;;  %v1429_v41 = vld [vmem:[%s10516_s29 + $0x690] sm:$0xff] }
  0x49   : > { %1428 = vst [vmem:[%s10521_s30 + $0x340] sm:$0xff] %v1427_v40  ;;  %v1431_v42 = vld [vmem:[%s10516_s29 + $0x6a0] sm:$0xff]  ;;  %v1433_v43 = vld [vmem:[%s10516_s29 + $0x6b0] sm:$0xff]  ;;  %1430 = vst [vmem:[%s10521_s30 + $0x348] sm:$0xff] %v1429_v41 }
  0x4a   : > { %1432 = vst [vmem:[%s10521_s30 + $0x350] sm:$0xff] %v1431_v42  ;;  %1434 = vst [vmem:[%s10521_s30 + $0x358] sm:$0xff] %v1433_v43  ;;  %v1435_v44 = vld [vmem:[%s10516_s29 + $0x6c0] sm:$0xff]  ;;  %v1437_v45 = vld [vmem:[%s10516_s29 + $0x6d0] sm:$0xff] }
  0x4b   : > { %v1439_v46 = vld [vmem:[%s10516_s29 + $0x6e0] sm:$0xff]  ;;  %1436 = vst [vmem:[%s10521_s30 + $0x360] sm:$0xff] %v1435_v44  ;;  %1438 = vst [vmem:[%s10521_s30 + $0x368] sm:$0xff] %v1437_v45  ;;  %v1441_v47 = vld [vmem:[%s10516_s29 + $0x6f0] sm:$0xff] }
  0x4c   : > { %1440 = vst [vmem:[%s10521_s30 + $0x370] sm:$0xff] %v1439_v46  ;;  %v1443_v48 = vld [vmem:[%s10516_s29 + $0x700] sm:$0xff]  ;;  %v1445_v49 = vld [vmem:[%s10516_s29 + $0x710] sm:$0xff]  ;;  %1442 = vst [vmem:[%s10521_s30 + $0x378] sm:$0xff] %v1441_v47 }
  0x4d   : > { %1444 = vst [vmem:[%s10521_s30 + $0x380] sm:$0xff] %v1443_v48  ;;  %1446 = vst [vmem:[%s10521_s30 + $0x388] sm:$0xff] %v1445_v49  ;;  %v1447_v50 = vld [vmem:[%s10516_s29 + $0x720] sm:$0xff]  ;;  %v1449_v51 = vld [vmem:[%s10516_s29 + $0x730] sm:$0xff] }
  0x4e   : > { %v1451_v52 = vld [vmem:[%s10516_s29 + $0x740] sm:$0xff]  ;;  %1448 = vst [vmem:[%s10521_s30 + $0x390] sm:$0xff] %v1447_v50  ;;  %1450 = vst [vmem:[%s10521_s30 + $0x398] sm:$0xff] %v1449_v51  ;;  %v1453_v53 = vld [vmem:[%s10516_s29 + $0x750] sm:$0xff] }
  0x4f   : > { %1452 = vst [vmem:[%s10521_s30 + $0x3a0] sm:$0xff] %v1451_v52  ;;  %v1455_v54 = vld [vmem:[%s10516_s29 + $0x760] sm:$0xff]  ;;  %v1457_v55 = vld [vmem:[%s10516_s29 + $0x770] sm:$0xff]  ;;  %1454 = vst [vmem:[%s10521_s30 + $0x3a8] sm:$0xff] %v1453_v53 }
  0x50   : > { %1456 = vst [vmem:[%s10521_s30 + $0x3b0] sm:$0xff] %v1455_v54  ;;  %1458 = vst [vmem:[%s10521_s30 + $0x3b8] sm:$0xff] %v1457_v55  ;;  %v1459_v56 = vld [vmem:[%s10516_s29 + $0x780] sm:$0xff]  ;;  %v1461_v57 = vld [vmem:[%s10516_s29 + $0x790] sm:$0xff] }
  0x51   : > { %v1463_v58 = vld [vmem:[%s10516_s29 + $0x7a0] sm:$0xff]  ;;  %1460 = vst [vmem:[%s10521_s30 + $0x3c0] sm:$0xff] %v1459_v56  ;;  %1462 = vst [vmem:[%s10521_s30 + $0x3c8] sm:$0xff] %v1461_v57  ;;  %v1465_v59 = vld [vmem:[%s10516_s29 + $0x7b0] sm:$0xff] }
  0x52   : > { %1464 = vst [vmem:[%s10521_s30 + $0x3d0] sm:$0xff] %v1463_v58  ;;  %v1467_v60 = vld [vmem:[%s10516_s29 + $0x7c0] sm:$0xff]  ;;  %v1469_v61 = vld [vmem:[%s10516_s29 + $0x7d0] sm:$0xff]  ;;  %1466 = vst [vmem:[%s10521_s30 + $0x3d8] sm:$0xff] %v1465_v59 }
  0x53   : > { %1468 = vst [vmem:[%s10521_s30 + $0x3e0] sm:$0xff] %v1467_v60  ;;  %1470 = vst [vmem:[%s10521_s30 + $0x3e8] sm:$0xff] %v1469_v61  ;;  %v1471_v62 = vld [vmem:[%s10516_s29 + $0x7e0] sm:$0xff]  ;;  %v1473_v63 = vld [vmem:[%s10516_s29 + $0x7f0] sm:$0xff] }
  0x54   : > { %v1475_v0 = vld [vmem:[%s10516_s29 + $0x800] sm:$0xff]  ;;  %1472 = vst [vmem:[%s10521_s30 + $0x3f0] sm:$0xff] %v1471_v62  ;;  %1474 = vst [vmem:[%s10521_s30 + $0x3f8] sm:$0xff] %v1473_v63  ;;  %v1477_v1 = vld [vmem:[%s10516_s29 + $0x810] sm:$0xff] }
  0x55   : > { %1476 = vst [vmem:[%s10521_s30 + $0x400] sm:$0xff] %v1475_v0  ;;  %v1479_v2 = vld [vmem:[%s10516_s29 + $0x820] sm:$0xff]  ;;  %v1481_v3 = vld [vmem:[%s10516_s29 + $0x830] sm:$0xff]  ;;  %1478 = vst [vmem:[%s10521_s30 + $0x408] sm:$0xff] %v1477_v1 }
  0x56   : > { %1480 = vst [vmem:[%s10521_s30 + $0x410] sm:$0xff] %v1479_v2  ;;  %1482 = vst [vmem:[%s10521_s30 + $0x418] sm:$0xff] %v1481_v3  ;;  %v1483_v4 = vld [vmem:[%s10516_s29 + $0x840] sm:$0xff]  ;;  %v1485_v5 = vld [vmem:[%s10516_s29 + $0x850] sm:$0xff] }
  0x57   : > { %v1487_v6 = vld [vmem:[%s10516_s29 + $0x860] sm:$0xff]  ;;  %1484 = vst [vmem:[%s10521_s30 + $0x420] sm:$0xff] %v1483_v4  ;;  %1486 = vst [vmem:[%s10521_s30 + $0x428] sm:$0xff] %v1485_v5  ;;  %v1489_v7 = vld [vmem:[%s10516_s29 + $0x870] sm:$0xff] }
  0x58   : > { %1488 = vst [vmem:[%s10521_s30 + $0x430] sm:$0xff] %v1487_v6  ;;  %v1491_v8 = vld [vmem:[%s10516_s29 + $0x880] sm:$0xff]  ;;  %v1493_v9 = vld [vmem:[%s10516_s29 + $0x890] sm:$0xff]  ;;  %1490 = vst [vmem:[%s10521_s30 + $0x438] sm:$0xff] %v1489_v7 }
  0x59   : > { %1492 = vst [vmem:[%s10521_s30 + $0x440] sm:$0xff] %v1491_v8  ;;  %1494 = vst [vmem:[%s10521_s30 + $0x448] sm:$0xff] %v1493_v9  ;;  %v1495_v10 = vld [vmem:[%s10516_s29 + $0x8a0] sm:$0xff]  ;;  %v1497_v11 = vld [vmem:[%s10516_s29 + $0x8b0] sm:$0xff] }
  0x5a   : > { %v1499_v12 = vld [vmem:[%s10516_s29 + $0x8c0] sm:$0xff]  ;;  %1496 = vst [vmem:[%s10521_s30 + $0x450] sm:$0xff] %v1495_v10  ;;  %1498 = vst [vmem:[%s10521_s30 + $0x458] sm:$0xff] %v1497_v11  ;;  %v1501_v13 = vld [vmem:[%s10516_s29 + $0x8d0] sm:$0xff] }
  0x5b   : > { %1500 = vst [vmem:[%s10521_s30 + $0x460] sm:$0xff] %v1499_v12  ;;  %v1503_v14 = vld [vmem:[%s10516_s29 + $0x8e0] sm:$0xff]  ;;  %v1505_v15 = vld [vmem:[%s10516_s29 + $0x8f0] sm:$0xff]  ;;  %1502 = vst [vmem:[%s10521_s30 + $0x468] sm:$0xff] %v1501_v13 }
  0x5c   : > { %1504 = vst [vmem:[%s10521_s30 + $0x470] sm:$0xff] %v1503_v14  ;;  %1506 = vst [vmem:[%s10521_s30 + $0x478] sm:$0xff] %v1505_v15  ;;  %v1507_v16 = vld [vmem:[%s10516_s29 + $0x900] sm:$0xff]  ;;  %v1509_v17 = vld [vmem:[%s10516_s29 + $0x910] sm:$0xff] }
  0x5d   : > { %v1511_v18 = vld [vmem:[%s10516_s29 + $0x920] sm:$0xff]  ;;  %1508 = vst [vmem:[%s10521_s30 + $0x480] sm:$0xff] %v1507_v16  ;;  %1510 = vst [vmem:[%s10521_s30 + $0x488] sm:$0xff] %v1509_v17  ;;  %v1513_v19 = vld [vmem:[%s10516_s29 + $0x930] sm:$0xff] }
  0x5e   : > { %1512 = vst [vmem:[%s10521_s30 + $0x490] sm:$0xff] %v1511_v18  ;;  %v1515_v20 = vld [vmem:[%s10516_s29 + $0x940] sm:$0xff]  ;;  %v1517_v21 = vld [vmem:[%s10516_s29 + $0x950] sm:$0xff]  ;;  %1514 = vst [vmem:[%s10521_s30 + $0x498] sm:$0xff] %v1513_v19 }
  0x5f   : > { %1516 = vst [vmem:[%s10521_s30 + $0x4a0] sm:$0xff] %v1515_v20  ;;  %1518 = vst [vmem:[%s10521_s30 + $0x4a8] sm:$0xff] %v1517_v21  ;;  %v1519_v22 = vld [vmem:[%s10516_s29 + $0x960] sm:$0xff]  ;;  %v1521_v23 = vld [vmem:[%s10516_s29 + $0x970] sm:$0xff] }
  0x60   : > { %v1523_v24 = vld [vmem:[%s10516_s29 + $0x980] sm:$0xff]  ;;  %1520 = vst [vmem:[%s10521_s30 + $0x4b0] sm:$0xff] %v1519_v22  ;;  %1522 = vst [vmem:[%s10521_s30 + $0x4b8] sm:$0xff] %v1521_v23  ;;  %v1525_v25 = vld [vmem:[%s10516_s29 + $0x990] sm:$0xff] }
  0x61   : > { %1524 = vst [vmem:[%s10521_s30 + $0x4c0] sm:$0xff] %v1523_v24  ;;  %v1527_v26 = vld [vmem:[%s10516_s29 + $0x9a0] sm:$0xff]  ;;  %v1529_v27 = vld [vmem:[%s10516_s29 + $0x9b0] sm:$0xff]  ;;  %1526 = vst [vmem:[%s10521_s30 + $0x4c8] sm:$0xff] %v1525_v25 }
  0x62   : > { %1528 = vst [vmem:[%s10521_s30 + $0x4d0] sm:$0xff] %v1527_v26  ;;  %1530 = vst [vmem:[%s10521_s30 + $0x4d8] sm:$0xff] %v1529_v27  ;;  %v1531_v28 = vld [vmem:[%s10516_s29 + $0x9c0] sm:$0xff]  ;;  %v1533_v29 = vld [vmem:[%s10516_s29 + $0x9d0] sm:$0xff] }
  0x63   : > { %v1535_v30 = vld [vmem:[%s10516_s29 + $0x9e0] sm:$0xff]  ;;  %1532 = vst [vmem:[%s10521_s30 + $0x4e0] sm:$0xff] %v1531_v28  ;;  %1534 = vst [vmem:[%s10521_s30 + $0x4e8] sm:$0xff] %v1533_v29  ;;  %v1537_v31 = vld [vmem:[%s10516_s29 + $0x9f0] sm:$0xff] }
  0x64   : > { %1536 = vst [vmem:[%s10521_s30 + $0x4f0] sm:$0xff] %v1535_v30  ;;  %v1539_v32 = vld [vmem:[%s10516_s29 + $0xa00] sm:$0xff]  ;;  %v1541_v33 = vld [vmem:[%s10516_s29 + $0xa10] sm:$0xff]  ;;  %1538 = vst [vmem:[%s10521_s30 + $0x4f8] sm:$0xff] %v1537_v31 }
  0x65   : > { %1540 = vst [vmem:[%s10521_s30 + $0x500] sm:$0xff] %v1539_v32  ;;  %1542 = vst [vmem:[%s10521_s30 + $0x508] sm:$0xff] %v1541_v33  ;;  %v1543_v34 = vld [vmem:[%s10516_s29 + $0xa20] sm:$0xff]  ;;  %v1545_v35 = vld [vmem:[%s10516_s29 + $0xa30] sm:$0xff] }
  0x66   : > { %v1547_v36 = vld [vmem:[%s10516_s29 + $0xa40] sm:$0xff]  ;;  %1544 = vst [vmem:[%s10521_s30 + $0x510] sm:$0xff] %v1543_v34  ;;  %1546 = vst [vmem:[%s10521_s30 + $0x518] sm:$0xff] %v1545_v35  ;;  %v1549_v37 = vld [vmem:[%s10516_s29 + $0xa50] sm:$0xff] }
  0x67   : > { %1548 = vst [vmem:[%s10521_s30 + $0x520] sm:$0xff] %v1547_v36  ;;  %v1551_v38 = vld [vmem:[%s10516_s29 + $0xa60] sm:$0xff]  ;;  %v1553_v39 = vld [vmem:[%s10516_s29 + $0xa70] sm:$0xff]  ;;  %1550 = vst [vmem:[%s10521_s30 + $0x528] sm:$0xff] %v1549_v37 }
  0x68   : > { %1552 = vst [vmem:[%s10521_s30 + $0x530] sm:$0xff] %v1551_v38  ;;  %1554 = vst [vmem:[%s10521_s30 + $0x538] sm:$0xff] %v1553_v39  ;;  %v1555_v40 = vld [vmem:[%s10516_s29 + $0xa80] sm:$0xff]  ;;  %v1557_v41 = vld [vmem:[%s10516_s29 + $0xa90] sm:$0xff] }
  0x69   : > { %v1559_v42 = vld [vmem:[%s10516_s29 + $0xaa0] sm:$0xff]  ;;  %1556 = vst [vmem:[%s10521_s30 + $0x540] sm:$0xff] %v1555_v40  ;;  %1558 = vst [vmem:[%s10521_s30 + $0x548] sm:$0xff] %v1557_v41  ;;  %v1561_v43 = vld [vmem:[%s10516_s29 + $0xab0] sm:$0xff] }
  0x6a   : > { %1560 = vst [vmem:[%s10521_s30 + $0x550] sm:$0xff] %v1559_v42  ;;  %v1563_v44 = vld [vmem:[%s10516_s29 + $0xac0] sm:$0xff]  ;;  %v1565_v45 = vld [vmem:[%s10516_s29 + $0xad0] sm:$0xff]  ;;  %1562 = vst [vmem:[%s10521_s30 + $0x558] sm:$0xff] %v1561_v43 }
  0x6b   : > { %1564 = vst [vmem:[%s10521_s30 + $0x560] sm:$0xff] %v1563_v44  ;;  %1566 = vst [vmem:[%s10521_s30 + $0x568] sm:$0xff] %v1565_v45  ;;  %v1567_v46 = vld [vmem:[%s10516_s29 + $0xae0] sm:$0xff]  ;;  %v1569_v47 = vld [vmem:[%s10516_s29 + $0xaf0] sm:$0xff] }
  0x6c   : > { %v1571_v48 = vld [vmem:[%s10516_s29 + $0xb00] sm:$0xff]  ;;  %1568 = vst [vmem:[%s10521_s30 + $0x570] sm:$0xff] %v1567_v46  ;;  %1570 = vst [vmem:[%s10521_s30 + $0x578] sm:$0xff] %v1569_v47  ;;  %v1573_v49 = vld [vmem:[%s10516_s29 + $0xb10] sm:$0xff] }
  0x6d   : > { %1572 = vst [vmem:[%s10521_s30 + $0x580] sm:$0xff] %v1571_v48  ;;  %v1575_v50 = vld [vmem:[%s10516_s29 + $0xb20] sm:$0xff]  ;;  %v1577_v51 = vld [vmem:[%s10516_s29 + $0xb30] sm:$0xff]  ;;  %1574 = vst [vmem:[%s10521_s30 + $0x588] sm:$0xff] %v1573_v49 }
  0x6e   : > { %1576 = vst [vmem:[%s10521_s30 + $0x590] sm:$0xff] %v1575_v50  ;;  %1578 = vst [vmem:[%s10521_s30 + $0x598] sm:$0xff] %v1577_v51  ;;  %v1579_v52 = vld [vmem:[%s10516_s29 + $0xb40] sm:$0xff]  ;;  %v1581_v53 = vld [vmem:[%s10516_s29 + $0xb50] sm:$0xff] }
  0x6f   : > { %v1583_v54 = vld [vmem:[%s10516_s29 + $0xb60] sm:$0xff]  ;;  %1580 = vst [vmem:[%s10521_s30 + $0x5a0] sm:$0xff] %v1579_v52  ;;  %1582 = vst [vmem:[%s10521_s30 + $0x5a8] sm:$0xff] %v1581_v53  ;;  %v1585_v55 = vld [vmem:[%s10516_s29 + $0xb70] sm:$0xff] }
  0x70   : > { %1584 = vst [vmem:[%s10521_s30 + $0x5b0] sm:$0xff] %v1583_v54  ;;  %v1587_v56 = vld [vmem:[%s10516_s29 + $0xb80] sm:$0xff]  ;;  %v1589_v57 = vld [vmem:[%s10516_s29 + $0xb90] sm:$0xff]  ;;  %1586 = vst [vmem:[%s10521_s30 + $0x5b8] sm:$0xff] %v1585_v55 }
  0x71   : > { %1588 = vst [vmem:[%s10521_s30 + $0x5c0] sm:$0xff] %v1587_v56  ;;  %1590 = vst [vmem:[%s10521_s30 + $0x5c8] sm:$0xff] %v1589_v57  ;;  %v1591_v58 = vld [vmem:[%s10516_s29 + $0xba0] sm:$0xff]  ;;  %v1593_v59 = vld [vmem:[%s10516_s29 + $0xbb0] sm:$0xff] }
  0x72   : > { %v1595_v60 = vld [vmem:[%s10516_s29 + $0xbc0] sm:$0xff]  ;;  %1592 = vst [vmem:[%s10521_s30 + $0x5d0] sm:$0xff] %v1591_v58  ;;  %1594 = vst [vmem:[%s10521_s30 + $0x5d8] sm:$0xff] %v1593_v59  ;;  %v1597_v61 = vld [vmem:[%s10516_s29 + $0xbd0] sm:$0xff] }
  0x73   : > { %1596 = vst [vmem:[%s10521_s30 + $0x5e0] sm:$0xff] %v1595_v60  ;;  %v1599_v62 = vld [vmem:[%s10516_s29 + $0xbe0] sm:$0xff]  ;;  %v1601_v63 = vld [vmem:[%s10516_s29 + $0xbf0] sm:$0xff]  ;;  %1598 = vst [vmem:[%s10521_s30 + $0x5e8] sm:$0xff] %v1597_v61 }
  0x74   : > { %1600 = vst [vmem:[%s10521_s30 + $0x5f0] sm:$0xff] %v1599_v62  ;;  %1602 = vst [vmem:[%s10521_s30 + $0x5f8] sm:$0xff] %v1601_v63  ;;  %v1603_v0 = vld [vmem:[%s10516_s29 + $0xc00] sm:$0xff]  ;;  %v1605_v1 = vld [vmem:[%s10516_s29 + $0xc10] sm:$0xff] }
  0x75   : > { %v1607_v2 = vld [vmem:[%s10516_s29 + $0xc20] sm:$0xff]  ;;  %1604 = vst [vmem:[%s10521_s30 + $0x600] sm:$0xff] %v1603_v0  ;;  %1606 = vst [vmem:[%s10521_s30 + $0x608] sm:$0xff] %v1605_v1  ;;  %v1609_v3 = vld [vmem:[%s10516_s29 + $0xc30] sm:$0xff] }
  0x76   : > { %1608 = vst [vmem:[%s10521_s30 + $0x610] sm:$0xff] %v1607_v2  ;;  %v1611_v4 = vld [vmem:[%s10516_s29 + $0xc40] sm:$0xff]  ;;  %v1613_v5 = vld [vmem:[%s10516_s29 + $0xc50] sm:$0xff]  ;;  %1610 = vst [vmem:[%s10521_s30 + $0x618] sm:$0xff] %v1609_v3 }
  0x77   : > { %1612 = vst [vmem:[%s10521_s30 + $0x620] sm:$0xff] %v1611_v4  ;;  %1614 = vst [vmem:[%s10521_s30 + $0x628] sm:$0xff] %v1613_v5  ;;  %v1615_v6 = vld [vmem:[%s10516_s29 + $0xc60] sm:$0xff]  ;;  %v1617_v7 = vld [vmem:[%s10516_s29 + $0xc70] sm:$0xff] }
  0x78   : > { %v1619_v8 = vld [vmem:[%s10516_s29 + $0xc80] sm:$0xff]  ;;  %1616 = vst [vmem:[%s10521_s30 + $0x630] sm:$0xff] %v1615_v6  ;;  %1618 = vst [vmem:[%s10521_s30 + $0x638] sm:$0xff] %v1617_v7  ;;  %v1621_v9 = vld [vmem:[%s10516_s29 + $0xc90] sm:$0xff] }
  0x79   : > { %1620 = vst [vmem:[%s10521_s30 + $0x640] sm:$0xff] %v1619_v8  ;;  %v1623_v10 = vld [vmem:[%s10516_s29 + $0xca0] sm:$0xff]  ;;  %v1625_v11 = vld [vmem:[%s10516_s29 + $0xcb0] sm:$0xff]  ;;  %1622 = vst [vmem:[%s10521_s30 + $0x648] sm:$0xff] %v1621_v9 }
  0x7a   : > { %1624 = vst [vmem:[%s10521_s30 + $0x650] sm:$0xff] %v1623_v10  ;;  %1626 = vst [vmem:[%s10521_s30 + $0x658] sm:$0xff] %v1625_v11  ;;  %v1627_v12 = vld [vmem:[%s10516_s29 + $0xcc0] sm:$0xff]  ;;  %v1629_v13 = vld [vmem:[%s10516_s29 + $0xcd0] sm:$0xff] }
  0x7b   : > { %v1631_v14 = vld [vmem:[%s10516_s29 + $0xce0] sm:$0xff]  ;;  %1628 = vst [vmem:[%s10521_s30 + $0x660] sm:$0xff] %v1627_v12  ;;  %1630 = vst [vmem:[%s10521_s30 + $0x668] sm:$0xff] %v1629_v13  ;;  %v1633_v15 = vld [vmem:[%s10516_s29 + $0xcf0] sm:$0xff] }
  0x7c   : > { %1632 = vst [vmem:[%s10521_s30 + $0x670] sm:$0xff] %v1631_v14  ;;  %v1635_v16 = vld [vmem:[%s10516_s29 + $0xd00] sm:$0xff]  ;;  %v1637_v17 = vld [vmem:[%s10516_s29 + $0xd10] sm:$0xff]  ;;  %1634 = vst [vmem:[%s10521_s30 + $0x678] sm:$0xff] %v1633_v15 }
  0x7d   : > { %1636 = vst [vmem:[%s10521_s30 + $0x680] sm:$0xff] %v1635_v16  ;;  %1638 = vst [vmem:[%s10521_s30 + $0x688] sm:$0xff] %v1637_v17  ;;  %v1639_v18 = vld [vmem:[%s10516_s29 + $0xd20] sm:$0xff]  ;;  %v1641_v19 = vld [vmem:[%s10516_s29 + $0xd30] sm:$0xff] }
  0x7e   : > { %v1643_v20 = vld [vmem:[%s10516_s29 + $0xd40] sm:$0xff]  ;;  %1640 = vst [vmem:[%s10521_s30 + $0x690] sm:$0xff] %v1639_v18  ;;  %1642 = vst [vmem:[%s10521_s30 + $0x698] sm:$0xff] %v1641_v19  ;;  %v1645_v21 = vld [vmem:[%s10516_s29 + $0xd50] sm:$0xff] }
  0x7f   : > { %1644 = vst [vmem:[%s10521_s30 + $0x6a0] sm:$0xff] %v1643_v20  ;;  %v1647_v22 = vld [vmem:[%s10516_s29 + $0xd60] sm:$0xff]  ;;  %v1649_v23 = vld [vmem:[%s10516_s29 + $0xd70] sm:$0xff]  ;;  %1646 = vst [vmem:[%s10521_s30 + $0x6a8] sm:$0xff] %v1645_v21 }
  0x80   : > { %1648 = vst [vmem:[%s10521_s30 + $0x6b0] sm:$0xff] %v1647_v22  ;;  %1650 = vst [vmem:[%s10521_s30 + $0x6b8] sm:$0xff] %v1649_v23  ;;  %v1651_v24 = vld [vmem:[%s10516_s29 + $0xd80] sm:$0xff]  ;;  %v1653_v25 = vld [vmem:[%s10516_s29 + $0xd90] sm:$0xff] }
  0x81   : > { %v1655_v26 = vld [vmem:[%s10516_s29 + $0xda0] sm:$0xff]  ;;  %1652 = vst [vmem:[%s10521_s30 + $0x6c0] sm:$0xff] %v1651_v24  ;;  %1654 = vst [vmem:[%s10521_s30 + $0x6c8] sm:$0xff] %v1653_v25  ;;  %v1657_v27 = vld [vmem:[%s10516_s29 + $0xdb0] sm:$0xff] }
  0x82   : > { %1656 = vst [vmem:[%s10521_s30 + $0x6d0] sm:$0xff] %v1655_v26  ;;  %v1659_v28 = vld [vmem:[%s10516_s29 + $0xdc0] sm:$0xff]  ;;  %v1661_v29 = vld [vmem:[%s10516_s29 + $0xdd0] sm:$0xff]  ;;  %1658 = vst [vmem:[%s10521_s30 + $0x6d8] sm:$0xff] %v1657_v27 }
  0x83   : > { %1660 = vst [vmem:[%s10521_s30 + $0x6e0] sm:$0xff] %v1659_v28  ;;  %1662 = vst [vmem:[%s10521_s30 + $0x6e8] sm:$0xff] %v1661_v29  ;;  %v1663_v30 = vld [vmem:[%s10516_s29 + $0xde0] sm:$0xff]  ;;  %v1665_v31 = vld [vmem:[%s10516_s29 + $0xdf0] sm:$0xff] }
  0x84   : > { %v1667_v32 = vld [vmem:[%s10516_s29 + $0xe00] sm:$0xff]  ;;  %1664 = vst [vmem:[%s10521_s30 + $0x6f0] sm:$0xff] %v1663_v30  ;;  %1666 = vst [vmem:[%s10521_s30 + $0x6f8] sm:$0xff] %v1665_v31  ;;  %v1669_v33 = vld [vmem:[%s10516_s29 + $0xe10] sm:$0xff] }
  0x85   : > { %1668 = vst [vmem:[%s10521_s30 + $0x700] sm:$0xff] %v1667_v32  ;;  %v1671_v34 = vld [vmem:[%s10516_s29 + $0xe20] sm:$0xff]  ;;  %v1673_v35 = vld [vmem:[%s10516_s29 + $0xe30] sm:$0xff]  ;;  %1670 = vst [vmem:[%s10521_s30 + $0x708] sm:$0xff] %v1669_v33 }
  0x86   : > { %1672 = vst [vmem:[%s10521_s30 + $0x710] sm:$0xff] %v1671_v34  ;;  %1674 = vst [vmem:[%s10521_s30 + $0x718] sm:$0xff] %v1673_v35  ;;  %v1675_v36 = vld [vmem:[%s10516_s29 + $0xe40] sm:$0xff]  ;;  %v1677_v37 = vld [vmem:[%s10516_s29 + $0xe50] sm:$0xff] }
  0x87   : > { %v1679_v38 = vld [vmem:[%s10516_s29 + $0xe60] sm:$0xff]  ;;  %1676 = vst [vmem:[%s10521_s30 + $0x720] sm:$0xff] %v1675_v36  ;;  %1678 = vst [vmem:[%s10521_s30 + $0x728] sm:$0xff] %v1677_v37  ;;  %v1681_v39 = vld [vmem:[%s10516_s29 + $0xe70] sm:$0xff] }
  0x88   : > { %1680 = vst [vmem:[%s10521_s30 + $0x730] sm:$0xff] %v1679_v38  ;;  %v1683_v40 = vld [vmem:[%s10516_s29 + $0xe80] sm:$0xff]  ;;  %v1685_v41 = vld [vmem:[%s10516_s29 + $0xe90] sm:$0xff]  ;;  %1682 = vst [vmem:[%s10521_s30 + $0x738] sm:$0xff] %v1681_v39 }
  0x89   : > { %1684 = vst [vmem:[%s10521_s30 + $0x740] sm:$0xff] %v1683_v40  ;;  %1686 = vst [vmem:[%s10521_s30 + $0x748] sm:$0xff] %v1685_v41  ;;  %v1687_v42 = vld [vmem:[%s10516_s29 + $0xea0] sm:$0xff]  ;;  %v1689_v43 = vld [vmem:[%s10516_s29 + $0xeb0] sm:$0xff] }
  0x8a   : > { %v1691_v44 = vld [vmem:[%s10516_s29 + $0xec0] sm:$0xff]  ;;  %1688 = vst [vmem:[%s10521_s30 + $0x750] sm:$0xff] %v1687_v42  ;;  %1690 = vst [vmem:[%s10521_s30 + $0x758] sm:$0xff] %v1689_v43  ;;  %v1693_v45 = vld [vmem:[%s10516_s29 + $0xed0] sm:$0xff] }
  0x8b   : > { %1692 = vst [vmem:[%s10521_s30 + $0x760] sm:$0xff] %v1691_v44  ;;  %v1695_v46 = vld [vmem:[%s10516_s29 + $0xee0] sm:$0xff]  ;;  %v1697_v47 = vld [vmem:[%s10516_s29 + $0xef0] sm:$0xff]  ;;  %1694 = vst [vmem:[%s10521_s30 + $0x768] sm:$0xff] %v1693_v45 }
  0x8c   : > { %1696 = vst [vmem:[%s10521_s30 + $0x770] sm:$0xff] %v1695_v46  ;;  %1698 = vst [vmem:[%s10521_s30 + $0x778] sm:$0xff] %v1697_v47  ;;  %v1699_v48 = vld [vmem:[%s10516_s29 + $0xf00] sm:$0xff]  ;;  %v1701_v49 = vld [vmem:[%s10516_s29 + $0xf10] sm:$0xff] }
  0x8d   : > { %v1703_v50 = vld [vmem:[%s10516_s29 + $0xf20] sm:$0xff]  ;;  %1700 = vst [vmem:[%s10521_s30 + $0x780] sm:$0xff] %v1699_v48  ;;  %1702 = vst [vmem:[%s10521_s30 + $0x788] sm:$0xff] %v1701_v49  ;;  %v1705_v51 = vld [vmem:[%s10516_s29 + $0xf30] sm:$0xff] }
  0x8e   : > { %1704 = vst [vmem:[%s10521_s30 + $0x790] sm:$0xff] %v1703_v50  ;;  %v1707_v52 = vld [vmem:[%s10516_s29 + $0xf40] sm:$0xff]  ;;  %v1709_v53 = vld [vmem:[%s10516_s29 + $0xf50] sm:$0xff]  ;;  %1706 = vst [vmem:[%s10521_s30 + $0x798] sm:$0xff] %v1705_v51 }
  0x8f   : > { %1708 = vst [vmem:[%s10521_s30 + $0x7a0] sm:$0xff] %v1707_v52  ;;  %1710 = vst [vmem:[%s10521_s30 + $0x7a8] sm:$0xff] %v1709_v53  ;;  %v1711_v54 = vld [vmem:[%s10516_s29 + $0xf60] sm:$0xff]  ;;  %v1713_v55 = vld [vmem:[%s10516_s29 + $0xf70] sm:$0xff] }
  0x90   : > { %v1715_v56 = vld [vmem:[%s10516_s29 + $0xf80] sm:$0xff]  ;;  %1712 = vst [vmem:[%s10521_s30 + $0x7b0] sm:$0xff] %v1711_v54  ;;  %1714 = vst [vmem:[%s10521_s30 + $0x7b8] sm:$0xff] %v1713_v55  ;;  %v1717_v57 = vld [vmem:[%s10516_s29 + $0xf90] sm:$0xff] }
  0x91   : > { %1716 = vst [vmem:[%s10521_s30 + $0x7c0] sm:$0xff] %v1715_v56  ;;  %v1719_v58 = vld [vmem:[%s10516_s29 + $0xfa0] sm:$0xff]  ;;  %v1721_v59 = vld [vmem:[%s10516_s29 + $0xfb0] sm:$0xff]  ;;  %1718 = vst [vmem:[%s10521_s30 + $0x7c8] sm:$0xff] %v1717_v57 }
  0x92   : > { %1720 = vst [vmem:[%s10521_s30 + $0x7d0] sm:$0xff] %v1719_v58  ;;  %1722 = vst [vmem:[%s10521_s30 + $0x7d8] sm:$0xff] %v1721_v59  ;;  %v1723_v60 = vld [vmem:[%s10516_s29 + $0xfc0] sm:$0xff]  ;;  %v1725_v61 = vld [vmem:[%s10516_s29 + $0xfd0] sm:$0xff] }
  0x93   : > { %v1727_v62 = vld [vmem:[%s10516_s29 + $0xfe0] sm:$0xff]  ;;  %1724 = vst [vmem:[%s10521_s30 + $0x7e0] sm:$0xff] %v1723_v60  ;;  %1726 = vst [vmem:[%s10521_s30 + $0x7e8] sm:$0xff] %v1725_v61  ;;  %v1729_v63 = vld [vmem:[%s10516_s29 + $0xff0] sm:$0xff] }
  0x94   : > { %1728 = vst [vmem:[%s10521_s30 + $0x7f0] sm:$0xff] %v1727_v62  ;;  %v1731_v0 = vld [vmem:[%s10516_s29 + $0x1000] sm:$0xff]  ;;  %v1733_v1 = vld [vmem:[%s10516_s29 + $0x1010] sm:$0xff]  ;;  %1730 = vst [vmem:[%s10521_s30 + $0x7f8] sm:$0xff] %v1729_v63 }
  0x95   : > { %1732 = vst [vmem:[%s10521_s30 + $0x800] sm:$0xff] %v1731_v0  ;;  %1734 = vst [vmem:[%s10521_s30 + $0x808] sm:$0xff] %v1733_v1  ;;  %v1735_v2 = vld [vmem:[%s10516_s29 + $0x1020] sm:$0xff]  ;;  %v1737_v3 = vld [vmem:[%s10516_s29 + $0x1030] sm:$0xff] }
  0x96   : > { %v1739_v4 = vld [vmem:[%s10516_s29 + $0x1040] sm:$0xff]  ;;  %1736 = vst [vmem:[%s10521_s30 + $0x810] sm:$0xff] %v1735_v2  ;;  %1738 = vst [vmem:[%s10521_s30 + $0x818] sm:$0xff] %v1737_v3  ;;  %v1741_v5 = vld [vmem:[%s10516_s29 + $0x1050] sm:$0xff] }
  0x97   : > { %1740 = vst [vmem:[%s10521_s30 + $0x820] sm:$0xff] %v1739_v4  ;;  %v1743_v6 = vld [vmem:[%s10516_s29 + $0x1060] sm:$0xff]  ;;  %v1745_v7 = vld [vmem:[%s10516_s29 + $0x1070] sm:$0xff]  ;;  %1742 = vst [vmem:[%s10521_s30 + $0x828] sm:$0xff] %v1741_v5 }
  0x98   : > { %1744 = vst [vmem:[%s10521_s30 + $0x830] sm:$0xff] %v1743_v6  ;;  %1746 = vst [vmem:[%s10521_s30 + $0x838] sm:$0xff] %v1745_v7  ;;  %v1747_v8 = vld [vmem:[%s10516_s29 + $0x1080] sm:$0xff]  ;;  %v1749_v9 = vld [vmem:[%s10516_s29 + $0x1090] sm:$0xff] }
  0x99   : > { %v1751_v10 = vld [vmem:[%s10516_s29 + $0x10a0] sm:$0xff]  ;;  %1748 = vst [vmem:[%s10521_s30 + $0x840] sm:$0xff] %v1747_v8  ;;  %1750 = vst [vmem:[%s10521_s30 + $0x848] sm:$0xff] %v1749_v9  ;;  %v1753_v11 = vld [vmem:[%s10516_s29 + $0x10b0] sm:$0xff] }
  0x9a   : > { %1752 = vst [vmem:[%s10521_s30 + $0x850] sm:$0xff] %v1751_v10  ;;  %v1755_v12 = vld [vmem:[%s10516_s29 + $0x10c0] sm:$0xff]  ;;  %v1757_v13 = vld [vmem:[%s10516_s29 + $0x10d0] sm:$0xff]  ;;  %1754 = vst [vmem:[%s10521_s30 + $0x858] sm:$0xff] %v1753_v11 }
  0x9b   : > { %1756 = vst [vmem:[%s10521_s30 + $0x860] sm:$0xff] %v1755_v12  ;;  %1758 = vst [vmem:[%s10521_s30 + $0x868] sm:$0xff] %v1757_v13  ;;  %v1759_v14 = vld [vmem:[%s10516_s29 + $0x10e0] sm:$0xff]  ;;  %v1761_v15 = vld [vmem:[%s10516_s29 + $0x10f0] sm:$0xff] }
  0x9c   : > { %v1763_v16 = vld [vmem:[%s10516_s29 + $0x1100] sm:$0xff]  ;;  %1760 = vst [vmem:[%s10521_s30 + $0x870] sm:$0xff] %v1759_v14  ;;  %1762 = vst [vmem:[%s10521_s30 + $0x878] sm:$0xff] %v1761_v15  ;;  %v1765_v17 = vld [vmem:[%s10516_s29 + $0x1110] sm:$0xff] }
  0x9d   : > { %1764 = vst [vmem:[%s10521_s30 + $0x880] sm:$0xff] %v1763_v16  ;;  %v1767_v18 = vld [vmem:[%s10516_s29 + $0x1120] sm:$0xff]  ;;  %v1769_v19 = vld [vmem:[%s10516_s29 + $0x1130] sm:$0xff]  ;;  %1766 = vst [vmem:[%s10521_s30 + $0x888] sm:$0xff] %v1765_v17 }
  0x9e   : > { %1768 = vst [vmem:[%s10521_s30 + $0x890] sm:$0xff] %v1767_v18  ;;  %1770 = vst [vmem:[%s10521_s30 + $0x898] sm:$0xff] %v1769_v19  ;;  %v1771_v20 = vld [vmem:[%s10516_s29 + $0x1140] sm:$0xff]  ;;  %v1773_v21 = vld [vmem:[%s10516_s29 + $0x1150] sm:$0xff] }
  0x9f   : > { %v1775_v22 = vld [vmem:[%s10516_s29 + $0x1160] sm:$0xff]  ;;  %1772 = vst [vmem:[%s10521_s30 + $0x8a0] sm:$0xff] %v1771_v20  ;;  %1774 = vst [vmem:[%s10521_s30 + $0x8a8] sm:$0xff] %v1773_v21  ;;  %v1777_v23 = vld [vmem:[%s10516_s29 + $0x1170] sm:$0xff] }
  0xa0   : > { %1776 = vst [vmem:[%s10521_s30 + $0x8b0] sm:$0xff] %v1775_v22  ;;  %v1779_v24 = vld [vmem:[%s10516_s29 + $0x1180] sm:$0xff]  ;;  %v1781_v25 = vld [vmem:[%s10516_s29 + $0x1190] sm:$0xff]  ;;  %1778 = vst [vmem:[%s10521_s30 + $0x8b8] sm:$0xff] %v1777_v23 }
  0xa1   : > { %1780 = vst [vmem:[%s10521_s30 + $0x8c0] sm:$0xff] %v1779_v24  ;;  %1782 = vst [vmem:[%s10521_s30 + $0x8c8] sm:$0xff] %v1781_v25  ;;  %v1783_v26 = vld [vmem:[%s10516_s29 + $0x11a0] sm:$0xff]  ;;  %v1785_v27 = vld [vmem:[%s10516_s29 + $0x11b0] sm:$0xff] }
  0xa2   : > { %v1787_v28 = vld [vmem:[%s10516_s29 + $0x11c0] sm:$0xff]  ;;  %1784 = vst [vmem:[%s10521_s30 + $0x8d0] sm:$0xff] %v1783_v26  ;;  %1786 = vst [vmem:[%s10521_s30 + $0x8d8] sm:$0xff] %v1785_v27  ;;  %v1789_v29 = vld [vmem:[%s10516_s29 + $0x11d0] sm:$0xff] }
  0xa3   : > { %1788 = vst [vmem:[%s10521_s30 + $0x8e0] sm:$0xff] %v1787_v28  ;;  %v1791_v30 = vld [vmem:[%s10516_s29 + $0x11e0] sm:$0xff]  ;;  %v1793_v31 = vld [vmem:[%s10516_s29 + $0x11f0] sm:$0xff]  ;;  %1790 = vst [vmem:[%s10521_s30 + $0x8e8] sm:$0xff] %v1789_v29 }
  0xa4   : > { %1792 = vst [vmem:[%s10521_s30 + $0x8f0] sm:$0xff] %v1791_v30  ;;  %1794 = vst [vmem:[%s10521_s30 + $0x8f8] sm:$0xff] %v1793_v31  ;;  %v1795_v32 = vld [vmem:[%s10516_s29 + $0x1200] sm:$0xff]  ;;  %v1797_v33 = vld [vmem:[%s10516_s29 + $0x1210] sm:$0xff] }
  0xa5   : > { %v1799_v34 = vld [vmem:[%s10516_s29 + $0x1220] sm:$0xff]  ;;  %1796 = vst [vmem:[%s10521_s30 + $0x900] sm:$0xff] %v1795_v32  ;;  %1798 = vst [vmem:[%s10521_s30 + $0x908] sm:$0xff] %v1797_v33  ;;  %v1801_v35 = vld [vmem:[%s10516_s29 + $0x1230] sm:$0xff] }
  0xa6   : > { %1800 = vst [vmem:[%s10521_s30 + $0x910] sm:$0xff] %v1799_v34  ;;  %v1803_v36 = vld [vmem:[%s10516_s29 + $0x1240] sm:$0xff]  ;;  %v1805_v37 = vld [vmem:[%s10516_s29 + $0x1250] sm:$0xff]  ;;  %1802 = vst [vmem:[%s10521_s30 + $0x918] sm:$0xff] %v1801_v35 }
  0xa7   : > { %1804 = vst [vmem:[%s10521_s30 + $0x920] sm:$0xff] %v1803_v36  ;;  %1806 = vst [vmem:[%s10521_s30 + $0x928] sm:$0xff] %v1805_v37  ;;  %v1807_v38 = vld [vmem:[%s10516_s29 + $0x1260] sm:$0xff]  ;;  %v1809_v39 = vld [vmem:[%s10516_s29 + $0x1270] sm:$0xff] }
  0xa8   : > { %v1811_v40 = vld [vmem:[%s10516_s29 + $0x1280] sm:$0xff]  ;;  %1808 = vst [vmem:[%s10521_s30 + $0x930] sm:$0xff] %v1807_v38  ;;  %1810 = vst [vmem:[%s10521_s30 + $0x938] sm:$0xff] %v1809_v39  ;;  %v1813_v41 = vld [vmem:[%s10516_s29 + $0x1290] sm:$0xff] }
  0xa9   : > { %1812 = vst [vmem:[%s10521_s30 + $0x940] sm:$0xff] %v1811_v40  ;;  %v1815_v42 = vld [vmem:[%s10516_s29 + $0x12a0] sm:$0xff]  ;;  %v1817_v43 = vld [vmem:[%s10516_s29 + $0x12b0] sm:$0xff]  ;;  %1814 = vst [vmem:[%s10521_s30 + $0x948] sm:$0xff] %v1813_v41 }
  0xaa   : > { %1816 = vst [vmem:[%s10521_s30 + $0x950] sm:$0xff] %v1815_v42  ;;  %1818 = vst [vmem:[%s10521_s30 + $0x958] sm:$0xff] %v1817_v43  ;;  %v1819_v44 = vld [vmem:[%s10516_s29 + $0x12c0] sm:$0xff]  ;;  %v1821_v45 = vld [vmem:[%s10516_s29 + $0x12d0] sm:$0xff] }
  0xab   : > { %v1823_v46 = vld [vmem:[%s10516_s29 + $0x12e0] sm:$0xff]  ;;  %1820 = vst [vmem:[%s10521_s30 + $0x960] sm:$0xff] %v1819_v44  ;;  %1822 = vst [vmem:[%s10521_s30 + $0x968] sm:$0xff] %v1821_v45  ;;  %v1825_v47 = vld [vmem:[%s10516_s29 + $0x12f0] sm:$0xff] }
  0xac   : > { %1824 = vst [vmem:[%s10521_s30 + $0x970] sm:$0xff] %v1823_v46  ;;  %v1827_v48 = vld [vmem:[%s10516_s29 + $0x1300] sm:$0xff]  ;;  %v1829_v49 = vld [vmem:[%s10516_s29 + $0x1310] sm:$0xff]  ;;  %1826 = vst [vmem:[%s10521_s30 + $0x978] sm:$0xff] %v1825_v47 }
  0xad   : > { %1828 = vst [vmem:[%s10521_s30 + $0x980] sm:$0xff] %v1827_v48  ;;  %1830 = vst [vmem:[%s10521_s30 + $0x988] sm:$0xff] %v1829_v49  ;;  %v1831_v50 = vld [vmem:[%s10516_s29 + $0x1320] sm:$0xff]  ;;  %v1833_v51 = vld [vmem:[%s10516_s29 + $0x1330] sm:$0xff] }
  0xae   : > { %v1835_v52 = vld [vmem:[%s10516_s29 + $0x1340] sm:$0xff]  ;;  %1832 = vst [vmem:[%s10521_s30 + $0x990] sm:$0xff] %v1831_v50  ;;  %1834 = vst [vmem:[%s10521_s30 + $0x998] sm:$0xff] %v1833_v51  ;;  %v1837_v53 = vld [vmem:[%s10516_s29 + $0x1350] sm:$0xff] }
  0xaf   : > { %1836 = vst [vmem:[%s10521_s30 + $0x9a0] sm:$0xff] %v1835_v52  ;;  %v1839_v54 = vld [vmem:[%s10516_s29 + $0x1360] sm:$0xff]  ;;  %v1841_v55 = vld [vmem:[%s10516_s29 + $0x1370] sm:$0xff]  ;;  %1838 = vst [vmem:[%s10521_s30 + $0x9a8] sm:$0xff] %v1837_v53 }
  0xb0   : > { %1840 = vst [vmem:[%s10521_s30 + $0x9b0] sm:$0xff] %v1839_v54  ;;  %1842 = vst [vmem:[%s10521_s30 + $0x9b8] sm:$0xff] %v1841_v55  ;;  %v1843_v56 = vld [vmem:[%s10516_s29 + $0x1380] sm:$0xff]  ;;  %v1845_v57 = vld [vmem:[%s10516_s29 + $0x1390] sm:$0xff] }
  0xb1   : > { %v1847_v58 = vld [vmem:[%s10516_s29 + $0x13a0] sm:$0xff]  ;;  %1844 = vst [vmem:[%s10521_s30 + $0x9c0] sm:$0xff] %v1843_v56  ;;  %1846 = vst [vmem:[%s10521_s30 + $0x9c8] sm:$0xff] %v1845_v57  ;;  %v1849_v59 = vld [vmem:[%s10516_s29 + $0x13b0] sm:$0xff] }
  0xb2   : > { %1848 = vst [vmem:[%s10521_s30 + $0x9d0] sm:$0xff] %v1847_v58  ;;  %v1851_v60 = vld [vmem:[%s10516_s29 + $0x13c0] sm:$0xff]  ;;  %v1853_v61 = vld [vmem:[%s10516_s29 + $0x13d0] sm:$0xff]  ;;  %1850 = vst [vmem:[%s10521_s30 + $0x9d8] sm:$0xff] %v1849_v59 }
  0xb3   : > { %1852 = vst [vmem:[%s10521_s30 + $0x9e0] sm:$0xff] %v1851_v60  ;;  %1854 = vst [vmem:[%s10521_s30 + $0x9e8] sm:$0xff] %v1853_v61  ;;  %v1855_v62 = vld [vmem:[%s10516_s29 + $0x13e0] sm:$0xff]  ;;  %v1857_v63 = vld [vmem:[%s10516_s29 + $0x13f0] sm:$0xff] }
  0xb4   : > { %v1859_v0 = vld [vmem:[%s10516_s29 + $0x1400] sm:$0xff]  ;;  %1856 = vst [vmem:[%s10521_s30 + $0x9f0] sm:$0xff] %v1855_v62  ;;  %1858 = vst [vmem:[%s10521_s30 + $0x9f8] sm:$0xff] %v1857_v63  ;;  %v1861_v1 = vld [vmem:[%s10516_s29 + $0x1410] sm:$0xff] }
  0xb5   : > { %1860 = vst [vmem:[%s10521_s30 + $0xa00] sm:$0xff] %v1859_v0  ;;  %v1863_v2 = vld [vmem:[%s10516_s29 + $0x1420] sm:$0xff]  ;;  %v1865_v3 = vld [vmem:[%s10516_s29 + $0x1430] sm:$0xff]  ;;  %1862 = vst [vmem:[%s10521_s30 + $0xa08] sm:$0xff] %v1861_v1 }
  0xb6   : > { %1864 = vst [vmem:[%s10521_s30 + $0xa10] sm:$0xff] %v1863_v2  ;;  %1866 = vst [vmem:[%s10521_s30 + $0xa18] sm:$0xff] %v1865_v3  ;;  %v1867_v4 = vld [vmem:[%s10516_s29 + $0x1440] sm:$0xff]  ;;  %v1869_v5 = vld [vmem:[%s10516_s29 + $0x1450] sm:$0xff] }
  0xb7   : > { %v1871_v6 = vld [vmem:[%s10516_s29 + $0x1460] sm:$0xff]  ;;  %1868 = vst [vmem:[%s10521_s30 + $0xa20] sm:$0xff] %v1867_v4  ;;  %1870 = vst [vmem:[%s10521_s30 + $0xa28] sm:$0xff] %v1869_v5  ;;  %v1873_v7 = vld [vmem:[%s10516_s29 + $0x1470] sm:$0xff] }
  0xb8   : > { %1872 = vst [vmem:[%s10521_s30 + $0xa30] sm:$0xff] %v1871_v6  ;;  %v1875_v8 = vld [vmem:[%s10516_s29 + $0x1480] sm:$0xff]  ;;  %v1877_v9 = vld [vmem:[%s10516_s29 + $0x1490] sm:$0xff]  ;;  %1874 = vst [vmem:[%s10521_s30 + $0xa38] sm:$0xff] %v1873_v7 }
  0xb9   : > { %1876 = vst [vmem:[%s10521_s30 + $0xa40] sm:$0xff] %v1875_v8  ;;  %1878 = vst [vmem:[%s10521_s30 + $0xa48] sm:$0xff] %v1877_v9  ;;  %v1879_v10 = vld [vmem:[%s10516_s29 + $0x14a0] sm:$0xff]  ;;  %v1881_v11 = vld [vmem:[%s10516_s29 + $0x14b0] sm:$0xff] }
  0xba   : > { %v1883_v12 = vld [vmem:[%s10516_s29 + $0x14c0] sm:$0xff]  ;;  %1880 = vst [vmem:[%s10521_s30 + $0xa50] sm:$0xff] %v1879_v10  ;;  %1882 = vst [vmem:[%s10521_s30 + $0xa58] sm:$0xff] %v1881_v11  ;;  %v1885_v13 = vld [vmem:[%s10516_s29 + $0x14d0] sm:$0xff] }
  0xbb   : > { %1884 = vst [vmem:[%s10521_s30 + $0xa60] sm:$0xff] %v1883_v12  ;;  %v1887_v14 = vld [vmem:[%s10516_s29 + $0x14e0] sm:$0xff]  ;;  %v1889_v15 = vld [vmem:[%s10516_s29 + $0x14f0] sm:$0xff]  ;;  %1886 = vst [vmem:[%s10521_s30 + $0xa68] sm:$0xff] %v1885_v13 }
  0xbc   : > { %1888 = vst [vmem:[%s10521_s30 + $0xa70] sm:$0xff] %v1887_v14  ;;  %1890 = vst [vmem:[%s10521_s30 + $0xa78] sm:$0xff] %v1889_v15  ;;  %v1891_v16 = vld [vmem:[%s10516_s29 + $0x1500] sm:$0xff]  ;;  %v1893_v17 = vld [vmem:[%s10516_s29 + $0x1510] sm:$0xff] }
  0xbd   : > { %v1895_v18 = vld [vmem:[%s10516_s29 + $0x1520] sm:$0xff]  ;;  %1892 = vst [vmem:[%s10521_s30 + $0xa80] sm:$0xff] %v1891_v16  ;;  %1894 = vst [vmem:[%s10521_s30 + $0xa88] sm:$0xff] %v1893_v17  ;;  %v1897_v19 = vld [vmem:[%s10516_s29 + $0x1530] sm:$0xff] }
  0xbe   : > { %1896 = vst [vmem:[%s10521_s30 + $0xa90] sm:$0xff] %v1895_v18  ;;  %v1899_v20 = vld [vmem:[%s10516_s29 + $0x1540] sm:$0xff]  ;;  %v1901_v21 = vld [vmem:[%s10516_s29 + $0x1550] sm:$0xff]  ;;  %1898 = vst [vmem:[%s10521_s30 + $0xa98] sm:$0xff] %v1897_v19 }
  0xbf   : > { %1900 = vst [vmem:[%s10521_s30 + $0xaa0] sm:$0xff] %v1899_v20  ;;  %1902 = vst [vmem:[%s10521_s30 + $0xaa8] sm:$0xff] %v1901_v21  ;;  %v1903_v22 = vld [vmem:[%s10516_s29 + $0x1560] sm:$0xff]  ;;  %v1905_v23 = vld [vmem:[%s10516_s29 + $0x1570] sm:$0xff] }
  0xc0   : > { %v1907_v24 = vld [vmem:[%s10516_s29 + $0x1580] sm:$0xff]  ;;  %1904 = vst [vmem:[%s10521_s30 + $0xab0] sm:$0xff] %v1903_v22  ;;  %1906 = vst [vmem:[%s10521_s30 + $0xab8] sm:$0xff] %v1905_v23  ;;  %v1909_v25 = vld [vmem:[%s10516_s29 + $0x1590] sm:$0xff] }
  0xc1   : > { %1908 = vst [vmem:[%s10521_s30 + $0xac0] sm:$0xff] %v1907_v24  ;;  %v1911_v26 = vld [vmem:[%s10516_s29 + $0x15a0] sm:$0xff]  ;;  %v1913_v27 = vld [vmem:[%s10516_s29 + $0x15b0] sm:$0xff]  ;;  %1910 = vst [vmem:[%s10521_s30 + $0xac8] sm:$0xff] %v1909_v25 }
  0xc2   : > { %1912 = vst [vmem:[%s10521_s30 + $0xad0] sm:$0xff] %v1911_v26  ;;  %1914 = vst [vmem:[%s10521_s30 + $0xad8] sm:$0xff] %v1913_v27  ;;  %v1915_v28 = vld [vmem:[%s10516_s29 + $0x15c0] sm:$0xff]  ;;  %v1917_v29 = vld [vmem:[%s10516_s29 + $0x15d0] sm:$0xff] }
  0xc3   : > { %v1919_v30 = vld [vmem:[%s10516_s29 + $0x15e0] sm:$0xff]  ;;  %1916 = vst [vmem:[%s10521_s30 + $0xae0] sm:$0xff] %v1915_v28  ;;  %1918 = vst [vmem:[%s10521_s30 + $0xae8] sm:$0xff] %v1917_v29  ;;  %v1921_v31 = vld [vmem:[%s10516_s29 + $0x15f0] sm:$0xff] }
  0xc4   : > { %1920 = vst [vmem:[%s10521_s30 + $0xaf0] sm:$0xff] %v1919_v30  ;;  %v1923_v32 = vld [vmem:[%s10516_s29 + $0x1600] sm:$0xff]  ;;  %v1925_v33 = vld [vmem:[%s10516_s29 + $0x1610] sm:$0xff]  ;;  %1922 = vst [vmem:[%s10521_s30 + $0xaf8] sm:$0xff] %v1921_v31 }
  0xc5   : > { %1924 = vst [vmem:[%s10521_s30 + $0xb00] sm:$0xff] %v1923_v32  ;;  %1926 = vst [vmem:[%s10521_s30 + $0xb08] sm:$0xff] %v1925_v33  ;;  %v1927_v34 = vld [vmem:[%s10516_s29 + $0x1620] sm:$0xff]  ;;  %v1929_v35 = vld [vmem:[%s10516_s29 + $0x1630] sm:$0xff] }
  0xc6   : > { %v1931_v36 = vld [vmem:[%s10516_s29 + $0x1640] sm:$0xff]  ;;  %1928 = vst [vmem:[%s10521_s30 + $0xb10] sm:$0xff] %v1927_v34  ;;  %1930 = vst [vmem:[%s10521_s30 + $0xb18] sm:$0xff] %v1929_v35  ;;  %v1933_v37 = vld [vmem:[%s10516_s29 + $0x1650] sm:$0xff] }
  0xc7   : > { %1932 = vst [vmem:[%s10521_s30 + $0xb20] sm:$0xff] %v1931_v36  ;;  %v1935_v38 = vld [vmem:[%s10516_s29 + $0x1660] sm:$0xff]  ;;  %v1937_v39 = vld [vmem:[%s10516_s29 + $0x1670] sm:$0xff]  ;;  %1934 = vst [vmem:[%s10521_s30 + $0xb28] sm:$0xff] %v1933_v37 }
  0xc8   : > { %1936 = vst [vmem:[%s10521_s30 + $0xb30] sm:$0xff] %v1935_v38  ;;  %1938 = vst [vmem:[%s10521_s30 + $0xb38] sm:$0xff] %v1937_v39  ;;  %v1939_v40 = vld [vmem:[%s10516_s29 + $0x1680] sm:$0xff]  ;;  %v1941_v41 = vld [vmem:[%s10516_s29 + $0x1690] sm:$0xff] }
  0xc9   : > { %v1943_v42 = vld [vmem:[%s10516_s29 + $0x16a0] sm:$0xff]  ;;  %1940 = vst [vmem:[%s10521_s30 + $0xb40] sm:$0xff] %v1939_v40  ;;  %1942 = vst [vmem:[%s10521_s30 + $0xb48] sm:$0xff] %v1941_v41  ;;  %v1945_v43 = vld [vmem:[%s10516_s29 + $0x16b0] sm:$0xff] }
  0xca   : > { %1944 = vst [vmem:[%s10521_s30 + $0xb50] sm:$0xff] %v1943_v42  ;;  %v1947_v44 = vld [vmem:[%s10516_s29 + $0x16c0] sm:$0xff]  ;;  %v1949_v45 = vld [vmem:[%s10516_s29 + $0x16d0] sm:$0xff]  ;;  %1946 = vst [vmem:[%s10521_s30 + $0xb58] sm:$0xff] %v1945_v43 }
  0xcb   : > { %1948 = vst [vmem:[%s10521_s30 + $0xb60] sm:$0xff] %v1947_v44  ;;  %1950 = vst [vmem:[%s10521_s30 + $0xb68] sm:$0xff] %v1949_v45  ;;  %v1951_v46 = vld [vmem:[%s10516_s29 + $0x16e0] sm:$0xff]  ;;  %v1953_v47 = vld [vmem:[%s10516_s29 + $0x16f0] sm:$0xff] }
  0xcc   : > { %v1955_v48 = vld [vmem:[%s10516_s29 + $0x1700] sm:$0xff]  ;;  %1952 = vst [vmem:[%s10521_s30 + $0xb70] sm:$0xff] %v1951_v46  ;;  %1954 = vst [vmem:[%s10521_s30 + $0xb78] sm:$0xff] %v1953_v47  ;;  %v1957_v49 = vld [vmem:[%s10516_s29 + $0x1710] sm:$0xff] }
  0xcd   : > { %1956 = vst [vmem:[%s10521_s30 + $0xb80] sm:$0xff] %v1955_v48  ;;  %v1959_v50 = vld [vmem:[%s10516_s29 + $0x1720] sm:$0xff]  ;;  %v1961_v51 = vld [vmem:[%s10516_s29 + $0x1730] sm:$0xff]  ;;  %1958 = vst [vmem:[%s10521_s30 + $0xb88] sm:$0xff] %v1957_v49 }
  0xce   : > { %1960 = vst [vmem:[%s10521_s30 + $0xb90] sm:$0xff] %v1959_v50  ;;  %1962 = vst [vmem:[%s10521_s30 + $0xb98] sm:$0xff] %v1961_v51  ;;  %v1963_v52 = vld [vmem:[%s10516_s29 + $0x1740] sm:$0xff]  ;;  %v1965_v53 = vld [vmem:[%s10516_s29 + $0x1750] sm:$0xff] }
  0xcf   : > { %v1967_v54 = vld [vmem:[%s10516_s29 + $0x1760] sm:$0xff]  ;;  %1964 = vst [vmem:[%s10521_s30 + $0xba0] sm:$0xff] %v1963_v52  ;;  %1966 = vst [vmem:[%s10521_s30 + $0xba8] sm:$0xff] %v1965_v53  ;;  %v1969_v55 = vld [vmem:[%s10516_s29 + $0x1770] sm:$0xff] }
  0xd0   : > { %1968 = vst [vmem:[%s10521_s30 + $0xbb0] sm:$0xff] %v1967_v54  ;;  %v1971_v56 = vld [vmem:[%s10516_s29 + $0x1780] sm:$0xff]  ;;  %v1973_v57 = vld [vmem:[%s10516_s29 + $0x1790] sm:$0xff]  ;;  %1970 = vst [vmem:[%s10521_s30 + $0xbb8] sm:$0xff] %v1969_v55 }
  0xd1   : > { %1972 = vst [vmem:[%s10521_s30 + $0xbc0] sm:$0xff] %v1971_v56  ;;  %1974 = vst [vmem:[%s10521_s30 + $0xbc8] sm:$0xff] %v1973_v57  ;;  %v1975_v58 = vld [vmem:[%s10516_s29 + $0x17a0] sm:$0xff]  ;;  %v1977_v59 = vld [vmem:[%s10516_s29 + $0x17b0] sm:$0xff] }
  0xd2   : > { %v1979_v60 = vld [vmem:[%s10516_s29 + $0x17c0] sm:$0xff]  ;;  %1976 = vst [vmem:[%s10521_s30 + $0xbd0] sm:$0xff] %v1975_v58  ;;  %1978 = vst [vmem:[%s10521_s30 + $0xbd8] sm:$0xff] %v1977_v59  ;;  %v1981_v61 = vld [vmem:[%s10516_s29 + $0x17d0] sm:$0xff] }
  0xd3   : > { %1980 = vst [vmem:[%s10521_s30 + $0xbe0] sm:$0xff] %v1979_v60  ;;  %v1983_v62 = vld [vmem:[%s10516_s29 + $0x17e0] sm:$0xff]  ;;  %v1985_v63 = vld [vmem:[%s10516_s29 + $0x17f0] sm:$0xff]  ;;  %1982 = vst [vmem:[%s10521_s30 + $0xbe8] sm:$0xff] %v1981_v61 }
  0xd4   : > { %1984 = vst [vmem:[%s10521_s30 + $0xbf0] sm:$0xff] %v1983_v62  ;;  %1986 = vst [vmem:[%s10521_s30 + $0xbf8] sm:$0xff] %v1985_v63  ;;  %v1987_v0 = vld [vmem:[%s10516_s29 + $0x1800] sm:$0xff]  ;;  %v1989_v1 = vld [vmem:[%s10516_s29 + $0x1810] sm:$0xff] }
  0xd5   : > { %v1991_v2 = vld [vmem:[%s10516_s29 + $0x1820] sm:$0xff]  ;;  %1988 = vst [vmem:[%s10521_s30 + $0xc00] sm:$0xff] %v1987_v0  ;;  %1990 = vst [vmem:[%s10521_s30 + $0xc08] sm:$0xff] %v1989_v1  ;;  %v1993_v3 = vld [vmem:[%s10516_s29 + $0x1830] sm:$0xff] }
  0xd6   : > { %1992 = vst [vmem:[%s10521_s30 + $0xc10] sm:$0xff] %v1991_v2  ;;  %v1995_v4 = vld [vmem:[%s10516_s29 + $0x1840] sm:$0xff]  ;;  %v1997_v5 = vld [vmem:[%s10516_s29 + $0x1850] sm:$0xff]  ;;  %1994 = vst [vmem:[%s10521_s30 + $0xc18] sm:$0xff] %v1993_v3 }
  0xd7   : > { %1996 = vst [vmem:[%s10521_s30 + $0xc20] sm:$0xff] %v1995_v4  ;;  %1998 = vst [vmem:[%s10521_s30 + $0xc28] sm:$0xff] %v1997_v5  ;;  %v1999_v6 = vld [vmem:[%s10516_s29 + $0x1860] sm:$0xff]  ;;  %v2001_v7 = vld [vmem:[%s10516_s29 + $0x1870] sm:$0xff] }
  0xd8   : > { %v2003_v8 = vld [vmem:[%s10516_s29 + $0x1880] sm:$0xff]  ;;  %2000 = vst [vmem:[%s10521_s30 + $0xc30] sm:$0xff] %v1999_v6  ;;  %2002 = vst [vmem:[%s10521_s30 + $0xc38] sm:$0xff] %v2001_v7  ;;  %v2005_v9 = vld [vmem:[%s10516_s29 + $0x1890] sm:$0xff] }
  0xd9   : > { %2004 = vst [vmem:[%s10521_s30 + $0xc40] sm:$0xff] %v2003_v8  ;;  %v2007_v10 = vld [vmem:[%s10516_s29 + $0x18a0] sm:$0xff]  ;;  %v2009_v11 = vld [vmem:[%s10516_s29 + $0x18b0] sm:$0xff]  ;;  %2006 = vst [vmem:[%s10521_s30 + $0xc48] sm:$0xff] %v2005_v9 }
  0xda   : > { %2008 = vst [vmem:[%s10521_s30 + $0xc50] sm:$0xff] %v2007_v10  ;;  %2010 = vst [vmem:[%s10521_s30 + $0xc58] sm:$0xff] %v2009_v11  ;;  %v2011_v12 = vld [vmem:[%s10516_s29 + $0x18c0] sm:$0xff]  ;;  %v2013_v13 = vld [vmem:[%s10516_s29 + $0x18d0] sm:$0xff] }
  0xdb   : > { %v2015_v14 = vld [vmem:[%s10516_s29 + $0x18e0] sm:$0xff]  ;;  %2012 = vst [vmem:[%s10521_s30 + $0xc60] sm:$0xff] %v2011_v12  ;;  %2014 = vst [vmem:[%s10521_s30 + $0xc68] sm:$0xff] %v2013_v13  ;;  %v2017_v15 = vld [vmem:[%s10516_s29 + $0x18f0] sm:$0xff] }
  0xdc   : > { %2016 = vst [vmem:[%s10521_s30 + $0xc70] sm:$0xff] %v2015_v14  ;;  %v2019_v16 = vld [vmem:[%s10516_s29 + $0x1900] sm:$0xff]  ;;  %v2021_v17 = vld [vmem:[%s10516_s29 + $0x1910] sm:$0xff]  ;;  %2018 = vst [vmem:[%s10521_s30 + $0xc78] sm:$0xff] %v2017_v15 }
  0xdd   : > { %2020 = vst [vmem:[%s10521_s30 + $0xc80] sm:$0xff] %v2019_v16  ;;  %2022 = vst [vmem:[%s10521_s30 + $0xc88] sm:$0xff] %v2021_v17  ;;  %v2023_v18 = vld [vmem:[%s10516_s29 + $0x1920] sm:$0xff]  ;;  %v2025_v19 = vld [vmem:[%s10516_s29 + $0x1930] sm:$0xff] }
  0xde   : > { %v2027_v20 = vld [vmem:[%s10516_s29 + $0x1940] sm:$0xff]  ;;  %2024 = vst [vmem:[%s10521_s30 + $0xc90] sm:$0xff] %v2023_v18  ;;  %2026 = vst [vmem:[%s10521_s30 + $0xc98] sm:$0xff] %v2025_v19  ;;  %v2029_v21 = vld [vmem:[%s10516_s29 + $0x1950] sm:$0xff] }
  0xdf   : > { %2028 = vst [vmem:[%s10521_s30 + $0xca0] sm:$0xff] %v2027_v20  ;;  %v2031_v22 = vld [vmem:[%s10516_s29 + $0x1960] sm:$0xff]  ;;  %v2033_v23 = vld [vmem:[%s10516_s29 + $0x1970] sm:$0xff]  ;;  %2030 = vst [vmem:[%s10521_s30 + $0xca8] sm:$0xff] %v2029_v21 }
  0xe0   : > { %2032 = vst [vmem:[%s10521_s30 + $0xcb0] sm:$0xff] %v2031_v22  ;;  %2034 = vst [vmem:[%s10521_s30 + $0xcb8] sm:$0xff] %v2033_v23  ;;  %v2035_v24 = vld [vmem:[%s10516_s29 + $0x1980] sm:$0xff]  ;;  %v2037_v25 = vld [vmem:[%s10516_s29 + $0x1990] sm:$0xff] }
  0xe1   : > { %v2039_v26 = vld [vmem:[%s10516_s29 + $0x19a0] sm:$0xff]  ;;  %2036 = vst [vmem:[%s10521_s30 + $0xcc0] sm:$0xff] %v2035_v24  ;;  %2038 = vst [vmem:[%s10521_s30 + $0xcc8] sm:$0xff] %v2037_v25  ;;  %v2041_v27 = vld [vmem:[%s10516_s29 + $0x19b0] sm:$0xff] }
  0xe2   : > { %2040 = vst [vmem:[%s10521_s30 + $0xcd0] sm:$0xff] %v2039_v26  ;;  %v2043_v28 = vld [vmem:[%s10516_s29 + $0x19c0] sm:$0xff]  ;;  %v2045_v29 = vld [vmem:[%s10516_s29 + $0x19d0] sm:$0xff]  ;;  %2042 = vst [vmem:[%s10521_s30 + $0xcd8] sm:$0xff] %v2041_v27 }
  0xe3   : > { %2044 = vst [vmem:[%s10521_s30 + $0xce0] sm:$0xff] %v2043_v28  ;;  %2046 = vst [vmem:[%s10521_s30 + $0xce8] sm:$0xff] %v2045_v29  ;;  %v2047_v30 = vld [vmem:[%s10516_s29 + $0x19e0] sm:$0xff]  ;;  %v2049_v31 = vld [vmem:[%s10516_s29 + $0x19f0] sm:$0xff] }
  0xe4   : > { %v2051_v32 = vld [vmem:[%s10516_s29 + $0x1a00] sm:$0xff]  ;;  %2048 = vst [vmem:[%s10521_s30 + $0xcf0] sm:$0xff] %v2047_v30  ;;  %2050 = vst [vmem:[%s10521_s30 + $0xcf8] sm:$0xff] %v2049_v31  ;;  %v2053_v33 = vld [vmem:[%s10516_s29 + $0x1a10] sm:$0xff] }
  0xe5   : > { %2052 = vst [vmem:[%s10521_s30 + $0xd00] sm:$0xff] %v2051_v32  ;;  %v2055_v34 = vld [vmem:[%s10516_s29 + $0x1a20] sm:$0xff]  ;;  %v2057_v35 = vld [vmem:[%s10516_s29 + $0x1a30] sm:$0xff]  ;;  %2054 = vst [vmem:[%s10521_s30 + $0xd08] sm:$0xff] %v2053_v33 }
  0xe6   : > { %2056 = vst [vmem:[%s10521_s30 + $0xd10] sm:$0xff] %v2055_v34  ;;  %2058 = vst [vmem:[%s10521_s30 + $0xd18] sm:$0xff] %v2057_v35  ;;  %v2059_v36 = vld [vmem:[%s10516_s29 + $0x1a40] sm:$0xff]  ;;  %v2061_v37 = vld [vmem:[%s10516_s29 + $0x1a50] sm:$0xff] }
  0xe7   : > { %v2063_v38 = vld [vmem:[%s10516_s29 + $0x1a60] sm:$0xff]  ;;  %2060 = vst [vmem:[%s10521_s30 + $0xd20] sm:$0xff] %v2059_v36  ;;  %2062 = vst [vmem:[%s10521_s30 + $0xd28] sm:$0xff] %v2061_v37  ;;  %v2065_v39 = vld [vmem:[%s10516_s29 + $0x1a70] sm:$0xff] }
  0xe8   : > { %2064 = vst [vmem:[%s10521_s30 + $0xd30] sm:$0xff] %v2063_v38  ;;  %v2067_v40 = vld [vmem:[%s10516_s29 + $0x1a80] sm:$0xff]  ;;  %v2069_v41 = vld [vmem:[%s10516_s29 + $0x1a90] sm:$0xff]  ;;  %2066 = vst [vmem:[%s10521_s30 + $0xd38] sm:$0xff] %v2065_v39 }
  0xe9   : > { %2068 = vst [vmem:[%s10521_s30 + $0xd40] sm:$0xff] %v2067_v40  ;;  %2070 = vst [vmem:[%s10521_s30 + $0xd48] sm:$0xff] %v2069_v41  ;;  %v2071_v42 = vld [vmem:[%s10516_s29 + $0x1aa0] sm:$0xff]  ;;  %v2073_v43 = vld [vmem:[%s10516_s29 + $0x1ab0] sm:$0xff] }
  0xea   : > { %v2075_v44 = vld [vmem:[%s10516_s29 + $0x1ac0] sm:$0xff]  ;;  %2072 = vst [vmem:[%s10521_s30 + $0xd50] sm:$0xff] %v2071_v42  ;;  %2074 = vst [vmem:[%s10521_s30 + $0xd58] sm:$0xff] %v2073_v43  ;;  %v2077_v45 = vld [vmem:[%s10516_s29 + $0x1ad0] sm:$0xff] }
  0xeb   : > { %2076 = vst [vmem:[%s10521_s30 + $0xd60] sm:$0xff] %v2075_v44  ;;  %v2079_v46 = vld [vmem:[%s10516_s29 + $0x1ae0] sm:$0xff]  ;;  %v2081_v47 = vld [vmem:[%s10516_s29 + $0x1af0] sm:$0xff]  ;;  %2078 = vst [vmem:[%s10521_s30 + $0xd68] sm:$0xff] %v2077_v45 }
  0xec   : > { %2080 = vst [vmem:[%s10521_s30 + $0xd70] sm:$0xff] %v2079_v46  ;;  %2082 = vst [vmem:[%s10521_s30 + $0xd78] sm:$0xff] %v2081_v47  ;;  %v2083_v48 = vld [vmem:[%s10516_s29 + $0x1b00] sm:$0xff]  ;;  %v2085_v49 = vld [vmem:[%s10516_s29 + $0x1b10] sm:$0xff] }
  0xed   : > { %v2087_v50 = vld [vmem:[%s10516_s29 + $0x1b20] sm:$0xff]  ;;  %2084 = vst [vmem:[%s10521_s30 + $0xd80] sm:$0xff] %v2083_v48  ;;  %2086 = vst [vmem:[%s10521_s30 + $0xd88] sm:$0xff] %v2085_v49  ;;  %v2089_v51 = vld [vmem:[%s10516_s29 + $0x1b30] sm:$0xff] }
  0xee   : > { %2088 = vst [vmem:[%s10521_s30 + $0xd90] sm:$0xff] %v2087_v50  ;;  %v2091_v52 = vld [vmem:[%s10516_s29 + $0x1b40] sm:$0xff]  ;;  %v2093_v53 = vld [vmem:[%s10516_s29 + $0x1b50] sm:$0xff]  ;;  %2090 = vst [vmem:[%s10521_s30 + $0xd98] sm:$0xff] %v2089_v51 }
  0xef   : > { %2092 = vst [vmem:[%s10521_s30 + $0xda0] sm:$0xff] %v2091_v52  ;;  %2094 = vst [vmem:[%s10521_s30 + $0xda8] sm:$0xff] %v2093_v53  ;;  %v2095_v54 = vld [vmem:[%s10516_s29 + $0x1b60] sm:$0xff]  ;;  %v2097_v55 = vld [vmem:[%s10516_s29 + $0x1b70] sm:$0xff] }
  0xf0   : > { %v2099_v56 = vld [vmem:[%s10516_s29 + $0x1b80] sm:$0xff]  ;;  %2096 = vst [vmem:[%s10521_s30 + $0xdb0] sm:$0xff] %v2095_v54  ;;  %2098 = vst [vmem:[%s10521_s30 + $0xdb8] sm:$0xff] %v2097_v55  ;;  %v2101_v57 = vld [vmem:[%s10516_s29 + $0x1b90] sm:$0xff] }
  0xf1   : > { %2100 = vst [vmem:[%s10521_s30 + $0xdc0] sm:$0xff] %v2099_v56  ;;  %v2103_v58 = vld [vmem:[%s10516_s29 + $0x1ba0] sm:$0xff]  ;;  %v2105_v59 = vld [vmem:[%s10516_s29 + $0x1bb0] sm:$0xff]  ;;  %2102 = vst [vmem:[%s10521_s30 + $0xdc8] sm:$0xff] %v2101_v57 }
  0xf2   : > { %2104 = vst [vmem:[%s10521_s30 + $0xdd0] sm:$0xff] %v2103_v58  ;;  %2106 = vst [vmem:[%s10521_s30 + $0xdd8] sm:$0xff] %v2105_v59  ;;  %v2107_v60 = vld [vmem:[%s10516_s29 + $0x1bc0] sm:$0xff]  ;;  %v2109_v61 = vld [vmem:[%s10516_s29 + $0x1bd0] sm:$0xff] }
  0xf3   : > { %v2111_v62 = vld [vmem:[%s10516_s29 + $0x1be0] sm:$0xff]  ;;  %2108 = vst [vmem:[%s10521_s30 + $0xde0] sm:$0xff] %v2107_v60  ;;  %2110 = vst [vmem:[%s10521_s30 + $0xde8] sm:$0xff] %v2109_v61  ;;  %v2113_v63 = vld [vmem:[%s10516_s29 + $0x1bf0] sm:$0xff] }
  0xf4   : > { %2112 = vst [vmem:[%s10521_s30 + $0xdf0] sm:$0xff] %v2111_v62  ;;  %v2115_v0 = vld [vmem:[%s10516_s29 + $0x1c00] sm:$0xff]  ;;  %v2117_v1 = vld [vmem:[%s10516_s29 + $0x1c10] sm:$0xff]  ;;  %2114 = vst [vmem:[%s10521_s30 + $0xdf8] sm:$0xff] %v2113_v63 }
  0xf5   : > { %2116 = vst [vmem:[%s10521_s30 + $0xe00] sm:$0xff] %v2115_v0  ;;  %2118 = vst [vmem:[%s10521_s30 + $0xe08] sm:$0xff] %v2117_v1  ;;  %v2119_v2 = vld [vmem:[%s10516_s29 + $0x1c20] sm:$0xff]  ;;  %v2121_v3 = vld [vmem:[%s10516_s29 + $0x1c30] sm:$0xff] }
  0xf6   : > { %v2123_v4 = vld [vmem:[%s10516_s29 + $0x1c40] sm:$0xff]  ;;  %2120 = vst [vmem:[%s10521_s30 + $0xe10] sm:$0xff] %v2119_v2  ;;  %2122 = vst [vmem:[%s10521_s30 + $0xe18] sm:$0xff] %v2121_v3  ;;  %v2125_v5 = vld [vmem:[%s10516_s29 + $0x1c50] sm:$0xff] }
  0xf7   : > { %2124 = vst [vmem:[%s10521_s30 + $0xe20] sm:$0xff] %v2123_v4  ;;  %v2127_v6 = vld [vmem:[%s10516_s29 + $0x1c60] sm:$0xff]  ;;  %v2129_v7 = vld [vmem:[%s10516_s29 + $0x1c70] sm:$0xff]  ;;  %2126 = vst [vmem:[%s10521_s30 + $0xe28] sm:$0xff] %v2125_v5 }
  0xf8   : > { %2128 = vst [vmem:[%s10521_s30 + $0xe30] sm:$0xff] %v2127_v6  ;;  %2130 = vst [vmem:[%s10521_s30 + $0xe38] sm:$0xff] %v2129_v7  ;;  %v2131_v8 = vld [vmem:[%s10516_s29 + $0x1c80] sm:$0xff]  ;;  %v2133_v9 = vld [vmem:[%s10516_s29 + $0x1c90] sm:$0xff] }
  0xf9   : > { %v2135_v10 = vld [vmem:[%s10516_s29 + $0x1ca0] sm:$0xff]  ;;  %2132 = vst [vmem:[%s10521_s30 + $0xe40] sm:$0xff] %v2131_v8  ;;  %2134 = vst [vmem:[%s10521_s30 + $0xe48] sm:$0xff] %v2133_v9  ;;  %v2137_v11 = vld [vmem:[%s10516_s29 + $0x1cb0] sm:$0xff] }
  0xfa   : > { %2136 = vst [vmem:[%s10521_s30 + $0xe50] sm:$0xff] %v2135_v10  ;;  %v2139_v12 = vld [vmem:[%s10516_s29 + $0x1cc0] sm:$0xff]  ;;  %v2141_v13 = vld [vmem:[%s10516_s29 + $0x1cd0] sm:$0xff]  ;;  %2138 = vst [vmem:[%s10521_s30 + $0xe58] sm:$0xff] %v2137_v11 }
  0xfb   : > { %2140 = vst [vmem:[%s10521_s30 + $0xe60] sm:$0xff] %v2139_v12  ;;  %2142 = vst [vmem:[%s10521_s30 + $0xe68] sm:$0xff] %v2141_v13  ;;  %v2143_v14 = vld [vmem:[%s10516_s29 + $0x1ce0] sm:$0xff]  ;;  %v2145_v15 = vld [vmem:[%s10516_s29 + $0x1cf0] sm:$0xff] }
  0xfc   : > { %v2147_v16 = vld [vmem:[%s10516_s29 + $0x1d00] sm:$0xff]  ;;  %2144 = vst [vmem:[%s10521_s30 + $0xe70] sm:$0xff] %v2143_v14  ;;  %2146 = vst [vmem:[%s10521_s30 + $0xe78] sm:$0xff] %v2145_v15  ;;  %v2149_v17 = vld [vmem:[%s10516_s29 + $0x1d10] sm:$0xff] }
  0xfd   : > { %2148 = vst [vmem:[%s10521_s30 + $0xe80] sm:$0xff] %v2147_v16  ;;  %v2151_v18 = vld [vmem:[%s10516_s29 + $0x1d20] sm:$0xff]  ;;  %v2153_v19 = vld [vmem:[%s10516_s29 + $0x1d30] sm:$0xff]  ;;  %2150 = vst [vmem:[%s10521_s30 + $0xe88] sm:$0xff] %v2149_v17 }
  0xfe   : > { %2152 = vst [vmem:[%s10521_s30 + $0xe90] sm:$0xff] %v2151_v18  ;;  %2154 = vst [vmem:[%s10521_s30 + $0xe98] sm:$0xff] %v2153_v19  ;;  %v2155_v20 = vld [vmem:[%s10516_s29 + $0x1d40] sm:$0xff]  ;;  %v2157_v21 = vld [vmem:[%s10516_s29 + $0x1d50] sm:$0xff] }
  0xff   : > { %v2159_v22 = vld [vmem:[%s10516_s29 + $0x1d60] sm:$0xff]  ;;  %2156 = vst [vmem:[%s10521_s30 + $0xea0] sm:$0xff] %v2155_v20  ;;  %2158 = vst [vmem:[%s10521_s30 + $0xea8] sm:$0xff] %v2157_v21  ;;  %v2161_v23 = vld [vmem:[%s10516_s29 + $0x1d70] sm:$0xff] }
 0x100   : > { %2160 = vst [vmem:[%s10521_s30 + $0xeb0] sm:$0xff] %v2159_v22  ;;  %v2163_v24 = vld [vmem:[%s10516_s29 + $0x1d80] sm:$0xff]  ;;  %v2165_v25 = vld [vmem:[%s10516_s29 + $0x1d90] sm:$0xff]  ;;  %2162 = vst [vmem:[%s10521_s30 + $0xeb8] sm:$0xff] %v2161_v23 }
 0x101   : > { %2164 = vst [vmem:[%s10521_s30 + $0xec0] sm:$0xff] %v2163_v24  ;;  %2166 = vst [vmem:[%s10521_s30 + $0xec8] sm:$0xff] %v2165_v25  ;;  %v2167_v26 = vld [vmem:[%s10516_s29 + $0x1da0] sm:$0xff]  ;;  %v2169_v27 = vld [vmem:[%s10516_s29 + $0x1db0] sm:$0xff] }
 0x102   : > { %v2171_v28 = vld [vmem:[%s10516_s29 + $0x1dc0] sm:$0xff]  ;;  %2168 = vst [vmem:[%s10521_s30 + $0xed0] sm:$0xff] %v2167_v26  ;;  %2170 = vst [vmem:[%s10521_s30 + $0xed8] sm:$0xff] %v2169_v27  ;;  %v2173_v29 = vld [vmem:[%s10516_s29 + $0x1dd0] sm:$0xff] }
 0x103   : > { %2172 = vst [vmem:[%s10521_s30 + $0xee0] sm:$0xff] %v2171_v28  ;;  %v2175_v30 = vld [vmem:[%s10516_s29 + $0x1de0] sm:$0xff]  ;;  %v2177_v31 = vld [vmem:[%s10516_s29 + $0x1df0] sm:$0xff]  ;;  %2174 = vst [vmem:[%s10521_s30 + $0xee8] sm:$0xff] %v2173_v29 }
 0x104   : > { %2176 = vst [vmem:[%s10521_s30 + $0xef0] sm:$0xff] %v2175_v30  ;;  %2178 = vst [vmem:[%s10521_s30 + $0xef8] sm:$0xff] %v2177_v31  ;;  %v2179_v32 = vld [vmem:[%s10516_s29 + $0x1e00] sm:$0xff]  ;;  %v2181_v33 = vld [vmem:[%s10516_s29 + $0x1e10] sm:$0xff] }
 0x105   : > { %v2183_v34 = vld [vmem:[%s10516_s29 + $0x1e20] sm:$0xff]  ;;  %2180 = vst [vmem:[%s10521_s30 + $0xf00] sm:$0xff] %v2179_v32  ;;  %2182 = vst [vmem:[%s10521_s30 + $0xf08] sm:$0xff] %v2181_v33  ;;  %v2185_v35 = vld [vmem:[%s10516_s29 + $0x1e30] sm:$0xff] }
 0x106   : > { %2184 = vst [vmem:[%s10521_s30 + $0xf10] sm:$0xff] %v2183_v34  ;;  %v2187_v36 = vld [vmem:[%s10516_s29 + $0x1e40] sm:$0xff]  ;;  %v2189_v37 = vld [vmem:[%s10516_s29 + $0x1e50] sm:$0xff]  ;;  %2186 = vst [vmem:[%s10521_s30 + $0xf18] sm:$0xff] %v2185_v35 }
 0x107   : > { %2188 = vst [vmem:[%s10521_s30 + $0xf20] sm:$0xff] %v2187_v36  ;;  %2190 = vst [vmem:[%s10521_s30 + $0xf28] sm:$0xff] %v2189_v37  ;;  %v2191_v38 = vld [vmem:[%s10516_s29 + $0x1e60] sm:$0xff]  ;;  %v2193_v39 = vld [vmem:[%s10516_s29 + $0x1e70] sm:$0xff] }
 0x108   : > { %v2195_v40 = vld [vmem:[%s10516_s29 + $0x1e80] sm:$0xff]  ;;  %2192 = vst [vmem:[%s10521_s30 + $0xf30] sm:$0xff] %v2191_v38  ;;  %2194 = vst [vmem:[%s10521_s30 + $0xf38] sm:$0xff] %v2193_v39  ;;  %v2197_v41 = vld [vmem:[%s10516_s29 + $0x1e90] sm:$0xff] }
 0x109   : > { %2196 = vst [vmem:[%s10521_s30 + $0xf40] sm:$0xff] %v2195_v40  ;;  %v2199_v42 = vld [vmem:[%s10516_s29 + $0x1ea0] sm:$0xff]  ;;  %v2201_v43 = vld [vmem:[%s10516_s29 + $0x1eb0] sm:$0xff]  ;;  %2198 = vst [vmem:[%s10521_s30 + $0xf48] sm:$0xff] %v2197_v41 }
 0x10a   : > { %2200 = vst [vmem:[%s10521_s30 + $0xf50] sm:$0xff] %v2199_v42  ;;  %2202 = vst [vmem:[%s10521_s30 + $0xf58] sm:$0xff] %v2201_v43  ;;  %v2203_v44 = vld [vmem:[%s10516_s29 + $0x1ec0] sm:$0xff]  ;;  %v2205_v45 = vld [vmem:[%s10516_s29 + $0x1ed0] sm:$0xff] }
 0x10b   : > { %v2207_v46 = vld [vmem:[%s10516_s29 + $0x1ee0] sm:$0xff]  ;;  %2204 = vst [vmem:[%s10521_s30 + $0xf60] sm:$0xff] %v2203_v44  ;;  %2206 = vst [vmem:[%s10521_s30 + $0xf68] sm:$0xff] %v2205_v45  ;;  %v2209_v47 = vld [vmem:[%s10516_s29 + $0x1ef0] sm:$0xff] }
 0x10c   : > { %2208 = vst [vmem:[%s10521_s30 + $0xf70] sm:$0xff] %v2207_v46  ;;  %v2211_v48 = vld [vmem:[%s10516_s29 + $0x1f00] sm:$0xff]  ;;  %v2213_v49 = vld [vmem:[%s10516_s29 + $0x1f10] sm:$0xff]  ;;  %2210 = vst [vmem:[%s10521_s30 + $0xf78] sm:$0xff] %v2209_v47 }
 0x10d   : > { %2212 = vst [vmem:[%s10521_s30 + $0xf80] sm:$0xff] %v2211_v48  ;;  %2214 = vst [vmem:[%s10521_s30 + $0xf88] sm:$0xff] %v2213_v49  ;;  %v2215_v50 = vld [vmem:[%s10516_s29 + $0x1f20] sm:$0xff]  ;;  %v2217_v51 = vld [vmem:[%s10516_s29 + $0x1f30] sm:$0xff] }
 0x10e   : > { %v2219_v52 = vld [vmem:[%s10516_s29 + $0x1f40] sm:$0xff]  ;;  %2216 = vst [vmem:[%s10521_s30 + $0xf90] sm:$0xff] %v2215_v50  ;;  %2218 = vst [vmem:[%s10521_s30 + $0xf98] sm:$0xff] %v2217_v51  ;;  %v2221_v53 = vld [vmem:[%s10516_s29 + $0x1f50] sm:$0xff] }
 0x10f   : > { %2220 = vst [vmem:[%s10521_s30 + $0xfa0] sm:$0xff] %v2219_v52  ;;  %v2223_v54 = vld [vmem:[%s10516_s29 + $0x1f60] sm:$0xff]  ;;  %v2225_v55 = vld [vmem:[%s10516_s29 + $0x1f70] sm:$0xff]  ;;  %2222 = vst [vmem:[%s10521_s30 + $0xfa8] sm:$0xff] %v2221_v53 }
 0x110   : > { %2224 = vst [vmem:[%s10521_s30 + $0xfb0] sm:$0xff] %v2223_v54  ;;  %2226 = vst [vmem:[%s10521_s30 + $0xfb8] sm:$0xff] %v2225_v55  ;;  %v2227_v56 = vld [vmem:[%s10516_s29 + $0x1f80] sm:$0xff]  ;;  %v2229_v57 = vld [vmem:[%s10516_s29 + $0x1f90] sm:$0xff] }
 0x111   : > { %v2231_v58 = vld [vmem:[%s10516_s29 + $0x1fa0] sm:$0xff]  ;;  %2228 = vst [vmem:[%s10521_s30 + $0xfc0] sm:$0xff] %v2227_v56  ;;  %2230 = vst [vmem:[%s10521_s30 + $0xfc8] sm:$0xff] %v2229_v57  ;;  %v2233_v59 = vld [vmem:[%s10516_s29 + $0x1fb0] sm:$0xff] }
 0x112   : > { %2232 = vst [vmem:[%s10521_s30 + $0xfd0] sm:$0xff] %v2231_v58  ;;  %v2235_v60 = vld [vmem:[%s10516_s29 + $0x1fc0] sm:$0xff]  ;;  %v2237_v61 = vld [vmem:[%s10516_s29 + $0x1fd0] sm:$0xff]  ;;  %2234 = vst [vmem:[%s10521_s30 + $0xfd8] sm:$0xff] %v2233_v59 }
 0x113   : > { %2236 = vst [vmem:[%s10521_s30 + $0xfe0] sm:$0xff] %v2235_v60  ;;  %2238 = vst [vmem:[%s10521_s30 + $0xfe8] sm:$0xff] %v2237_v61  ;;  %v2239_v62 = vld [vmem:[%s10516_s29 + $0x1fe0] sm:$0xff]  ;;  %v2241_v63 = vld [vmem:[%s10516_s29 + $0x1ff0] sm:$0xff] }
 0x114   : > { %2240 = vst [vmem:[%s10521_s30 + $0xff0] sm:$0xff] %v2239_v62  ;;  %2242 = vst [vmem:[%s10521_s30 + $0xff8] sm:$0xff] %v2241_v63 }
 0x115 PF: > { %p8887_p7 = scmp.ge.s32.totalorder %s10448_s17, 1  ;;  %p4347_p8 = scmp.lt.s32.totalorder %s10448_s17, 3 }
 0x117   : > { %p4348_p9 = pnand %p8887_p7, %p4347_p8 }
 0x118   : > { %s4354_s5 = sand.u32 (!%p4348_p9), 1, %s10440_s15   ;;  %v11550_v0 = vld [vmem:[%s12370_s0] sm:$0xff] (!%p4348_p9)  ;;  %vm8607_vm0 = vcmask (!%p4348_p9), 1041408  }
 0x119   : > { %4351 = sbr.rel (%p4348_p9) target bundleno = 1095 (0x447), region = 84  ;;  %v11555_v1 = vld [vmem:[%s12370_s0 + $0x80] sm:$0xff] (!%p4348_p9)  ;;  %s8888_s12 = sshll.u32 (!%p4348_p9), %s4354_s5, 12 }
 0x11a   : > { %v11560_v2 = vld [vmem:[%s12370_s0 + $0x40] sm:$0xff] (!%p4348_p9)  ;;  %v8891_v3 = vcombine.low (!%p4348_p9), %v11550_v0, %v11555_v1  ;;  %v8892_v4 = vcombine.high (!%p4348_p9), %v11550_v0, %v11555_v1  ;;  %s11577_s17 = scalar_lea.vmem (!%p4348_p9), [#allocation2], %s8888_s12  ;;  %s9597_s26 = smul.u32 (!%p4348_p9), 24, %s4354_s5 }
 0x11b   : > { %v11571_v5 = vld [vmem:[%s12370_s0 + $0xc0] sm:$0xff] (!%p4348_p9)  ;;  %v9628_v12 = vld [vmem:[%s11577_s17 + $0x14] ss:$8 sps:$4 sm:$0xff] (!%p4348_p9)   ;;  %v9632_v14 = vld [vmem:[%s11577_s17 + $0x10] ss:$8 sps:$4 sm:$0xff] (!%p4348_p9)  }
 0x11c   : > { %v8907_v6 = vcombine.low (!%p4348_p9), %v11560_v2, %v11571_v5  ;;  %v8908_v7 = vcombine.high (!%p4348_p9), %v11560_v2, %v11571_v5  ;;  %v9622_v8 = vld [vmem:[%s11577_s17 + $0x4] ss:$8 sps:$4 sm:$0xff] (!%p4348_p9)   ;;  %7822 = vmatprep.mubr.bf16.mxu1 (!%p4348_p9), %v8892_v4  ;;  %v9626_v10 = vld [vmem:[%s11577_s17] ss:$8 sps:$4 sm:$0xff] (!%p4348_p9)   ;;  %v9630_v13 = vld [vmem:[%s11577_s17 + $0x814] ss:$8 sps:$4 sm:$0xff] (!%p4348_p9)  }
 0x11d   : > { %v9624_v9 = vld [vmem:[%s11577_s17 + $0x804] ss:$8 sps:$4 sm:$0xff] (!%p4348_p9)   ;;  %7790 = vmatprep.subr.bf16.mxu1 (!%p4348_p9), %v9622_v8  ;;  %v9627_v11 = vld [vmem:[%s11577_s17 + $0x800] ss:$8 sps:$4 sm:$0xff] (!%p4348_p9)   ;;  %v9633_v15 = vld [vmem:[%s11577_s17 + $0x810] ss:$8 sps:$4 sm:$0xff] (!%p4348_p9)  }
 0x11e   : > { %8230 = vmatprep.mubr.bf16.mxu0 (!%p4348_p9), %v8908_v7  ;;  %8198 = vmatprep.subr.bf16.mxu0 (!%p4348_p9), %v9624_v9  ;;  %v9634_v16 = vld [vmem:[%s11577_s17 + $0x24] ss:$8 sps:$4 sm:$0xff] (!%p4348_p9)   ;;  %v9638_v18 = vld [vmem:[%s11577_s17 + $0x20] ss:$8 sps:$4 sm:$0xff] (!%p4348_p9)   ;;  %v9640_v20 = vld [vmem:[%s11577_s17 + $0x34] ss:$8 sps:$4 sm:$0xff] (!%p4348_p9)  }
 0x11f   : > { %7791 = vmatpush1.bf16.msra.mxu1 (!%p4348_p9), %v9626_v10  ;;  %8199 = vmatpush1.bf16.msra.mxu0 (!%p4348_p9), %v9627_v11  ;;  %v9636_v17 = vld [vmem:[%s11577_s17 + $0x824] ss:$8 sps:$4 sm:$0xff] (!%p4348_p9)   ;;  %v9639_v19 = vld [vmem:[%s11577_s17 + $0x820] ss:$8 sps:$4 sm:$0xff] (!%p4348_p9)   ;;  %v9642_v21 = vld [vmem:[%s11577_s17 + $0x834] ss:$8 sps:$4 sm:$0xff] (!%p4348_p9)  }
 0x120   : > { %7792 = vmatprep.subr.bf16.mxu1 %v9628_v12  ;;  %8200 = vmatprep.subr.bf16.mxu0 %v9630_v13  ;;  %v9644_v22 = vld [vmem:[%s11577_s17 + $0x30] ss:$8 sps:$4 sm:$0xff]   ;;  %v9646_v24 = vld [vmem:[%s11577_s17 + $0x44] ss:$8 sps:$4 sm:$0xff]   ;;  %v9650_v26 = vld [vmem:[%s11577_s17 + $0x40] ss:$8 sps:$4 sm:$0xff]  }
 0x121   : > { %v9645_v23 = vld [vmem:[%s11577_s17 + $0x830] ss:$8 sps:$4 sm:$0xff]   ;;  %v9648_v25 = vld [vmem:[%s11577_s17 + $0x844] ss:$8 sps:$4 sm:$0xff]   ;;  %v9651_v27 = vld [vmem:[%s11577_s17 + $0x840] ss:$8 sps:$4 sm:$0xff]  }
 0x122   : > { %v9652_v28 = vld [vmem:[%s11577_s17 + $0x54] ss:$8 sps:$4 sm:$0xff]   ;;  %v9656_v30 = vld [vmem:[%s11577_s17 + $0x50] ss:$8 sps:$4 sm:$0xff]   ;;  %v9658_v32 = vld [vmem:[%s11577_s17 + $0x64] ss:$8 sps:$4 sm:$0xff]  }
 0x123   : > { %7793 = vmatpush1.bf16.msra.mxu1 %v9632_v14  ;;  %8201 = vmatpush1.bf16.msra.mxu0 %v9633_v15  ;;  %v9654_v29 = vld [vmem:[%s11577_s17 + $0x854] ss:$8 sps:$4 sm:$0xff]   ;;  %v9657_v31 = vld [vmem:[%s11577_s17 + $0x850] ss:$8 sps:$4 sm:$0xff]   ;;  %v9660_v33 = vld [vmem:[%s11577_s17 + $0x864] ss:$8 sps:$4 sm:$0xff]  }
 0x124   : > { %7794 = vmatprep.subr.bf16.mxu1 %v9634_v16  ;;  %8202 = vmatprep.subr.bf16.mxu0 %v9636_v17  ;;  %v9662_v34 = vld [vmem:[%s11577_s17 + $0x60] ss:$8 sps:$4 sm:$0xff]   ;;  %v9664_v36 = vld [vmem:[%s11577_s17 + $0x74] ss:$8 sps:$4 sm:$0xff]   ;;  %v9668_v38 = vld [vmem:[%s11577_s17 + $0x70] ss:$8 sps:$4 sm:$0xff]  }
 0x125   : > { %v9663_v35 = vld [vmem:[%s11577_s17 + $0x860] ss:$8 sps:$4 sm:$0xff]   ;;  %v9666_v37 = vld [vmem:[%s11577_s17 + $0x874] ss:$8 sps:$4 sm:$0xff]   ;;  %v9669_v39 = vld [vmem:[%s11577_s17 + $0x870] ss:$8 sps:$4 sm:$0xff]  }
 0x126   : > { %v9670_v40 = vld [vmem:[%s11577_s17 + $0x84] ss:$8 sps:$4 sm:$0xff]   ;;  %v9674_v42 = vld [vmem:[%s11577_s17 + $0x80] ss:$8 sps:$4 sm:$0xff]   ;;  %v9676_v44 = vld [vmem:[%s11577_s17 + $0x94] ss:$8 sps:$4 sm:$0xff]  }
 0x127   : > { %7795 = vmatpush1.bf16.msra.mxu1 %v9638_v18  ;;  %8203 = vmatpush1.bf16.msra.mxu0 %v9639_v19  ;;  %v9672_v41 = vld [vmem:[%s11577_s17 + $0x884] ss:$8 sps:$4 sm:$0xff]   ;;  %v9675_v43 = vld [vmem:[%s11577_s17 + $0x880] ss:$8 sps:$4 sm:$0xff]   ;;  %v9678_v45 = vld [vmem:[%s11577_s17 + $0x894] ss:$8 sps:$4 sm:$0xff]  }
 0x128   : > { %7796 = vmatprep.subr.bf16.mxu1 %v9640_v20  ;;  %8204 = vmatprep.subr.bf16.mxu0 %v9642_v21  ;;  %v9680_v46 = vld [vmem:[%s11577_s17 + $0x90] ss:$8 sps:$4 sm:$0xff]   ;;  %v9682_v48 = vld [vmem:[%s11577_s17 + $0xa4] ss:$8 sps:$4 sm:$0xff]   ;;  %v9686_v50 = vld [vmem:[%s11577_s17 + $0xa0] ss:$8 sps:$4 sm:$0xff]  }
 0x129   : > { %v9681_v47 = vld [vmem:[%s11577_s17 + $0x890] ss:$8 sps:$4 sm:$0xff]   ;;  %v9684_v49 = vld [vmem:[%s11577_s17 + $0x8a4] ss:$8 sps:$4 sm:$0xff]   ;;  %v9687_v51 = vld [vmem:[%s11577_s17 + $0x8a0] ss:$8 sps:$4 sm:$0xff]  }
 0x12a   : > { %v9688_v52 = vld [vmem:[%s11577_s17 + $0xb4] ss:$8 sps:$4 sm:$0xff]   ;;  %v9692_v54 = vld [vmem:[%s11577_s17 + $0xb0] ss:$8 sps:$4 sm:$0xff]   ;;  %v9694_v56 = vld [vmem:[%s11577_s17 + $0xc4] ss:$8 sps:$4 sm:$0xff]  }
 0x12b   : > { %7797 = vmatpush1.bf16.msra.mxu1 %v9644_v22  ;;  %8205 = vmatpush1.bf16.msra.mxu0 %v9645_v23  ;;  %v9690_v53 = vld [vmem:[%s11577_s17 + $0x8b4] ss:$8 sps:$4 sm:$0xff]   ;;  %v9693_v55 = vld [vmem:[%s11577_s17 + $0x8b0] ss:$8 sps:$4 sm:$0xff]   ;;  %v9696_v57 = vld [vmem:[%s11577_s17 + $0x8c4] ss:$8 sps:$4 sm:$0xff]  }
 0x12c   : > { %7798 = vmatprep.subr.bf16.mxu1 %v9646_v24  ;;  %8206 = vmatprep.subr.bf16.mxu0 %v9648_v25  ;;  %v9698_v58 = vld [vmem:[%s11577_s17 + $0xc0] ss:$8 sps:$4 sm:$0xff]   ;;  %v9700_v60 = vld [vmem:[%s11577_s17 + $0xd4] ss:$8 sps:$4 sm:$0xff]   ;;  %v9704_v62 = vld [vmem:[%s11577_s17 + $0xd0] ss:$8 sps:$4 sm:$0xff]  }
 0x12d   : > { %v9699_v59 = vld [vmem:[%s11577_s17 + $0x8c0] ss:$8 sps:$4 sm:$0xff]   ;;  %v9702_v61 = vld [vmem:[%s11577_s17 + $0x8d4] ss:$8 sps:$4 sm:$0xff]   ;;  %v9705_v63 = vld [vmem:[%s11577_s17 + $0x8d0] ss:$8 sps:$4 sm:$0xff]  }
 0x12e   : > { %v9706_v4 = vld [vmem:[%s11577_s17 + $0xe4] ss:$8 sps:$4 sm:$0xff]   ;;  %v9710_v8 = vld [vmem:[%s11577_s17 + $0xe0] ss:$8 sps:$4 sm:$0xff]   ;;  %v9712_v10 = vld [vmem:[%s11577_s17 + $0xf4] ss:$8 sps:$4 sm:$0xff]  }
 0x12f   : > { %7799 = vmatpush1.bf16.msra.mxu1 %v9650_v26  ;;  %8207 = vmatpush1.bf16.msra.mxu0 %v9651_v27  ;;  %v9708_v7 = vld [vmem:[%s11577_s17 + $0x8e4] ss:$8 sps:$4 sm:$0xff]   ;;  %v9711_v9 = vld [vmem:[%s11577_s17 + $0x8e0] ss:$8 sps:$4 sm:$0xff]   ;;  %v9714_v11 = vld [vmem:[%s11577_s17 + $0x8f4] ss:$8 sps:$4 sm:$0xff]  }
 0x130   : > { %7800 = vmatprep.subr.bf16.mxu1 %v9652_v28  ;;  %8208 = vmatprep.subr.bf16.mxu0 %v9654_v29  ;;  %v9716_v12 = vld [vmem:[%s11577_s17 + $0xf0] ss:$8 sps:$4 sm:$0xff]   ;;  %v9720_v14 = vld [vmem:[%s11577_s17 + $0x104] ss:$8 sps:$4 sm:$0xff]   ;;  %v9718_v18 = vld [vmem:[%s11577_s17 + $0x100] ss:$8 sps:$4 sm:$0xff]  }
 0x131   : > { %v9717_v13 = vld [vmem:[%s11577_s17 + $0x8f0] ss:$8 sps:$4 sm:$0xff]   ;;  %v9723_v15 = vld [vmem:[%s11577_s17 + $0x904] ss:$8 sps:$4 sm:$0xff]   ;;  %v9721_v19 = vld [vmem:[%s11577_s17 + $0x900] ss:$8 sps:$4 sm:$0xff]  }
 0x132   : > { %v4430_v16 = vld [vmem:[%s12370_s0 + $0x100] sm:$0x11]  ;;  %v9726_v20 = vld [vmem:[%s11577_s17 + $0x114] ss:$8 sps:$4 sm:$0xff]   ;;  %v9724_v24 = vld [vmem:[%s11577_s17 + $0x110] ss:$8 sps:$4 sm:$0xff]  }
 0x133   : > { %7801 = vmatpush1.bf16.msra.mxu1 %v9656_v30  ;;  %8209 = vmatpush1.bf16.msra.mxu0 %v9657_v31  ;;  %v4438_v17 = vld [vmem:[%s12370_s0 + $0x140] sm:$0x11]  ;;  %v9729_v21 = vld [vmem:[%s11577_s17 + $0x914] ss:$8 sps:$4 sm:$0xff]   ;;  %v8924_v22 = vcombine.high %v4430_v16, %v4430_v16  ;;  %v9727_v25 = vld [vmem:[%s11577_s17 + $0x910] ss:$8 sps:$4 sm:$0xff]  }
 0x134   : > { %7802 = vmatprep.subr.bf16.mxu1 %v9658_v32  ;;  %8210 = vmatprep.subr.bf16.mxu0 %v9660_v33  ;;  %v8940_v23 = vcombine.high %v4438_v17, %v4438_v17  ;;  %v9732_v26 = vld [vmem:[%s11577_s17 + $0x124] ss:$8 sps:$4 sm:$0xff]   ;;  %v9730_v0 = vld [vmem:[%s11577_s17 + $0x120] ss:$8 sps:$4 sm:$0xff]   ;;  %v8939_v2 = vcombine.low %v4438_v17, %v4438_v17  ;;  %v9738_v5 = vld [vmem:[%s11577_s17 + $0x134] ss:$8 sps:$4 sm:$0xff]  }
 0x135   : > { %v9735_v27 = vld [vmem:[%s11577_s17 + $0x924] ss:$8 sps:$4 sm:$0xff]   ;;  %v9733_v1 = vld [vmem:[%s11577_s17 + $0x920] ss:$8 sps:$4 sm:$0xff]   ;;  %v9736_v28 = vld [vmem:[%s11577_s17 + $0x130] ss:$8 sps:$4 sm:$0xff]  }
 0x136   : > { %v9739_v29 = vld [vmem:[%s11577_s17 + $0x930] ss:$8 sps:$4 sm:$0xff]   ;;  %v9744_v30 = vld [vmem:[%s11577_s17 + $0x144] ss:$8 sps:$4 sm:$0xff]   ;;  %v9742_v32 = vld [vmem:[%s11577_s17 + $0x140] ss:$8 sps:$4 sm:$0xff]  }
 0x137   : > { %7803 = vmatpush1.bf16.msra.mxu1 %v9662_v34  ;;  %8211 = vmatpush1.bf16.msra.mxu0 %v9663_v35  ;;  %v9747_v31 = vld [vmem:[%s11577_s17 + $0x944] ss:$8 sps:$4 sm:$0xff]   ;;  %v9745_v33 = vld [vmem:[%s11577_s17 + $0x940] ss:$8 sps:$4 sm:$0xff]   ;;  %v9750_v34 = vld [vmem:[%s11577_s17 + $0x154] ss:$8 sps:$4 sm:$0xff]  }
 0x138   : > { %7804 = vmatprep.subr.bf16.mxu1 %v9664_v36  ;;  %8212 = vmatprep.subr.bf16.mxu0 %v9666_v37  ;;  %v9753_v35 = vld [vmem:[%s11577_s17 + $0x954] ss:$8 sps:$4 sm:$0xff]   ;;  %v9748_v36 = vld [vmem:[%s11577_s17 + $0x150] ss:$8 sps:$4 sm:$0xff]   ;;  %s4385_s27 = scalar_lea.vmem [#allocation3], %s9597_s26  ;;  %s9478_s15 = sshll.u32 (%p10506_p5), %s10491_s18, 3 }
 0x139   : > { %v9751_v37 = vld [vmem:[%s11577_s17 + $0x950] ss:$8 sps:$4 sm:$0xff]   ;;  %s8756_s29 = scalar_lea.vmem (%p10506_p5), %s12374_s4, %s9478_s15 }
 0x13a   : > { %v9799_v17 = vld [vmem:[%s11577_s17 + $0x9d0] ss:$8 sps:$4 sm:$0xff]  }
 0x13b   : > { %7805 = vmatpush1.bf16.msra.mxu1 %v9668_v38  ;;  %8213 = vmatpush1.bf16.msra.mxu0 %v9669_v39  ;;  %v9756_v38 = vld [vmem:[%s11577_s17 + $0x164] ss:$8 sps:$4 sm:$0xff]  }
 0x13c   : > { %7806 = vmatprep.subr.bf16.mxu1 %v9670_v40  ;;  %8214 = vmatprep.subr.bf16.mxu0 %v9672_v41  ;;  %v9759_v39 = vld [vmem:[%s11577_s17 + $0x964] ss:$8 sps:$4 sm:$0xff]  }
 0x13d   : > { %v11684_v40 = vld [vmem:[%s12370_s0 + $0x8] sm:$0xff] }
 0x13e   : > { %v11689_v41 = vld [vmem:[%s12370_s0 + $0x88] sm:$0xff] }
 0x13f   : > { %7807 = vmatpush1.bf16.msra.mxu1 %v9674_v42  ;;  %8215 = vmatpush1.bf16.msra.mxu0 %v9675_v43  ;;  %v9754_v42 = vld [vmem:[%s11577_s17 + $0x160] ss:$8 sps:$4 sm:$0xff]   ;;  %v8894_v43 = vcombine.high %v11684_v40, %v11689_v41 }
 0x140   : > { %7808 = vmatprep.subr.bf16.mxu1 %v9676_v44  ;;  %8216 = vmatprep.subr.bf16.mxu0 %v9678_v45  ;;  %v9757_v44 = vld [vmem:[%s11577_s17 + $0x960] ss:$8 sps:$4 sm:$0xff]  }
 0x141   : > { %v11698_v45 = vld [vmem:[%s12370_s0 + $0x48] sm:$0xff] }
 0x143   : > { %7809 = vmatpush1.bf16.msra.mxu1 %v9680_v46  ;;  %8217 = vmatpush1.bf16.msra.mxu0 %v9681_v47  ;;  %v11703_v46 = vld [vmem:[%s12370_s0 + $0xc8] sm:$0xff]  ;;  %v9762_v47 = vld [vmem:[%s11577_s17 + $0x174] ss:$8 sps:$4 sm:$0xff]  }
 0x144   : > { %7810 = vmatprep.subr.bf16.mxu1 %v9682_v48  ;;  %8218 = vmatprep.subr.bf16.mxu0 %v9684_v49  ;;  %v8910_v48 = vcombine.high %v11698_v45, %v11703_v46  ;;  %v9765_v49 = vld [vmem:[%s11577_s17 + $0x974] ss:$8 sps:$4 sm:$0xff]  }
 0x147   : > { %7811 = vmatpush1.bf16.msra.mxu1 %v9686_v50  ;;  %8219 = vmatpush1.bf16.msra.mxu0 %v9687_v51  ;;  %v9760_v50 = vld [vmem:[%s11577_s17 + $0x170] ss:$8 sps:$4 sm:$0xff]  }
 0x148   : > { %7812 = vmatprep.subr.bf16.mxu1 %v9688_v52  ;;  %8220 = vmatprep.subr.bf16.mxu0 %v9690_v53  ;;  %v9763_v51 = vld [vmem:[%s11577_s17 + $0x970] ss:$8 sps:$4 sm:$0xff]   ;;  %v9768_v52 = vld [vmem:[%s11577_s17 + $0x184] ss:$8 sps:$4 sm:$0xff]  }
 0x149   : > { %v9771_v53 = vld [vmem:[%s11577_s17 + $0x984] ss:$8 sps:$4 sm:$0xff]  }
 0x14b   : > { %7813 = vmatpush1.bf16.msra.mxu1 %v9692_v54  ;;  %8221 = vmatpush1.bf16.msra.mxu0 %v9693_v55  ;;  %v9766_v54 = vld [vmem:[%s11577_s17 + $0x180] ss:$8 sps:$4 sm:$0xff]  }
 0x14c   : > { %7814 = vmatprep.subr.bf16.mxu1 %v9694_v56  ;;  %8222 = vmatprep.subr.bf16.mxu0 %v9696_v57  ;;  %v9769_v55 = vld [vmem:[%s11577_s17 + $0x980] ss:$8 sps:$4 sm:$0xff]   ;;  %v9774_v56 = vld [vmem:[%s11577_s17 + $0x194] ss:$8 sps:$4 sm:$0xff]  }
 0x14d   : > { %v9777_v57 = vld [vmem:[%s11577_s17 + $0x994] ss:$8 sps:$4 sm:$0xff]  }
 0x14f   : > { %7815 = vmatpush1.bf16.msra.mxu1 %v9698_v58  ;;  %8223 = vmatpush1.bf16.msra.mxu0 %v9699_v59  ;;  %v9772_v58 = vld [vmem:[%s11577_s17 + $0x190] ss:$8 sps:$4 sm:$0xff]  }
 0x150   : > { %7816 = vmatprep.subr.bf16.mxu1 %v9700_v60  ;;  %8224 = vmatprep.subr.bf16.mxu0 %v9702_v61  ;;  %v9775_v59 = vld [vmem:[%s11577_s17 + $0x990] ss:$8 sps:$4 sm:$0xff]   ;;  %v9780_v60 = vld [vmem:[%s11577_s17 + $0x1a4] ss:$8 sps:$4 sm:$0xff]  }
 0x151   : > { %v9783_v61 = vld [vmem:[%s11577_s17 + $0x9a4] ss:$8 sps:$4 sm:$0xff]  }
 0x153   : > { %7817 = vmatpush1.bf16.msra.mxu1 %v9704_v62  ;;  %8225 = vmatpush1.bf16.msra.mxu0 %v9705_v63  ;;  %v9778_v62 = vld [vmem:[%s11577_s17 + $0x1a0] ss:$8 sps:$4 sm:$0xff]  }
 0x154   : > { %7818 = vmatprep.subr.bf16.mxu1 %v9706_v4  ;;  %8226 = vmatprep.subr.bf16.mxu0 %v9708_v7  ;;  %v9781_v63 = vld [vmem:[%s11577_s17 + $0x9a0] ss:$8 sps:$4 sm:$0xff]   ;;  %v9786_v4 = vld [vmem:[%s11577_s17 + $0x1b4] ss:$8 sps:$4 sm:$0xff]  }
 0x155   : > { %v9789_v7 = vld [vmem:[%s11577_s17 + $0x9b4] ss:$8 sps:$4 sm:$0xff]  }
 0x157   : > { %7819 = vmatpush1.bf16.msra.mxu1 %v9710_v8  ;;  %8227 = vmatpush1.bf16.msra.mxu0 %v9711_v9  ;;  %v9784_v8 = vld [vmem:[%s11577_s17 + $0x1b0] ss:$8 sps:$4 sm:$0xff]  }
 0x158   : > { %7820 = vmatprep.subr.bf16.mxu1 %v9712_v10  ;;  %8228 = vmatprep.subr.bf16.mxu0 %v9714_v11  ;;  %v9787_v9 = vld [vmem:[%s11577_s17 + $0x9b0] ss:$8 sps:$4 sm:$0xff]   ;;  %v9792_v10 = vld [vmem:[%s11577_s17 + $0x1c4] ss:$8 sps:$4 sm:$0xff]  }
 0x159   : > { %v9795_v11 = vld [vmem:[%s11577_s17 + $0x9c4] ss:$8 sps:$4 sm:$0xff]  }
 0x15b   : > { %7821 = vmatpush1.bf16.msra.mxu1 %v9716_v12  ;;  %8229 = vmatpush1.bf16.msra.mxu0 %v9717_v13  ;;  %v9790_v12 = vld [vmem:[%s11577_s17 + $0x1c0] ss:$8 sps:$4 sm:$0xff]  }
 0x15c   : > { %7841 = vmatprep.subr.bf16.mxu1 %v9720_v14  ;;  %8249 = vmatprep.subr.bf16.mxu0 %v9723_v15  ;;  %v9793_v13 = vld [vmem:[%s11577_s17 + $0x9c0] ss:$8 sps:$4 sm:$0xff]   ;;  %v9798_v14 = vld [vmem:[%s11577_s17 + $0x1d4] ss:$8 sps:$4 sm:$0xff]  }
 0x15d   : > { %v9801_v15 = vld [vmem:[%s11577_s17 + $0x9d4] ss:$8 sps:$4 sm:$0xff]  }
 0x15e   : > { %7823 = vmatmul.mubr.bf16.vlgmr.msra.gmra.mrb[0].mxu1 %v8891_v3  ;;  %8231 = vmatmul.mubr.bf16.vlgmr.msra.gmra.mrb[0].mxu0 %v8907_v6  ;;  %v8923_v3 = vcombine.low %v4430_v16, %v4430_v16  ;;  %v9741_v6 = vld [vmem:[%s11577_s17 + $0x934] ss:$8 sps:$4 sm:$0xff]   ;;  %v9796_v16 = vld [vmem:[%s11577_s17 + $0x1d0] ss:$8 sps:$4 sm:$0xff]  }
 0x15f   : > { %7842 = vmatpush1.bf16.msra.mxu1 %v9718_v18  ;;  %8250 = vmatpush1.bf16.msra.mxu0 %v9721_v19  ;;  %v9805_v18 = vld [vmem:[%s11577_s17 + $0x1e4] ss:$8 sps:$4 sm:$0xff]  }
 0x160   : > { %7843 = vmatprep.subr.bf16.mxu1 %v9726_v20  ;;  %8251 = vmatprep.subr.bf16.mxu0 %v9729_v21  ;;  %v9809_v19 = vld [vmem:[%s11577_s17 + $0x9e4] ss:$8 sps:$4 sm:$0xff]   ;;  %v9803_v20 = vld [vmem:[%s11577_s17 + $0x1e0] ss:$8 sps:$4 sm:$0xff]  }
 0x161   : > { %7832 = vmatprep.mubr.bf16.mxu1 %v8924_v22  ;;  %8240 = vmatprep.mubr.bf16.mxu0 %v8940_v23  ;;  %v9807_v21 = vld [vmem:[%s11577_s17 + $0x9e0] ss:$8 sps:$4 sm:$0xff]   ;;  %v9814_v22 = vld [vmem:[%s11577_s17 + $0x1f4] ss:$8 sps:$4 sm:$0xff]  }
 0x162   : > { %v9817_v23 = vld [vmem:[%s11577_s17 + $0x9f4] ss:$8 sps:$4 sm:$0xff]  }
 0x163   : > { %7844 = vmatpush1.bf16.msra.mxu1 %v9724_v24  ;;  %8252 = vmatpush1.bf16.msra.mxu0 %v9727_v25  ;;  %v9812_v24 = vld [vmem:[%s11577_s17 + $0x1f0] ss:$8 sps:$4 sm:$0xff]  }
 0x164   : > { %7845 = vmatprep.subr.bf16.mxu1 %v9732_v26  ;;  %8253 = vmatprep.subr.bf16.mxu0 %v9735_v27  ;;  %v9815_v25 = vld [vmem:[%s11577_s17 + $0x9f0] ss:$8 sps:$4 sm:$0xff]   ;;  %v9820_v26 = vld [vmem:[%s11577_s17 + $0x204] ss:$8 sps:$4 sm:$0xff]  }
 0x165   : > { %v9823_v27 = vld [vmem:[%s11577_s17 + $0xa04] ss:$8 sps:$4 sm:$0xff]  }
 0x166   : > { %7833 = vmatmul.mubr.bf16.gmra.mrb[4].mxu1 %v8923_v3  ;;  %8241 = vmatmul.mubr.bf16.gmra.mrb[4].mxu0 %v8939_v2  ;;  %v8909_v3 = vcombine.low %v11698_v45, %v11703_v46  ;;  %v4439_v2 = vld [vmem:[%s12370_s0 + $0x148] sm:$0x11]  ;;  %v9841_v45 = vld [vmem:[%s11577_s17 + $0xa34] ss:$8 sps:$4 sm:$0xff]  }
 0x167   : > { %7846 = vmatpush1.bf16.msra.mxu1 %v9730_v0  ;;  %8254 = vmatpush1.bf16.msra.mxu0 %v9733_v1  ;;  %v4431_v0 = vld [vmem:[%s12370_s0 + $0x108] sm:$0x11]  ;;  %v8893_v1 = vcombine.low %v11684_v40, %v11689_v41  ;;  %v8941_v40 = vcombine.low %v4439_v2, %v4439_v2  ;;  %v11781_v41 = vld [vmem:[%s12370_s0 + $0xd0] sm:$0xff] }
 0x168   : > { %7847 = vmatprep.subr.bf16.mxu1 %v9738_v5  ;;  %8255 = vmatprep.subr.bf16.mxu0 %v9741_v6  ;;  %v9818_v5 = vld [vmem:[%s11577_s17 + $0x200] ss:$8 sps:$4 sm:$0xff]  }
 0x169   : > { %7873 = vmatprep.mubr.bf16.mxu1 %v8894_v43  ;;  %8281 = vmatprep.mubr.bf16.mxu0 %v8910_v48  ;;  %v9821_v6 = vld [vmem:[%s11577_s17 + $0xa00] ss:$8 sps:$4 sm:$0xff]   ;;  %v9836_v48 = vld [vmem:[%s11577_s17 + $0x230] ss:$8 sps:$4 sm:$0xff]  }
 0x16a   : > { %v9833_v43 = vld [vmem:[%s11577_s17 + $0xa20] ss:$8 sps:$4 sm:$0xff]  }
 0x16b   : > { %7848 = vmatpush1.bf16.msra.mxu1 %v9736_v28  ;;  %8256 = vmatpush1.bf16.msra.mxu0 %v9739_v29  ;;  %v9826_v28 = vld [vmem:[%s11577_s17 + $0x214] ss:$8 sps:$4 sm:$0xff]  }
 0x16c   : > { %7849 = vmatprep.subr.bf16.mxu1 %v9744_v30  ;;  %8257 = vmatprep.subr.bf16.mxu0 %v9747_v31  ;;  %v9829_v29 = vld [vmem:[%s11577_s17 + $0xa14] ss:$8 sps:$4 sm:$0xff]   ;;  %v8926_v30 = vcombine.high %v4431_v0, %v4431_v0  ;;  %v8942_v31 = vcombine.high %v4439_v2, %v4439_v2  ;;  %v9899_v2 = vld [vmem:[%s11577_s17 + $0xad0] ss:$8 sps:$4 sm:$0xff]  }
 0x16f   : > { %7850 = vmatpush1.bf16.msra.mxu1 %v9742_v32  ;;  %8258 = vmatpush1.bf16.msra.mxu0 %v9745_v33  ;;  %v9824_v32 = vld [vmem:[%s11577_s17 + $0x210] ss:$8 sps:$4 sm:$0xff]  }
 0x170   : > { %7851 = vmatprep.subr.bf16.mxu1 %v9750_v34  ;;  %8259 = vmatprep.subr.bf16.mxu0 %v9753_v35  ;;  %v9827_v33 = vld [vmem:[%s11577_s17 + $0xa10] ss:$8 sps:$4 sm:$0xff]   ;;  %v9832_v34 = vld [vmem:[%s11577_s17 + $0x224] ss:$8 sps:$4 sm:$0xff]  }
 0x171   : > { %v9835_v35 = vld [vmem:[%s11577_s17 + $0xa24] ss:$8 sps:$4 sm:$0xff]  }
 0x173   : > { %7852 = vmatpush1.bf16.msra.mxu1 %v9748_v36  ;;  %8260 = vmatpush1.bf16.msra.mxu0 %v9751_v37  ;;  %v11766_v36 = vld [vmem:[%s12370_s0 + $0x10] sm:$0xff] }
 0x174   : > { %7853 = vmatprep.subr.bf16.mxu1 %v9756_v38  ;;  %8261 = vmatprep.subr.bf16.mxu0 %v9759_v39  ;;  %v11771_v37 = vld [vmem:[%s12370_s0 + $0x90] sm:$0xff]  ;;  %v8925_v39 = vcombine.low %v4431_v0, %v4431_v0 }
 0x175   : > { %v11776_v38 = vld [vmem:[%s12370_s0 + $0x50] sm:$0xff]  ;;  %v8896_v46 = vcombine.high %v11766_v36, %v11771_v37 }
 0x176   : > { %v9898_v0 = vld [vmem:[%s11577_s17 + $0x2d4] ss:$8 sps:$4 sm:$0xff]  }
 0x177   : > { %7854 = vmatpush1.bf16.msra.mxu1 %v9754_v42  ;;  %8262 = vmatpush1.bf16.msra.mxu0 %v9757_v44  ;;  %v9830_v42 = vld [vmem:[%s11577_s17 + $0x220] ss:$8 sps:$4 sm:$0xff]   ;;  %v9838_v44 = vld [vmem:[%s11577_s17 + $0x234] ss:$8 sps:$4 sm:$0xff]  }
 0x178   : > { %7855 = vmatprep.subr.bf16.mxu1 %v9762_v47  ;;  %8263 = vmatprep.subr.bf16.mxu0 %v9765_v49  ;;  %v8912_v47 = vcombine.high %v11776_v38, %v11781_v41  ;;  %v9839_v49 = vld [vmem:[%s11577_s17 + $0xa30] ss:$8 sps:$4 sm:$0xff]  }
 0x17b   : > { %7856 = vmatpush1.bf16.msra.mxu1 %v9760_v50  ;;  %8264 = vmatpush1.bf16.msra.mxu0 %v9763_v51  ;;  %v9844_v50 = vld [vmem:[%s11577_s17 + $0x244] ss:$8 sps:$4 sm:$0xff]  }
 0x17c   : > { %7857 = vmatprep.subr.bf16.mxu1 %v9768_v52  ;;  %8265 = vmatprep.subr.bf16.mxu0 %v9771_v53  ;;  %v9847_v51 = vld [vmem:[%s11577_s17 + $0xa44] ss:$8 sps:$4 sm:$0xff]   ;;  %v9842_v52 = vld [vmem:[%s11577_s17 + $0x240] ss:$8 sps:$4 sm:$0xff]  }
 0x17d   : > { %v9845_v53 = vld [vmem:[%s11577_s17 + $0xa40] ss:$8 sps:$4 sm:$0xff]  }
 0x17f   : > { %7858 = vmatpush1.bf16.msra.mxu1 %v9766_v54  ;;  %8266 = vmatpush1.bf16.msra.mxu0 %v9769_v55  ;;  %v9850_v54 = vld [vmem:[%s11577_s17 + $0x254] ss:$8 sps:$4 sm:$0xff]  }
 0x180   : > { %7859 = vmatprep.subr.bf16.mxu1 %v9774_v56  ;;  %8267 = vmatprep.subr.bf16.mxu0 %v9777_v57  ;;  %v9853_v55 = vld [vmem:[%s11577_s17 + $0xa54] ss:$8 sps:$4 sm:$0xff]   ;;  %v9848_v56 = vld [vmem:[%s11577_s17 + $0x250] ss:$8 sps:$4 sm:$0xff]  }
 0x181   : > { %v9851_v57 = vld [vmem:[%s11577_s17 + $0xa50] ss:$8 sps:$4 sm:$0xff]  }
 0x183   : > { %7860 = vmatpush1.bf16.msra.mxu1 %v9772_v58  ;;  %8268 = vmatpush1.bf16.msra.mxu0 %v9775_v59  ;;  %v9856_v58 = vld [vmem:[%s11577_s17 + $0x264] ss:$8 sps:$4 sm:$0xff]  }
 0x184   : > { %7861 = vmatprep.subr.bf16.mxu1 %v9780_v60  ;;  %8269 = vmatprep.subr.bf16.mxu0 %v9783_v61  ;;  %v9859_v59 = vld [vmem:[%s11577_s17 + $0xa64] ss:$8 sps:$4 sm:$0xff]   ;;  %v9854_v60 = vld [vmem:[%s11577_s17 + $0x260] ss:$8 sps:$4 sm:$0xff]  }
 0x185   : > { %v9857_v61 = vld [vmem:[%s11577_s17 + $0xa60] ss:$8 sps:$4 sm:$0xff]  }
 0x187   : > { %7862 = vmatpush1.bf16.msra.mxu1 %v9778_v62  ;;  %8270 = vmatpush1.bf16.msra.mxu0 %v9781_v63  ;;  %v9862_v62 = vld [vmem:[%s11577_s17 + $0x274] ss:$8 sps:$4 sm:$0xff]  }
 0x188   : > { %7863 = vmatprep.subr.bf16.mxu1 %v9786_v4  ;;  %8271 = vmatprep.subr.bf16.mxu0 %v9789_v7  ;;  %v9865_v63 = vld [vmem:[%s11577_s17 + $0xa74] ss:$8 sps:$4 sm:$0xff]   ;;  %v9860_v4 = vld [vmem:[%s11577_s17 + $0x270] ss:$8 sps:$4 sm:$0xff]  }
 0x189   : > { %v9863_v7 = vld [vmem:[%s11577_s17 + $0xa70] ss:$8 sps:$4 sm:$0xff]  }
 0x18b   : > { %7864 = vmatpush1.bf16.msra.mxu1 %v9784_v8  ;;  %8272 = vmatpush1.bf16.msra.mxu0 %v9787_v9  ;;  %v9868_v8 = vld [vmem:[%s11577_s17 + $0x284] ss:$8 sps:$4 sm:$0xff]  }
 0x18c   : > { %7865 = vmatprep.subr.bf16.mxu1 %v9792_v10  ;;  %8273 = vmatprep.subr.bf16.mxu0 %v9795_v11  ;;  %v9871_v9 = vld [vmem:[%s11577_s17 + $0xa84] ss:$8 sps:$4 sm:$0xff]   ;;  %v9866_v10 = vld [vmem:[%s11577_s17 + $0x280] ss:$8 sps:$4 sm:$0xff]  }
 0x18d   : > { %v9869_v11 = vld [vmem:[%s11577_s17 + $0xa80] ss:$8 sps:$4 sm:$0xff]  }
 0x18f   : > { %7866 = vmatpush1.bf16.msra.mxu1 %v9790_v12  ;;  %8274 = vmatpush1.bf16.msra.mxu0 %v9793_v13  ;;  %v9874_v12 = vld [vmem:[%s11577_s17 + $0x294] ss:$8 sps:$4 sm:$0xff]  }
 0x190   : > { %7867 = vmatprep.subr.bf16.mxu1 %v9798_v14  ;;  %8275 = vmatprep.subr.bf16.mxu0 %v9801_v15  ;;  %v9877_v13 = vld [vmem:[%s11577_s17 + $0xa94] ss:$8 sps:$4 sm:$0xff]   ;;  %v9872_v14 = vld [vmem:[%s11577_s17 + $0x290] ss:$8 sps:$4 sm:$0xff]  }
 0x191   : > { %v9875_v15 = vld [vmem:[%s11577_s17 + $0xa90] ss:$8 sps:$4 sm:$0xff]  }
 0x193   : > { %7868 = vmatpush1.bf16.msra.mxu1 %v9796_v16  ;;  %8276 = vmatpush1.bf16.msra.mxu0 %v9799_v17  ;;  %v9880_v16 = vld [vmem:[%s11577_s17 + $0x2a4] ss:$8 sps:$4 sm:$0xff]  }
 0x194   : > { %7869 = vmatprep.subr.bf16.mxu1 %v9805_v18  ;;  %8277 = vmatprep.subr.bf16.mxu0 %v9809_v19  ;;  %v9883_v17 = vld [vmem:[%s11577_s17 + $0xaa4] ss:$8 sps:$4 sm:$0xff]   ;;  %v9878_v18 = vld [vmem:[%s11577_s17 + $0x2a0] ss:$8 sps:$4 sm:$0xff]  }
 0x195   : > { %v9881_v19 = vld [vmem:[%s11577_s17 + $0xaa0] ss:$8 sps:$4 sm:$0xff]  }
 0x197   : > { %7870 = vmatpush1.bf16.msra.mxu1 %v9803_v20  ;;  %8278 = vmatpush1.bf16.msra.mxu0 %v9807_v21  ;;  %v9886_v20 = vld [vmem:[%s11577_s17 + $0x2b4] ss:$8 sps:$4 sm:$0xff]  }
 0x198   : > { %7871 = vmatprep.subr.bf16.mxu1 %v9814_v22  ;;  %8279 = vmatprep.subr.bf16.mxu0 %v9817_v23  ;;  %v9889_v21 = vld [vmem:[%s11577_s17 + $0xab4] ss:$8 sps:$4 sm:$0xff]   ;;  %v9884_v22 = vld [vmem:[%s11577_s17 + $0x2b0] ss:$8 sps:$4 sm:$0xff]  }
 0x199   : > { %v9887_v23 = vld [vmem:[%s11577_s17 + $0xab0] ss:$8 sps:$4 sm:$0xff]  }
 0x19b   : > { %7872 = vmatpush1.bf16.msra.mxu1 %v9812_v24  ;;  %8280 = vmatpush1.bf16.msra.mxu0 %v9815_v25  ;;  %v9892_v24 = vld [vmem:[%s11577_s17 + $0x2c4] ss:$8 sps:$4 sm:$0xff]  }
 0x19c   : > { %7892 = vmatprep.subr.bf16.mxu1 %v9820_v26  ;;  %8300 = vmatprep.subr.bf16.mxu0 %v9823_v27  ;;  %v9895_v25 = vld [vmem:[%s11577_s17 + $0xac4] ss:$8 sps:$4 sm:$0xff]   ;;  %v9890_v26 = vld [vmem:[%s11577_s17 + $0x2c0] ss:$8 sps:$4 sm:$0xff]  }
 0x19d   : > { %v9893_v27 = vld [vmem:[%s11577_s17 + $0xac0] ss:$8 sps:$4 sm:$0xff]  }
 0x19e   : > { %7874 = vmatmul.mubr.bf16.vlgmr.msra.gmra.mrb[0].mxu1 %v8893_v1  ;;  %8282 = vmatmul.mubr.bf16.vlgmr.msra.gmra.mrb[0].mxu0 %v8909_v3  ;;  %v9901_v1 = vld [vmem:[%s11577_s17 + $0xad4] ss:$8 sps:$4 sm:$0xff]   ;;  %v9896_v3 = vld [vmem:[%s11577_s17 + $0x2d0] ss:$8 sps:$4 sm:$0xff]  }
 0x19f   : > { %7893 = vmatpush1.bf16.msra.mxu1 %v9818_v5  ;;  %8301 = vmatpush1.bf16.msra.mxu0 %v9821_v6  ;;  %v9905_v5 = vld [vmem:[%s11577_s17 + $0x2e4] ss:$8 sps:$4 sm:$0xff]  }
 0x1a0   : > { %7894 = vmatprep.subr.bf16.mxu1 %v9826_v28  ;;  %8302 = vmatprep.subr.bf16.mxu0 %v9829_v29  ;;  %v9909_v6 = vld [vmem:[%s11577_s17 + $0xae4] ss:$8 sps:$4 sm:$0xff]   ;;  %v9903_v28 = vld [vmem:[%s11577_s17 + $0x2e0] ss:$8 sps:$4 sm:$0xff]  }
 0x1a1   : > { %7883 = vmatprep.mubr.bf16.mxu1 %v8926_v30  ;;  %8291 = vmatprep.mubr.bf16.mxu0 %v8942_v31  ;;  %v9907_v29 = vld [vmem:[%s11577_s17 + $0xae0] ss:$8 sps:$4 sm:$0xff]   ;;  %v9914_v30 = vld [vmem:[%s11577_s17 + $0x2f4] ss:$8 sps:$4 sm:$0xff]  }
 0x1a2   : > { %v9917_v31 = vld [vmem:[%s11577_s17 + $0xaf4] ss:$8 sps:$4 sm:$0xff]  }
 0x1a3   : > { %7895 = vmatpush1.bf16.msra.mxu1 %v9824_v32  ;;  %8303 = vmatpush1.bf16.msra.mxu0 %v9827_v33  ;;  %v9912_v32 = vld [vmem:[%s11577_s17 + $0x2f0] ss:$8 sps:$4 sm:$0xff]  }
 0x1a4   : > { %7896 = vmatprep.subr.bf16.mxu1 %v9832_v34  ;;  %8304 = vmatprep.subr.bf16.mxu0 %v9835_v35  ;;  %v9915_v33 = vld [vmem:[%s11577_s17 + $0xaf0] ss:$8 sps:$4 sm:$0xff]   ;;  %v9920_v34 = vld [vmem:[%s11577_s17 + $0x304] ss:$8 sps:$4 sm:$0xff]  }
 0x1a5   : > { %v9923_v35 = vld [vmem:[%s11577_s17 + $0xb04] ss:$8 sps:$4 sm:$0xff]  }
 0x1a6   : > { %7884 = vmatmul.mubr.bf16.gmra.mrb[4].mxu1 %v8925_v39  ;;  %8292 = vmatmul.mubr.bf16.gmra.mrb[4].mxu0 %v8941_v40  ;;  %v9918_v39 = vld [vmem:[%s11577_s17 + $0x300] ss:$8 sps:$4 sm:$0xff]  }
 0x1a7   : > { %7897 = vmatpush1.bf16.msra.mxu1 %v9830_v42  ;;  %8305 = vmatpush1.bf16.msra.mxu0 %v9833_v43  ;;  %v9921_v40 = vld [vmem:[%s11577_s17 + $0xb00] ss:$8 sps:$4 sm:$0xff]   ;;  %v8895_v42 = vcombine.low %v11766_v36, %v11771_v37  ;;  %v8911_v43 = vcombine.low %v11776_v38, %v11781_v41  ;;  %v9929_v36 = vld [vmem:[%s11577_s17 + $0xb14] ss:$8 sps:$4 sm:$0xff]   ;;  %v9924_v41 = vld [vmem:[%s11577_s17 + $0x310] ss:$8 sps:$4 sm:$0xff]  }
 0x1a8   : > { %7898 = vmatprep.subr.bf16.mxu1 %v9838_v44  ;;  %8306 = vmatprep.subr.bf16.mxu0 %v9841_v45  ;;  %v4432_v44 = vld [vmem:[%s12370_s0 + $0x110] sm:$0x11] }
 0x1a9   : > { %7924 = vmatprep.mubr.bf16.mxu1 %v8896_v46  ;;  %8332 = vmatprep.mubr.bf16.mxu0 %v8912_v47  ;;  %v4440_v45 = vld [vmem:[%s12370_s0 + $0x150] sm:$0x11]  ;;  %v8928_v37 = vcombine.high %v4432_v44, %v4432_v44 }
 0x1aa   : > { %v9926_v46 = vld [vmem:[%s11577_s17 + $0x314] ss:$8 sps:$4 sm:$0xff]   ;;  %v8944_v38 = vcombine.high %v4440_v45, %v4440_v45  ;;  %v9927_v47 = vld [vmem:[%s11577_s17 + $0xb10] ss:$8 sps:$4 sm:$0xff]  }
 0x1ab   : > { %7899 = vmatpush1.bf16.msra.mxu1 %v9836_v48  ;;  %8307 = vmatpush1.bf16.msra.mxu0 %v9839_v49  ;;  %v9932_v48 = vld [vmem:[%s11577_s17 + $0x324] ss:$8 sps:$4 sm:$0xff]  }
 0x1ac   : > { %7900 = vmatprep.subr.bf16.mxu1 %v9844_v50  ;;  %8308 = vmatprep.subr.bf16.mxu0 %v9847_v51  ;;  %v9935_v49 = vld [vmem:[%s11577_s17 + $0xb24] ss:$8 sps:$4 sm:$0xff]   ;;  %v9930_v50 = vld [vmem:[%s11577_s17 + $0x320] ss:$8 sps:$4 sm:$0xff]  }
 0x1ad   : > { %v9933_v51 = vld [vmem:[%s11577_s17 + $0xb20] ss:$8 sps:$4 sm:$0xff]  }
 0x1af   : > { %7901 = vmatpush1.bf16.msra.mxu1 %v9842_v52  ;;  %8309 = vmatpush1.bf16.msra.mxu0 %v9845_v53  ;;  %v11866_v52 = vld [vmem:[%s12370_s0 + $0x18] sm:$0xff] }
 0x1b0   : > { %7902 = vmatprep.subr.bf16.mxu1 %v9850_v54  ;;  %8310 = vmatprep.subr.bf16.mxu0 %v9853_v55  ;;  %v11871_v53 = vld [vmem:[%s12370_s0 + $0x98] sm:$0xff]  ;;  %v8927_v54 = vcombine.low %v4432_v44, %v4432_v44  ;;  %v8943_v55 = vcombine.low %v4440_v45, %v4440_v45  ;;  %v10005_v44 = vld [vmem:[%s11577_s17 + $0x3e4] ss:$8 sps:$4 sm:$0xff]  }
 0x1b1   : > { %v10009_v45 = vld [vmem:[%s11577_s17 + $0xbe4] ss:$8 sps:$4 sm:$0xff]  }
 0x1b3   : > { %7903 = vmatpush1.bf16.msra.mxu1 %v9848_v56  ;;  %8311 = vmatpush1.bf16.msra.mxu0 %v9851_v57  ;;  %v11876_v56 = vld [vmem:[%s12370_s0 + $0x58] sm:$0xff] }
 0x1b4   : > { %7904 = vmatprep.subr.bf16.mxu1 %v9856_v58  ;;  %8312 = vmatprep.subr.bf16.mxu0 %v9859_v59  ;;  %v11881_v57 = vld [vmem:[%s12370_s0 + $0xd8] sm:$0xff] }
 0x1b5   : > { %v9938_v58 = vld [vmem:[%s11577_s17 + $0x334] ss:$8 sps:$4 sm:$0xff]  }
 0x1b6   : > { %v9941_v59 = vld [vmem:[%s11577_s17 + $0xb34] ss:$8 sps:$4 sm:$0xff]  }
 0x1b7   : > { %7905 = vmatpush1.bf16.msra.mxu1 %v9854_v60  ;;  %8313 = vmatpush1.bf16.msra.mxu0 %v9857_v61  ;;  %v8898_v60 = vcombine.high %v11866_v52, %v11871_v53  ;;  %v8914_v61 = vcombine.high %v11876_v56, %v11881_v57 }
 0x1b8   : > { %7906 = vmatprep.subr.bf16.mxu1 %v9862_v62  ;;  %8314 = vmatprep.subr.bf16.mxu0 %v9865_v63  ;;  %v9936_v62 = vld [vmem:[%s11577_s17 + $0x330] ss:$8 sps:$4 sm:$0xff]  }
 0x1b9   : > { %v9939_v63 = vld [vmem:[%s11577_s17 + $0xb30] ss:$8 sps:$4 sm:$0xff]  }
 0x1bb   : > { %7907 = vmatpush1.bf16.msra.mxu1 %v9860_v4  ;;  %8315 = vmatpush1.bf16.msra.mxu0 %v9863_v7  ;;  %v9944_v4 = vld [vmem:[%s11577_s17 + $0x344] ss:$8 sps:$4 sm:$0xff]  }
 0x1bc   : > { %7908 = vmatprep.subr.bf16.mxu1 %v9868_v8  ;;  %8316 = vmatprep.subr.bf16.mxu0 %v9871_v9  ;;  %v9947_v7 = vld [vmem:[%s11577_s17 + $0xb44] ss:$8 sps:$4 sm:$0xff]   ;;  %v9942_v8 = vld [vmem:[%s11577_s17 + $0x340] ss:$8 sps:$4 sm:$0xff]  }
 0x1bd   : > { %v9945_v9 = vld [vmem:[%s11577_s17 + $0xb40] ss:$8 sps:$4 sm:$0xff]  }
 0x1bf   : > { %7909 = vmatpush1.bf16.msra.mxu1 %v9866_v10  ;;  %8317 = vmatpush1.bf16.msra.mxu0 %v9869_v11  ;;  %v9950_v10 = vld [vmem:[%s11577_s17 + $0x354] ss:$8 sps:$4 sm:$0xff]  }
 0x1c0   : > { %7910 = vmatprep.subr.bf16.mxu1 %v9874_v12  ;;  %8318 = vmatprep.subr.bf16.mxu0 %v9877_v13  ;;  %v9953_v11 = vld [vmem:[%s11577_s17 + $0xb54] ss:$8 sps:$4 sm:$0xff]   ;;  %v9948_v12 = vld [vmem:[%s11577_s17 + $0x350] ss:$8 sps:$4 sm:$0xff]  }
 0x1c1   : > { %v9951_v13 = vld [vmem:[%s11577_s17 + $0xb50] ss:$8 sps:$4 sm:$0xff]  }
 0x1c3   : > { %7911 = vmatpush1.bf16.msra.mxu1 %v9872_v14  ;;  %8319 = vmatpush1.bf16.msra.mxu0 %v9875_v15  ;;  %v9956_v14 = vld [vmem:[%s11577_s17 + $0x364] ss:$8 sps:$4 sm:$0xff]  }
 0x1c4   : > { %7912 = vmatprep.subr.bf16.mxu1 %v9880_v16  ;;  %8320 = vmatprep.subr.bf16.mxu0 %v9883_v17  ;;  %v9959_v15 = vld [vmem:[%s11577_s17 + $0xb64] ss:$8 sps:$4 sm:$0xff]   ;;  %v9954_v16 = vld [vmem:[%s11577_s17 + $0x360] ss:$8 sps:$4 sm:$0xff]  }
 0x1c5   : > { %v9957_v17 = vld [vmem:[%s11577_s17 + $0xb60] ss:$8 sps:$4 sm:$0xff]  }
 0x1c7   : > { %7913 = vmatpush1.bf16.msra.mxu1 %v9878_v18  ;;  %8321 = vmatpush1.bf16.msra.mxu0 %v9881_v19  ;;  %v9962_v18 = vld [vmem:[%s11577_s17 + $0x374] ss:$8 sps:$4 sm:$0xff]  }
 0x1c8   : > { %7914 = vmatprep.subr.bf16.mxu1 %v9886_v20  ;;  %8322 = vmatprep.subr.bf16.mxu0 %v9889_v21  ;;  %v9965_v19 = vld [vmem:[%s11577_s17 + $0xb74] ss:$8 sps:$4 sm:$0xff]   ;;  %v9960_v20 = vld [vmem:[%s11577_s17 + $0x370] ss:$8 sps:$4 sm:$0xff]  }
 0x1c9   : > { %v9963_v21 = vld [vmem:[%s11577_s17 + $0xb70] ss:$8 sps:$4 sm:$0xff]  }
 0x1cb   : > { %7915 = vmatpush1.bf16.msra.mxu1 %v9884_v22  ;;  %8323 = vmatpush1.bf16.msra.mxu0 %v9887_v23  ;;  %v9968_v22 = vld [vmem:[%s11577_s17 + $0x384] ss:$8 sps:$4 sm:$0xff]  }
 0x1cc   : > { %7916 = vmatprep.subr.bf16.mxu1 %v9892_v24  ;;  %8324 = vmatprep.subr.bf16.mxu0 %v9895_v25  ;;  %v9971_v23 = vld [vmem:[%s11577_s17 + $0xb84] ss:$8 sps:$4 sm:$0xff]   ;;  %v9966_v24 = vld [vmem:[%s11577_s17 + $0x380] ss:$8 sps:$4 sm:$0xff]  }
 0x1cd   : > { %v9969_v25 = vld [vmem:[%s11577_s17 + $0xb80] ss:$8 sps:$4 sm:$0xff]  }
 0x1cf   : > { %7917 = vmatpush1.bf16.msra.mxu1 %v9890_v26  ;;  %8325 = vmatpush1.bf16.msra.mxu0 %v9893_v27  ;;  %v9974_v26 = vld [vmem:[%s11577_s17 + $0x394] ss:$8 sps:$4 sm:$0xff]  }
 0x1d0   : > { %7918 = vmatprep.subr.bf16.mxu1 %v9898_v0  ;;  %8326 = vmatprep.subr.bf16.mxu0 %v9901_v1  ;;  %v9977_v27 = vld [vmem:[%s11577_s17 + $0xb94] ss:$8 sps:$4 sm:$0xff]   ;;  %v9972_v0 = vld [vmem:[%s11577_s17 + $0x390] ss:$8 sps:$4 sm:$0xff]  }
 0x1d1   : > { %v9975_v1 = vld [vmem:[%s11577_s17 + $0xb90] ss:$8 sps:$4 sm:$0xff]  }
 0x1d3   : > { %7919 = vmatpush1.bf16.msra.mxu1 %v9896_v3  ;;  %8327 = vmatpush1.bf16.msra.mxu0 %v9899_v2  ;;  %v9980_v3 = vld [vmem:[%s11577_s17 + $0x3a4] ss:$8 sps:$4 sm:$0xff]  }
 0x1d4   : > { %7920 = vmatprep.subr.bf16.mxu1 %v9905_v5  ;;  %8328 = vmatprep.subr.bf16.mxu0 %v9909_v6  ;;  %v9983_v2 = vld [vmem:[%s11577_s17 + $0xba4] ss:$8 sps:$4 sm:$0xff]   ;;  %v9978_v5 = vld [vmem:[%s11577_s17 + $0x3a0] ss:$8 sps:$4 sm:$0xff]  }
 0x1d5   : > { %v9981_v6 = vld [vmem:[%s11577_s17 + $0xba0] ss:$8 sps:$4 sm:$0xff]  }
 0x1d7   : > { %7921 = vmatpush1.bf16.msra.mxu1 %v9903_v28  ;;  %8329 = vmatpush1.bf16.msra.mxu0 %v9907_v29  ;;  %v9986_v28 = vld [vmem:[%s11577_s17 + $0x3b4] ss:$8 sps:$4 sm:$0xff]  }
 0x1d8   : > { %7922 = vmatprep.subr.bf16.mxu1 %v9914_v30  ;;  %8330 = vmatprep.subr.bf16.mxu0 %v9917_v31  ;;  %v9989_v29 = vld [vmem:[%s11577_s17 + $0xbb4] ss:$8 sps:$4 sm:$0xff]   ;;  %v9984_v30 = vld [vmem:[%s11577_s17 + $0x3b0] ss:$8 sps:$4 sm:$0xff]  }
 0x1d9   : > { %v9987_v31 = vld [vmem:[%s11577_s17 + $0xbb0] ss:$8 sps:$4 sm:$0xff]  }
 0x1db   : > { %7923 = vmatpush1.bf16.msra.mxu1 %v9912_v32  ;;  %8331 = vmatpush1.bf16.msra.mxu0 %v9915_v33  ;;  %v9992_v32 = vld [vmem:[%s11577_s17 + $0x3c4] ss:$8 sps:$4 sm:$0xff]  }
 0x1dc   : > { %7943 = vmatprep.subr.bf16.mxu1 %v9920_v34  ;;  %8351 = vmatprep.subr.bf16.mxu0 %v9923_v35  ;;  %v9995_v33 = vld [vmem:[%s11577_s17 + $0xbc4] ss:$8 sps:$4 sm:$0xff]   ;;  %v9990_v34 = vld [vmem:[%s11577_s17 + $0x3c0] ss:$8 sps:$4 sm:$0xff]  }
 0x1dd   : > { %v9993_v35 = vld [vmem:[%s11577_s17 + $0xbc0] ss:$8 sps:$4 sm:$0xff]  }
 0x1de   : > { %7925 = vmatmul.mubr.bf16.vlgmr.msra.gmra.mrb[0].mxu1 %v8895_v42  ;;  %8333 = vmatmul.mubr.bf16.vlgmr.msra.gmra.mrb[0].mxu0 %v8911_v43  ;;  %v9996_v42 = vld [vmem:[%s11577_s17 + $0x3d0] ss:$8 sps:$4 sm:$0xff]  }
 0x1df   : > { %7944 = vmatpush1.bf16.msra.mxu1 %v9918_v39  ;;  %8352 = vmatpush1.bf16.msra.mxu0 %v9921_v40  ;;  %v9998_v39 = vld [vmem:[%s11577_s17 + $0x3d4] ss:$8 sps:$4 sm:$0xff]   ;;  %v9999_v43 = vld [vmem:[%s11577_s17 + $0xbd0] ss:$8 sps:$4 sm:$0xff]  }
 0x1e0   : > { %7945 = vmatprep.subr.bf16.mxu1 %v9926_v46  ;;  %8353 = vmatprep.subr.bf16.mxu0 %v9929_v36  ;;  %v10001_v40 = vld [vmem:[%s11577_s17 + $0xbd4] ss:$8 sps:$4 sm:$0xff]   ;;  %v10003_v46 = vld [vmem:[%s11577_s17 + $0x3e0] ss:$8 sps:$4 sm:$0xff]  }
 0x1e1   : > { %7934 = vmatprep.mubr.bf16.mxu1 %v8928_v37  ;;  %8342 = vmatprep.mubr.bf16.mxu0 %v8944_v38  ;;  %v10007_v36 = vld [vmem:[%s11577_s17 + $0xbe0] ss:$8 sps:$4 sm:$0xff]   ;;  %v10014_v37 = vld [vmem:[%s11577_s17 + $0x3f4] ss:$8 sps:$4 sm:$0xff]  }
 0x1e2   : > { %v10017_v38 = vld [vmem:[%s11577_s17 + $0xbf4] ss:$8 sps:$4 sm:$0xff]  }
 0x1e3   : > { %7946 = vmatpush1.bf16.msra.mxu1 %v9924_v41  ;;  %8354 = vmatpush1.bf16.msra.mxu0 %v9927_v47  ;;  %v10012_v41 = vld [vmem:[%s11577_s17 + $0x3f0] ss:$8 sps:$4 sm:$0xff]  }
 0x1e4   : > { %7947 = vmatprep.subr.bf16.mxu1 %v9932_v48  ;;  %8355 = vmatprep.subr.bf16.mxu0 %v9935_v49  ;;  %v10015_v47 = vld [vmem:[%s11577_s17 + $0xbf0] ss:$8 sps:$4 sm:$0xff]   ;;  %v10020_v48 = vld [vmem:[%s11577_s17 + $0x404] ss:$8 sps:$4 sm:$0xff]  }
 0x1e5   : > { %v10023_v49 = vld [vmem:[%s11577_s17 + $0xc04] ss:$8 sps:$4 sm:$0xff]  }
 0x1e6   : > { %7935 = vmatmul.mubr.bf16.gmra.mrb[4].mxu1 %v8927_v54  ;;  %8343 = vmatmul.mubr.bf16.gmra.mrb[4].mxu0 %v8943_v55  ;;  %v8913_v54 = vcombine.low %v11876_v56, %v11881_v57  ;;  %v4441_v55 = vld [vmem:[%s12370_s0 + $0x158] sm:$0x11]  ;;  %v10032_v57 = vld [vmem:[%s11577_s17 + $0x424] ss:$8 sps:$4 sm:$0xff]  }
 0x1e7   : > { %7948 = vmatpush1.bf16.msra.mxu1 %v9930_v50  ;;  %8356 = vmatpush1.bf16.msra.mxu0 %v9933_v51  ;;  %v4433_v50 = vld [vmem:[%s12370_s0 + $0x118] sm:$0x11]  ;;  %v8897_v51 = vcombine.low %v11866_v52, %v11871_v53  ;;  %v8946_v52 = vcombine.high %v4441_v55, %v4441_v55 }
 0x1e8   : > { %7949 = vmatprep.subr.bf16.mxu1 %v9938_v58  ;;  %8357 = vmatprep.subr.bf16.mxu0 %v9941_v59  ;;  %v10018_v58 = vld [vmem:[%s11577_s17 + $0x400] ss:$8 sps:$4 sm:$0xff]   ;;  %v10024_v53 = vld [vmem:[%s11577_s17 + $0x410] ss:$8 sps:$4 sm:$0xff]  }
 0x1e9   : > { %7975 = vmatprep.mubr.bf16.mxu1 %v8898_v60  ;;  %8383 = vmatprep.mubr.bf16.mxu0 %v8914_v61  ;;  %v10021_v59 = vld [vmem:[%s11577_s17 + $0xc00] ss:$8 sps:$4 sm:$0xff]   ;;  %v10026_v60 = vld [vmem:[%s11577_s17 + $0x414] ss:$8 sps:$4 sm:$0xff]   ;;  %v10027_v56 = vld [vmem:[%s11577_s17 + $0xc10] ss:$8 sps:$4 sm:$0xff]  }
 0x1ea   : > { %v10029_v61 = vld [vmem:[%s11577_s17 + $0xc14] ss:$8 sps:$4 sm:$0xff]  }
 0x1eb   : > { %7950 = vmatpush1.bf16.msra.mxu1 %v9936_v62  ;;  %8358 = vmatpush1.bf16.msra.mxu0 %v9939_v63  ;;  %v8930_v62 = vcombine.high %v4433_v50, %v4433_v50  ;;  %v10035_v63 = vld [vmem:[%s11577_s17 + $0xc24] ss:$8 sps:$4 sm:$0xff]  }
 0x1ec   : > { %7951 = vmatprep.subr.bf16.mxu1 %v9944_v4  ;;  %8359 = vmatprep.subr.bf16.mxu0 %v9947_v7  ;;  %v11962_v4 = vld [vmem:[%s12370_s0 + $0x20] sm:$0xff] }
 0x1ed   : > { %v11967_v7 = vld [vmem:[%s12370_s0 + $0xa0] sm:$0xff] }
 0x1ef   : > { %7952 = vmatpush1.bf16.msra.mxu1 %v9942_v8  ;;  %8360 = vmatpush1.bf16.msra.mxu0 %v9945_v9  ;;  %v8929_v8 = vcombine.low %v4433_v50, %v4433_v50  ;;  %v8945_v9 = vcombine.low %v4441_v55, %v4441_v55  ;;  %v10098_v50 = vld [vmem:[%s11577_s17 + $0x4d4] ss:$8 sps:$4 sm:$0xff]   ;;  %v10099_v55 = vld [vmem:[%s11577_s17 + $0xcd0] ss:$8 sps:$4 sm:$0xff]  }
 0x1f0   : > { %7953 = vmatprep.subr.bf16.mxu1 %v9950_v10  ;;  %8361 = vmatprep.subr.bf16.mxu0 %v9953_v11  ;;  %v11972_v10 = vld [vmem:[%s12370_s0 + $0x60] sm:$0xff] }
 0x1f1   : > { %v11977_v11 = vld [vmem:[%s12370_s0 + $0xe0] sm:$0xff] }
 0x1f3   : > { %7954 = vmatpush1.bf16.msra.mxu1 %v9948_v12  ;;  %8362 = vmatpush1.bf16.msra.mxu0 %v9951_v13  ;;  %v10030_v12 = vld [vmem:[%s11577_s17 + $0x420] ss:$8 sps:$4 sm:$0xff]  }
 0x1f4   : > { %7955 = vmatprep.subr.bf16.mxu1 %v9956_v14  ;;  %8363 = vmatprep.subr.bf16.mxu0 %v9959_v15  ;;  %v10033_v13 = vld [vmem:[%s11577_s17 + $0xc20] ss:$8 sps:$4 sm:$0xff]   ;;  %v10038_v14 = vld [vmem:[%s11577_s17 + $0x434] ss:$8 sps:$4 sm:$0xff]  }
 0x1f5   : > { %v10041_v15 = vld [vmem:[%s11577_s17 + $0xc34] ss:$8 sps:$4 sm:$0xff]  }
 0x1f7   : > { %7956 = vmatpush1.bf16.msra.mxu1 %v9954_v16  ;;  %8364 = vmatpush1.bf16.msra.mxu0 %v9957_v17  ;;  %v8900_v16 = vcombine.high %v11962_v4, %v11967_v7  ;;  %v8916_v17 = vcombine.high %v11972_v10, %v11977_v11 }
 0x1f8   : > { %7957 = vmatprep.subr.bf16.mxu1 %v9962_v18  ;;  %8365 = vmatprep.subr.bf16.mxu0 %v9965_v19  ;;  %v10036_v18 = vld [vmem:[%s11577_s17 + $0x430] ss:$8 sps:$4 sm:$0xff]  }
 0x1f9   : > { %v10039_v19 = vld [vmem:[%s11577_s17 + $0xc30] ss:$8 sps:$4 sm:$0xff]  }
 0x1fb   : > { %7958 = vmatpush1.bf16.msra.mxu1 %v9960_v20  ;;  %8366 = vmatpush1.bf16.msra.mxu0 %v9963_v21  ;;  %v10044_v20 = vld [vmem:[%s11577_s17 + $0x444] ss:$8 sps:$4 sm:$0xff]  }
 0x1fc   : > { %7959 = vmatprep.subr.bf16.mxu1 %v9968_v22  ;;  %8367 = vmatprep.subr.bf16.mxu0 %v9971_v23  ;;  %v10047_v21 = vld [vmem:[%s11577_s17 + $0xc44] ss:$8 sps:$4 sm:$0xff]   ;;  %v10042_v22 = vld [vmem:[%s11577_s17 + $0x440] ss:$8 sps:$4 sm:$0xff]  }
 0x1fd   : > { %v10045_v23 = vld [vmem:[%s11577_s17 + $0xc40] ss:$8 sps:$4 sm:$0xff]  }
 0x1ff   : > { %7960 = vmatpush1.bf16.msra.mxu1 %v9966_v24  ;;  %8368 = vmatpush1.bf16.msra.mxu0 %v9969_v25  ;;  %v10050_v24 = vld [vmem:[%s11577_s17 + $0x454] ss:$8 sps:$4 sm:$0xff]  }
 0x200   : > { %7961 = vmatprep.subr.bf16.mxu1 %v9974_v26  ;;  %8369 = vmatprep.subr.bf16.mxu0 %v9977_v27  ;;  %v10053_v25 = vld [vmem:[%s11577_s17 + $0xc54] ss:$8 sps:$4 sm:$0xff]   ;;  %v10048_v26 = vld [vmem:[%s11577_s17 + $0x450] ss:$8 sps:$4 sm:$0xff]  }
 0x201   : > { %v10051_v27 = vld [vmem:[%s11577_s17 + $0xc50] ss:$8 sps:$4 sm:$0xff]  }
 0x203   : > { %7962 = vmatpush1.bf16.msra.mxu1 %v9972_v0  ;;  %8370 = vmatpush1.bf16.msra.mxu0 %v9975_v1  ;;  %v10056_v0 = vld [vmem:[%s11577_s17 + $0x464] ss:$8 sps:$4 sm:$0xff]  }
 0x204   : > { %7963 = vmatprep.subr.bf16.mxu1 %v9980_v3  ;;  %8371 = vmatprep.subr.bf16.mxu0 %v9983_v2  ;;  %v10059_v1 = vld [vmem:[%s11577_s17 + $0xc64] ss:$8 sps:$4 sm:$0xff]   ;;  %v10054_v3 = vld [vmem:[%s11577_s17 + $0x460] ss:$8 sps:$4 sm:$0xff]  }
 0x205   : > { %v10057_v2 = vld [vmem:[%s11577_s17 + $0xc60] ss:$8 sps:$4 sm:$0xff]  }
 0x207   : > { %7964 = vmatpush1.bf16.msra.mxu1 %v9978_v5  ;;  %8372 = vmatpush1.bf16.msra.mxu0 %v9981_v6  ;;  %v10062_v5 = vld [vmem:[%s11577_s17 + $0x474] ss:$8 sps:$4 sm:$0xff]  }
 0x208   : > { %7965 = vmatprep.subr.bf16.mxu1 %v9986_v28  ;;  %8373 = vmatprep.subr.bf16.mxu0 %v9989_v29  ;;  %v10065_v6 = vld [vmem:[%s11577_s17 + $0xc74] ss:$8 sps:$4 sm:$0xff]   ;;  %v10060_v28 = vld [vmem:[%s11577_s17 + $0x470] ss:$8 sps:$4 sm:$0xff]  }
 0x209   : > { %v10063_v29 = vld [vmem:[%s11577_s17 + $0xc70] ss:$8 sps:$4 sm:$0xff]  }
 0x20b   : > { %7966 = vmatpush1.bf16.msra.mxu1 %v9984_v30  ;;  %8374 = vmatpush1.bf16.msra.mxu0 %v9987_v31  ;;  %v10068_v30 = vld [vmem:[%s11577_s17 + $0x484] ss:$8 sps:$4 sm:$0xff]  }
 0x20c   : > { %7967 = vmatprep.subr.bf16.mxu1 %v9992_v32  ;;  %8375 = vmatprep.subr.bf16.mxu0 %v9995_v33  ;;  %v10071_v31 = vld [vmem:[%s11577_s17 + $0xc84] ss:$8 sps:$4 sm:$0xff]   ;;  %v10066_v32 = vld [vmem:[%s11577_s17 + $0x480] ss:$8 sps:$4 sm:$0xff]  }
 0x20d   : > { %v10069_v33 = vld [vmem:[%s11577_s17 + $0xc80] ss:$8 sps:$4 sm:$0xff]  }
 0x20f   : > { %7968 = vmatpush1.bf16.msra.mxu1 %v9990_v34  ;;  %8376 = vmatpush1.bf16.msra.mxu0 %v9993_v35  ;;  %v10074_v34 = vld [vmem:[%s11577_s17 + $0x494] ss:$8 sps:$4 sm:$0xff]  }
 0x210   : > { %7969 = vmatprep.subr.bf16.mxu1 %v9998_v39  ;;  %8377 = vmatprep.subr.bf16.mxu0 %v10001_v40  ;;  %v10077_v35 = vld [vmem:[%s11577_s17 + $0xc94] ss:$8 sps:$4 sm:$0xff]   ;;  %v10072_v39 = vld [vmem:[%s11577_s17 + $0x490] ss:$8 sps:$4 sm:$0xff]  }
 0x211   : > { %v10075_v40 = vld [vmem:[%s11577_s17 + $0xc90] ss:$8 sps:$4 sm:$0xff]  }
 0x213   : > { %7970 = vmatpush1.bf16.msra.mxu1 %v9996_v42  ;;  %8378 = vmatpush1.bf16.msra.mxu0 %v9999_v43  ;;  %v10080_v42 = vld [vmem:[%s11577_s17 + $0x4a4] ss:$8 sps:$4 sm:$0xff]  }
 0x214   : > { %7971 = vmatprep.subr.bf16.mxu1 %v10005_v44  ;;  %8379 = vmatprep.subr.bf16.mxu0 %v10009_v45  ;;  %v10083_v43 = vld [vmem:[%s11577_s17 + $0xca4] ss:$8 sps:$4 sm:$0xff]   ;;  %v10078_v44 = vld [vmem:[%s11577_s17 + $0x4a0] ss:$8 sps:$4 sm:$0xff]  }
 0x215   : > { %v10081_v45 = vld [vmem:[%s11577_s17 + $0xca0] ss:$8 sps:$4 sm:$0xff]  }
 0x217   : > { %7972 = vmatpush1.bf16.msra.mxu1 %v10003_v46  ;;  %8380 = vmatpush1.bf16.msra.mxu0 %v10007_v36  ;;  %v10086_v46 = vld [vmem:[%s11577_s17 + $0x4b4] ss:$8 sps:$4 sm:$0xff]  }
 0x218   : > { %7973 = vmatprep.subr.bf16.mxu1 %v10014_v37  ;;  %8381 = vmatprep.subr.bf16.mxu0 %v10017_v38  ;;  %v10089_v36 = vld [vmem:[%s11577_s17 + $0xcb4] ss:$8 sps:$4 sm:$0xff]   ;;  %v10084_v37 = vld [vmem:[%s11577_s17 + $0x4b0] ss:$8 sps:$4 sm:$0xff]  }
 0x219   : > { %v10087_v38 = vld [vmem:[%s11577_s17 + $0xcb0] ss:$8 sps:$4 sm:$0xff]  }
 0x21b   : > { %7974 = vmatpush1.bf16.msra.mxu1 %v10012_v41  ;;  %8382 = vmatpush1.bf16.msra.mxu0 %v10015_v47  ;;  %v10092_v41 = vld [vmem:[%s11577_s17 + $0x4c4] ss:$8 sps:$4 sm:$0xff]  }
 0x21c   : > { %7994 = vmatprep.subr.bf16.mxu1 %v10020_v48  ;;  %8402 = vmatprep.subr.bf16.mxu0 %v10023_v49  ;;  %v10095_v47 = vld [vmem:[%s11577_s17 + $0xcc4] ss:$8 sps:$4 sm:$0xff]   ;;  %v10090_v48 = vld [vmem:[%s11577_s17 + $0x4c0] ss:$8 sps:$4 sm:$0xff]  }
 0x21d   : > { %v10093_v49 = vld [vmem:[%s11577_s17 + $0xcc0] ss:$8 sps:$4 sm:$0xff]  }
 0x21e   : > { %7976 = vmatmul.mubr.bf16.vlgmr.msra.gmra.mrb[0].mxu1 %v8897_v51  ;;  %8384 = vmatmul.mubr.bf16.vlgmr.msra.gmra.mrb[0].mxu0 %v8913_v54  ;;  %v10101_v51 = vld [vmem:[%s11577_s17 + $0xcd4] ss:$8 sps:$4 sm:$0xff]   ;;  %v10096_v54 = vld [vmem:[%s11577_s17 + $0x4d0] ss:$8 sps:$4 sm:$0xff]  }
 0x21f   : > { %7995 = vmatpush1.bf16.msra.mxu1 %v10018_v58  ;;  %8403 = vmatpush1.bf16.msra.mxu0 %v10021_v59  ;;  %v10105_v58 = vld [vmem:[%s11577_s17 + $0x4e4] ss:$8 sps:$4 sm:$0xff]  }
 0x220   : > { %7996 = vmatprep.subr.bf16.mxu1 %v10026_v60  ;;  %8404 = vmatprep.subr.bf16.mxu0 %v10029_v61  ;;  %v10109_v59 = vld [vmem:[%s11577_s17 + $0xce4] ss:$8 sps:$4 sm:$0xff]   ;;  %v10103_v60 = vld [vmem:[%s11577_s17 + $0x4e0] ss:$8 sps:$4 sm:$0xff]  }
 0x221   : > { %7985 = vmatprep.mubr.bf16.mxu1 %v8930_v62  ;;  %8393 = vmatprep.mubr.bf16.mxu0 %v8946_v52  ;;  %v10107_v61 = vld [vmem:[%s11577_s17 + $0xce0] ss:$8 sps:$4 sm:$0xff]   ;;  %v10114_v62 = vld [vmem:[%s11577_s17 + $0x4f4] ss:$8 sps:$4 sm:$0xff]  }
 0x222   : > { %v10117_v52 = vld [vmem:[%s11577_s17 + $0xcf4] ss:$8 sps:$4 sm:$0xff]  }
 0x223   : > { %7997 = vmatpush1.bf16.msra.mxu1 %v10024_v53  ;;  %8405 = vmatpush1.bf16.msra.mxu0 %v10027_v56  ;;  %v10112_v53 = vld [vmem:[%s11577_s17 + $0x4f0] ss:$8 sps:$4 sm:$0xff]  }
 0x224   : > { %7998 = vmatprep.subr.bf16.mxu1 %v10032_v57  ;;  %8406 = vmatprep.subr.bf16.mxu0 %v10035_v63  ;;  %v10115_v56 = vld [vmem:[%s11577_s17 + $0xcf0] ss:$8 sps:$4 sm:$0xff]   ;;  %v10120_v57 = vld [vmem:[%s11577_s17 + $0x504] ss:$8 sps:$4 sm:$0xff]  }
 0x225   : > { %v10123_v63 = vld [vmem:[%s11577_s17 + $0xd04] ss:$8 sps:$4 sm:$0xff]  }
 0x226   : > { %7986 = vmatmul.mubr.bf16.gmra.mrb[4].mxu1 %v8929_v8  ;;  %8394 = vmatmul.mubr.bf16.gmra.mrb[4].mxu0 %v8945_v9  ;;  %v4434_v8 = vld [vmem:[%s12370_s0 + $0x120] sm:$0x11] }
 0x227   : > { %7999 = vmatpush1.bf16.msra.mxu1 %v10030_v12  ;;  %8407 = vmatpush1.bf16.msra.mxu0 %v10033_v13  ;;  %v4442_v9 = vld [vmem:[%s12370_s0 + $0x160] sm:$0x11]  ;;  %v8899_v12 = vcombine.low %v11962_v4, %v11967_v7  ;;  %v8915_v13 = vcombine.low %v11972_v10, %v11977_v11  ;;  %v12060_v10 = vld [vmem:[%s12370_s0 + $0x28] sm:$0xff] }
 0x228   : > { %8000 = vmatprep.subr.bf16.mxu1 %v10038_v14  ;;  %8408 = vmatprep.subr.bf16.mxu0 %v10041_v15  ;;  %v10118_v14 = vld [vmem:[%s11577_s17 + $0x500] ss:$8 sps:$4 sm:$0xff]   ;;  %v10132_v4 = vld [vmem:[%s11577_s17 + $0x524] ss:$8 sps:$4 sm:$0xff]  }
 0x229   : > { %8026 = vmatprep.mubr.bf16.mxu1 %v8900_v16  ;;  %8434 = vmatprep.mubr.bf16.mxu0 %v8916_v17  ;;  %v10121_v15 = vld [vmem:[%s11577_s17 + $0xd00] ss:$8 sps:$4 sm:$0xff]   ;;  %v10126_v16 = vld [vmem:[%s11577_s17 + $0x514] ss:$8 sps:$4 sm:$0xff]   ;;  %v10135_v7 = vld [vmem:[%s11577_s17 + $0xd24] ss:$8 sps:$4 sm:$0xff]  }
 0x22a   : > { %v10129_v17 = vld [vmem:[%s11577_s17 + $0xd14] ss:$8 sps:$4 sm:$0xff]   ;;  %v12065_v11 = vld [vmem:[%s12370_s0 + $0xa8] sm:$0xff] }
 0x22b   : > { %8001 = vmatpush1.bf16.msra.mxu1 %v10036_v18  ;;  %8409 = vmatpush1.bf16.msra.mxu0 %v10039_v19  ;;  %v10124_v18 = vld [vmem:[%s11577_s17 + $0x510] ss:$8 sps:$4 sm:$0xff]  }
 0x22c   : > { %8002 = vmatprep.subr.bf16.mxu1 %v10044_v20  ;;  %8410 = vmatprep.subr.bf16.mxu0 %v10047_v21  ;;  %v10127_v19 = vld [vmem:[%s11577_s17 + $0xd10] ss:$8 sps:$4 sm:$0xff]   ;;  %v8932_v20 = vcombine.high %v4434_v8, %v4434_v8  ;;  %v8948_v21 = vcombine.high %v4442_v9, %v4442_v9 }
 0x22f   : > { %8003 = vmatpush1.bf16.msra.mxu1 %v10042_v22  ;;  %8411 = vmatpush1.bf16.msra.mxu0 %v10045_v23  ;;  %v12070_v22 = vld [vmem:[%s12370_s0 + $0x68] sm:$0xff] }
 0x230   : > { %8004 = vmatprep.subr.bf16.mxu1 %v10050_v24  ;;  %8412 = vmatprep.subr.bf16.mxu0 %v10053_v25  ;;  %v12075_v23 = vld [vmem:[%s12370_s0 + $0xe8] sm:$0xff]  ;;  %v8931_v24 = vcombine.low %v4434_v8, %v4434_v8  ;;  %v8947_v25 = vcombine.low %v4442_v9, %v4442_v9  ;;  %v10198_v8 = vld [vmem:[%s11577_s17 + $0x5d4] ss:$8 sps:$4 sm:$0xff]  }
 0x231   : > { %v10201_v9 = vld [vmem:[%s11577_s17 + $0xdd4] ss:$8 sps:$4 sm:$0xff]  }
 0x233   : > { %8005 = vmatpush1.bf16.msra.mxu1 %v10048_v26  ;;  %8413 = vmatpush1.bf16.msra.mxu0 %v10051_v27  ;;  %v10130_v26 = vld [vmem:[%s11577_s17 + $0x520] ss:$8 sps:$4 sm:$0xff]  }
 0x234   : > { %8006 = vmatprep.subr.bf16.mxu1 %v10056_v0  ;;  %8414 = vmatprep.subr.bf16.mxu0 %v10059_v1  ;;  %v10133_v27 = vld [vmem:[%s11577_s17 + $0xd20] ss:$8 sps:$4 sm:$0xff]   ;;  %v10138_v0 = vld [vmem:[%s11577_s17 + $0x534] ss:$8 sps:$4 sm:$0xff]  }
 0x235   : > { %v10141_v1 = vld [vmem:[%s11577_s17 + $0xd34] ss:$8 sps:$4 sm:$0xff]  }
 0x237   : > { %8007 = vmatpush1.bf16.msra.mxu1 %v10054_v3  ;;  %8415 = vmatpush1.bf16.msra.mxu0 %v10057_v2  ;;  %v8902_v3 = vcombine.high %v12060_v10, %v12065_v11  ;;  %v8918_v2 = vcombine.high %v12070_v22, %v12075_v23 }
 0x238   : > { %8008 = vmatprep.subr.bf16.mxu1 %v10062_v5  ;;  %8416 = vmatprep.subr.bf16.mxu0 %v10065_v6  ;;  %v10136_v5 = vld [vmem:[%s11577_s17 + $0x530] ss:$8 sps:$4 sm:$0xff]  }
 0x239   : > { %v10139_v6 = vld [vmem:[%s11577_s17 + $0xd30] ss:$8 sps:$4 sm:$0xff]  }
 0x23b   : > { %8009 = vmatpush1.bf16.msra.mxu1 %v10060_v28  ;;  %8417 = vmatpush1.bf16.msra.mxu0 %v10063_v29  ;;  %v10144_v28 = vld [vmem:[%s11577_s17 + $0x544] ss:$8 sps:$4 sm:$0xff]  }
 0x23c   : > { %8010 = vmatprep.subr.bf16.mxu1 %v10068_v30  ;;  %8418 = vmatprep.subr.bf16.mxu0 %v10071_v31  ;;  %v10147_v29 = vld [vmem:[%s11577_s17 + $0xd44] ss:$8 sps:$4 sm:$0xff]   ;;  %v10142_v30 = vld [vmem:[%s11577_s17 + $0x540] ss:$8 sps:$4 sm:$0xff]  }
 0x23d   : > { %v10145_v31 = vld [vmem:[%s11577_s17 + $0xd40] ss:$8 sps:$4 sm:$0xff]  }
 0x23f   : > { %8011 = vmatpush1.bf16.msra.mxu1 %v10066_v32  ;;  %8419 = vmatpush1.bf16.msra.mxu0 %v10069_v33  ;;  %v10150_v32 = vld [vmem:[%s11577_s17 + $0x554] ss:$8 sps:$4 sm:$0xff]  }
 0x240   : > { %8012 = vmatprep.subr.bf16.mxu1 %v10074_v34  ;;  %8420 = vmatprep.subr.bf16.mxu0 %v10077_v35  ;;  %v10153_v33 = vld [vmem:[%s11577_s17 + $0xd54] ss:$8 sps:$4 sm:$0xff]   ;;  %v10148_v34 = vld [vmem:[%s11577_s17 + $0x550] ss:$8 sps:$4 sm:$0xff]  }
 0x241   : > { %v10151_v35 = vld [vmem:[%s11577_s17 + $0xd50] ss:$8 sps:$4 sm:$0xff]  }
 0x243   : > { %8013 = vmatpush1.bf16.msra.mxu1 %v10072_v39  ;;  %8421 = vmatpush1.bf16.msra.mxu0 %v10075_v40  ;;  %v10156_v39 = vld [vmem:[%s11577_s17 + $0x564] ss:$8 sps:$4 sm:$0xff]  }
 0x244   : > { %8014 = vmatprep.subr.bf16.mxu1 %v10080_v42  ;;  %8422 = vmatprep.subr.bf16.mxu0 %v10083_v43  ;;  %v10159_v40 = vld [vmem:[%s11577_s17 + $0xd64] ss:$8 sps:$4 sm:$0xff]   ;;  %v10154_v42 = vld [vmem:[%s11577_s17 + $0x560] ss:$8 sps:$4 sm:$0xff]  }
 0x245   : > { %v10157_v43 = vld [vmem:[%s11577_s17 + $0xd60] ss:$8 sps:$4 sm:$0xff]  }
 0x247   : > { %8015 = vmatpush1.bf16.msra.mxu1 %v10078_v44  ;;  %8423 = vmatpush1.bf16.msra.mxu0 %v10081_v45  ;;  %v10162_v44 = vld [vmem:[%s11577_s17 + $0x574] ss:$8 sps:$4 sm:$0xff]  }
 0x248   : > { %8016 = vmatprep.subr.bf16.mxu1 %v10086_v46  ;;  %8424 = vmatprep.subr.bf16.mxu0 %v10089_v36  ;;  %v10165_v45 = vld [vmem:[%s11577_s17 + $0xd74] ss:$8 sps:$4 sm:$0xff]   ;;  %v10160_v46 = vld [vmem:[%s11577_s17 + $0x570] ss:$8 sps:$4 sm:$0xff]  }
 0x249   : > { %v10163_v36 = vld [vmem:[%s11577_s17 + $0xd70] ss:$8 sps:$4 sm:$0xff]  }
 0x24b   : > { %8017 = vmatpush1.bf16.msra.mxu1 %v10084_v37  ;;  %8425 = vmatpush1.bf16.msra.mxu0 %v10087_v38  ;;  %v10168_v37 = vld [vmem:[%s11577_s17 + $0x584] ss:$8 sps:$4 sm:$0xff]  }
 0x24c   : > { %8018 = vmatprep.subr.bf16.mxu1 %v10092_v41  ;;  %8426 = vmatprep.subr.bf16.mxu0 %v10095_v47  ;;  %v10171_v38 = vld [vmem:[%s11577_s17 + $0xd84] ss:$8 sps:$4 sm:$0xff]   ;;  %v10166_v41 = vld [vmem:[%s11577_s17 + $0x580] ss:$8 sps:$4 sm:$0xff]  }
 0x24d   : > { %v10169_v47 = vld [vmem:[%s11577_s17 + $0xd80] ss:$8 sps:$4 sm:$0xff]  }
 0x24f   : > { %8019 = vmatpush1.bf16.msra.mxu1 %v10090_v48  ;;  %8427 = vmatpush1.bf16.msra.mxu0 %v10093_v49  ;;  %v10174_v48 = vld [vmem:[%s11577_s17 + $0x594] ss:$8 sps:$4 sm:$0xff]  }
 0x250   : > { %8020 = vmatprep.subr.bf16.mxu1 %v10098_v50  ;;  %8428 = vmatprep.subr.bf16.mxu0 %v10101_v51  ;;  %v10177_v49 = vld [vmem:[%s11577_s17 + $0xd94] ss:$8 sps:$4 sm:$0xff]   ;;  %v10172_v50 = vld [vmem:[%s11577_s17 + $0x590] ss:$8 sps:$4 sm:$0xff]  }
 0x251   : > { %v10175_v51 = vld [vmem:[%s11577_s17 + $0xd90] ss:$8 sps:$4 sm:$0xff]  }
 0x253   : > { %8021 = vmatpush1.bf16.msra.mxu1 %v10096_v54  ;;  %8429 = vmatpush1.bf16.msra.mxu0 %v10099_v55  ;;  %v10180_v54 = vld [vmem:[%s11577_s17 + $0x5a4] ss:$8 sps:$4 sm:$0xff]  }
 0x254   : > { %8022 = vmatprep.subr.bf16.mxu1 %v10105_v58  ;;  %8430 = vmatprep.subr.bf16.mxu0 %v10109_v59  ;;  %v10183_v55 = vld [vmem:[%s11577_s17 + $0xda4] ss:$8 sps:$4 sm:$0xff]   ;;  %v10178_v58 = vld [vmem:[%s11577_s17 + $0x5a0] ss:$8 sps:$4 sm:$0xff]  }
 0x255   : > { %v10181_v59 = vld [vmem:[%s11577_s17 + $0xda0] ss:$8 sps:$4 sm:$0xff]  }
 0x257   : > { %8023 = vmatpush1.bf16.msra.mxu1 %v10103_v60  ;;  %8431 = vmatpush1.bf16.msra.mxu0 %v10107_v61  ;;  %v10186_v60 = vld [vmem:[%s11577_s17 + $0x5b4] ss:$8 sps:$4 sm:$0xff]  }
 0x258   : > { %8024 = vmatprep.subr.bf16.mxu1 %v10114_v62  ;;  %8432 = vmatprep.subr.bf16.mxu0 %v10117_v52  ;;  %v10189_v61 = vld [vmem:[%s11577_s17 + $0xdb4] ss:$8 sps:$4 sm:$0xff]   ;;  %v10184_v62 = vld [vmem:[%s11577_s17 + $0x5b0] ss:$8 sps:$4 sm:$0xff]  }
 0x259   : > { %v10187_v52 = vld [vmem:[%s11577_s17 + $0xdb0] ss:$8 sps:$4 sm:$0xff]  }
 0x25b   : > { %8025 = vmatpush1.bf16.msra.mxu1 %v10112_v53  ;;  %8433 = vmatpush1.bf16.msra.mxu0 %v10115_v56  ;;  %v10192_v53 = vld [vmem:[%s11577_s17 + $0x5c4] ss:$8 sps:$4 sm:$0xff]  }
 0x25c   : > { %8045 = vmatprep.subr.bf16.mxu1 %v10120_v57  ;;  %8453 = vmatprep.subr.bf16.mxu0 %v10123_v63  ;;  %v10195_v56 = vld [vmem:[%s11577_s17 + $0xdc4] ss:$8 sps:$4 sm:$0xff]   ;;  %v10190_v57 = vld [vmem:[%s11577_s17 + $0x5c0] ss:$8 sps:$4 sm:$0xff]  }
 0x25d   : > { %v10193_v63 = vld [vmem:[%s11577_s17 + $0xdc0] ss:$8 sps:$4 sm:$0xff]  }
 0x25e   : > { %8027 = vmatmul.mubr.bf16.vlgmr.msra.gmra.mrb[0].mxu1 %v8899_v12  ;;  %8435 = vmatmul.mubr.bf16.vlgmr.msra.gmra.mrb[0].mxu0 %v8915_v13  ;;  %v10196_v12 = vld [vmem:[%s11577_s17 + $0x5d0] ss:$8 sps:$4 sm:$0xff]  }
 0x25f   : > { %8046 = vmatpush1.bf16.msra.mxu1 %v10118_v14  ;;  %8454 = vmatpush1.bf16.msra.mxu0 %v10121_v15  ;;  %v10199_v13 = vld [vmem:[%s11577_s17 + $0xdd0] ss:$8 sps:$4 sm:$0xff]   ;;  %v10205_v14 = vld [vmem:[%s11577_s17 + $0x5e4] ss:$8 sps:$4 sm:$0xff]  }
 0x260   : > { %8047 = vmatprep.subr.bf16.mxu1 %v10126_v16  ;;  %8455 = vmatprep.subr.bf16.mxu0 %v10129_v17  ;;  %v10209_v15 = vld [vmem:[%s11577_s17 + $0xde4] ss:$8 sps:$4 sm:$0xff]   ;;  %v10203_v16 = vld [vmem:[%s11577_s17 + $0x5e0] ss:$8 sps:$4 sm:$0xff]  }
 0x261   : > { %8036 = vmatprep.mubr.bf16.mxu1 %v8932_v20  ;;  %8444 = vmatprep.mubr.bf16.mxu0 %v8948_v21  ;;  %v10207_v17 = vld [vmem:[%s11577_s17 + $0xde0] ss:$8 sps:$4 sm:$0xff]   ;;  %v10212_v20 = vld [vmem:[%s11577_s17 + $0x5f0] ss:$8 sps:$4 sm:$0xff]  }
 0x262   : > { %v10215_v21 = vld [vmem:[%s11577_s17 + $0xdf0] ss:$8 sps:$4 sm:$0xff]  }
 0x263   : > { %8048 = vmatpush1.bf16.msra.mxu1 %v10124_v18  ;;  %8456 = vmatpush1.bf16.msra.mxu0 %v10127_v19  ;;  %v10214_v18 = vld [vmem:[%s11577_s17 + $0x5f4] ss:$8 sps:$4 sm:$0xff]  }
 0x264   : > { %8049 = vmatprep.subr.bf16.mxu1 %v10132_v4  ;;  %8457 = vmatprep.subr.bf16.mxu0 %v10135_v7  ;;  %v10217_v19 = vld [vmem:[%s11577_s17 + $0xdf4] ss:$8 sps:$4 sm:$0xff]   ;;  %v10220_v4 = vld [vmem:[%s11577_s17 + $0x604] ss:$8 sps:$4 sm:$0xff]  }
 0x265   : > { %v10223_v7 = vld [vmem:[%s11577_s17 + $0xe04] ss:$8 sps:$4 sm:$0xff]  }
 0x266   : > { %8037 = vmatmul.mubr.bf16.gmra.mrb[4].mxu1 %v8931_v24  ;;  %8445 = vmatmul.mubr.bf16.gmra.mrb[4].mxu0 %v8947_v25  ;;  %v8901_v24 = vcombine.low %v12060_v10, %v12065_v11  ;;  %v8917_v25 = vcombine.low %v12070_v22, %v12075_v23  ;;  %v10226_v10 = vld [vmem:[%s11577_s17 + $0x614] ss:$8 sps:$4 sm:$0xff]  }
 0x267   : > { %8050 = vmatpush1.bf16.msra.mxu1 %v10130_v26  ;;  %8458 = vmatpush1.bf16.msra.mxu0 %v10133_v27  ;;  %v4435_v26 = vld [vmem:[%s12370_s0 + $0x128] sm:$0x11]  ;;  %v10229_v11 = vld [vmem:[%s11577_s17 + $0xe14] ss:$8 sps:$4 sm:$0xff]  }
 0x268   : > { %8051 = vmatprep.subr.bf16.mxu1 %v10138_v0  ;;  %8459 = vmatprep.subr.bf16.mxu0 %v10141_v1  ;;  %v4443_v27 = vld [vmem:[%s12370_s0 + $0x168] sm:$0x11]  ;;  %v8934_v22 = vcombine.high %v4435_v26, %v4435_v26 }
 0x269   : > { %8077 = vmatprep.mubr.bf16.mxu1 %v8902_v3  ;;  %8485 = vmatprep.mubr.bf16.mxu0 %v8918_v2  ;;  %v10218_v0 = vld [vmem:[%s11577_s17 + $0x600] ss:$8 sps:$4 sm:$0xff]   ;;  %v8950_v23 = vcombine.high %v4443_v27, %v4443_v27  ;;  %v10224_v3 = vld [vmem:[%s11577_s17 + $0x610] ss:$8 sps:$4 sm:$0xff]  }
 0x26a   : > { %v10221_v1 = vld [vmem:[%s11577_s17 + $0xe00] ss:$8 sps:$4 sm:$0xff]   ;;  %v10227_v2 = vld [vmem:[%s11577_s17 + $0xe10] ss:$8 sps:$4 sm:$0xff]  }
 0x26b   : > { %8052 = vmatpush1.bf16.msra.mxu1 %v10136_v5  ;;  %8460 = vmatpush1.bf16.msra.mxu0 %v10139_v6  ;;  %v10232_v5 = vld [vmem:[%s11577_s17 + $0x624] ss:$8 sps:$4 sm:$0xff]  }
 0x26c   : > { %8053 = vmatprep.subr.bf16.mxu1 %v10144_v28  ;;  %8461 = vmatprep.subr.bf16.mxu0 %v10147_v29  ;;  %v10235_v6 = vld [vmem:[%s11577_s17 + $0xe24] ss:$8 sps:$4 sm:$0xff]   ;;  %v12158_v28 = vld [vmem:[%s12370_s0 + $0x30] sm:$0xff]  ;;  %v8933_v29 = vcombine.low %v4435_v26, %v4435_v26 }
 0x26d   : > { %v10296_v26 = vld [vmem:[%s11577_s17 + $0x6d0] ss:$8 sps:$4 sm:$0xff]  }
 0x26f   : > { %8054 = vmatpush1.bf16.msra.mxu1 %v10142_v30  ;;  %8462 = vmatpush1.bf16.msra.mxu0 %v10145_v31  ;;  %v8949_v30 = vcombine.low %v4443_v27, %v4443_v27  ;;  %v12163_v31 = vld [vmem:[%s12370_s0 + $0xb0] sm:$0xff] }
 0x270   : > { %8055 = vmatprep.subr.bf16.mxu1 %v10150_v32  ;;  %8463 = vmatprep.subr.bf16.mxu0 %v10153_v33  ;;  %v12168_v32 = vld [vmem:[%s12370_s0 + $0x70] sm:$0xff] }
 0x271   : > { %v12173_v33 = vld [vmem:[%s12370_s0 + $0xf0] sm:$0xff] }
 0x272   : > { %v10299_v27 = vld [vmem:[%s11577_s17 + $0xed0] ss:$8 sps:$4 sm:$0xff]  }
 0x273   : > { %8056 = vmatpush1.bf16.msra.mxu1 %v10148_v34  ;;  %8464 = vmatpush1.bf16.msra.mxu0 %v10151_v35  ;;  %v10230_v34 = vld [vmem:[%s11577_s17 + $0x620] ss:$8 sps:$4 sm:$0xff]  }
 0x274   : > { %8057 = vmatprep.subr.bf16.mxu1 %v10156_v39  ;;  %8465 = vmatprep.subr.bf16.mxu0 %v10159_v40  ;;  %v10233_v35 = vld [vmem:[%s11577_s17 + $0xe20] ss:$8 sps:$4 sm:$0xff]   ;;  %v10238_v39 = vld [vmem:[%s11577_s17 + $0x634] ss:$8 sps:$4 sm:$0xff]  }
 0x275   : > { %v10241_v40 = vld [vmem:[%s11577_s17 + $0xe34] ss:$8 sps:$4 sm:$0xff]  }
 0x277   : > { %8058 = vmatpush1.bf16.msra.mxu1 %v10154_v42  ;;  %8466 = vmatpush1.bf16.msra.mxu0 %v10157_v43  ;;  %v8904_v42 = vcombine.high %v12158_v28, %v12163_v31  ;;  %v8920_v43 = vcombine.high %v12168_v32, %v12173_v33 }
 0x278   : > { %8059 = vmatprep.subr.bf16.mxu1 %v10162_v44  ;;  %8467 = vmatprep.subr.bf16.mxu0 %v10165_v45  ;;  %v10236_v44 = vld [vmem:[%s11577_s17 + $0x630] ss:$8 sps:$4 sm:$0xff]  }
 0x279   : > { %v10239_v45 = vld [vmem:[%s11577_s17 + $0xe30] ss:$8 sps:$4 sm:$0xff]  }
 0x27b   : > { %8060 = vmatpush1.bf16.msra.mxu1 %v10160_v46  ;;  %8468 = vmatpush1.bf16.msra.mxu0 %v10163_v36  ;;  %v10244_v46 = vld [vmem:[%s11577_s17 + $0x644] ss:$8 sps:$4 sm:$0xff]  }
 0x27c   : > { %8061 = vmatprep.subr.bf16.mxu1 %v10168_v37  ;;  %8469 = vmatprep.subr.bf16.mxu0 %v10171_v38  ;;  %v10247_v36 = vld [vmem:[%s11577_s17 + $0xe44] ss:$8 sps:$4 sm:$0xff]   ;;  %v10242_v37 = vld [vmem:[%s11577_s17 + $0x640] ss:$8 sps:$4 sm:$0xff]  }
 0x27d   : > { %v10245_v38 = vld [vmem:[%s11577_s17 + $0xe40] ss:$8 sps:$4 sm:$0xff]  }
 0x27f   : > { %8062 = vmatpush1.bf16.msra.mxu1 %v10166_v41  ;;  %8470 = vmatpush1.bf16.msra.mxu0 %v10169_v47  ;;  %v10250_v41 = vld [vmem:[%s11577_s17 + $0x654] ss:$8 sps:$4 sm:$0xff]  }
 0x280   : > { %8063 = vmatprep.subr.bf16.mxu1 %v10174_v48  ;;  %8471 = vmatprep.subr.bf16.mxu0 %v10177_v49  ;;  %v10253_v47 = vld [vmem:[%s11577_s17 + $0xe54] ss:$8 sps:$4 sm:$0xff]   ;;  %v10248_v48 = vld [vmem:[%s11577_s17 + $0x650] ss:$8 sps:$4 sm:$0xff]  }
 0x281   : > { %v10251_v49 = vld [vmem:[%s11577_s17 + $0xe50] ss:$8 sps:$4 sm:$0xff]  }
 0x283   : > { %8064 = vmatpush1.bf16.msra.mxu1 %v10172_v50  ;;  %8472 = vmatpush1.bf16.msra.mxu0 %v10175_v51  ;;  %v10256_v50 = vld [vmem:[%s11577_s17 + $0x664] ss:$8 sps:$4 sm:$0xff]  }
 0x284   : > { %8065 = vmatprep.subr.bf16.mxu1 %v10180_v54  ;;  %8473 = vmatprep.subr.bf16.mxu0 %v10183_v55  ;;  %v10259_v51 = vld [vmem:[%s11577_s17 + $0xe64] ss:$8 sps:$4 sm:$0xff]   ;;  %v10254_v54 = vld [vmem:[%s11577_s17 + $0x660] ss:$8 sps:$4 sm:$0xff]  }
 0x285   : > { %v10257_v55 = vld [vmem:[%s11577_s17 + $0xe60] ss:$8 sps:$4 sm:$0xff]  }
 0x287   : > { %8066 = vmatpush1.bf16.msra.mxu1 %v10178_v58  ;;  %8474 = vmatpush1.bf16.msra.mxu0 %v10181_v59  ;;  %v10262_v58 = vld [vmem:[%s11577_s17 + $0x674] ss:$8 sps:$4 sm:$0xff]  }
 0x288   : > { %8067 = vmatprep.subr.bf16.mxu1 %v10186_v60  ;;  %8475 = vmatprep.subr.bf16.mxu0 %v10189_v61  ;;  %v10265_v59 = vld [vmem:[%s11577_s17 + $0xe74] ss:$8 sps:$4 sm:$0xff]   ;;  %v10260_v60 = vld [vmem:[%s11577_s17 + $0x670] ss:$8 sps:$4 sm:$0xff]  }
 0x289   : > { %v10263_v61 = vld [vmem:[%s11577_s17 + $0xe70] ss:$8 sps:$4 sm:$0xff]  }
 0x28b   : > { %8068 = vmatpush1.bf16.msra.mxu1 %v10184_v62  ;;  %8476 = vmatpush1.bf16.msra.mxu0 %v10187_v52  ;;  %v10268_v62 = vld [vmem:[%s11577_s17 + $0x684] ss:$8 sps:$4 sm:$0xff]  }
 0x28c   : > { %8069 = vmatprep.subr.bf16.mxu1 %v10192_v53  ;;  %8477 = vmatprep.subr.bf16.mxu0 %v10195_v56  ;;  %v10271_v52 = vld [vmem:[%s11577_s17 + $0xe84] ss:$8 sps:$4 sm:$0xff]   ;;  %v10266_v53 = vld [vmem:[%s11577_s17 + $0x680] ss:$8 sps:$4 sm:$0xff]  }
 0x28d   : > { %v10269_v56 = vld [vmem:[%s11577_s17 + $0xe80] ss:$8 sps:$4 sm:$0xff]  }
 0x28f   : > { %8070 = vmatpush1.bf16.msra.mxu1 %v10190_v57  ;;  %8478 = vmatpush1.bf16.msra.mxu0 %v10193_v63  ;;  %v10274_v57 = vld [vmem:[%s11577_s17 + $0x694] ss:$8 sps:$4 sm:$0xff]  }
 0x290   : > { %8071 = vmatprep.subr.bf16.mxu1 %v10198_v8  ;;  %8479 = vmatprep.subr.bf16.mxu0 %v10201_v9  ;;  %v10277_v63 = vld [vmem:[%s11577_s17 + $0xe94] ss:$8 sps:$4 sm:$0xff]   ;;  %v10272_v8 = vld [vmem:[%s11577_s17 + $0x690] ss:$8 sps:$4 sm:$0xff]  }
 0x291   : > { %v10275_v9 = vld [vmem:[%s11577_s17 + $0xe90] ss:$8 sps:$4 sm:$0xff]  }
 0x293   : > { %8072 = vmatpush1.bf16.msra.mxu1 %v10196_v12  ;;  %8480 = vmatpush1.bf16.msra.mxu0 %v10199_v13  ;;  %v10280_v12 = vld [vmem:[%s11577_s17 + $0x6a4] ss:$8 sps:$4 sm:$0xff]  }
 0x294   : > { %8073 = vmatprep.subr.bf16.mxu1 %v10205_v14  ;;  %8481 = vmatprep.subr.bf16.mxu0 %v10209_v15  ;;  %v10283_v13 = vld [vmem:[%s11577_s17 + $0xea4] ss:$8 sps:$4 sm:$0xff]   ;;  %v10278_v14 = vld [vmem:[%s11577_s17 + $0x6a0] ss:$8 sps:$4 sm:$0xff]  }
 0x295   : > { %v10281_v15 = vld [vmem:[%s11577_s17 + $0xea0] ss:$8 sps:$4 sm:$0xff]  }
 0x297   : > { %8074 = vmatpush1.bf16.msra.mxu1 %v10203_v16  ;;  %8482 = vmatpush1.bf16.msra.mxu0 %v10207_v17  ;;  %v10286_v16 = vld [vmem:[%s11577_s17 + $0x6b4] ss:$8 sps:$4 sm:$0xff]  }
 0x298   : > { %8075 = vmatprep.subr.bf16.mxu1 %v10214_v18  ;;  %8483 = vmatprep.subr.bf16.mxu0 %v10217_v19  ;;  %v10289_v17 = vld [vmem:[%s11577_s17 + $0xeb4] ss:$8 sps:$4 sm:$0xff]   ;;  %v10284_v18 = vld [vmem:[%s11577_s17 + $0x6b0] ss:$8 sps:$4 sm:$0xff]  }
 0x299   : > { %v10287_v19 = vld [vmem:[%s11577_s17 + $0xeb0] ss:$8 sps:$4 sm:$0xff]  }
 0x29b   : > { %8076 = vmatpush1.bf16.msra.mxu1 %v10212_v20  ;;  %8484 = vmatpush1.bf16.msra.mxu0 %v10215_v21  ;;  %v10292_v20 = vld [vmem:[%s11577_s17 + $0x6c4] ss:$8 sps:$4 sm:$0xff]  }
 0x29c   : > { %8096 = vmatprep.subr.bf16.mxu1 %v10220_v4  ;;  %8504 = vmatprep.subr.bf16.mxu0 %v10223_v7  ;;  %v10295_v21 = vld [vmem:[%s11577_s17 + $0xec4] ss:$8 sps:$4 sm:$0xff]   ;;  %v10290_v4 = vld [vmem:[%s11577_s17 + $0x6c0] ss:$8 sps:$4 sm:$0xff]  }
 0x29d   : > { %v10293_v7 = vld [vmem:[%s11577_s17 + $0xec0] ss:$8 sps:$4 sm:$0xff]  }
 0x29e   : > { %8078 = vmatmul.mubr.bf16.vlgmr.msra.gmra.mrb[0].mxu1 %v8901_v24  ;;  %8486 = vmatmul.mubr.bf16.vlgmr.msra.gmra.mrb[0].mxu0 %v8917_v25  ;;  %v10298_v24 = vld [vmem:[%s11577_s17 + $0x6d4] ss:$8 sps:$4 sm:$0xff]  }
 0x29f   : > { %8097 = vmatpush1.bf16.msra.mxu1 %v10218_v0  ;;  %8505 = vmatpush1.bf16.msra.mxu0 %v10221_v1  ;;  %v10301_v25 = vld [vmem:[%s11577_s17 + $0xed4] ss:$8 sps:$4 sm:$0xff]   ;;  %v10305_v0 = vld [vmem:[%s11577_s17 + $0x6e4] ss:$8 sps:$4 sm:$0xff]  }
 0x2a0   : > { %8098 = vmatprep.subr.bf16.mxu1 %v10226_v10  ;;  %8506 = vmatprep.subr.bf16.mxu0 %v10229_v11  ;;  %v10309_v1 = vld [vmem:[%s11577_s17 + $0xee4] ss:$8 sps:$4 sm:$0xff]   ;;  %v10303_v10 = vld [vmem:[%s11577_s17 + $0x6e0] ss:$8 sps:$4 sm:$0xff]  }
 0x2a1   : > { %8087 = vmatprep.mubr.bf16.mxu1 %v8934_v22  ;;  %8495 = vmatprep.mubr.bf16.mxu0 %v8950_v23  ;;  %v10307_v11 = vld [vmem:[%s11577_s17 + $0xee0] ss:$8 sps:$4 sm:$0xff]   ;;  %v10314_v22 = vld [vmem:[%s11577_s17 + $0x6f4] ss:$8 sps:$4 sm:$0xff]  }
 0x2a2   : > { %v10317_v23 = vld [vmem:[%s11577_s17 + $0xef4] ss:$8 sps:$4 sm:$0xff]  }
 0x2a3   : > { %8099 = vmatpush1.bf16.msra.mxu1 %v10224_v3  ;;  %8507 = vmatpush1.bf16.msra.mxu0 %v10227_v2  ;;  %v10312_v3 = vld [vmem:[%s11577_s17 + $0x6f0] ss:$8 sps:$4 sm:$0xff]  }
 0x2a4   : > { %8100 = vmatprep.subr.bf16.mxu1 %v10232_v5  ;;  %8508 = vmatprep.subr.bf16.mxu0 %v10235_v6  ;;  %v10315_v2 = vld [vmem:[%s11577_s17 + $0xef0] ss:$8 sps:$4 sm:$0xff]   ;;  %v10320_v5 = vld [vmem:[%s11577_s17 + $0x704] ss:$8 sps:$4 sm:$0xff]  }
 0x2a5   : > { %v10323_v6 = vld [vmem:[%s11577_s17 + $0xf04] ss:$8 sps:$4 sm:$0xff]  }
 0x2a6   : > { %8088 = vmatmul.mubr.bf16.gmra.mrb[4].mxu1 %v8933_v29  ;;  %8496 = vmatmul.mubr.bf16.gmra.mrb[4].mxu0 %v8949_v30  ;;  %v8903_v29 = vcombine.low %v12158_v28, %v12163_v31  ;;  %v8919_v30 = vcombine.low %v12168_v32, %v12173_v33  ;;  %v10326_v28 = vld [vmem:[%s11577_s17 + $0x714] ss:$8 sps:$4 sm:$0xff]  }
 0x2a7   : > { %8101 = vmatpush1.bf16.msra.mxu1 %v10230_v34  ;;  %8509 = vmatpush1.bf16.msra.mxu0 %v10233_v35  ;;  %v4436_v34 = vld [vmem:[%s12370_s0 + $0x130] sm:$0x11] }
 0x2a8   : > { %8102 = vmatprep.subr.bf16.mxu1 %v10238_v39  ;;  %8510 = vmatprep.subr.bf16.mxu0 %v10241_v40  ;;  %v4444_v35 = vld [vmem:[%s12370_s0 + $0x170] sm:$0x11]  ;;  %v10318_v39 = vld [vmem:[%s11577_s17 + $0x700] ss:$8 sps:$4 sm:$0xff]   ;;  %v8936_v32 = vcombine.high %v4436_v34, %v4436_v34 }
 0x2a9   : > { %8128 = vmatprep.mubr.bf16.mxu1 %v8904_v42  ;;  %8536 = vmatprep.mubr.bf16.mxu0 %v8920_v43  ;;  %v10321_v40 = vld [vmem:[%s11577_s17 + $0xf00] ss:$8 sps:$4 sm:$0xff]   ;;  %v10329_v31 = vld [vmem:[%s11577_s17 + $0xf14] ss:$8 sps:$4 sm:$0xff]   ;;  %v8952_v33 = vcombine.high %v4444_v35, %v4444_v35  ;;  %v10324_v42 = vld [vmem:[%s11577_s17 + $0x710] ss:$8 sps:$4 sm:$0xff]  }
 0x2aa   : > { %v10327_v43 = vld [vmem:[%s11577_s17 + $0xf10] ss:$8 sps:$4 sm:$0xff]  }
 0x2ab   : > { %8103 = vmatpush1.bf16.msra.mxu1 %v10236_v44  ;;  %8511 = vmatpush1.bf16.msra.mxu0 %v10239_v45  ;;  %v10332_v44 = vld [vmem:[%s11577_s17 + $0x724] ss:$8 sps:$4 sm:$0xff]  }
 0x2ac   : > { %8104 = vmatprep.subr.bf16.mxu1 %v10244_v46  ;;  %8512 = vmatprep.subr.bf16.mxu0 %v10247_v36  ;;  %v10335_v45 = vld [vmem:[%s11577_s17 + $0xf24] ss:$8 sps:$4 sm:$0xff]   ;;  %v12256_v46 = vld [vmem:[%s12370_s0 + $0x38] sm:$0xff]  ;;  %v8935_v36 = vcombine.low %v4436_v34, %v4436_v34 }
 0x2ad   : > { %v10396_v34 = vld [vmem:[%s11577_s17 + $0x7d0] ss:$8 sps:$4 sm:$0xff]  }
 0x2af   : > { %8105 = vmatpush1.bf16.msra.mxu1 %v10242_v37  ;;  %8513 = vmatpush1.bf16.msra.mxu0 %v10245_v38  ;;  %v8951_v37 = vcombine.low %v4444_v35, %v4444_v35  ;;  %v12261_v38 = vld [vmem:[%s12370_s0 + $0xb8] sm:$0xff] }
 0x2b0   : > { %8106 = vmatprep.subr.bf16.mxu1 %v10250_v41  ;;  %8514 = vmatprep.subr.bf16.mxu0 %v10253_v47  ;;  %v12266_v41 = vld [vmem:[%s12370_s0 + $0x78] sm:$0xff] }
 0x2b1   : > { %v12271_v47 = vld [vmem:[%s12370_s0 + $0xf8] sm:$0xff] }
 0x2b2   : > { %v10399_v35 = vld [vmem:[%s11577_s17 + $0xfd0] ss:$8 sps:$4 sm:$0xff]  }
 0x2b3   : > { %8107 = vmatpush1.bf16.msra.mxu1 %v10248_v48  ;;  %8515 = vmatpush1.bf16.msra.mxu0 %v10251_v49  ;;  %v10330_v48 = vld [vmem:[%s11577_s17 + $0x720] ss:$8 sps:$4 sm:$0xff]  }
 0x2b4   : > { %8108 = vmatprep.subr.bf16.mxu1 %v10256_v50  ;;  %8516 = vmatprep.subr.bf16.mxu0 %v10259_v51  ;;  %v10333_v49 = vld [vmem:[%s11577_s17 + $0xf20] ss:$8 sps:$4 sm:$0xff]   ;;  %v10338_v50 = vld [vmem:[%s11577_s17 + $0x734] ss:$8 sps:$4 sm:$0xff]  }
 0x2b5   : > { %v10341_v51 = vld [vmem:[%s11577_s17 + $0xf34] ss:$8 sps:$4 sm:$0xff]  }
 0x2b7   : > { %8109 = vmatpush1.bf16.msra.mxu1 %v10254_v54  ;;  %8517 = vmatpush1.bf16.msra.mxu0 %v10257_v55  ;;  %v8906_v54 = vcombine.high %v12256_v46, %v12261_v38  ;;  %v8922_v55 = vcombine.high %v12266_v41, %v12271_v47 }
 0x2b8   : > { %8110 = vmatprep.subr.bf16.mxu1 %v10262_v58  ;;  %8518 = vmatprep.subr.bf16.mxu0 %v10265_v59  ;;  %v10336_v58 = vld [vmem:[%s11577_s17 + $0x730] ss:$8 sps:$4 sm:$0xff]  }
 0x2b9   : > { %v10339_v59 = vld [vmem:[%s11577_s17 + $0xf30] ss:$8 sps:$4 sm:$0xff]  }
 0x2bb   : > { %8111 = vmatpush1.bf16.msra.mxu1 %v10260_v60  ;;  %8519 = vmatpush1.bf16.msra.mxu0 %v10263_v61  ;;  %v10344_v60 = vld [vmem:[%s11577_s17 + $0x744] ss:$8 sps:$4 sm:$0xff]  }
 0x2bc   : > { %8112 = vmatprep.subr.bf16.mxu1 %v10268_v62  ;;  %8520 = vmatprep.subr.bf16.mxu0 %v10271_v52  ;;  %v10347_v61 = vld [vmem:[%s11577_s17 + $0xf44] ss:$8 sps:$4 sm:$0xff]   ;;  %v10342_v62 = vld [vmem:[%s11577_s17 + $0x740] ss:$8 sps:$4 sm:$0xff]  }
 0x2bd   : > { %v10345_v52 = vld [vmem:[%s11577_s17 + $0xf40] ss:$8 sps:$4 sm:$0xff]  }
 0x2bf   : > { %8113 = vmatpush1.bf16.msra.mxu1 %v10266_v53  ;;  %8521 = vmatpush1.bf16.msra.mxu0 %v10269_v56  ;;  %v10350_v53 = vld [vmem:[%s11577_s17 + $0x754] ss:$8 sps:$4 sm:$0xff]  }
 0x2c0   : > { %8114 = vmatprep.subr.bf16.mxu1 %v10274_v57  ;;  %8522 = vmatprep.subr.bf16.mxu0 %v10277_v63  ;;  %v10353_v56 = vld [vmem:[%s11577_s17 + $0xf54] ss:$8 sps:$4 sm:$0xff]   ;;  %v10348_v57 = vld [vmem:[%s11577_s17 + $0x750] ss:$8 sps:$4 sm:$0xff]  }
 0x2c1   : > { %v10351_v63 = vld [vmem:[%s11577_s17 + $0xf50] ss:$8 sps:$4 sm:$0xff]  }
 0x2c3   : > { %8115 = vmatpush1.bf16.msra.mxu1 %v10272_v8  ;;  %8523 = vmatpush1.bf16.msra.mxu0 %v10275_v9  ;;  %v10356_v8 = vld [vmem:[%s11577_s17 + $0x764] ss:$8 sps:$4 sm:$0xff]  }
 0x2c4   : > { %8116 = vmatprep.subr.bf16.mxu1 %v10280_v12  ;;  %8524 = vmatprep.subr.bf16.mxu0 %v10283_v13  ;;  %v10359_v9 = vld [vmem:[%s11577_s17 + $0xf64] ss:$8 sps:$4 sm:$0xff]   ;;  %v10354_v12 = vld [vmem:[%s11577_s17 + $0x760] ss:$8 sps:$4 sm:$0xff]  }
 0x2c5   : > { %v10357_v13 = vld [vmem:[%s11577_s17 + $0xf60] ss:$8 sps:$4 sm:$0xff]  }
 0x2c7   : > { %8117 = vmatpush1.bf16.msra.mxu1 %v10278_v14  ;;  %8525 = vmatpush1.bf16.msra.mxu0 %v10281_v15  ;;  %v10362_v14 = vld [vmem:[%s11577_s17 + $0x774] ss:$8 sps:$4 sm:$0xff]  }
 0x2c8   : > { %8118 = vmatprep.subr.bf16.mxu1 %v10286_v16  ;;  %8526 = vmatprep.subr.bf16.mxu0 %v10289_v17  ;;  %v10365_v15 = vld [vmem:[%s11577_s17 + $0xf74] ss:$8 sps:$4 sm:$0xff]   ;;  %v10360_v16 = vld [vmem:[%s11577_s17 + $0x770] ss:$8 sps:$4 sm:$0xff]  }
 0x2c9   : > { %v10363_v17 = vld [vmem:[%s11577_s17 + $0xf70] ss:$8 sps:$4 sm:$0xff]  }
 0x2cb   : > { %8119 = vmatpush1.bf16.msra.mxu1 %v10284_v18  ;;  %8527 = vmatpush1.bf16.msra.mxu0 %v10287_v19  ;;  %v10368_v18 = vld [vmem:[%s11577_s17 + $0x784] ss:$8 sps:$4 sm:$0xff]  }
 0x2cc   : > { %8120 = vmatprep.subr.bf16.mxu1 %v10292_v20  ;;  %8528 = vmatprep.subr.bf16.mxu0 %v10295_v21  ;;  %v10371_v19 = vld [vmem:[%s11577_s17 + $0xf84] ss:$8 sps:$4 sm:$0xff]   ;;  %v10366_v20 = vld [vmem:[%s11577_s17 + $0x780] ss:$8 sps:$4 sm:$0xff]  }
 0x2cd   : > { %v10369_v21 = vld [vmem:[%s11577_s17 + $0xf80] ss:$8 sps:$4 sm:$0xff]  }
 0x2cf   : > { %8121 = vmatpush1.bf16.msra.mxu1 %v10290_v4  ;;  %8529 = vmatpush1.bf16.msra.mxu0 %v10293_v7  ;;  %v10374_v4 = vld [vmem:[%s11577_s17 + $0x794] ss:$8 sps:$4 sm:$0xff]  }
 0x2d0   : > { %8122 = vmatprep.subr.bf16.mxu1 %v10298_v24  ;;  %8530 = vmatprep.subr.bf16.mxu0 %v10301_v25  ;;  %v10377_v7 = vld [vmem:[%s11577_s17 + $0xf94] ss:$8 sps:$4 sm:$0xff]   ;;  %v10372_v24 = vld [vmem:[%s11577_s17 + $0x790] ss:$8 sps:$4 sm:$0xff]  }
 0x2d1   : > { %v10375_v25 = vld [vmem:[%s11577_s17 + $0xf90] ss:$8 sps:$4 sm:$0xff]  }
 0x2d3   : > { %8123 = vmatpush1.bf16.msra.mxu1 %v10296_v26  ;;  %8531 = vmatpush1.bf16.msra.mxu0 %v10299_v27  ;;  %v10380_v26 = vld [vmem:[%s11577_s17 + $0x7a4] ss:$8 sps:$4 sm:$0xff]  }
 0x2d4   : > { %8124 = vmatprep.subr.bf16.mxu1 %v10305_v0  ;;  %8532 = vmatprep.subr.bf16.mxu0 %v10309_v1  ;;  %v10383_v27 = vld [vmem:[%s11577_s17 + $0xfa4] ss:$8 sps:$4 sm:$0xff]   ;;  %v10378_v0 = vld [vmem:[%s11577_s17 + $0x7a0] ss:$8 sps:$4 sm:$0xff]  }
 0x2d5   : > { %v10381_v1 = vld [vmem:[%s11577_s17 + $0xfa0] ss:$8 sps:$4 sm:$0xff]  }
 0x2d7   : > { %8125 = vmatpush1.bf16.msra.mxu1 %v10303_v10  ;;  %8533 = vmatpush1.bf16.msra.mxu0 %v10307_v11  ;;  %v10386_v10 = vld [vmem:[%s11577_s17 + $0x7b4] ss:$8 sps:$4 sm:$0xff]  }
 0x2d8   : > { %8126 = vmatprep.subr.bf16.mxu1 %v10314_v22  ;;  %8534 = vmatprep.subr.bf16.mxu0 %v10317_v23  ;;  %v10389_v11 = vld [vmem:[%s11577_s17 + $0xfb4] ss:$8 sps:$4 sm:$0xff]   ;;  %v10384_v22 = vld [vmem:[%s11577_s17 + $0x7b0] ss:$8 sps:$4 sm:$0xff]  }
 0x2d9   : > { %v10387_v23 = vld [vmem:[%s11577_s17 + $0xfb0] ss:$8 sps:$4 sm:$0xff]  }
 0x2db   : > { %8127 = vmatpush1.bf16.msra.mxu1 %v10312_v3  ;;  %8535 = vmatpush1.bf16.msra.mxu0 %v10315_v2  ;;  %v10392_v3 = vld [vmem:[%s11577_s17 + $0x7c4] ss:$8 sps:$4 sm:$0xff]  }
 0x2dc   : > { %8147 = vmatprep.subr.bf16.mxu1 %v10320_v5  ;;  %8555 = vmatprep.subr.bf16.mxu0 %v10323_v6  ;;  %v10395_v2 = vld [vmem:[%s11577_s17 + $0xfc4] ss:$8 sps:$4 sm:$0xff]   ;;  %v10390_v5 = vld [vmem:[%s11577_s17 + $0x7c0] ss:$8 sps:$4 sm:$0xff]  }
 0x2dd   : > { %v10393_v6 = vld [vmem:[%s11577_s17 + $0xfc0] ss:$8 sps:$4 sm:$0xff]  }
 0x2de   : > { %8129 = vmatmul.mubr.bf16.vlgmr.msra.gmra.mrb[0].mxu1 %v8903_v29  ;;  %8537 = vmatmul.mubr.bf16.vlgmr.msra.gmra.mrb[0].mxu0 %v8919_v30  ;;  %v10398_v29 = vld [vmem:[%s11577_s17 + $0x7d4] ss:$8 sps:$4 sm:$0xff]  }
 0x2df   : > { %8148 = vmatpush1.bf16.msra.mxu1 %v10318_v39  ;;  %8556 = vmatpush1.bf16.msra.mxu0 %v10321_v40  ;;  %v10401_v30 = vld [vmem:[%s11577_s17 + $0xfd4] ss:$8 sps:$4 sm:$0xff]   ;;  %v10407_v39 = vld [vmem:[%s11577_s17 + $0x7e4] ss:$8 sps:$4 sm:$0xff]  }
 0x2e0   : > { %8149 = vmatprep.subr.bf16.mxu1 %v10326_v28  ;;  %8557 = vmatprep.subr.bf16.mxu0 %v10329_v31  ;;  %v10411_v40 = vld [vmem:[%s11577_s17 + $0xfe4] ss:$8 sps:$4 sm:$0xff]   ;;  %v10405_v28 = vld [vmem:[%s11577_s17 + $0x7e0] ss:$8 sps:$4 sm:$0xff]  }
 0x2e1   : > { %8138 = vmatprep.mubr.bf16.mxu1 %v8936_v32  ;;  %8546 = vmatprep.mubr.bf16.mxu0 %v8952_v33  ;;  %v10409_v31 = vld [vmem:[%s11577_s17 + $0xfe0] ss:$8 sps:$4 sm:$0xff]   ;;  %v10414_v32 = vld [vmem:[%s11577_s17 + $0x7f4] ss:$8 sps:$4 sm:$0xff]  }
 0x2e2   : > { %v10417_v33 = vld [vmem:[%s11577_s17 + $0xff4] ss:$8 sps:$4 sm:$0xff]  }
 0x2e3   : > { %8150 = vmatpush1.bf16.msra.mxu1 %v10324_v42  ;;  %8558 = vmatpush1.bf16.msra.mxu0 %v10327_v43  ;;  %v10412_v42 = vld [vmem:[%s11577_s17 + $0x7f0] ss:$8 sps:$4 sm:$0xff]  }
 0x2e4   : > { %8151 = vmatprep.subr.bf16.mxu1 %v10332_v44  ;;  %8559 = vmatprep.subr.bf16.mxu0 %v10335_v45  ;;  %v10415_v43 = vld [vmem:[%s11577_s17 + $0xff0] ss:$8 sps:$4 sm:$0xff]   ;;  %s8889_s17 = sshll.u32 %s10491_s18, 1 }
 0x2e5   : > { %v4437_v44 = vld [vmem:[%s12370_s0 + $0x138] sm:$0x11]  ;;  %p4388_p10 = scmp.lt.s32.totalorder %s8889_s17, 3 }
 0x2e6   : > { %8139 = vmatmul.mubr.bf16.gmra.mrb[4].mxu1 %v8935_v36  ;;  %8547 = vmatmul.mubr.bf16.gmra.mrb[4].mxu0 %v8951_v37  ;;  %v4445_v45 = vld [vmem:[%s12370_s0 + $0x178] sm:$0x11]  ;;  %v8905_v36 = vcombine.low %v12256_v46, %v12261_v38  ;;  %v8921_v37 = vcombine.low %v12266_v41, %v12271_v47 }
 0x2e7   : > { %8152 = vmatpush1.bf16.msra.mxu1 %v10330_v48  ;;  %8560 = vmatpush1.bf16.msra.mxu0 %v10333_v49  ;;  %v8938_v48 = vcombine.high %v4437_v44, %v4437_v44  ;;  %v8954_v49 = vcombine.high %v4445_v45, %v4445_v45  ;;  %s12380_s17 = smov (!%p4388_p10, %s8889_s17), 3 }
 0x2e8   : > { %8153 = vmatprep.subr.bf16.mxu1 %v10338_v50  ;;  %8561 = vmatprep.subr.bf16.mxu0 %v10341_v51  ;;  %v8937_v50 = vcombine.low %v4437_v44, %v4437_v44  ;;  %v8953_v51 = vcombine.low %v4445_v45, %v4445_v45  ;;  %s4390_s20 = scalar_lea.vmem %s12372_s2, %s12380_s17  ;;  %s4395_s25 = scalar_lea.vmem %s12373_s3, %s12380_s17 }
 0x2e9   : > { %8179 = vmatprep.mubr.bf16.mxu1 %v8906_v54  ;;  %8587 = vmatprep.mubr.bf16.mxu0 %v8922_v55 }
 0x2eb   : > { %8154 = vmatpush1.bf16.msra.mxu1 %v10336_v58  ;;  %8562 = vmatpush1.bf16.msra.mxu0 %v10339_v59 }
 0x2ec   : > { %8155 = vmatprep.subr.bf16.mxu1 %v10344_v60  ;;  %8563 = vmatprep.subr.bf16.mxu0 %v10347_v61 }
 0x2ef   : > { %8156 = vmatpush1.bf16.msra.mxu1 %v10342_v62  ;;  %8564 = vmatpush1.bf16.msra.mxu0 %v10345_v52 }
 0x2f0   : > { %8157 = vmatprep.subr.bf16.mxu1 %v10350_v53  ;;  %8565 = vmatprep.subr.bf16.mxu0 %v10353_v56 }
 0x2f3   : > { %8158 = vmatpush1.bf16.msra.mxu1 %v10348_v57  ;;  %8566 = vmatpush1.bf16.msra.mxu0 %v10351_v63 }
 0x2f4   : > { %8159 = vmatprep.subr.bf16.mxu1 %v10356_v8  ;;  %8567 = vmatprep.subr.bf16.mxu0 %v10359_v9 }
 0x2f7   : > { %8160 = vmatpush1.bf16.msra.mxu1 %v10354_v12  ;;  %8568 = vmatpush1.bf16.msra.mxu0 %v10357_v13 }
 0x2f8   : > { %8161 = vmatprep.subr.bf16.mxu1 %v10362_v14  ;;  %8569 = vmatprep.subr.bf16.mxu0 %v10365_v15 }
 0x2fb   : > { %8162 = vmatpush1.bf16.msra.mxu1 %v10360_v16  ;;  %8570 = vmatpush1.bf16.msra.mxu0 %v10363_v17 }
 0x2fc   : > { %8163 = vmatprep.subr.bf16.mxu1 %v10368_v18  ;;  %8571 = vmatprep.subr.bf16.mxu0 %v10371_v19 }
 0x2ff   : > { %8164 = vmatpush1.bf16.msra.mxu1 %v10366_v20  ;;  %8572 = vmatpush1.bf16.msra.mxu0 %v10369_v21 }
 0x300   : > { %8165 = vmatprep.subr.bf16.mxu1 %v10374_v4  ;;  %8573 = vmatprep.subr.bf16.mxu0 %v10377_v7 }
 0x303   : > { %8166 = vmatpush1.bf16.msra.mxu1 %v10372_v24  ;;  %8574 = vmatpush1.bf16.msra.mxu0 %v10375_v25 }
 0x304   : > { %8167 = vmatprep.subr.bf16.mxu1 %v10380_v26  ;;  %8575 = vmatprep.subr.bf16.mxu0 %v10383_v27 }
 0x307   : > { %8168 = vmatpush1.bf16.msra.mxu1 %v10378_v0  ;;  %8576 = vmatpush1.bf16.msra.mxu0 %v10381_v1 }
 0x308   : > { %8169 = vmatprep.subr.bf16.mxu1 %v10386_v10  ;;  %8577 = vmatprep.subr.bf16.mxu0 %v10389_v11 }
 0x30b   : > { %8170 = vmatpush1.bf16.msra.mxu1 %v10384_v22  ;;  %8578 = vmatpush1.bf16.msra.mxu0 %v10387_v23 }
 0x30c   : > { %8171 = vmatprep.subr.bf16.mxu1 %v10392_v3  ;;  %8579 = vmatprep.subr.bf16.mxu0 %v10395_v2 }
 0x30f   : > { %8172 = vmatpush1.bf16.msra.mxu1 %v10390_v5  ;;  %8580 = vmatpush1.bf16.msra.mxu0 %v10393_v6 }
 0x310   : > { %8173 = vmatprep.subr.bf16.mxu1 %v10398_v29  ;;  %8581 = vmatprep.subr.bf16.mxu0 %v10401_v30 }
 0x313   : > { %8174 = vmatpush1.bf16.msra.mxu1 %v10396_v34  ;;  %8582 = vmatpush1.bf16.msra.mxu0 %v10399_v35 }
 0x314   : > { %8175 = vmatprep.subr.bf16.mxu1 %v10407_v39  ;;  %8583 = vmatprep.subr.bf16.mxu0 %v10411_v40 }
 0x317   : > { %8176 = vmatpush1.bf16.msra.mxu1 %v10405_v28  ;;  %8584 = vmatpush1.bf16.msra.mxu0 %v10409_v31 }
 0x318   : > { %8177 = vmatprep.subr.bf16.mxu1 %v10414_v32  ;;  %8585 = vmatprep.subr.bf16.mxu0 %v10417_v33 }
 0x31b   : > { %8178 = vmatpush1.bf16.msra.mxu1 %v10412_v42  ;;  %8586 = vmatpush1.bf16.msra.mxu0 %v10415_v43 }
 0x31e   : > { %8180 = vmatmul.mubr.bf16.vlgmr.msra.gmra.mrb[0].mxu1 %v8905_v36  ;;  %8588 = vmatmul.mubr.bf16.vlgmr.msra.gmra.mrb[0].mxu0 %v8921_v37 }
 0x31f   : > { %8189 = vmatprep.mubr.bf16.mxu1 %v8938_v48  ;;  %8597 = vmatprep.mubr.bf16.mxu0 %v8954_v49 }
 0x326   : > { %8190 = vmatmul.mubr.bf16.gmra.mrb[4].mxu1 %v8937_v50  ;;  %8598 = vmatmul.mubr.bf16.gmra.mrb[4].mxu0 %v8953_v51 }
 0x3f1   : > { %v8181_v54 = vpop.f32.mrb[0].mxu1  ;;  %v8589_v55 = vpop.f32.mrb[0].mxu0 }
 0x3f2   : > { %v9479_v58 = vadd.f32 %v8589_v55, %v8181_v54  ;;  %v8183_v59 = vpop.f32.mrb[1].mxu1  ;;  %v8591_v46 = vpop.f32.mrb[1].mxu0 }
 0x3f3   : > { %v9480_v38 = vadd.f32 %v8591_v46, %v8183_v59  ;;  %v8185_v60 = vpop.f32.mrb[2].mxu1  ;;  %v8593_v41 = vpop.f32.mrb[2].mxu0 }
 0x3f4   : > { %v9481_v47 = vadd.f32 %v8593_v41, %v8185_v60  ;;  %v8187_v61 = vpop.f32.mrb[3].mxu1  ;;  %v8595_v62 = vpop.f32.mrb[3].mxu0 }
 0x3f5   : > { %v9482_v52 = vadd.f32 %v8595_v62, %v8187_v61  ;;  %v8672_v61 = vlaneseq }
 0x3f6   : > { %v8606_v53 = vadd.f32 %v9481_v47, %v9479_v58 }
 0x3f7   : > { %v8616_v56 = vadd.f32 %v9482_v52, %v9480_v38 }
 0x3f9   : > { %v8191_v57 = vpop.f32.mrb[4].mxu1  ;;  %v8599_v63 = vpop.f32.mrb[4].mxu0 }
 0x3fa   : > { %v9483_v8 = vadd.f32 %v8599_v63, %v8191_v57  ;;  %v8193_v9 = vpop.f32.mrb[5].mxu1  ;;  %v8601_v12 = vpop.f32.mrb[5].mxu0  ;;  %v8670_v63 = vld [vmem:[%s4390_s20] sm:$0x3] }
 0x3fb   : > { %v9484_v13 = vadd.f32 %v8601_v12, %v8193_v9  ;;  %v8195_v14 = vpop.f32.mrb[6].mxu1  ;;  %v8603_v15 = vpop.f32.mrb[6].mxu0  ;;  %v8688_v9 = vld [vmem:[%s4395_s25] sm:$0x3] }
 0x3fc   : > { %v8608_v16 = vsel %vm8607_vm0, %v9483_v8, 0.0  ;;  %v8196_v17 = vpop.f32.mrb[7].mxu1  ;;  %v8604_v18 = vpop.f32.mrb[7].mxu0 }
 0x3fd   : > { %v8609_v19 = vadd.f32 %v8608_v16, %v8606_v53  ;;  %v8617_v20 = vsel %vm8607_vm0, %v9484_v13, 0.0 }
 0x3fe   : > { %v8618_v21 = vadd.f32 %v8617_v20, %v8616_v56  ;;  %v8673_v56 = vshrl.u32 %v8672_v61, 7 }
 0x3ff   : > { %v8610_v4 = vrot.slane %v8609_v19, 4 }
 0x400   : > { %v8619_v7 = vrot.slane %v8618_v21, 4  ;;  %v8674_v57 = vsub.s32 0, %v8673_v56 }
 0x401   : > { %v8611_v24 = vadd.f32 %v8610_v4, %v8609_v19 }
 0x402   : > { %v8620_v25 = vadd.f32 %v8619_v7, %v8618_v21  ;;  %v8675_v12 = vrot.slane %v8670_v63, %v8674_v57  ;;  %v8693_v19 = vrot.slane %v8688_v9, %v8674_v57 }
 0x403   : > { %v8612_v26 = vrot.slane %v8611_v24, 2 }
 0x404   : > { %v8621_v27 = vrot.slane %v8620_v25, 2 }
 0x405   : > { %v8613_v0 = vadd.f32 %v8612_v26, %v8611_v24 }
 0x406   : > { %v8622_v1 = vadd.f32 %v8621_v27, %v8620_v25 }
 0x407   : > { %v8614_v10 = vrot.slane %v8613_v0, 1 }
 0x408   : > { %v8623_v11 = vrot.slane %v8622_v1, 1 }
 0x409   : > { %v8615_v22 = vadd.f32 %v8614_v10, %v8613_v0 }
 0x40a   : > { %v8624_v23 = vadd.f32 %v8623_v11, %v8622_v1 }
 0x40b   : > { %v8626_v3 = vmul.f32 0.055555556, %v8615_v22 }
 0x40c   : > { %v8627_v2 = vmul.f32 0.055555556, %v8624_v23 }
 0x40d   : > { %v8628_v5 = vsub.f32 %v9479_v58, %v8626_v3  ;;  %v8630_v6 = vsub.f32 %v9481_v47, %v8626_v3  ;;  %v8632_v29 = vsub.f32 %v9483_v8, %v8626_v3  ;;  %v8678_v8 = vsub.s32 1, %v8673_v56 }
 0x40e   : > { %v8629_v30 = vsub.f32 %v9480_v38, %v8627_v2  ;;  %v8631_v34 = vsub.f32 %v9482_v52, %v8627_v2  ;;  %v8633_v35 = vsub.f32 %v9484_v13, %v8627_v2 }
 0x40f   : > { %v8634_v39 = vmul.f32 %v8628_v5, %v8628_v5  ;;  %v8636_v40 = vmul.f32 %v8630_v6, %v8630_v6  ;;  %v8638_v28 = vmul.f32 %v8632_v29, %v8632_v29  ;;  %v8679_v14 = vrot.slane %v8670_v63, %v8678_v8 }
 0x410   : > { %v8635_v31 = vmul.f32 %v8629_v30, %v8629_v30  ;;  %v8637_v32 = vmul.f32 %v8631_v34, %v8631_v34  ;;  %v8639_v33 = vmul.f32 %v8633_v35, %v8633_v35  ;;  %v8697_v7 = vrot.slane %v8688_v9, %v8678_v8 }
 0x411   : > { %v8640_v42 = vadd.f32 %v8636_v40, %v8634_v39  ;;  %v8641_v43 = vsel %vm8607_vm0, %v8638_v28, 0.0 }
 0x412   : > { %v8649_v44 = vadd.f32 %v8637_v32, %v8635_v31  ;;  %v8650_v45 = vsel %vm8607_vm0, %v8639_v33, 0.0 }
 0x413   : > { %v8642_v36 = vadd.f32 %v8641_v43, %v8640_v42 }
 0x414   : > { %v8651_v37 = vadd.f32 %v8650_v45, %v8649_v44 }
 0x415   : > { %v8643_v48 = vrot.slane %v8642_v36, 4 }
 0x416   : > { %v8652_v49 = vrot.slane %v8651_v37, 4 }
 0x417   : > { %v8644_v50 = vadd.f32 %v8643_v48, %v8642_v36 }
 0x418   : > { %v8653_v51 = vadd.f32 %v8652_v49, %v8651_v37 }
 0x419   : > { %v8645_v54 = vrot.slane %v8644_v50, 2 }
 0x41a   : > { %v8654_v55 = vrot.slane %v8653_v51, 2 }
 0x41b   : > { %v8646_v58 = vadd.f32 %v8645_v54, %v8644_v50 }
 0x41c   : > { %v8655_v59 = vadd.f32 %v8654_v55, %v8653_v51 }
 0x41d   : > { %v8647_v46 = vrot.slane %v8646_v58, 1 }
 0x41e   : > { %v8656_v38 = vrot.slane %v8655_v59, 1 }
 0x41f   : > { %v8648_v60 = vadd.f32 %v8647_v46, %v8646_v58 }
 0x420   : > { %v8657_v41 = vadd.f32 %v8656_v38, %v8655_v59 }
 0x421   : > { %v8658_v47 = vmul.f32 0.055555556, %v8648_v60 }
 0x422   : > { %v8659_v62 = vmul.f32 0.055555556, %v8657_v41 }
 0x423   : > { %v8660_v52 = vadd.f32 1e-05, %v8658_v47 }
 0x424   : > { %v8661_v53 = vadd.f32 1e-05, %v8659_v62 }
 0x425   : > { %10422 = vrsqrt.f32 %v8660_v52 }
 0x426   : > { %10424 = vrsqrt.f32 %v8661_v53 }
 0x42f   : > { %v10423_v13 = vpop.eup %10422 }
 0x430   : > { %v10425_v15 = vpop.eup %10424  ;;  %v8664_v16 = vmul.f32 %v10423_v13, %v8628_v5  ;;  %v8666_v17 = vmul.f32 %v10423_v13, %v8630_v6  ;;  %v8668_v18 = vmul.f32 %v10423_v13, %v8632_v29 }
 0x431   : > { %v8665_v20 = vmul.f32 %v10425_v15, %v8629_v30  ;;  %v8667_v21 = vmul.f32 %v10425_v15, %v8631_v34  ;;  %v8669_v4 = vmul.f32 %v10425_v15, %v8633_v35 }
 0x432   : > { %v8682_v24 = vmul.f32 %v8675_v12, %v8664_v16  ;;  %v8684_v25 = vmul.f32 %v8675_v12, %v8666_v17  ;;  %v8686_v26 = vmul.f32 %v8675_v12, %v8668_v18 }
 0x433   : > { %v8683_v27 = vmul.f32 %v8679_v14, %v8665_v20  ;;  %v8685_v0 = vmul.f32 %v8679_v14, %v8667_v21  ;;  %v8687_v1 = vmul.f32 %v8679_v14, %v8669_v4 }
 0x434   : > { %v8700_v10 = vadd.f32 %v8693_v19, %v8682_v24  ;;  %v8702_v11 = vadd.f32 %v8693_v19, %v8684_v25  ;;  %v8704_v22 = vadd.f32 %v8693_v19, %v8686_v26 }
 0x435   : > { %v8701_v23 = vadd.f32 %v8697_v7, %v8683_v27  ;;  %v8703_v3 = vadd.f32 %v8697_v7, %v8685_v0  ;;  %v8705_v2 = vadd.f32 %v8697_v7, %v8687_v1 }
 0x436   : > { %vm8706_vm1 = vcmp.ge.f32.partialorder %v8700_v10, 0.0  ;;  %vm8708_vm2 = vcmp.ge.f32.partialorder %v8702_v11, 0.0  ;;  %vm8710_vm3 = vcmp.ge.f32.partialorder %v8704_v22, 0.0  ;;  %v8712_v5 = vmul.f32 0.2, %v8700_v10 }
 0x437   : > { %v8714_v6 = vmul.f32 0.2, %v8702_v11  ;;  %v8716_v29 = vmul.f32 0.2, %v8704_v22  ;;  %vm8707_vm4 = vcmp.ge.f32.partialorder %v8701_v23, 0.0  ;;  %vm8709_vm5 = vcmp.ge.f32.partialorder %v8703_v3, 0.0 }
 0x438   : > { %v8718_v30 = vsel %vm8706_vm1, %v8700_v10, %v8712_v5  ;;  %vm8711_vm6 = vcmp.ge.f32.partialorder %v8705_v2, 0.0  ;;  %v8713_v34 = vmul.f32 0.2, %v8701_v23  ;;  %v8715_v35 = vmul.f32 0.2, %v8703_v3  ;;  %8753 = sbr.rel (!%p10506_p5) target bundleno = 1095 (0x447), region = 92 }
 0x439   : > { %v8720_v39 = vsel %vm8708_vm2, %v8702_v11, %v8714_v6  ;;  %v8722_v40 = vsel %vm8710_vm3, %v8704_v22, %v8716_v29  ;;  %v8717_v28 = vmul.f32 0.2, %v8705_v2 }
 0x43a   : > { %v8719_v31 = vsel %vm8707_vm4, %v8701_v23, %v8713_v34  ;;  %v8721_v32 = vsel %vm8709_vm5, %v8703_v3, %v8715_v35 }
 0x43b   : > { %v8723_v33 = vsel %vm8711_vm6, %v8705_v2, %v8717_v28  ;;  %v9475_v42 = vpack.c.bf16 %v8719_v31, %v8718_v30  ;;  %v9476_v43 = vpack.c.bf16 %v8721_v32, %v8720_v39 }
 0x43c   : > { %v9477_v44 = vpack.c.bf16 %v8723_v33, %v8722_v40 }
 0x43d   : > { %8744 = vst [vmem:[%s4385_s27] sm:$0xff] %v9475_v42  ;;  %8745 = vst [vmem:[%s4385_s27 + $0x8] sm:$0xff] %v9476_v43 }
 0x43e   : > { %8746 = vst [vmem:[%s4385_s27 + $0x10] sm:$0x11] %v9477_v44 }
 0x444   : > { %v8788_v45 = vld [vmem:[%s4385_s27] sm:$0xff]  ;;  %v8790_v36 = vld [vmem:[%s4385_s27 + $0x8] sm:$0xff] }
 0x445   : > { %v8792_v37 = vld [vmem:[%s4385_s27 + $0x10] sm:$0xff]  ;;  %8789 = vst [vmem:[%s8756_s29] sm:$0xff] %v8788_v45  ;;  %8791 = vst [vmem:[%s8756_s29 + $0x10] sm:$0xff] %v8790_v36 }
 0x446   : > { %8793 = vst [vmem:[%s8756_s29 + $0x20] sm:$0xff] %v8792_v37 }
 0x447 PF: > { %p11_p11 = scmp.ge.s32.totalorder %s10494_s19, 4   ;;  %s12376_s15 = smov %s10444_s16 }
 0x448   : > { %s12377_s16 = smov %s10504_s22  ;;  %s12378_s17 = smov %s10494_s19 }
 0x449   :  { %13 = sbr.rel (!%p11_p11) target bundleno = 2 (0x2), region = 173 }

</bundles_post_ra>
